<compile_context>
chip_gen: v5e
topology: v5e:2x2
jax: 0.10.0
libtpu: 0.0.40
codegen_flags: <defaults>
</compile_context>

<pallas_src>
import math

import numpy as np
import jax
import jax.numpy as jnp
from jax.experimental import pallas as pl
from jax.experimental.pallas import tpu as pltpu


# ---------------------------------------------------------------------------
# In-kernel helpers (operate on traced VMEM values)
# ---------------------------------------------------------------------------

def _gn_silu(x, M, Mt, gamma, beta, cnt, eps):
    """Fused GroupNorm + SiLU.  x: (R, C) f32; M: (C, G) group one-hot; Mt: (G, C)."""
    s = jnp.sum(x, axis=0, keepdims=True)                                # (1, C)
    ss = jnp.sum(x * x, axis=0, keepdims=True)                           # (1, C)
    gsum = jnp.dot(s, M, preferred_element_type=jnp.float32)             # (1, G)
    gsq = jnp.dot(ss, M, preferred_element_type=jnp.float32)             # (1, G)
    mean_g = gsum / cnt
    var_g = gsq / cnt - mean_g * mean_g
    mean_c = jnp.dot(mean_g, Mt, preferred_element_type=jnp.float32)     # (1, C)
    var_c = jnp.dot(var_g, Mt, preferred_element_type=jnp.float32)       # (1, C)
    xn = (x - mean_c) * jax.lax.rsqrt(var_c + eps)
    xn = xn * gamma + beta
    return xn * jax.nn.sigmoid(xn)                                        # SiLU


def _conv3x3(x_flat, H, W, C, w, b):
    """3x3 same-padding conv as ONE im2col matmul on the MXU.

    x_flat: (H*W, C) f32 ; w: (9*C, Cout) with (dy, dx, cin) row ordering ;
    b: (1, Cout).  Zero padding is built in VMEM (no HBM round trip).
    """
    x = x_flat.reshape(H, W, C)
    zr = jnp.zeros((1, W, C), x.dtype)
    xp = jnp.concatenate([zr, x, zr], axis=0)                             # (H+2, W, C)
    zc = jnp.zeros((H + 2, 1, C), x.dtype)
    xp = jnp.concatenate([zc, xp, zc], axis=1)                            # (H+2, W+2, C)
    cols = [xp[dy:dy + H, dx:dx + W, :].reshape(H * W, C)
            for dy in range(3) for dx in range(3)]
    patches = jnp.concatenate(cols, axis=-1)                              # (HW, 9C)
    return jnp.dot(patches, w, preferred_element_type=jnp.float32) + b


# ---------------------------------------------------------------------------
# Kernel A: channel concat + ResnetBlock2D (no upsample), fully fused
# ---------------------------------------------------------------------------

def _make_resnet_kernel(H, W, Ca, Cb, Cout, G1, G2, eps, inv_scale):
    HW = H * W
    Ct = Ca + Cb
    cnt1 = float(HW * (Ct // G1))
    cnt2 = float(HW * (Cout // G2))

    def kernel(hid_ref, res_ref, m1_ref, m1t_ref, m2_ref, m2t_ref,
               g1_ref, be1_ref, w1_ref, b1_ref,
               g2_ref, be2_ref, w2_ref, b2_ref,
               ws_ref, bs_ref, o_ref):
        a = hid_ref[0].astype(jnp.float32).reshape(HW, Ca)
        b = res_ref[0].astype(jnp.float32).reshape(HW, Cb)
        x = jnp.concatenate([a, b], axis=-1)                              # torch.cat(dim=1)
        h = _gn_silu(x, m1_ref[...], m1t_ref[...], g1_ref[...], be1_ref[...], cnt1, eps)
        h = _conv3x3(h, H, W, Ct, w1_ref[...], b1_ref[...])               # (HW, Cout)
        # TODO(synk): time-embedding (temb) projection path not implemented; forward assumes temb=None.
        h = _gn_silu(h, m2_ref[...], m2t_ref[...], g2_ref[...], be2_ref[...], cnt2, eps)
        # dropout(p=0.0) is identity
        h = _conv3x3(h, H, W, Cout, w2_ref[...], b2_ref[...])
        short = jnp.dot(x, ws_ref[...], preferred_element_type=jnp.float32) + bs_ref[...]
        o_ref[0] = ((short + h) * inv_scale).reshape(H, W, Cout).astype(o_ref.dtype)

    return kernel


# ---------------------------------------------------------------------------
# Kernel B: skip path (GN->SiLU->conv3x3 + FIR-up(skip)) and ResnetBlock2D-up
#           (FIR 2x upsample, use_in_shortcut=True), fully fused
# ---------------------------------------------------------------------------

def _make_up_skip_kernel(H, W, Hs, Ws, Cout, G, eps, inv_scale):
    HW = H * W
    H2, W2 = 2 * H, 2 * W
    HW2 = H2 * W2
    cnt_lo = float(HW * (Cout // G))
    cnt_hi = float(HW2 * (Cout // G))

    def kernel(y_ref, sk_ref, uup_ref, usk_ref, m_ref, mt_ref,
               sg_ref, sb_ref, sw_ref, sbias_ref,
               ug1_ref, ub1_ref, uw1_ref, ubb1_ref,
               ug2_ref, ub2_ref, uw2_ref, ubb2_ref,
               uws_ref, ubs_ref,
               hid_out_ref, skip_out_ref):
        y = y_ref[0].astype(jnp.float32).reshape(HW, Cout)
        M = m_ref[...]
        Mt = mt_ref[...]

        # ---- skip path: GN -> SiLU -> conv3x3 (Cout -> 3), + FIR-up(skip_in) ----
        s = _gn_silu(y, M, Mt, sg_ref[...], sb_ref[...], cnt_lo, eps)
        s = _conv3x3(s, H, W, Cout, sw_ref[...], sbias_ref[...])          # (HW, 3)
        sk = sk_ref[0].astype(jnp.float32).reshape(Hs * Ws, 3)
        sk_up = jnp.dot(usk_ref[...], sk, preferred_element_type=jnp.float32)   # (HW, 3)
        skip_out_ref[0] = (sk_up + s).reshape(H, W, 3).astype(skip_out_ref.dtype)

        # ---- resnet_up: GN -> SiLU -> FIR-up(h, x) -> conv1 -> GN -> SiLU
        #                 -> conv2 ; + conv1x1(FIR-up(x)) ; / sqrt(2) ----
        h = _gn_silu(y, M, Mt, ug1_ref[...], ub1_ref[...], cnt_lo, eps)
        U = uup_ref[...]                                                   # (4HW, HW)
        x_up = jnp.dot(U, y, preferred_element_type=jnp.float32)           # (4HW, Cout)
        h_up = jnp.dot(U, h, preferred_element_type=jnp.float32)           # (4HW, Cout)
        h = _conv3x3(h_up, H2, W2, Cout, uw1_ref[...], ubb1_ref[...])
        h = _gn_silu(h, M, Mt, ug2_ref[...], ub2_ref[...], cnt_hi, eps)
        h = _conv3x3(h, H2, W2, Cout, uw2_ref[...], ubb2_ref[...])
        short = jnp.dot(x_up, uws_ref[...], preferred_element_type=jnp.float32) + ubs_ref[...]
        hid_out_ref[0] = ((short + h) * inv_scale).reshape(H2, W2, Cout).astype(hid_out_ref.dtype)

    return kernel


# ---------------------------------------------------------------------------
# Wrapper helpers
# ---------------------------------------------------------------------------

def _group_onehot(C, G):
    return (jnp.arange(C)[:, None] // (C // G) == jnp.arange(G)[None, :]).astype(jnp.float32)


def _fir_up_1d(n):
    """Dense 1D operator of FIR (1,3,3,1) 2x upsampling (upfirdn up=2, pad=(2,1))."""
    u = np.zeros((2 * n, n), np.float32)
    for i in range(n):
        u[2 * i, i] = 0.75
        if i > 0:
            u[2 * i, i - 1] = 0.25
        u[2 * i + 1, i] = 0.75
        if i + 1 < n:
            u[2 * i + 1, i + 1] = 0.25
    return u


def _fir_up_2d(h, w):
    """(4hw, hw) operator acting on row-major flattened (h, w) spatial maps."""
    return jnp.asarray(np.kron(_fir_up_1d(h), _fir_up_1d(w)))


def _rep_spec(shape):
    zeros = (0,) * len(shape)
    return pl.BlockSpec(tuple(shape), lambda n: zeros)


def _batch_spec(shape):
    tail = (0,) * (len(shape) - 1)
    return pl.BlockSpec((1,) + tuple(shape[1:]), lambda n: (n,) + tail)


# ---------------------------------------------------------------------------
# Module forward
# ---------------------------------------------------------------------------

def skip_up_block_2d(hidden, res_hidden, skip_sample, params, *, eps=1e-6,
                     output_scale_factor=math.sqrt(2.0)):
    """Fused SkipUpBlock2D forward (num_layers=1, temb=None, add_upsample=True).

    hidden:      (N, H, W, C_prev)   NHWC
    res_hidden:  (N, H, W, C_skip)   NHWC (last entry of res_hidden_states_tuple)
    skip_sample: (N, H//2, W//2, 3)  NHWC, or None
    returns: (hidden_out (N, 2H, 2W, C_out), skip_out (N, H, W, 3))
    """
    N, H, W, Ca = hidden.shape
    Cb = res_hidden.shape[-1]
    Ct = Ca + Cb
    p1, ps, pu = params["resnet1"], params["skip"], params["resnet_up"]
    Cout = p1["w1"].shape[-1]
    G1 = min(Ct // 4, 32)
    G2 = min(Cout // 4, 32)
    inv_scale = 1.0 / output_scale_factor
    dtype = hidden.dtype

    m1 = _group_onehot(Ct, G1)
    m2 = _group_onehot(Cout, G2)

    def rw(w):   # HWIO (3,3,Cin,Cout) -> (9*Cin, Cout), (dy, dx, cin) row order
        kh, kw, ci, co = w.shape
        return w.reshape(kh * kw * ci, co)

    def rb(b):
        return b.reshape(1, -1)

    # ---- kernel A: concat + ResnetBlock2D (no upsample) ----
    kern_a = _make_resnet_kernel(H, W, Ca, Cb, Cout, G1, G2, eps, inv_scale)
    args_a = [hidden, res_hidden, m1, m1.T, m2, m2.T,
              rb(p1["gn1_g"]), rb(p1["gn1_b"]), rw(p1["w1"]), rb(p1["b1"]),
              rb(p1["gn2_g"]), rb(p1["gn2_b"]), rw(p1["w2"]), rb(p1["b2"]),
              p1["ws"], rb(p1["bs"])]
    specs_a = [_batch_spec(hidden.shape), _batch_spec(res_hidden.shape)] + \
              [_rep_spec(a.shape) for a in args_a[2:]]
    y = pl.pallas_call(
        kern_a,
        out_shape=jax.ShapeDtypeStruct((N, H, W, Cout), dtype),
        grid=(N,),
        in_specs=specs_a,
        out_specs=_batch_spec((N, H, W, Cout)),
        compiler_params=pltpu.CompilerParams(dimension_semantics=("parallel",)),
    )(*args_a)

    # ---- kernel B: skip path + ResnetBlock2D with FIR 2x upsample ----
    Hs, Ws = H // 2, W // 2
    if skip_sample is None:
        # upsample(0) == 0, so zeros reproduce the `skip_sample = 0` branch.
        skip_sample = jnp.zeros((N, Hs, Ws, 3), dtype)
    u_up = _fir_up_2d(H, W)        # (4HW, HW)
    u_sk = _fir_up_2d(Hs, Ws)      # (HW, Hs*Ws)

    # TODO(synk): for production resolutions (H, W >= 64) the whole-image block +
    # dense FIR operator will not fit v7x's 64 MiB VMEM; tile spatially by row
    # strips with a 1-row halo instead.
    kern_b = _make_up_skip_kernel(H, W, Hs, Ws, Cout, G2, eps, inv_scale)
    args_b = [y, skip_sample, u_up, u_sk, m2, m2.T,
              rb(ps["gn_g"]), rb(ps["gn_b"]), rw(ps["w"]), rb(ps["b"]),
              rb(pu["gn1_g"]), rb(pu["gn1_b"]), rw(pu["w1"]), rb(pu["b1"]),
              rb(pu["gn2_g"]), rb(pu["gn2_b"]), rw(pu["w2"]), rb(pu["b2"]),
              pu["ws"], rb(pu["bs"])]
    specs_b = [_batch_spec(y.shape), _batch_spec(skip_sample.shape)] + \
              [_rep_spec(a.shape) for a in args_b[2:]]
    hidden_out, skip_out = pl.pallas_call(
        kern_b,
        out_shape=(jax.ShapeDtypeStruct((N, 2 * H, 2 * W, Cout), dtype),
                   jax.ShapeDtypeStruct((N, H, W, 3), dtype)),
        grid=(N,),
        in_specs=specs_b,
        out_specs=(_batch_spec((N, 2 * H, 2 * W, Cout)),
                   _batch_spec((N, H, W, 3))),
        compiler_params=pltpu.CompilerParams(dimension_semantics=("parallel",)),
    )(*args_b)
    return hidden_out, skip_out


# ---------------------------------------------------------------------------
# Pure-JAX reference (independent implementation, for correctness check)
# ---------------------------------------------------------------------------

def _ref_groupnorm(x, gamma, beta, groups, eps):
    N, H, W, C = x.shape
    xr = x.reshape(N, H, W, groups, C // groups)
    mean = xr.mean(axis=(1, 2, 4), keepdims=True)
    var = ((xr - mean) ** 2).mean(axis=(1, 2, 4), keepdims=True)
    xn = ((xr - mean) / jnp.sqrt(var + eps)).reshape(N, H, W, C)
    return xn * gamma + beta


def _ref_silu(x):
    return x * jax.nn.sigmoid(x)


def _ref_conv3x3(x, w, b):
    y = jax.lax.conv_general_dilated(
        x, w, (1, 1), "SAME", dimension_numbers=("NHWC", "HWIO", "NHWC"),
        precision=jax.lax.Precision.HIGHEST)
    return y + b


def _ref_fir_up2x(x):
    """upfirdn2d(x, outer([1,3,3,1]), up=2, pad=(2,1)), gain=factor^2 (diffusers upsample_2d)."""
    N, H, W, C = x.shape
    k1 = jnp.array([1.0, 3.0, 3.0, 1.0], jnp.float32)
    k2 = jnp.outer(k1, k1)
    k2 = k2 / jnp.sum(k2) * 4.0
    w = jnp.tile(k2[:, :, None, None], (1, 1, 1, C))          # depthwise (4,4,1,C)
    return jax.lax.conv_general_dilated(
        x, w, window_strides=(1, 1), padding=((2, 2), (2, 2)),
        lhs_dilation=(2, 2), dimension_numbers=("NHWC", "HWIO", "NHWC"),
        feature_group_count=C, precision=jax.lax.Precision.HIGHEST)


def _ref_resnet_block(x, p, g_in, g_out, eps, scale, fir_up=False):
    h = _ref_silu(_ref_groupnorm(x, p["gn1_g"], p["gn1_b"], g_in, eps))
    inp = x
    if fir_up:
        inp = _ref_fir_up2x(inp)
        h = _ref_fir_up2x(h)
    h = _ref_conv3x3(h, p["w1"], p["b1"])
    h = _ref_silu(_ref_groupnorm(h, p["gn2_g"], p["gn2_b"], g_out, eps))
    h = _ref_conv3x3(h, p["w2"], p["b2"])
    short = jnp.einsum("nhwc,cd->nhwd", inp, p["ws"],
                       precision=jax.lax.Precision.HIGHEST) + p["bs"]
    return (short + h) / scale


def _ref_forward(hidden, res_hidden, skip_sample, params, eps, scale):
    Ct = hidden.shape[-1] + res_hidden.shape[-1]
    Cout = params["resnet1"]["w1"].shape[-1]
    G1 = min(Ct // 4, 32)
    G2 = min(Cout // 4, 32)
    x = jnp.concatenate([hidden, res_hidden], axis=-1)
    h = _ref_resnet_block(x, params["resnet1"], G1, G2, eps, scale)
    ps = params["skip"]
    s = _ref_silu(_ref_groupnorm(h, ps["gn_g"], ps["gn_b"], G2, eps))
    s = _ref_conv3x3(s, ps["w"], ps["b"])
    sk = _ref_fir_up2x(skip_sample) if skip_sample is not None else 0.0
    skip_out = sk + s
    hidden_out = _ref_resnet_block(h, params["resnet_up"], G2, G2, eps, scale, fir_up=True)
    return hidden_out, skip_out


# ---------------------------------------------------------------------------
# Main
# ---------------------------------------------------------------------------

if __name__ == "__main__":
    # SkipUpBlock2D(in_channels=32, prev_output_channel=32, out_channels=32,
    #               num_layers=1, resnet_eps=1e-6, output_scale_factor=sqrt(2),
    #               add_upsample=True), forward(temb=None, skip_sample given).
    N, Cin_skip, Cprev, Cout, H, W = 2, 32, 32, 32, 16, 16
    eps = 1e-6
    scale = math.sqrt(2.0)
    Ct = Cprev + Cin_skip

    key = jax.random.PRNGKey(0)
    ks = iter(jax.random.split(key, 64))

    def nrm(shape, s=0.05):
        return s * jax.random.normal(next(ks), shape, jnp.float32)

    params = {
        "resnet1": {
            "gn1_g": 1.0 + nrm((Ct,), 0.1), "gn1_b": nrm((Ct,)),
            "w1": nrm((3, 3, Ct, Cout)), "b1": nrm((Cout,)),
            "gn2_g": 1.0 + nrm((Cout,), 0.1), "gn2_b": nrm((Cout,)),
            "w2": nrm((3, 3, Cout, Cout)), "b2": nrm((Cout,)),
            # conv_shortcut (1x1) since in_channels != out_channels
            "ws": nrm((Ct, Cout)), "bs": nrm((Cout,)),
        },
        "skip": {   # skip_norm (SVDGroupNorm) + skip_conv (SVDConv2d, Cout -> 3)
            "gn_g": 1.0 + nrm((Cout,), 0.1), "gn_b": nrm((Cout,)),
            "w": nrm((3, 3, Cout, 3)), "b": nrm((3,)),
        },
        "resnet_up": {  # ResnetBlock2D(up=True, kernel='fir', use_in_shortcut=True)
            "gn1_g": 1.0 + nrm((Cout,), 0.1), "gn1_b": nrm((Cout,)),
            "w1": nrm((3, 3, Cout, Cout)), "b1": nrm((Cout,)),
            "gn2_g": 1.0 + nrm((Cout,), 0.1), "gn2_b": nrm((Cout,)),
            "w2": nrm((3, 3, Cout, Cout)), "b2": nrm((Cout,)),
            "ws": nrm((Cout, Cout)), "bs": nrm((Cout,)),
        },
    }

    # PyTorch inputs would be NCHW; the kernels use NHWC.
    hidden_nchw = jax.random.normal(next(ks), (N, Cprev, H, W), jnp.float32)
    res_nchw = jax.random.normal(next(ks), (N, Cin_skip, H, W), jnp.float32)
    skip_nchw = jax.random.normal(next(ks), (N, 3, H // 2, W // 2), jnp.float32)
    hidden = jnp.transpose(hidden_nchw, (0, 2, 3, 1))
    res = jnp.transpose(res_nchw, (0, 2, 3, 1))
    skip_in = jnp.transpose(skip_nchw, (0, 2, 3, 1))

    hidden_out, skip_out = skip_up_block_2d(
        hidden, res, skip_in, params, eps=eps, output_scale_factor=scale)
    hidden_out = jax.block_until_ready(hidden_out)
    skip_out = jax.block_until_ready(skip_out)
    assert hidden_out.shape == (N, 2 * H, 2 * W, Cout), hidden_out.shape
    assert skip_out.shape == (N, H, W, 3), skip_out.shape

    ref_hidden, ref_skip = _ref_forward(hidden, res, skip_in, params, eps, scale)
    ref_hidden = jax.block_until_ready(ref_hidden)
    err_h = float(jnp.max(jnp.abs(hidden_out - ref_hidden)))
    err_s = float(jnp.max(jnp.abs(skip_out - ref_skip)))
    assert jnp.allclose(hidden_out, ref_hidden, atol=2e-3, rtol=2e-3), err_h
    assert jnp.allclose(skip_out, ref_skip, atol=2e-3, rtol=2e-3), err_s

    print("KERNEL_OK")
</pallas_src>

<mosaic_0001>
module attributes {stable_mosaic.version = 11 : i64} {
  func.func @kernel(%arg0: i32, %arg1: memref<1x16x16x32xf32, #tpu.memory_space<vmem>>, %arg2: memref<1x16x16x32xf32, #tpu.memory_space<vmem>>, %arg3: memref<64x16xf32, #tpu.memory_space<vmem>>, %arg4: memref<16x64xf32, #tpu.memory_space<vmem>>, %arg5: memref<32x8xf32, #tpu.memory_space<vmem>>, %arg6: memref<8x32xf32, #tpu.memory_space<vmem>>, %arg7: memref<1x64xf32, #tpu.memory_space<vmem>>, %arg8: memref<1x64xf32, #tpu.memory_space<vmem>>, %arg9: memref<576x32xf32, #tpu.memory_space<vmem>>, %arg10: memref<1x32xf32, #tpu.memory_space<vmem>>, %arg11: memref<1x32xf32, #tpu.memory_space<vmem>>, %arg12: memref<1x32xf32, #tpu.memory_space<vmem>>, %arg13: memref<288x32xf32, #tpu.memory_space<vmem>>, %arg14: memref<1x32xf32, #tpu.memory_space<vmem>>, %arg15: memref<64x32xf32, #tpu.memory_space<vmem>>, %arg16: memref<1x32xf32, #tpu.memory_space<vmem>>, %arg17: memref<1x16x16x32xf32, #tpu.memory_space<vmem>>) attributes {dimension_semantics = [#tpu.dimension_semantics<parallel>], iteration_bounds = array<i64: 2>, scalar_prefetch = 0 : i64, scratch_operands = 0 : i64, tpu.core_type = #tpu.core_type<tc>, window_params = [{transform_indices = @transform_0, window_bounds = array<i64: 1, 16, 16, 32>}, {transform_indices = @transform_1, window_bounds = array<i64: 1, 16, 16, 32>}, {pipeline_mode = #tpu.pipeline_mode<synchronous>, transform_indices = @transform_2, window_bounds = array<i64: 64, 16>}, {pipeline_mode = #tpu.pipeline_mode<synchronous>, transform_indices = @transform_3, window_bounds = array<i64: 16, 64>}, {pipeline_mode = #tpu.pipeline_mode<synchronous>, transform_indices = @transform_4, window_bounds = array<i64: 32, 8>}, {pipeline_mode = #tpu.pipeline_mode<synchronous>, transform_indices = @transform_5, window_bounds = array<i64: 8, 32>}, {pipeline_mode = #tpu.pipeline_mode<synchronous>, transform_indices = @transform_6, window_bounds = array<i64: 1, 64>}, {pipeline_mode = #tpu.pipeline_mode<synchronous>, transform_indices = @transform_7, window_bounds = array<i64: 1, 64>}, {pipeline_mode = #tpu.pipeline_mode<synchronous>, transform_indices = @transform_8, window_bounds = array<i64: 576, 32>}, {pipeline_mode = #tpu.pipeline_mode<synchronous>, transform_indices = @transform_9, window_bounds = array<i64: 1, 32>}, {pipeline_mode = #tpu.pipeline_mode<synchronous>, transform_indices = @transform_10, window_bounds = array<i64: 1, 32>}, {pipeline_mode = #tpu.pipeline_mode<synchronous>, transform_indices = @transform_11, window_bounds = array<i64: 1, 32>}, {pipeline_mode = #tpu.pipeline_mode<synchronous>, transform_indices = @transform_12, window_bounds = array<i64: 288, 32>}, {pipeline_mode = #tpu.pipeline_mode<synchronous>, transform_indices = @transform_13, window_bounds = array<i64: 1, 32>}, {pipeline_mode = #tpu.pipeline_mode<synchronous>, transform_indices = @transform_14, window_bounds = array<i64: 64, 32>}, {pipeline_mode = #tpu.pipeline_mode<synchronous>, transform_indices = @transform_15, window_bounds = array<i64: 1, 32>}, {transform_indices = @transform_16, window_bounds = array<i64: 1, 16, 16, 32>}]} {
    %c0 = arith.constant 0 : index
    %c0_0 = arith.constant 0 : index
    %c0_1 = arith.constant 0 : index
    %c0_2 = arith.constant 0 : index
    %0 = vector.load %arg1[%c0, %c0_0, %c0_1, %c0_2] : memref<1x16x16x32xf32, #tpu.memory_space<vmem>>, vector<1x16x16x32xf32>
    %1 = vector.shape_cast %0 : vector<1x16x16x32xf32> to vector<16x16x32xf32>
    %2 = vector.shape_cast %1 : vector<16x16x32xf32> to vector<256x32xf32>
    %c0_3 = arith.constant 0 : index
    %c0_4 = arith.constant 0 : index
    %c0_5 = arith.constant 0 : index
    %c0_6 = arith.constant 0 : index
    %3 = vector.load %arg2[%c0_3, %c0_4, %c0_5, %c0_6] : memref<1x16x16x32xf32, #tpu.memory_space<vmem>>, vector<1x16x16x32xf32>
    %4 = vector.shape_cast %3 : vector<1x16x16x32xf32> to vector<16x16x32xf32>
    %5 = vector.shape_cast %4 : vector<16x16x32xf32> to vector<256x32xf32>
    %6 = tpu.concatenate %2, %5 in 1 : vector<256x32xf32>, vector<256x32xf32> -> vector<256x64xf32>
    %c0_7 = arith.constant 0 : index
    %c0_8 = arith.constant 0 : index
    %7 = vector.load %arg3[%c0_7, %c0_8] : memref<64x16xf32, #tpu.memory_space<vmem>>, vector<64x16xf32>
    %c0_9 = arith.constant 0 : index
    %c0_10 = arith.constant 0 : index
    %8 = vector.load %arg4[%c0_9, %c0_10] : memref<16x64xf32, #tpu.memory_space<vmem>>, vector<16x64xf32>
    %c0_11 = arith.constant 0 : index
    %c0_12 = arith.constant 0 : index
    %9 = vector.load %arg7[%c0_11, %c0_12] : memref<1x64xf32, #tpu.memory_space<vmem>>, vector<1x64xf32>
    %c0_13 = arith.constant 0 : index
    %c0_14 = arith.constant 0 : index
    %10 = vector.load %arg8[%c0_13, %c0_14] : memref<1x64xf32, #tpu.memory_space<vmem>>, vector<1x64xf32>
    %cst = arith.constant dense<0.000000e+00> : vector<64xf32>
    %11 = vector.multi_reduction <add>, %6, %cst [0] : vector<256x64xf32> to vector<64xf32>
    %12 = vector.shape_cast %11 : vector<64xf32> to vector<1x64xf32>
    %13 = arith.mulf %6, %6 : vector<256x64xf32>
    %cst_15 = arith.constant dense<0.000000e+00> : vector<64xf32>
    %14 = vector.multi_reduction <add>, %13, %cst_15 [0] : vector<256x64xf32> to vector<64xf32>
    %15 = vector.shape_cast %14 : vector<64xf32> to vector<1x64xf32>
    %cst_16 = arith.constant dense<0.000000e+00> : vector<1x16xf32>
    %16 = tpu.matmul %12, %7, %cst_16 {dimension_numbers = #tpu.dot_dimension_numbers<[1], [0], [0], [1], [0, 0, 1, 1], [], []>} : vector<1x64xf32>, vector<64x16xf32>, vector<1x16xf32> -> vector<1x16xf32>
    %cst_17 = arith.constant dense<0.000000e+00> : vector<1x16xf32>
    %17 = tpu.matmul %15, %7, %cst_17 {dimension_numbers = #tpu.dot_dimension_numbers<[1], [0], [0], [1], [0, 0, 1, 1], [], []>} : vector<1x64xf32>, vector<64x16xf32>, vector<1x16xf32> -> vector<1x16xf32>
    %cst_18 = arith.constant 1.024000e+03 : f32
    %18 = vector.broadcast %cst_18 : f32 to vector<1x16xf32>
    %19 = arith.divf %16, %18 : vector<1x16xf32>
    %cst_19 = arith.constant 1.024000e+03 : f32
    %20 = vector.broadcast %cst_19 : f32 to vector<1x16xf32>
    %21 = arith.divf %17, %20 : vector<1x16xf32>
    %22 = arith.mulf %19, %19 : vector<1x16xf32>
    %23 = arith.subf %21, %22 : vector<1x16xf32>
    %cst_20 = arith.constant dense<0.000000e+00> : vector<1x64xf32>
    %24 = tpu.matmul %19, %8, %cst_20 {dimension_numbers = #tpu.dot_dimension_numbers<[1], [0], [0], [1], [0, 0, 1, 1], [], []>} : vector<1x16xf32>, vector<16x64xf32>, vector<1x64xf32> -> vector<1x64xf32>
    %cst_21 = arith.constant dense<0.000000e+00> : vector<1x64xf32>
    %25 = tpu.matmul %23, %8, %cst_21 {dimension_numbers = #tpu.dot_dimension_numbers<[1], [0], [0], [1], [0, 0, 1, 1], [], []>} : vector<1x16xf32>, vector<16x64xf32>, vector<1x64xf32> -> vector<1x64xf32>
    %26 = vector.broadcast %24 : vector<1x64xf32> to vector<256x64xf32>
    %27 = arith.subf %6, %26 : vector<256x64xf32>
    %cst_22 = arith.constant 9.99999997E-7 : f32
    %28 = vector.broadcast %cst_22 : f32 to vector<1x64xf32>
    %29 = arith.addf %25, %28 : vector<1x64xf32>
    %30 = math.rsqrt %29 : vector<1x64xf32>
    %31 = vector.broadcast %30 : vector<1x64xf32> to vector<256x64xf32>
    %32 = arith.mulf %27, %31 : vector<256x64xf32>
    %33 = vector.broadcast %9 : vector<1x64xf32> to vector<256x64xf32>
    %34 = arith.mulf %32, %33 : vector<256x64xf32>
    %35 = vector.broadcast %10 : vector<1x64xf32> to vector<256x64xf32>
    %36 = arith.addf %34, %35 : vector<256x64xf32>
    %37 = arith.negf %36 : vector<256x64xf32>
    %38 = math.exp %37 : vector<256x64xf32>
    %cst_23 = arith.constant 1.000000e+00 : f32
    %39 = vector.broadcast %cst_23 : f32 to vector<256x64xf32>
    %40 = arith.addf %39, %38 : vector<256x64xf32>
    %41 = arith.divf %39, %40 : vector<256x64xf32>
    %42 = arith.mulf %36, %41 : vector<256x64xf32>
    %c0_24 = arith.constant 0 : index
    %c0_25 = arith.constant 0 : index
    %43 = vector.load %arg9[%c0_24, %c0_25] : memref<576x32xf32, #tpu.memory_space<vmem>>, vector<576x32xf32>
    %c0_26 = arith.constant 0 : index
    %c0_27 = arith.constant 0 : index
    %44 = vector.load %arg10[%c0_26, %c0_27] : memref<1x32xf32, #tpu.memory_space<vmem>>, vector<1x32xf32>
    %45 = vector.shape_cast %42 : vector<256x64xf32> to vector<16x16x64xf32>
    %cst_28 = arith.constant 0.000000e+00 : f32
    %46 = vector.broadcast %cst_28 : f32 to vector<1x16x64xf32>
    %47 = tpu.concatenate %46, %45, %46 in 0 : vector<1x16x64xf32>, vector<16x16x64xf32>, vector<1x16x64xf32> -> vector<18x16x64xf32>
    %cst_29 = arith.constant 0.000000e+00 : f32
    %48 = vector.broadcast %cst_29 : f32 to vector<18x1x64xf32>
    %49 = tpu.concatenate %48, %47, %48 in 1 : vector<18x1x64xf32>, vector<18x16x64xf32>, vector<18x1x64xf32> -> vector<18x18x64xf32>
    %50 = vector.extract_strided_slice %49 {offsets = [0, 0, 0], sizes = [16, 16, 64], strides = [1, 1, 1]} : vector<18x18x64xf32> to vector<16x16x64xf32>
    %51 = vector.shape_cast %50 : vector<16x16x64xf32> to vector<256x64xf32>
    %52 = vector.extract_strided_slice %49 {offsets = [0, 1, 0], sizes = [16, 16, 64], strides = [1, 1, 1]} : vector<18x18x64xf32> to vector<16x16x64xf32>
    %53 = vector.shape_cast %52 : vector<16x16x64xf32> to vector<256x64xf32>
    %54 = vector.extract_strided_slice %49 {offsets = [0, 2, 0], sizes = [16, 16, 64], strides = [1, 1, 1]} : vector<18x18x64xf32> to vector<16x16x64xf32>
    %55 = vector.shape_cast %54 : vector<16x16x64xf32> to vector<256x64xf32>
    %56 = vector.extract_strided_slice %49 {offsets = [1, 0, 0], sizes = [16, 16, 64], strides = [1, 1, 1]} : vector<18x18x64xf32> to vector<16x16x64xf32>
    %57 = vector.shape_cast %56 : vector<16x16x64xf32> to vector<256x64xf32>
    %58 = vector.extract_strided_slice %49 {offsets = [1, 1, 0], sizes = [16, 16, 64], strides = [1, 1, 1]} : vector<18x18x64xf32> to vector<16x16x64xf32>
    %59 = vector.shape_cast %58 : vector<16x16x64xf32> to vector<256x64xf32>
    %60 = vector.extract_strided_slice %49 {offsets = [1, 2, 0], sizes = [16, 16, 64], strides = [1, 1, 1]} : vector<18x18x64xf32> to vector<16x16x64xf32>
    %61 = vector.shape_cast %60 : vector<16x16x64xf32> to vector<256x64xf32>
    %62 = vector.extract_strided_slice %49 {offsets = [2, 0, 0], sizes = [16, 16, 64], strides = [1, 1, 1]} : vector<18x18x64xf32> to vector<16x16x64xf32>
    %63 = vector.shape_cast %62 : vector<16x16x64xf32> to vector<256x64xf32>
    %64 = vector.extract_strided_slice %49 {offsets = [2, 1, 0], sizes = [16, 16, 64], strides = [1, 1, 1]} : vector<18x18x64xf32> to vector<16x16x64xf32>
    %65 = vector.shape_cast %64 : vector<16x16x64xf32> to vector<256x64xf32>
    %66 = vector.extract_strided_slice %49 {offsets = [2, 2, 0], sizes = [16, 16, 64], strides = [1, 1, 1]} : vector<18x18x64xf32> to vector<16x16x64xf32>
    %67 = vector.shape_cast %66 : vector<16x16x64xf32> to vector<256x64xf32>
    %68 = tpu.concatenate %51, %53, %55, %57, %59, %61, %63, %65, %67 in 1 : vector<256x64xf32>, vector<256x64xf32>, vector<256x64xf32>, vector<256x64xf32>, vector<256x64xf32>, vector<256x64xf32>, vector<256x64xf32>, vector<256x64xf32>, vector<256x64xf32> -> vector<256x576xf32>
    %cst_30 = arith.constant dense<0.000000e+00> : vector<256x32xf32>
    %69 = tpu.matmul %68, %43, %cst_30 {dimension_numbers = #tpu.dot_dimension_numbers<[1], [0], [0], [1], [0, 0, 1, 1], [], []>} : vector<256x576xf32>, vector<576x32xf32>, vector<256x32xf32> -> vector<256x32xf32>
    %70 = vector.broadcast %44 : vector<1x32xf32> to vector<256x32xf32>
    %71 = arith.addf %69, %70 : vector<256x32xf32>
    %c0_31 = arith.constant 0 : index
    %c0_32 = arith.constant 0 : index
    %72 = vector.load %arg5[%c0_31, %c0_32] : memref<32x8xf32, #tpu.memory_space<vmem>>, vector<32x8xf32>
    %c0_33 = arith.constant 0 : index
    %c0_34 = arith.constant 0 : index
    %73 = vector.load %arg6[%c0_33, %c0_34] : memref<8x32xf32, #tpu.memory_space<vmem>>, vector<8x32xf32>
    %c0_35 = arith.constant 0 : index
    %c0_36 = arith.constant 0 : index
    %74 = vector.load %arg11[%c0_35, %c0_36] : memref<1x32xf32, #tpu.memory_space<vmem>>, vector<1x32xf32>
    %c0_37 = arith.constant 0 : index
    %c0_38 = arith.constant 0 : index
    %75 = vector.load %arg12[%c0_37, %c0_38] : memref<1x32xf32, #tpu.memory_space<vmem>>, vector<1x32xf32>
    %cst_39 = arith.constant dense<0.000000e+00> : vector<32xf32>
    %76 = vector.multi_reduction <add>, %71, %cst_39 [0] : vector<256x32xf32> to vector<32xf32>
    %77 = vector.shape_cast %76 : vector<32xf32> to vector<1x32xf32>
    %78 = arith.mulf %71, %71 : vector<256x32xf32>
    %cst_40 = arith.constant dense<0.000000e+00> : vector<32xf32>
    %79 = vector.multi_reduction <add>, %78, %cst_40 [0] : vector<256x32xf32> to vector<32xf32>
    %80 = vector.shape_cast %79 : vector<32xf32> to vector<1x32xf32>
    %cst_41 = arith.constant dense<0.000000e+00> : vector<1x8xf32>
    %81 = tpu.matmul %77, %72, %cst_41 {dimension_numbers = #tpu.dot_dimension_numbers<[1], [0], [0], [1], [0, 0, 1, 1], [], []>} : vector<1x32xf32>, vector<32x8xf32>, vector<1x8xf32> -> vector<1x8xf32>
    %cst_42 = arith.constant dense<0.000000e+00> : vector<1x8xf32>
    %82 = tpu.matmul %80, %72, %cst_42 {dimension_numbers = #tpu.dot_dimension_numbers<[1], [0], [0], [1], [0, 0, 1, 1], [], []>} : vector<1x32xf32>, vector<32x8xf32>, vector<1x8xf32> -> vector<1x8xf32>
    %cst_43 = arith.constant 1.024000e+03 : f32
    %83 = vector.broadcast %cst_43 : f32 to vector<1x8xf32>
    %84 = arith.divf %81, %83 : vector<1x8xf32>
    %cst_44 = arith.constant 1.024000e+03 : f32
    %85 = vector.broadcast %cst_44 : f32 to vector<1x8xf32>
    %86 = arith.divf %82, %85 : vector<1x8xf32>
    %87 = arith.mulf %84, %84 : vector<1x8xf32>
    %88 = arith.subf %86, %87 : vector<1x8xf32>
    %cst_45 = arith.constant dense<0.000000e+00> : vector<1x32xf32>
    %89 = tpu.matmul %84, %73, %cst_45 {dimension_numbers = #tpu.dot_dimension_numbers<[1], [0], [0], [1], [0, 0, 1, 1], [], []>} : vector<1x8xf32>, vector<8x32xf32>, vector<1x32xf32> -> vector<1x32xf32>
    %cst_46 = arith.constant dense<0.000000e+00> : vector<1x32xf32>
    %90 = tpu.matmul %88, %73, %cst_46 {dimension_numbers = #tpu.dot_dimension_numbers<[1], [0], [0], [1], [0, 0, 1, 1], [], []>} : vector<1x8xf32>, vector<8x32xf32>, vector<1x32xf32> -> vector<1x32xf32>
    %91 = vector.broadcast %89 : vector<1x32xf32> to vector<256x32xf32>
    %92 = arith.subf %71, %91 : vector<256x32xf32>
    %cst_47 = arith.constant 9.99999997E-7 : f32
    %93 = vector.broadcast %cst_47 : f32 to vector<1x32xf32>
    %94 = arith.addf %90, %93 : vector<1x32xf32>
    %95 = math.rsqrt %94 : vector<1x32xf32>
    %96 = vector.broadcast %95 : vector<1x32xf32> to vector<256x32xf32>
    %97 = arith.mulf %92, %96 : vector<256x32xf32>
    %98 = vector.broadcast %74 : vector<1x32xf32> to vector<256x32xf32>
    %99 = arith.mulf %97, %98 : vector<256x32xf32>
    %100 = vector.broadcast %75 : vector<1x32xf32> to vector<256x32xf32>
    %101 = arith.addf %99, %100 : vector<256x32xf32>
    %102 = arith.negf %101 : vector<256x32xf32>
    %103 = math.exp %102 : vector<256x32xf32>
    %cst_48 = arith.constant 1.000000e+00 : f32
    %104 = vector.broadcast %cst_48 : f32 to vector<256x32xf32>
    %105 = arith.addf %104, %103 : vector<256x32xf32>
    %106 = arith.divf %104, %105 : vector<256x32xf32>
    %107 = arith.mulf %101, %106 : vector<256x32xf32>
    %c0_49 = arith.constant 0 : index
    %c0_50 = arith.constant 0 : index
    %108 = vector.load %arg13[%c0_49, %c0_50] : memref<288x32xf32, #tpu.memory_space<vmem>>, vector<288x32xf32>
    %c0_51 = arith.constant 0 : index
    %c0_52 = arith.constant 0 : index
    %109 = vector.load %arg14[%c0_51, %c0_52] : memref<1x32xf32, #tpu.memory_space<vmem>>, vector<1x32xf32>
    %110 = vector.shape_cast %107 : vector<256x32xf32> to vector<16x16x32xf32>
    %cst_53 = arith.constant 0.000000e+00 : f32
    %111 = vector.broadcast %cst_53 : f32 to vector<1x16x32xf32>
    %112 = tpu.concatenate %111, %110, %111 in 0 : vector<1x16x32xf32>, vector<16x16x32xf32>, vector<1x16x32xf32> -> vector<18x16x32xf32>
    %cst_54 = arith.constant 0.000000e+00 : f32
    %113 = vector.broadcast %cst_54 : f32 to vector<18x1x32xf32>
    %114 = tpu.concatenate %113, %112, %113 in 1 : vector<18x1x32xf32>, vector<18x16x32xf32>, vector<18x1x32xf32> -> vector<18x18x32xf32>
    %115 = vector.extract_strided_slice %114 {offsets = [0, 0, 0], sizes = [16, 16, 32], strides = [1, 1, 1]} : vector<18x18x32xf32> to vector<16x16x32xf32>
    %116 = vector.shape_cast %115 : vector<16x16x32xf32> to vector<256x32xf32>
    %117 = vector.extract_strided_slice %114 {offsets = [0, 1, 0], sizes = [16, 16, 32], strides = [1, 1, 1]} : vector<18x18x32xf32> to vector<16x16x32xf32>
    %118 = vector.shape_cast %117 : vector<16x16x32xf32> to vector<256x32xf32>
    %119 = vector.extract_strided_slice %114 {offsets = [0, 2, 0], sizes = [16, 16, 32], strides = [1, 1, 1]} : vector<18x18x32xf32> to vector<16x16x32xf32>
    %120 = vector.shape_cast %119 : vector<16x16x32xf32> to vector<256x32xf32>
    %121 = vector.extract_strided_slice %114 {offsets = [1, 0, 0], sizes = [16, 16, 32], strides = [1, 1, 1]} : vector<18x18x32xf32> to vector<16x16x32xf32>
    %122 = vector.shape_cast %121 : vector<16x16x32xf32> to vector<256x32xf32>
    %123 = vector.extract_strided_slice %114 {offsets = [1, 1, 0], sizes = [16, 16, 32], strides = [1, 1, 1]} : vector<18x18x32xf32> to vector<16x16x32xf32>
    %124 = vector.shape_cast %123 : vector<16x16x32xf32> to vector<256x32xf32>
    %125 = vector.extract_strided_slice %114 {offsets = [1, 2, 0], sizes = [16, 16, 32], strides = [1, 1, 1]} : vector<18x18x32xf32> to vector<16x16x32xf32>
    %126 = vector.shape_cast %125 : vector<16x16x32xf32> to vector<256x32xf32>
    %127 = vector.extract_strided_slice %114 {offsets = [2, 0, 0], sizes = [16, 16, 32], strides = [1, 1, 1]} : vector<18x18x32xf32> to vector<16x16x32xf32>
    %128 = vector.shape_cast %127 : vector<16x16x32xf32> to vector<256x32xf32>
    %129 = vector.extract_strided_slice %114 {offsets = [2, 1, 0], sizes = [16, 16, 32], strides = [1, 1, 1]} : vector<18x18x32xf32> to vector<16x16x32xf32>
    %130 = vector.shape_cast %129 : vector<16x16x32xf32> to vector<256x32xf32>
    %131 = vector.extract_strided_slice %114 {offsets = [2, 2, 0], sizes = [16, 16, 32], strides = [1, 1, 1]} : vector<18x18x32xf32> to vector<16x16x32xf32>
    %132 = vector.shape_cast %131 : vector<16x16x32xf32> to vector<256x32xf32>
    %133 = tpu.concatenate %116, %118, %120, %122, %124, %126, %128, %130, %132 in 1 : vector<256x32xf32>, vector<256x32xf32>, vector<256x32xf32>, vector<256x32xf32>, vector<256x32xf32>, vector<256x32xf32>, vector<256x32xf32>, vector<256x32xf32>, vector<256x32xf32> -> vector<256x288xf32>
    %cst_55 = arith.constant dense<0.000000e+00> : vector<256x32xf32>
    %134 = tpu.matmul %133, %108, %cst_55 {dimension_numbers = #tpu.dot_dimension_numbers<[1], [0], [0], [1], [0, 0, 1, 1], [], []>} : vector<256x288xf32>, vector<288x32xf32>, vector<256x32xf32> -> vector<256x32xf32>
    %135 = vector.broadcast %109 : vector<1x32xf32> to vector<256x32xf32>
    %136 = arith.addf %134, %135 : vector<256x32xf32>
    %c0_56 = arith.constant 0 : index
    %c0_57 = arith.constant 0 : index
    %137 = vector.load %arg15[%c0_56, %c0_57] : memref<64x32xf32, #tpu.memory_space<vmem>>, vector<64x32xf32>
    %cst_58 = arith.constant dense<0.000000e+00> : vector<256x32xf32>
    %138 = tpu.matmul %6, %137, %cst_58 {dimension_numbers = #tpu.dot_dimension_numbers<[1], [0], [0], [1], [0, 0, 1, 1], [], []>} : vector<256x64xf32>, vector<64x32xf32>, vector<256x32xf32> -> vector<256x32xf32>
    %c0_59 = arith.constant 0 : index
    %c0_60 = arith.constant 0 : index
    %139 = vector.load %arg16[%c0_59, %c0_60] : memref<1x32xf32, #tpu.memory_space<vmem>>, vector<1x32xf32>
    %140 = vector.broadcast %139 : vector<1x32xf32> to vector<256x32xf32>
    %141 = arith.addf %138, %140 : vector<256x32xf32>
    %142 = arith.addf %141, %136 : vector<256x32xf32>
    %cst_61 = arith.constant 0.707106769 : f32
    %143 = vector.broadcast %cst_61 : f32 to vector<256x32xf32>
    %144 = arith.mulf %142, %143 : vector<256x32xf32>
    %145 = vector.shape_cast %144 : vector<256x32xf32> to vector<16x16x32xf32>
    %c0_62 = arith.constant 0 : index
    %c0_63 = arith.constant 0 : index
    %c0_64 = arith.constant 0 : index
    %c0_65 = arith.constant 0 : index
    %146 = vector.load %arg17[%c0_62, %c0_63, %c0_64, %c0_65] : memref<1x16x16x32xf32, #tpu.memory_space<vmem>>, vector<1x16x16x32xf32>
    %147 = vector.shape_cast %146 : vector<1x16x16x32xf32> to vector<16x16x32xf32>
    %148 = vector.shape_cast %145 : vector<16x16x32xf32> to vector<1x16x16x32xf32>
    tpu.vector_store %arg17[%c0_62, %c0_63, %c0_64, %c0_65], %148 {strides = array<i32>} : memref<1x16x16x32xf32, #tpu.memory_space<vmem>>, vector<1x16x16x32xf32>,
    return
  }
  func.func @transform_0(%arg0: i32) -> (i32, i32, i32, i32) {
    %c0_i32 = arith.constant 0 : i32
    %c0_i32_0 = arith.constant 0 : i32
    %c0_i32_1 = arith.constant 0 : i32
    %c0_i32_2 = arith.constant 0 : i32
    return %arg0, %c0_i32, %c0_i32_0, %c0_i32_1 : i32, i32, i32, i32
  }
  func.func @transform_1(%arg0: i32) -> (i32, i32, i32, i32) {
    %c0_i32 = arith.constant 0 : i32
    %c0_i32_0 = arith.constant 0 : i32
    %c0_i32_1 = arith.constant 0 : i32
    %c0_i32_2 = arith.constant 0 : i32
    return %arg0, %c0_i32, %c0_i32_0, %c0_i32_1 : i32, i32, i32, i32
  }
  func.func @transform_2(%arg0: i32) -> (i32, i32) {
    %c0_i32 = arith.constant 0 : i32
    %c0_i32_0 = arith.constant 0 : i32
    %c0_i32_1 = arith.constant 0 : i32
    return %c0_i32, %c0_i32_0 : i32, i32
  }
  func.func @transform_3(%arg0: i32) -> (i32, i32) {
    %c0_i32 = arith.constant 0 : i32
    %c0_i32_0 = arith.constant 0 : i32
    %c0_i32_1 = arith.constant 0 : i32
    return %c0_i32, %c0_i32_0 : i32, i32
  }
  func.func @transform_4(%arg0: i32) -> (i32, i32) {
    %c0_i32 = arith.constant 0 : i32
    %c0_i32_0 = arith.constant 0 : i32
    %c0_i32_1 = arith.constant 0 : i32
    return %c0_i32, %c0_i32_0 : i32, i32
  }
  func.func @transform_5(%arg0: i32) -> (i32, i32) {
    %c0_i32 = arith.constant 0 : i32
    %c0_i32_0 = arith.constant 0 : i32
    %c0_i32_1 = arith.constant 0 : i32
    return %c0_i32, %c0_i32_0 : i32, i32
  }
  func.func @transform_6(%arg0: i32) -> (i32, i32) {
    %c0_i32 = arith.constant 0 : i32
    %c0_i32_0 = arith.constant 0 : i32
    %c0_i32_1 = arith.constant 0 : i32
    return %c0_i32, %c0_i32_0 : i32, i32
  }
  func.func @transform_7(%arg0: i32) -> (i32, i32) {
    %c0_i32 = arith.constant 0 : i32
    %c0_i32_0 = arith.constant 0 : i32
    %c0_i32_1 = arith.constant 0 : i32
    return %c0_i32, %c0_i32_0 : i32, i32
  }
  func.func @transform_8(%arg0: i32) -> (i32, i32) {
    %c0_i32 = arith.constant 0 : i32
    %c0_i32_0 = arith.constant 0 : i32
    %c0_i32_1 = arith.constant 0 : i32
    return %c0_i32, %c0_i32_0 : i32, i32
  }
  func.func @transform_9(%arg0: i32) -> (i32, i32) {
    %c0_i32 = arith.constant 0 : i32
    %c0_i32_0 = arith.constant 0 : i32
    %c0_i32_1 = arith.constant 0 : i32
    return %c0_i32, %c0_i32_0 : i32, i32
  }
  func.func @transform_10(%arg0: i32) -> (i32, i32) {
    %c0_i32 = arith.constant 0 : i32
    %c0_i32_0 = arith.constant 0 : i32
    %c0_i32_1 = arith.constant 0 : i32
    return %c0_i32, %c0_i32_0 : i32, i32
  }
  func.func @transform_11(%arg0: i32) -> (i32, i32) {
    %c0_i32 = arith.constant 0 : i32
    %c0_i32_0 = arith.constant 0 : i32
    %c0_i32_1 = arith.constant 0 : i32
    return %c0_i32, %c0_i32_0 : i32, i32
  }
  func.func @transform_12(%arg0: i32) -> (i32, i32) {
    %c0_i32 = arith.constant 0 : i32
    %c0_i32_0 = arith.constant 0 : i32
    %c0_i32_1 = arith.constant 0 : i32
    return %c0_i32, %c0_i32_0 : i32, i32
  }
  func.func @transform_13(%arg0: i32) -> (i32, i32) {
    %c0_i32 = arith.constant 0 : i32
    %c0_i32_0 = arith.constant 0 : i32
    %c0_i32_1 = arith.constant 0 : i32
    return %c0_i32, %c0_i32_0 : i32, i32
  }
  func.func @transform_14(%arg0: i32) -> (i32, i32) {
    %c0_i32 = arith.constant 0 : i32
    %c0_i32_0 = arith.constant 0 : i32
    %c0_i32_1 = arith.constant 0 : i32
    return %c0_i32, %c0_i32_0 : i32, i32
  }
  func.func @transform_15(%arg0: i32) -> (i32, i32) {
    %c0_i32 = arith.constant 0 : i32
    %c0_i32_0 = arith.constant 0 : i32
    %c0_i32_1 = arith.constant 0 : i32
    return %c0_i32, %c0_i32_0 : i32, i32
  }
  func.func @transform_16(%arg0: i32) -> (i32, i32, i32, i32) {
    %c0_i32 = arith.constant 0 : i32
    %c0_i32_0 = arith.constant 0 : i32
    %c0_i32_1 = arith.constant 0 : i32
    %c0_i32_2 = arith.constant 0 : i32
    return %arg0, %c0_i32, %c0_i32_0, %c0_i32_1 : i32, i32, i32, i32
  }
}

</mosaic_0001>

<bundles_post_ra>
// kernel: tpu_custom_call.1
= control target key start
LH: loop header
LB: loop body
LE: loop exit
PB: predicated region body
PF: predicated region fallthrough
CT: control target
= control target key end

     0   :  { %s14429_s0 = inlined_call_operand.vmem [shape: f32[2,16,16,32], index: 0, kind: input, shape index: {}]   ;;  %s14430_s1 = inlined_call_operand.hbm [shape: f32[2,16,16,32], index: 1, kind: input, shape index: {}]   ;;  %s14431_s2 = inlined_call_operand.vmem [shape: f32[64,16], index: 2, kind: input, shape index: {}]   ;;  %s14432_s3 = inlined_call_operand.vmem [shape: f32[16,64], index: 3, kind: input, shape index: {}]   ;;  %s14433_s4 = inlined_call_operand.vmem [shape: f32[32,8], index: 4, kind: input, shape index: {}]   ;;  %s14434_s5 = inlined_call_operand.vmem [shape: f32[8,32], index: 5, kind: input, shape index: {}]   ;;  %s14435_s6 = inlined_call_operand.vmem [shape: f32[1,64], index: 6, kind: input, shape index: {}]   ;;  %s14436_s7 = inlined_call_operand.vmem [shape: f32[1,64], index: 7, kind: input, shape index: {}]   ;;  %s14437_s8 = inlined_call_operand.vmem [shape: f32[576,32], index: 8, kind: input, shape index: {}]   ;;  %s14438_s9 = inlined_call_operand.vmem [shape: f32[1,32], index: 9, kind: input, shape index: {}]   ;;  %s14439_s10 = inlined_call_operand.vmem [shape: f32[1,32], index: 10, kind: input, shape index: {}]   ;;  %s14440_s11 = inlined_call_operand.vmem [shape: f32[1,32], index: 11, kind: input, shape index: {}]   ;;  %s14441_s12 = inlined_call_operand.vmem [shape: f32[288,32], index: 12, kind: input, shape index: {}]   ;;  %s14442_s13 = inlined_call_operand.vmem [shape: f32[1,32], index: 13, kind: input, shape index: {}]   ;;  %s14443_s14 = inlined_call_operand.vmem [shape: f32[64,32], index: 14, kind: input, shape index: {}]   ;;  %s14444_s15 = inlined_call_operand.vmem [shape: f32[1,32], index: 15, kind: input, shape index: {}]   ;;  %s14445_s16 = inlined_call_operand.hbm [shape: f32[2,16,16,32], index: 16, kind: output, shape index: {}]  }
   0x1   :  { %14822 = sst [smem:[#allocation107_spill]] %s14429_s0 }
   0x2   :  { %14823 = sst [smem:[#allocation108_spill]] %s14430_s1 }
   0x3   :  { %14824 = sst [smem:[#allocation109_spill]] %s14431_s2 }
   0x4   :  { %14825 = sst [smem:[#allocation110_spill]] %s14442_s13 }
   0x5   :  { %14826 = sst [smem:[#allocation111_spill]] %s14444_s15 }
   0x6   :  { %14827 = sst [smem:[#allocation112_spill]] %s14445_s16 }
   0x7   :  { %21 = vsyncpa [#allocation3], 0 }
   0x8   :  { %23 = vsyncpa [#allocation3 + $0x1], 0 }
   0x9   :  { %24 = vsyncpa [#allocation4], 0 }
   0xa   :  { %26 = vsyncpa [#allocation4 + $0x1], 0  ;;  %s7927_s21 = smov 0   ;;  %s7929_s22 = smov 0  }
   0xb   :  { %s7931_s23 = smov 0   ;;  %s7933_s24 = smov 0  }
   0xc LB: > { %14828 = sst [smem:[#allocation8_spill]] %s7819_s21  ;;  %s7948_s25 = sadd.s32 4294967295, %s7831_s24   ;;  %s7831_s24 = sphi %s7933_s24, %s16237_s24   ;;  %s7827_s23 = sphi %s7931_s23, %s16239_s23   ;;  %s7823_s22 = sphi %s7929_s22, %s16241_s22   ;;  %s7819_s21 = sphi %s7927_s21, %s16240_s21  }
   0xd   : > { %14829 = sst [smem:[#allocation9_spill]] %s7827_s23  ;;  %s6468_s26 = sadd.s32 4294967294, %s7831_s24  }
   0xe   : > { %s7952_s27 = sadd.s32 1, %s7831_s24   ;;  %s65_s28 = sadd.s32 1, %s7827_s23 }
   0xf   : > { %14830 = sst [smem:[#allocation10_spill]] %s7952_s27  ;;  %s62_s29 = ssub.s32 %s7831_s24, %s7952_s27 }
  0x10   : > { %p72_p0 = scmp.ne.s32.totalorder %s7827_s23, %s7823_s22  ;;  %p63_p1 = scmp.eq.s32.totalorder %s62_s29, 0 }
  0x11   : > { %p73_p2 = scmp.eq.s32.totalorder %s7831_s24, 0  ;;  %p78_p3 = scmp.ne.s32.totalorder %s7823_s22, %s7819_s21 }
  0x12   : > { %p79_p4 = scmp.eq.s32.totalorder %s7948_s25, 0  ;;  %p396_p7 = scmp.eq.s32.totalorder %s7948_s25, 1 }
  0x13   : > { %s7964_s30 = scalar_select %p63_p1, %s7827_s23, %s65_s28  }
  0x14   : > { %p7966_p5 = por %p73_p2, %p72_p0  ;;  %p7970_p6 = por %p79_p4, %p78_p3 }
  0x15   : > { %14831 = sst [smem:[#allocation11_spill]] %s7964_s30  ;;  %p402_p8 = scmp.eq.s32.totalorder %s6468_s26, 1 }
  0x16   : > { %p6715_p10 = scmp.lt.s32.totalorder %s7831_s24, 2  ;;  %p7977_p11 = por %p396_p7, %p72_p0 }
  0x17   : > { %p7981_p12 = por %p402_p8, %p78_p3  ;;  %s472_s20 = sand.u32 1, %s7827_s23  }
  0x18   : > { %s14834_s18 = scalar_select %p7977_p11, 1, 0 }
  0x19   : > { %s14836_s19 = scalar_select %p7981_p12, 1, 0 }
  0x1a   : > { %14835 = sst [smem:[#allocation12_spill]] %s14834_s18  ;;  %s6652_s28 = sshll.u32 %s7831_s24, 8 }
  0x1b   : > { %14837 = sst [smem:[#allocation13_spill]] %s14836_s19  ;;  %s6471_s29 = sshll.u32 %s472_s20, 8 }
  0x1c   : > { %s14838_s1 = sld [smem:[#allocation108_spill]]  ;;  %s476_s26 = scalar_lea.vmem [#allocation2], %s6471_s29 }
  0x1d   : > { %s484_s15 = sshll.u32 %s476_s26, 4  ;;  %p7992_p13 = pnand %p6715_p10, %p7966_p5  ;;  %s485_s15 = int_to_ptr.vmem [resolvable:$true] %s484_s15 }
  0x1e   : > { %p6474_p0 = scmp.ge.s32.totalorder %s7831_s24, 1  ;;  %p492_p1 = scmp.lt.s32.totalorder %s7831_s24, 3 }
  0x1f   : > { %s473_s23 = scalar_lea.sflag [#allocation3], %s472_s20  ;;  %p7739_p3 = pneg %p7992_p13 }
  0x22   : > { %s481_s21 = scalar_lea.hbm %s14838_s1, %s6652_s28  ;;  %s7742_s30 = scalar_lea.hbm %s14838_s1, 512 }
  0x23   : > { %s482_s16 = sshll.u32 %s481_s21, 4  ;;  %s483_s16 = int_to_ptr.hbm [resolvable:$true] %s482_s16 }
  0x24   : > { %s7735_s19 = sshra.s32 %s483_s16, 4  ;;  %s7736_s19 = int_to_ptr.hbm [resolvable:$true] %s7735_s19 }
  0x25   : > { %s7737_s18 = scalar_lea.hbm %s7736_s19, 256  ;;  %p7743_p5 = scmp.lt.s32.totalorder %s7736_s19, %s14838_s1 }
  0x26   : > { %p7738_p2 = scmp.ne.s32.totalorder %s7736_s19, %s7737_s18  ;;  %p7744_p8 = scmp.lt.s32.totalorder %s7742_s30, %s7737_s18 }
  0x28   : > { %p7740_p4 = pnand %p7739_p3, %p7738_p2  ;;  %p7745_p10 = por %p7744_p8, %p7743_p5 }
  0x2a   : > { %p7741_p7 = pneg %p7740_p4 }
  0x2c   : > { %p7746_p9 = pnand %p7745_p10, %p7741_p7 }
  0x2e   : > { %7749 = shalt.err (!%p7746_p9)
}
  0x2f   : > { %s7833_s20 = smov 128   ;;  %s7834_s29 = smov 8  }
  0x30   : > { %6710 = dma.hbm_to_vmem [thread:$0]  (!%p7992_p13), %s483_s16, 4096, %s485_s15, %s473_s23, %s7833_s20, %s7833_s20, %s7834_s29  }
  0x31   : > { %p493_p2 = pnand %p6474_p0, %p492_p1 }
  0x33   : > { %496 = sbr.rel (%p493_p2) target bundleno = 2359 (0x937), region = 84 }
  0x38   : > { %s8013_s26 = sand.u32 1, %s7823_s22  }
  0x39   : > { %s6475_s18 = sshll.u32 %s8013_s26, 8  ;;  %s499_s19 = scalar_lea.sflag [#allocation3], %s8013_s26 }
  0x3a   : > { %s8019_s21 = scalar_lea.vmem [#allocation2], %s6475_s18 }
  0x3b   : > { %7810 = dma.done.wait (%p7970_p6), %s499_s19, 4096  }
  0x3c   : > { %7812 = vsyncadd (%p7970_p6), %s499_s19, 4294963200  ;;  %v594_v0 = vld [vmem:[%s8019_s21] sm:$0xff]  ;;  %v596_v1 = vld [vmem:[%s8019_s21 + $0x10] sm:$0xff]  ;;  %s7835_s13 = smov 32   ;;  %p557_p6 = scmp.lt.s32.totalorder %s7948_s25, 1  ;;  %vm14531_vm0 = vcmask 261120  }
  0x3d   : > { %658 = vrot.lane.b32.xlu0 %v594_v0, %s7835_s13  ;;  %662 = vrot.lane.b32.xlu1 %v596_v1, %s7835_s13  ;;  %v598_v2 = vld [vmem:[%s8019_s21 + $0x20] sm:$0xff]  ;;  %v595_v3 = vld [vmem:[%s8019_s21 + $0x8] sm:$0xff]  ;;  %s14840_s27 = sld [smem:[#allocation107_spill]]  ;;  %vm14532_vm1 = vcmask 523264   ;;  %vm1027_vm3 = vcmask 130048   ;;  %s7837_s28 = smov 64  }
  0x3e   : > { %v597_v4 = vld [vmem:[%s8019_s21 + $0x18] sm:$0xff]  ;;  %666 = vrot.lane.b32.xlu2 %v598_v2, %s7835_s13  ;;  %v599_v5 = vld [vmem:[%s8019_s21 + $0x28] sm:$0xff]  ;;  %v600_v6 = vld [vmem:[%s8019_s21 + $0x30] sm:$0xff]  ;;  %s558_s15 = scalar_select %p557_p6, %s7948_s25, 1 }
  0x3f   : > { %v601_v7 = vld [vmem:[%s8019_s21 + $0x38] sm:$0xff]  ;;  %v602_v8 = vld [vmem:[%s8019_s21 + $0x40] sm:$0xff]  ;;  %v603_v9 = vld [vmem:[%s8019_s21 + $0x48] sm:$0xff]  ;;  %s14862_s2 = sld [smem:[#allocation109_spill]]  ;;  %s7839_s0 = smov 96  }
  0x40   : > { %v604_v10 = vld [vmem:[%s8019_s21 + $0x50] sm:$0xff]  ;;  %v605_v11 = vld [vmem:[%s8019_s21 + $0x58] sm:$0xff]  ;;  %v606_v12 = vld [vmem:[%s8019_s21 + $0x60] sm:$0xff]  ;;  %s6653_s16 = sshll.u32 %s558_s15, 8  ;;  %s16113_s23 = sld [smem:[#allocation111_spill]] }
  0x41   : > { %v607_v13 = vld [vmem:[%s8019_s21 + $0x68] sm:$0xff]  ;;  %v608_v14 = vld [vmem:[%s8019_s21 + $0x70] sm:$0xff]  ;;  %v609_v15 = vld [vmem:[%s8019_s21 + $0x78] sm:$0xff]  ;;  %s14049_s17 = scalar_lea.vmem [#allocation5], %s6475_s18  ;;  %s6654_s19 = sshll.u32 %s7948_s25, 8 }
  0x42   : > { %v610_v16 = vld [vmem:[%s8019_s21 + $0x80] sm:$0xff]  ;;  %v611_v17 = vld [vmem:[%s8019_s21 + $0x88] sm:$0xff]  ;;  %v612_v18 = vld [vmem:[%s8019_s21 + $0x90] sm:$0xff]  ;;  %s6368_s25 = scalar_lea.sflag [#allocation4], %s8013_s26 }
  0x43   : > { %v613_v19 = vld [vmem:[%s8019_s21 + $0x98] sm:$0xff]  ;;  %v614_v20 = vld [vmem:[%s8019_s21 + $0xa0] sm:$0xff]  ;;  %v615_v21 = vld [vmem:[%s8019_s21 + $0xa8] sm:$0xff]  ;;  %s8094_s30 = scalar_lea.vmem %s14840_s27, %s6653_s16 }
  0x44   : > { %v616_v22 = vld [vmem:[%s8019_s21 + $0xb0] sm:$0xff]  ;;  %v617_v23 = vld [vmem:[%s8019_s21 + $0xb8] sm:$0xff]  ;;  %v618_v24 = vld [vmem:[%s8019_s21 + $0xc0] sm:$0xff] }
  0x45   : > { %660 = vrot.lane.b32.xlu0 %v595_v3, %s7835_s13  ;;  %664 = vrot.lane.b32.xlu1 %v597_v4, %s7835_s13  ;;  %v619_v25 = vld [vmem:[%s8019_s21 + $0xc8] sm:$0xff]  ;;  %v620_v26 = vld [vmem:[%s8019_s21 + $0xd0] sm:$0xff] }
  0x46   : > { %668 = vrot.lane.b32.xlu2 %v599_v5, %s7835_s13  ;;  %v621_v27 = vld [vmem:[%s8019_s21 + $0xd8] sm:$0xff]  ;;  %v622_v28 = vld [vmem:[%s8019_s21 + $0xe0] sm:$0xff]  ;;  %v623_v29 = vld [vmem:[%s8019_s21 + $0xe8] sm:$0xff] }
  0x47   : > { %v624_v30 = vld [vmem:[%s8019_s21 + $0xf0] sm:$0xff]  ;;  %v625_v31 = vld [vmem:[%s8019_s21 + $0xf8] sm:$0xff]  ;;  %v562_v37 = vld [vmem:[%s8094_s30] sm:$0xff] }
  0x48   : > { %v564_v38 = vld [vmem:[%s8094_s30 + $0x10] sm:$0xff]  ;;  %v563_v40 = vld [vmem:[%s8094_s30 + $0x8] sm:$0xff]  ;;  %v565_v41 = vld [vmem:[%s8094_s30 + $0x18] sm:$0xff] }
  0x49   : > { %v566_v44 = vld [vmem:[%s8094_s30 + $0x20] sm:$0xff]  ;;  %v567_v54 = vld [vmem:[%s8094_s30 + $0x28] sm:$0xff]  ;;  %v568_v4 = vld [vmem:[%s8094_s30 + $0x30] sm:$0xff] }
  0x4a   : > { %v570_v0 = vld [vmem:[%s8094_s30 + $0x40] sm:$0xff]  ;;  %v569_v5 = vld [vmem:[%s8094_s30 + $0x38] sm:$0xff] }
  0x4d   : > { %670 = vrot.lane.b32.xlu0 %v600_v6, %s7835_s13  ;;  %672 = vrot.lane.b32.xlu1 %v601_v7, %s7835_s13 }
  0x4e   : > { %674 = vrot.lane.b32.xlu2 %v602_v8, %s7835_s13 }
  0x55   : > { %676 = vrot.lane.b32.xlu0 %v603_v9, %s7835_s13  ;;  %678 = vrot.lane.b32.xlu1 %v604_v10, %s7835_s13 }
  0x56   : > { %680 = vrot.lane.b32.xlu2 %v605_v11, %s7835_s13 }
  0x5d   : > { %682 = vrot.lane.b32.xlu0 %v606_v12, %s7835_s13  ;;  %684 = vrot.lane.b32.xlu1 %v607_v13, %s7835_s13 }
  0x5e   : > { %686 = vrot.lane.b32.xlu2 %v608_v14, %s7835_s13 }
  0x65   : > { %688 = vrot.lane.b32.xlu0 %v609_v15, %s7835_s13  ;;  %690 = vrot.lane.b32.xlu1 %v610_v16, %s7835_s13 }
  0x66   : > { %692 = vrot.lane.b32.xlu2 %v611_v17, %s7835_s13 }
  0x6d   : > { %694 = vrot.lane.b32.xlu0 %v612_v18, %s7835_s13  ;;  %696 = vrot.lane.b32.xlu1 %v613_v19, %s7835_s13 }
  0x6e   : > { %698 = vrot.lane.b32.xlu2 %v614_v20, %s7835_s13 }
  0x75   : > { %700 = vrot.lane.b32.xlu0 %v615_v21, %s7835_s13  ;;  %702 = vrot.lane.b32.xlu1 %v616_v22, %s7835_s13 }
  0x76   : > { %704 = vrot.lane.b32.xlu2 %v617_v23, %s7835_s13 }
  0x7d   : > { %706 = vrot.lane.b32.xlu0 %v618_v24, %s7835_s13  ;;  %708 = vrot.lane.b32.xlu1 %v619_v25, %s7835_s13 }
  0x7e   : > { %710 = vrot.lane.b32.xlu2 %v620_v26, %s7835_s13 }
  0x85   : > { %712 = vrot.lane.b32.xlu0 %v621_v27, %s7835_s13  ;;  %714 = vrot.lane.b32.xlu1 %v622_v28, %s7835_s13 }
  0x86   : > { %716 = vrot.lane.b32.xlu2 %v623_v29, %s7835_s13 }
  0x8d   : > { %718 = vrot.lane.b32.xlu0 %v624_v30, %s7835_s13  ;;  %720 = vrot.lane.b32.xlu1 %v625_v31, %s7835_s13  ;;  %v573_v30 = vld [vmem:[%s8094_s30 + $0x58] sm:$0xff] }
  0x98   : > { %v667_v32 = vpop.permute.xlu2 %666 }
  0x99   : > { %v8125_v55 = vsel %vm14531_vm0, %v566_v44, %v667_v32 }
  0x9a   : > { %14845 = vst [vmem:[#allocation18_spill] sm:$0xff] %v8125_v55  ;;  %v873_v2 = vmul.f32 %v8125_v55, %v8125_v55  ;;  %v807_v8 = vsel %vm14532_vm1, %v8125_v55, 0.0 }
  0x9c   : > { %v908_v18 = vsel %vm14532_vm1, %v873_v2, 0.0  ;;  %v574_v2 = vld [vmem:[%s8094_s30 + $0x60] sm:$0xff] }
  0xa0   : > { %v669_v33 = vpop.permute.xlu2 %668 }
  0xa1   : > { %v8134_v63 = vsel %vm14531_vm0, %v567_v54, %v669_v33 }
  0xa2   : > { %14846 = vst [vmem:[#allocation19_spill] sm:$0xff] %v8134_v63  ;;  %v874_v10 = vmul.f32 %v8134_v63, %v8134_v63  ;;  %v809_v19 = vsel %vm14532_vm1, %v8134_v63, 0.0 }
  0xa4   : > { %v910_v24 = vsel %vm14532_vm1, %v874_v10, 0.0 }
  0xa8   : > { %v675_v34 = vpop.permute.xlu2 %674 }
  0xa9   : > { %v8150_v13 = vsel %vm14531_vm0, %v570_v0, %v675_v34  ;;  %v571_v34 = vld [vmem:[%s8094_s30 + $0x48] sm:$0xff] }
  0xaa   : > { %14847 = vst [vmem:[#allocation20_spill] sm:$0xff] %v8150_v13  ;;  %v877_v27 = vmul.f32 %v8150_v13, %v8150_v13  ;;  %v815_v33 = vsel %vm14532_vm1, %v8150_v13, 0.0 }
  0xaf   : > { %v659_v35 = vpop.permute.xlu0 %658  ;;  %v663_v36 = vpop.permute.xlu1 %662 }
  0xb0   : > { %v8099_v39 = vsel %vm14531_vm0, %v562_v37, %v659_v35  ;;  %v8104_v42 = vsel %vm14531_vm0, %v564_v38, %v663_v36  ;;  %v681_v49 = vpop.permute.xlu2 %680  ;;  %v572_v35 = vld [vmem:[%s8094_s30 + $0x50] sm:$0xff] }
  0xb1   : > { %14841 = vst [vmem:[#allocation14_spill] sm:$0xff] %v8099_v39  ;;  %v869_v43 = vmul.f32 %v8099_v39, %v8099_v39  ;;  %v800_v50 = vsel %vm14532_vm1, %v8099_v39, 0.0  ;;  %v871_v51 = vmul.f32 %v8104_v42, %v8104_v42  ;;  %v803_v58 = vsel %vm14532_vm1, %v8104_v42, 0.0 }
  0xb2   : > { %14842 = vst [vmem:[#allocation15_spill] sm:$0xff] %v8104_v42  ;;  %v8181_v44 = vsel %vm14531_vm0, %v573_v30, %v681_v49  ;;  %v579_v30 = vld [vmem:[%s8094_s30 + $0x88] sm:$0xff] }
  0xb3   : > { %v901_v57 = vsel %vm14532_vm1, %v869_v43, 0.0  ;;  %v904_v1 = vsel %vm14532_vm1, %v871_v51, 0.0  ;;  %14850 = vst [vmem:[#allocation23_spill] sm:$0xff] %v8181_v44 }
  0xb7   : > { %v661_v45 = vpop.permute.xlu0 %660  ;;  %v665_v46 = vpop.permute.xlu1 %664 }
  0xb8   : > { %v8110_v47 = vsel %vm14531_vm0, %v563_v40, %v661_v45  ;;  %v8113_v48 = vsel %vm14531_vm0, %v565_v41, %v665_v46  ;;  %v687_v23 = vpop.permute.xlu2 %686  ;;  %v916_v40 = vsel %vm14532_vm1, %v877_v27, 0.0 }
  0xb9   : > { %14843 = vst [vmem:[#allocation16_spill] sm:$0xff] %v8110_v47  ;;  %v801_v52 = vsel %vm14532_vm1, %v8110_v47, 0.0  ;;  %v870_v53 = vmul.f32 %v8110_v47, %v8110_v47  ;;  %v872_v60 = vmul.f32 %v8113_v48, %v8113_v48  ;;  %v805_v3 = vsel %vm14532_vm1, %v8113_v48, 0.0 }
  0xba   : > { %14844 = vst [vmem:[#allocation17_spill] sm:$0xff] %v8113_v48  ;;  %v802_v56 = vadd.f32 %v801_v52, %v800_v50 }
  0xbb   : > { %v902_v59 = vsel %vm14532_vm1, %v870_v53, 0.0  ;;  %v906_v9 = vsel %vm14532_vm1, %v872_v60, 0.0  ;;  %v880_v60 = vmul.f32 %v8181_v44, %v8181_v44 }
  0xbc   : > { %v903_v61 = vadd.f32 %v902_v59, %v901_v57  ;;  %v804_v62 = vadd.f32 %v803_v58, %v802_v56 }
  0xbe   : > { %v806_v6 = vadd.f32 %v805_v3, %v804_v62  ;;  %v905_v7 = vadd.f32 %v904_v1, %v903_v61  ;;  %v821_v1 = vsel %vm14532_vm1, %v8181_v44, 0.0  ;;  %v575_v3 = vld [vmem:[%s8094_s30 + $0x68] sm:$0xff] }
  0xbf   : > { %v671_v11 = vpop.permute.xlu0 %670  ;;  %v673_v12 = vpop.permute.xlu1 %672 }
  0xc0   : > { %v907_v14 = vadd.f32 %v906_v9, %v905_v7  ;;  %v808_v15 = vadd.f32 %v807_v8, %v806_v6  ;;  %v8153_v16 = vsel %vm14531_vm0, %v568_v4, %v671_v11  ;;  %v8156_v17 = vsel %vm14531_vm0, %v569_v5, %v673_v12  ;;  %v693_v0 = vpop.permute.xlu2 %692  ;;  %v576_v4 = vld [vmem:[%s8094_s30 + $0x70] sm:$0xff] }
  0xc1   : > { %14848 = vst [vmem:[#allocation21_spill] sm:$0xff] %v8153_v16  ;;  %v875_v20 = vmul.f32 %v8153_v16, %v8153_v16  ;;  %v811_v25 = vsel %vm14532_vm1, %v8153_v16, 0.0  ;;  %v876_v26 = vmul.f32 %v8156_v17, %v8156_v17  ;;  %v813_v32 = vsel %vm14532_vm1, %v8156_v17, 0.0 }
  0xc2   : > { %14849 = vst [vmem:[#allocation22_spill] sm:$0xff] %v8156_v17  ;;  %v810_v21 = vadd.f32 %v809_v19, %v808_v15  ;;  %v909_v22 = vadd.f32 %v908_v18, %v907_v14  ;;  %v922_v6 = vsel %vm14532_vm1, %v880_v60, 0.0  ;;  %v8214_v12 = vsel %vm14531_vm0, %v576_v4, %v687_v23  ;;  %v580_v60 = vld [vmem:[%s8094_s30 + $0x90] sm:$0xff] }
  0xc3   : > { %v912_v31 = vsel %vm14532_vm1, %v875_v20, 0.0  ;;  %v914_v38 = vsel %vm14532_vm1, %v876_v26, 0.0  ;;  %14855 = vst [vmem:[#allocation28_spill] sm:$0xff] %v8214_v12  ;;  %v883_v23 = vmul.f32 %v8214_v12, %v8214_v12  ;;  %v827_v27 = vsel %vm14532_vm1, %v8214_v12, 0.0 }
  0xc4   : > { %v911_v28 = vadd.f32 %v910_v24, %v909_v22  ;;  %v812_v29 = vadd.f32 %v811_v25, %v810_v21 }
  0xc6   : > { %v913_v36 = vadd.f32 %v912_v31, %v911_v28  ;;  %v814_v37 = vadd.f32 %v813_v32, %v812_v29  ;;  %v577_v28 = vld [vmem:[%s8094_s30 + $0x78] sm:$0xff]  ;;  %v578_v29 = vld [vmem:[%s8094_s30 + $0x80] sm:$0xff] }
  0xc7   : > { %v677_v41 = vpop.permute.xlu0 %676  ;;  %v679_v43 = vpop.permute.xlu1 %678 }
  0xc8   : > { %v915_v45 = vadd.f32 %v914_v38, %v913_v36  ;;  %v816_v46 = vadd.f32 %v815_v33, %v814_v37  ;;  %v8184_v50 = vsel %vm14531_vm0, %v571_v34, %v677_v41  ;;  %v8187_v51 = vsel %vm14531_vm0, %v572_v35, %v679_v43  ;;  %v699_v32 = vpop.permute.xlu2 %698 }
  0xc9   : > { %14851 = vst [vmem:[#allocation24_spill] sm:$0xff] %v8184_v50  ;;  %v817_v52 = vsel %vm14532_vm1, %v8184_v50, 0.0  ;;  %v878_v53 = vmul.f32 %v8184_v50, %v8184_v50  ;;  %v819_v49 = vsel %vm14532_vm1, %v8187_v51, 0.0  ;;  %v879_v54 = vmul.f32 %v8187_v51, %v8187_v51 }
  0xca   : > { %14852 = vst [vmem:[#allocation25_spill] sm:$0xff] %v8187_v51  ;;  %v917_v56 = vadd.f32 %v916_v40, %v915_v45  ;;  %v818_v57 = vadd.f32 %v817_v52, %v816_v46  ;;  %v928_v33 = vsel %vm14532_vm1, %v883_v23, 0.0  ;;  %v8241_v40 = vsel %vm14531_vm0, %v579_v30, %v693_v0  ;;  %v584_v30 = vld [vmem:[%s8094_s30 + $0xb0] sm:$0xff] }
  0xcb   : > { %v918_v58 = vsel %vm14532_vm1, %v878_v53, 0.0  ;;  %v920_v59 = vsel %vm14532_vm1, %v879_v54, 0.0  ;;  %14858 = vst [vmem:[#allocation31_spill] sm:$0xff] %v8241_v40 }
  0xcc   : > { %v919_v61 = vadd.f32 %v918_v58, %v917_v56  ;;  %v820_v62 = vadd.f32 %v819_v49, %v818_v57  ;;  %v886_v56 = vmul.f32 %v8241_v40, %v8241_v40 }
  0xce   : > { %v921_v5 = vadd.f32 %v920_v59, %v919_v61  ;;  %v822_v9 = vadd.f32 %v821_v1, %v820_v62  ;;  %v833_v59 = vsel %vm14532_vm1, %v8241_v40, 0.0  ;;  %v581_v61 = vld [vmem:[%s8094_s30 + $0x98] sm:$0xff]  ;;  %v582_v62 = vld [vmem:[%s8094_s30 + $0xa0] sm:$0xff]  ;;  %v934_v1 = vsel %vm14532_vm1, %v886_v56, 0.0 }
  0xcf   : > { %v683_v7 = vpop.permute.xlu0 %682  ;;  %v685_v8 = vpop.permute.xlu1 %684 }
  0xd0   : > { %v8208_v10 = vsel %vm14531_vm0, %v574_v2, %v683_v7  ;;  %v8211_v11 = vsel %vm14531_vm0, %v575_v3, %v685_v8  ;;  %v923_v20 = vadd.f32 %v922_v6, %v921_v5  ;;  %v8268_v7 = vsel %vm14531_vm0, %v582_v62, %v699_v32 }
  0xd1   : > { %14853 = vst [vmem:[#allocation26_spill] sm:$0xff] %v8208_v10  ;;  %v823_v14 = vsel %vm14532_vm1, %v8208_v10, 0.0  ;;  %v881_v15 = vmul.f32 %v8208_v10, %v8208_v10  ;;  %v825_v18 = vsel %vm14532_vm1, %v8211_v11, 0.0  ;;  %v882_v19 = vmul.f32 %v8211_v11, %v8211_v11 }
  0xd2   : > { %14854 = vst [vmem:[#allocation27_spill] sm:$0xff] %v8211_v11  ;;  %v824_v21 = vadd.f32 %v823_v14, %v822_v9  ;;  %v889_v23 = vmul.f32 %v8268_v7, %v8268_v7 }
  0xd3   : > { %v924_v22 = vsel %vm14532_vm1, %v881_v15, 0.0  ;;  %v926_v24 = vsel %vm14532_vm1, %v882_v19, 0.0  ;;  %14861 = vst [vmem:[#allocation34_spill] sm:$0xff] %v8268_v7 }
  0xd4   : > { %v925_v25 = vadd.f32 %v924_v22, %v923_v20  ;;  %v826_v26 = vadd.f32 %v825_v18, %v824_v21  ;;  %v705_v18 = vpop.permute.xlu2 %704  ;;  %v794_v21 = vld [vmem:[%s14862_s2 + $0x38] sm:$0xff] }
  0xd5   : > { %981 = vmatpush.msra.mxu0 %v794_v21  ;;  %1004 = vmatpush.msra.mxu1 %v794_v21 }
  0xd6   : > { %v927_v31 = vadd.f32 %v926_v24, %v925_v25  ;;  %v828_v36 = vadd.f32 %v827_v27, %v826_v26  ;;  %v793_v27 = vld [vmem:[%s14862_s2 + $0x30] sm:$0xff] }
  0xd7   : > { %v689_v34 = vpop.permute.xlu0 %688  ;;  %v691_v35 = vpop.permute.xlu1 %690  ;;  %982 = vmatpush.msra.mxu0 %v793_v27  ;;  %1005 = vmatpush.msra.mxu1 %v793_v27 }
  0xd8   : > { %v8235_v37 = vsel %vm14531_vm0, %v577_v28, %v689_v34  ;;  %v8238_v38 = vsel %vm14531_vm0, %v578_v29, %v691_v35  ;;  %v929_v52 = vadd.f32 %v928_v33, %v927_v31  ;;  %v839_v28 = vsel %vm14532_vm1, %v8268_v7, 0.0  ;;  %v583_v29 = vld [vmem:[%s8094_s30 + $0xa8] sm:$0xff]  ;;  %v585_v31 = vld [vmem:[%s8094_s30 + $0xb8] sm:$0xff]  ;;  %v791_v34 = vld [vmem:[%s14862_s2 + $0x20] sm:$0xff] }
  0xd9   : > { %14856 = vst [vmem:[#allocation29_spill] sm:$0xff] %v8235_v37  ;;  %v829_v41 = vsel %vm14532_vm1, %v8235_v37, 0.0  ;;  %v884_v43 = vmul.f32 %v8235_v37, %v8235_v37  ;;  %v831_v45 = vsel %vm14532_vm1, %v8238_v38, 0.0  ;;  %v885_v46 = vmul.f32 %v8238_v38, %v8238_v38  ;;  %v792_v33 = vld [vmem:[%s14862_s2 + $0x28] sm:$0xff] }
  0xda   : > { %14857 = vst [vmem:[#allocation30_spill] sm:$0xff] %v8238_v38  ;;  %v830_v53 = vadd.f32 %v829_v41, %v828_v36  ;;  %v940_v35 = vsel %vm14532_vm1, %v889_v23, 0.0  ;;  %983 = vmatpush.msra.mxu0 %v792_v33  ;;  %1006 = vmatpush.msra.mxu1 %v792_v33 }
  0xdb   : > { %v930_v49 = vsel %vm14532_vm1, %v884_v43, 0.0  ;;  %v932_v54 = vsel %vm14532_vm1, %v885_v46, 0.0 }
  0xdc   : > { %v931_v57 = vadd.f32 %v930_v49, %v929_v52  ;;  %v832_v58 = vadd.f32 %v831_v45, %v830_v53  ;;  %v8307_v52 = vsel %vm14531_vm0, %v585_v31, %v705_v18  ;;  %v790_v53 = vld [vmem:[%s14862_s2 + $0x18] sm:$0xff]  ;;  %984 = vmatpush.msra.mxu0 %v791_v34  ;;  %1007 = vmatpush.msra.mxu1 %v791_v34 }
  0xdd   : > { %14865 = vst [vmem:[#allocation37_spill] sm:$0xff] %v8307_v52 }
  0xde   : > { %v933_v0 = vadd.f32 %v932_v54, %v931_v57  ;;  %v834_v4 = vadd.f32 %v833_v59, %v832_v58  ;;  %985 = vmatpush.msra.mxu0 %v790_v53  ;;  %1008 = vmatpush.msra.mxu1 %v790_v53  ;;  %v8366_v53 = vld [vmem:[%s14432_s3] sm:$0xff] }
  0xdf   : > { %v695_v2 = vpop.permute.xlu0 %694  ;;  %v697_v3 = vpop.permute.xlu1 %696 }
  0xe0   : > { %v8262_v5 = vsel %vm14531_vm0, %v580_v60, %v695_v2  ;;  %v8265_v6 = vsel %vm14531_vm0, %v581_v61, %v697_v3  ;;  %v935_v19 = vadd.f32 %v934_v1, %v933_v0  ;;  %v789_v60 = vld [vmem:[%s14862_s2 + $0x10] sm:$0xff]  ;;  %v892_v0 = vmul.f32 %v8307_v52, %v8307_v52  ;;  %v711_v1 = vpop.permute.xlu2 %710 }
  0xe1   : > { %14859 = vst [vmem:[#allocation32_spill] sm:$0xff] %v8262_v5  ;;  %v835_v8 = vsel %vm14532_vm1, %v8262_v5, 0.0  ;;  %v887_v9 = vmul.f32 %v8262_v5, %v8262_v5  ;;  %v837_v14 = vsel %vm14532_vm1, %v8265_v6, 0.0  ;;  %v888_v15 = vmul.f32 %v8265_v6, %v8265_v6  ;;  %986 = vmatpush.msra.mxu0 %v789_v60  ;;  %1009 = vmatpush.msra.mxu1 %v789_v60 }
  0xe2   : > { %14860 = vst [vmem:[#allocation33_spill] sm:$0xff] %v8265_v6  ;;  %v836_v20 = vadd.f32 %v835_v8, %v834_v4  ;;  %v788_v4 = vld [vmem:[%s14862_s2 + $0x8] sm:$0xff]  ;;  %v845_v8 = vsel %vm14532_vm1, %v8307_v52, 0.0 }
  0xe3   : > { %v936_v22 = vsel %vm14532_vm1, %v887_v9, 0.0  ;;  %v938_v24 = vsel %vm14532_vm1, %v888_v15, 0.0  ;;  %v586_v9 = vld [vmem:[%s8094_s30 + $0xc0] sm:$0xff]  ;;  %v588_v15 = vld [vmem:[%s8094_s30 + $0xd0] sm:$0xff]  ;;  %987 = vmatpush.msra.mxu0 %v788_v4  ;;  %1010 = vmatpush.msra.mxu1 %v788_v4 }
  0xe4   : > { %v937_v25 = vadd.f32 %v936_v22, %v935_v19  ;;  %v838_v26 = vadd.f32 %v837_v14, %v836_v20  ;;  %v587_v14 = vld [vmem:[%s8094_s30 + $0xc8] sm:$0xff]  ;;  %v787_v19 = vld [vmem:[%s14862_s2] sm:$0xff]  ;;  %v946_v20 = vsel %vm14532_vm1, %v892_v0, 0.0 }
  0xe5   : > { %988 = vmatpush.msra.mxu0 %v787_v19  ;;  %1011 = vmatpush.msra.mxu1 %v787_v19 }
  0xe6   : > { %v939_v32 = vadd.f32 %v938_v24, %v937_v25  ;;  %v840_v43 = vadd.f32 %v839_v28, %v838_v26  ;;  %v8346_v26 = vsel %vm14531_vm0, %v588_v15, %v711_v1 }
  0xe7   : > { %v701_v36 = vpop.permute.xlu0 %700  ;;  %v703_v41 = vpop.permute.xlu1 %702  ;;  %14868 = vst [vmem:[#allocation40_spill] sm:$0xff] %v8346_v26 }
  0xe8   : > { %v8301_v45 = vsel %vm14531_vm0, %v583_v29, %v701_v36  ;;  %v8304_v46 = vsel %vm14531_vm0, %v584_v30, %v703_v41  ;;  %v941_v58 = vadd.f32 %v940_v35, %v939_v32  ;;  %v895_v35 = vmul.f32 %v8346_v26, %v8346_v26 }
  0xe9   : > { %14863 = vst [vmem:[#allocation35_spill] sm:$0xff] %v8301_v45  ;;  %v841_v49 = vsel %vm14532_vm1, %v8301_v45, 0.0  ;;  %v890_v54 = vmul.f32 %v8301_v45, %v8301_v45  ;;  %v843_v56 = vsel %vm14532_vm1, %v8304_v46, 0.0  ;;  %v891_v57 = vmul.f32 %v8304_v46, %v8304_v46 }
  0xea   : > { %14864 = vst [vmem:[#allocation36_spill] sm:$0xff] %v8304_v46  ;;  %v842_v59 = vadd.f32 %v841_v49, %v840_v43  ;;  %v796_v43 = vld [vmem:[%s14432_s3 + $0x8] sm:$0xff]  ;;  %v851_v49 = vsel %vm14532_vm1, %v8346_v26, 0.0  ;;  %v952_v60 = vsel %vm14532_vm1, %v895_v35, 0.0 }
  0xeb   : > { %v942_v61 = vsel %vm14532_vm1, %v890_v54, 0.0  ;;  %v944_v62 = vsel %vm14532_vm1, %v891_v57, 0.0  ;;  %v589_v54 = vld [vmem:[%s8094_s30 + $0xd8] sm:$0xff]  ;;  %v717_v57 = vpop.permute.xlu2 %716  ;;  %1045 = vmatpush.msrb.mxu0 %v796_v43 }
  0xec   : > { %v943_v2 = vadd.f32 %v942_v61, %v941_v58  ;;  %v844_v3 = vadd.f32 %v843_v56, %v842_v59  ;;  %v590_v56 = vld [vmem:[%s8094_s30 + $0xe0] sm:$0xff]  ;;  %v591_v58 = vld [vmem:[%s8094_s30 + $0xe8] sm:$0xff] }
  0xed   : > { %1046 = vmatpush.msrb.mxu0 %v8366_v53 }
  0xee   : > { %v945_v18 = vadd.f32 %v944_v62, %v943_v2  ;;  %v846_v24 = vadd.f32 %v845_v8, %v844_v3  ;;  %v8382_v3 = vsel %vm14531_vm0, %v591_v58, %v717_v57 }
  0xef   : > { %v707_v21 = vpop.permute.xlu0 %706  ;;  %v709_v22 = vpop.permute.xlu1 %708  ;;  %14871 = vst [vmem:[#allocation43_spill] sm:$0xff] %v8382_v3 }
  0xf0   : > { %v8340_v23 = vsel %vm14531_vm0, %v586_v9, %v707_v21  ;;  %v8343_v25 = vsel %vm14531_vm0, %v587_v14, %v709_v22  ;;  %v947_v31 = vadd.f32 %v946_v20, %v945_v18  ;;  %v898_v21 = vmul.f32 %v8382_v3, %v8382_v3 }
  0xf1   : > { %14866 = vst [vmem:[#allocation38_spill] sm:$0xff] %v8340_v23  ;;  %v847_v27 = vsel %vm14532_vm1, %v8340_v23, 0.0  ;;  %v893_v28 = vmul.f32 %v8340_v23, %v8340_v23  ;;  %v849_v29 = vsel %vm14532_vm1, %v8343_v25, 0.0  ;;  %v894_v30 = vmul.f32 %v8343_v25, %v8343_v25 }
  0xf2   : > { %14867 = vst [vmem:[#allocation39_spill] sm:$0xff] %v8343_v25  ;;  %v848_v32 = vadd.f32 %v847_v27, %v846_v24  ;;  %v857_v27 = vsel %vm14532_vm1, %v8382_v3, 0.0 }
  0xf3   : > { %v948_v33 = vsel %vm14532_vm1, %v893_v28, 0.0  ;;  %v950_v34 = vsel %vm14532_vm1, %v894_v30, 0.0  ;;  %v592_v28 = vld [vmem:[%s8094_s30 + $0xf0] sm:$0xff] }
  0xf4   : > { %v949_v36 = vadd.f32 %v948_v33, %v947_v31  ;;  %v850_v41 = vadd.f32 %v849_v29, %v848_v32  ;;  %v593_v29 = vld [vmem:[%s8094_s30 + $0xf8] sm:$0xff]  ;;  %v958_v31 = vsel %vm14532_vm1, %v898_v21, 0.0  ;;  %s16114_s30 = smov %s16113_s23 }
  0xf6   : > { %v951_v59 = vadd.f32 %v950_v34, %v949_v36  ;;  %v852_v0 = vadd.f32 %v851_v49, %v850_v41 }
  0xf7   : > { %v713_v61 = vpop.permute.xlu0 %712  ;;  %v715_v62 = vpop.permute.xlu1 %714 }
  0xf8   : > { %v8376_v1 = vsel %vm14531_vm0, %v589_v54, %v713_v61  ;;  %v8379_v2 = vsel %vm14531_vm0, %v590_v56, %v715_v62  ;;  %v953_v15 = vadd.f32 %v952_v60, %v951_v59 }
  0xf9   : > { %14869 = vst [vmem:[#allocation41_spill] sm:$0xff] %v8376_v1  ;;  %v853_v4 = vsel %vm14532_vm1, %v8376_v1, 0.0  ;;  %v896_v8 = vmul.f32 %v8376_v1, %v8376_v1  ;;  %v855_v9 = vsel %vm14532_vm1, %v8379_v2, 0.0  ;;  %v897_v14 = vmul.f32 %v8379_v2, %v8379_v2 }
  0xfa   : > { %14870 = vst [vmem:[#allocation42_spill] sm:$0xff] %v8379_v2  ;;  %v854_v18 = vadd.f32 %v853_v4, %v852_v0 }
  0xfb   : > { %v954_v19 = vsel %vm14532_vm1, %v896_v8, 0.0  ;;  %v956_v20 = vsel %vm14532_vm1, %v897_v14, 0.0 }
  0xfc   : > { %v955_v22 = vadd.f32 %v954_v19, %v953_v15  ;;  %v856_v24 = vadd.f32 %v855_v9, %v854_v18 }
  0xfe   : > { %v957_v30 = vadd.f32 %v956_v20, %v955_v22  ;;  %v858_v34 = vadd.f32 %v857_v27, %v856_v24 }
  0xff   : > { %v719_v32 = vpop.permute.xlu0 %718  ;;  %v721_v33 = vpop.permute.xlu1 %720 }
 0x100   : > { %v8402_v35 = vsel %vm14531_vm0, %v592_v28, %v719_v32  ;;  %v8405_v36 = vsel %vm14531_vm0, %v593_v29, %v721_v33  ;;  %v959_v57 = vadd.f32 %v958_v31, %v957_v30  ;;  %v7836_v28 = vmov 1024.0  }
 0x101   : > { %14872 = vst [vmem:[#allocation44_spill] sm:$0xff] %v8402_v35  ;;  %v859_v41 = vsel %vm14532_vm1, %v8402_v35, 0.0  ;;  %v899_v49 = vmul.f32 %v8402_v35, %v8402_v35  ;;  %v861_v54 = vsel %vm14532_vm1, %v8405_v36, 0.0  ;;  %v900_v56 = vmul.f32 %v8405_v36, %v8405_v36 }
 0x102   : > { %14873 = vst [vmem:[#allocation45_spill] sm:$0xff] %v8405_v36  ;;  %v860_v58 = vadd.f32 %v859_v41, %v858_v34  ;;  %7470 = vrcp.f32 %v7836_v28 }
 0x103   : > { %v960_v59 = vsel %vm14532_vm1, %v899_v49, 0.0  ;;  %v962_v60 = vsel %vm14532_vm1, %v900_v56, 0.0 }
 0x104   : > { %v961_v61 = vadd.f32 %v960_v59, %v959_v57  ;;  %v862_v62 = vadd.f32 %v861_v54, %v860_v58 }
 0x106   : > { %v863_v0 = vrot.slane %v862_v62, 4  ;;  %v963_v4 = vadd.f32 %v962_v60, %v961_v61 }
 0x108   : > { %v864_v8 = vadd.f32 %v863_v0, %v862_v62  ;;  %v964_v9 = vrot.slane %v963_v4, 4  ;;  %v7471_v29 = vpop.eup %7470 }
 0x109   : > { %v1017_v30 = vmul.f32 1024.0, %v7471_v29  ;;  %vm1021_vm2 = vweird.f32 %v7471_v29 }
 0x10a   : > { %v865_v14 = vrot.slane %v864_v8, 2  ;;  %v965_v15 = vadd.f32 %v964_v9, %v963_v4 }
 0x10b   : > { %v1018_v31 = vsub.f32 1.0, %v1017_v30 }
 0x10c   : > { %v866_v18 = vadd.f32 %v865_v14, %v864_v8  ;;  %v966_v19 = vrot.slane %v965_v15, 2 }
 0x10d   : > { %v1019_v32 = vmul.f32 %v7471_v29, %v1018_v31 }
 0x10e   : > { %v867_v20 = vrot.slane %v866_v18, 1  ;;  %v967_v21 = vadd.f32 %v966_v19, %v965_v15 }
 0x10f   : > { %v1020_v33 = vadd.f32 %v7471_v29, %v1019_v32 }
 0x110   : > { %v868_v22 = vadd.f32 %v867_v20, %v866_v18  ;;  %v968_v24 = vrot.slane %v967_v21, 1 }
 0x111   : > { %v8420_v34 = vsel %vm1021_vm2, %v7471_v29, %v1020_v33  ;;  %vm14718_vm2 = vcmask 1040384  }
 0x112   : > { %6479 = vmatmul.msk.f32.vlgmr.msra.gmra.mxu0 %vm14532_vm1, %v868_v22  ;;  %v969_v27 = vadd.f32 %v968_v24, %v967_v21  ;;  %14874 = vst [vmem:[#allocation46_spill] sm:$0xff] %v8420_v34 }
 0x113   : > { %1101 = vmatpush.msra.mxu0 %v796_v43 }
 0x114   : > { %6480 = vmatmul.msk.f32.vlgmr.msra.gmra.mxu1 %vm14532_vm1, %v969_v27 }
 0x115   : > { %1102 = vmatpush.msra.mxu0 %v8366_v53 }
 0x18f   : > { %v990_v41 = vpop.f32.mrf.mxu0 }
 0x190   : > { %v1023_v49 = vmul.f32 %v8420_v34, %v990_v41 }
 0x191   : > { %v1013_v54 = vpop.f32.mrf.mxu1 }
 0x192   : > { %6481 = vmatmul.msk.f32.vlgmr.msrb.gmra.mxu0 %vm1027_vm3, %v1023_v49  ;;  %v1025_v43 = vmul.f32 %v1023_v49, %v1023_v49  ;;  %v1024_v56 = vmul.f32 %v8420_v34, %v1013_v54 }
 0x194   : > { %v1026_v53 = vsub.f32 %v1024_v56, %v1025_v43 }
 0x19a   : > { %6482 = vmatmul.msk.f32.vlgmr.msra.gmra.mxu0 %vm1027_vm3, %v1026_v53 }
 0x20f   : > { %v1048_v57 = vpop.f32.mrf.mxu0 }
 0x210   : > { %v8424_v0 = vperm.slane %v1048_v57, 0 }
 0x212   : > { %v1052_v9 = vsub.f32 %v8099_v39, %v8424_v0  ;;  %v1053_v14 = vsub.f32 %v8110_v47, %v8424_v0  ;;  %v1056_v15 = vsub.f32 %v8125_v55, %v8424_v0  ;;  %v1057_v18 = vsub.f32 %v8134_v63, %v8424_v0 }
 0x213   : > { %v1058_v20 = vsub.f32 %v8153_v16, %v8424_v0  ;;  %v1059_v21 = vsub.f32 %v8156_v17, %v8424_v0  ;;  %v1060_v22 = vsub.f32 %v8150_v13, %v8424_v0  ;;  %v1061_v24 = vsub.f32 %v8184_v50, %v8424_v0 }
 0x214   : > { %v1064_v27 = vsub.f32 %v8208_v10, %v8424_v0  ;;  %v1065_v28 = vsub.f32 %v8211_v11, %v8424_v0  ;;  %v1066_v29 = vsub.f32 %v8214_v12, %v8424_v0  ;;  %v1067_v31 = vsub.f32 %v8235_v37, %v8424_v0 }
 0x215   : > { %v1070_v32 = vsub.f32 %v8262_v5, %v8424_v0  ;;  %v1071_v33 = vsub.f32 %v8265_v6, %v8424_v0  ;;  %v1072_v49 = vsub.f32 %v8268_v7, %v8424_v0  ;;  %v1073_v54 = vsub.f32 %v8301_v45, %v8424_v0 }
 0x216   : > { %v1074_v43 = vsub.f32 %v8304_v46, %v8424_v0  ;;  %v1075_v56 = vsub.f32 %v8307_v52, %v8424_v0  ;;  %v1078_v53 = vsub.f32 %v8346_v26, %v8424_v0  ;;  %v1079_v57 = vsub.f32 %v8376_v1, %v8424_v0 }
 0x217   : > { %v1104_v58 = vpop.f32.mrf.mxu0 }
 0x218   : > { %v1105_v59 = vadd.f32 1e-06, %v1104_v58 }
 0x21a   : > { %7472 = vrsqrt.f32 %v1105_v59  ;;  %vm1113_vm5 = vweird.f32 %v1105_v59 }
 0x220   : > { %v7473_v60 = vpop.eup %7472 }
 0x221   : > { %v1108_v61 = vmul.f32 %v7473_v60, %v1105_v59  ;;  %vm1114_vm4 = vweird.f32 %v7473_v60 }
 0x222   : > { %vm1115_vm6 = vmor %vm1113_vm5, %vm1114_vm4 }
 0x223   : > { %v1109_v62 = vmul.f32 %v7473_v60, %v1108_v61 }
 0x225   : > { %v1110_v4 = vmul.f32 0.5, %v1109_v62 }
 0x227   : > { %v1111_v8 = vsub.f32 1.5, %v1110_v4 }
 0x229   : > { %v1112_v19 = vmul.f32 %v7473_v60, %v1111_v8  ;;  %v1080_v8 = vsub.f32 %v8379_v2, %v8424_v0  ;;  %v8502_v2 = vld [vmem:[%s14436_s7] ss:$0 sm:$0xff] }
 0x22b   : > { %v1116_v30 = vsel %vm1115_vm6, %v7473_v60, %v1112_v19  ;;  %v1081_v19 = vsub.f32 %v8382_v3, %v8424_v0 }
 0x22c   : > { %v8454_v41 = vperm.slane %v1116_v30, 0 }
 0x22e   : > { %v1118_v58 = vmul.f32 %v8454_v41, %v1052_v9  ;;  %v1119_v59 = vmul.f32 %v8454_v41, %v1053_v14  ;;  %v1122_v60 = vmul.f32 %v8454_v41, %v1056_v15  ;;  %v1123_v61 = vmul.f32 %v8454_v41, %v1057_v18 }
 0x22f   : > { %v1124_v62 = vmul.f32 %v8454_v41, %v1058_v20  ;;  %v1125_v4 = vmul.f32 %v8454_v41, %v1059_v21  ;;  %v1126_v30 = vmul.f32 %v8454_v41, %v1060_v22  ;;  %v1127_v9 = vmul.f32 %v8454_v41, %v1061_v24  ;;  %v8489_v21 = vld [vmem:[%s14435_s6] ss:$0 sm:$0xff] }
 0x230   : > { %v1082_v14 = vsub.f32 %v8402_v35, %v8424_v0  ;;  %v1083_v15 = vsub.f32 %v8405_v36, %v8424_v0  ;;  %v1130_v18 = vmul.f32 %v8454_v41, %v1064_v27  ;;  %v1131_v20 = vmul.f32 %v8454_v41, %v1065_v28 }
 0x231   : > { %v1132_v34 = vmul.f32 %v8454_v41, %v1066_v29  ;;  %v1133_v22 = vmul.f32 %v8454_v41, %v1067_v31  ;;  %v1136_v24 = vmul.f32 %v8454_v41, %v1070_v32  ;;  %v1137_v35 = vmul.f32 %v8454_v41, %v1071_v33 }
 0x232   : > { %v1138_v3 = vmul.f32 %v8454_v41, %v1072_v49  ;;  %v1139_v36 = vmul.f32 %v8454_v41, %v1073_v54  ;;  %v1140_v27 = vmul.f32 %v8454_v41, %v1074_v43  ;;  %v1141_v28 = vmul.f32 %v8454_v41, %v1075_v56 }
 0x233   : > { %v1144_v29 = vmul.f32 %v8454_v41, %v1078_v53  ;;  %v1145_v31 = vmul.f32 %v8454_v41, %v1079_v57  ;;  %v1146_v32 = vmul.f32 %v8454_v41, %v1080_v8  ;;  %v1147_v33 = vmul.f32 %v8454_v41, %v1081_v19 }
 0x234   : > { %v1148_v49 = vmul.f32 %v8454_v41, %v1082_v14  ;;  %v1149_v54 = vmul.f32 %v8454_v41, %v1083_v15  ;;  %v1165_v43 = vmul.f32 %v8489_v21, %v1130_v18  ;;  %v1166_v56 = vmul.f32 %v8489_v21, %v1131_v20 }
 0x235   : > { %v1167_v1 = vmul.f32 %v8489_v21, %v1132_v34  ;;  %v1168_v26 = vmul.f32 %v8489_v21, %v1133_v22  ;;  %v1062_v53 = vsub.f32 %v8187_v51, %v8424_v0  ;;  %v1063_v57 = vsub.f32 %v8181_v44, %v8424_v0 }
 0x236   : > { %v1153_v8 = vmul.f32 %v8489_v21, %v1118_v58  ;;  %v1154_v19 = vmul.f32 %v8489_v21, %v1119_v59  ;;  %v8521_v14 = vadd.f32 %v8502_v2, %v1165_v43  ;;  %v8524_v15 = vadd.f32 %v8502_v2, %v1166_v56 }
 0x237   : > { %v8527_v34 = vadd.f32 %v8502_v2, %v1167_v1  ;;  %v8530_v18 = vadd.f32 %v8502_v2, %v1168_v26  ;;  %v1157_v20 = vmul.f32 %v8489_v21, %v1122_v60  ;;  %v1158_v22 = vmul.f32 %v8489_v21, %v1123_v61 }
 0x238   : > { %v1159_v58 = vmul.f32 %v8489_v21, %v1124_v62  ;;  %v1160_v59 = vmul.f32 %v8489_v21, %v1125_v4  ;;  %v6495_v43 = vmul.f32 -1.442695, %v8521_v14  ;;  %v6496_v52 = vmul.f32 -1.442695, %v8524_v15 }
 0x239   : > { %v6497_v56 = vmul.f32 -1.442695, %v8527_v34  ;;  %v8540_v1 = vmul.f32 %v8489_v21, %v1126_v30  ;;  %v1128_v26 = vmul.f32 %v8454_v41, %v1062_v53  ;;  %v6498_v46 = vmul.f32 -1.442695, %v8530_v18 }
 0x23a   : > { %v8545_v60 = vmul.f32 %v8489_v21, %v1127_v9  ;;  %v1129_v61 = vmul.f32 %v8454_v41, %v1063_v57  ;;  %7474 = vpow2.f32 %v6495_v43  ;;  %v8549_v62 = vmul.f32 %v8489_v21, %v1136_v24 }
 0x23b   : > { %7476 = vpow2.f32 %v6496_v52  ;;  %v8552_v4 = vmul.f32 %v8489_v21, %v1137_v35  ;;  %v8555_v30 = vmul.f32 %v8489_v21, %v1138_v3  ;;  %v8558_v53 = vmul.f32 %v8489_v21, %v1139_v36 }
 0x23c   : > { %7478 = vpow2.f32 %v6497_v56  ;;  %v8561_v9 = vmul.f32 %v8489_v21, %v1140_v27  ;;  %v1163_v57 = vmul.f32 %v8489_v21, %v1128_v26  ;;  %v8565_v52 = vmul.f32 %v8489_v21, %v1141_v28 }
 0x23d   : > { %7480 = vpow2.f32 %v6498_v46  ;;  %v8568_v24 = vmul.f32 %v8489_v21, %v1144_v29  ;;  %v8571_v35 = vmul.f32 %v8489_v21, %v1145_v31  ;;  %v8574_v3 = vmul.f32 %v8489_v21, %v1146_v32 }
 0x23e   : > { %v8577_v36 = vmul.f32 %v8489_v21, %v1147_v33  ;;  %v1054_v46 = vsub.f32 %v8104_v42, %v8424_v0  ;;  %v1164_v27 = vmul.f32 %v8489_v21, %v1129_v61  ;;  %v8583_v28 = vmul.f32 %v8489_v21, %v1148_v49 }
 0x23f   : > { %v8586_v29 = vmul.f32 %v8489_v21, %v1149_v54  ;;  %v1055_v31 = vsub.f32 %v8113_v48, %v8424_v0  ;;  %v1068_v32 = vsub.f32 %v8238_v38, %v8424_v0  ;;  %v8593_v33 = vadd.f32 %v8502_v2, %v1153_v8 }
 0x240   : > { %v7475_v43 = vpop.eup %7474  ;;  %v8596_v56 = vadd.f32 %v8502_v2, %v1154_v19  ;;  %v1069_v49 = vsub.f32 %v8241_v40, %v8424_v0  ;;  %v8603_v54 = vadd.f32 %v8502_v2, %v1163_v57  ;;  %v8606_v45 = vadd.f32 %v8502_v2, %v1157_v20 }
 0x241   : > { %14875 = vst [vmem:[#allocation47_spill] sm:$0xff] %v8593_v33  ;;  %v7477_v26 = vpop.eup %7476  ;;  %v8600_v61 = vadd.f32 1.0, %v7475_v43  ;;  %v8611_v8 = vadd.f32 %v8502_v2, %v1158_v22  ;;  %v8614_v19 = vadd.f32 %v8502_v2, %v1159_v58  ;;  %v8617_v5 = vadd.f32 %v8502_v2, %v1160_v59 }
 0x242   : > { %14876 = vst [vmem:[#allocation48_spill] sm:$0xff] %v8596_v56  ;;  %v7479_v7 = vpop.eup %7478  ;;  %v8608_v6 = vadd.f32 1.0, %v7477_v26  ;;  %v1076_v57 = vsub.f32 %v8340_v23, %v8424_v0  ;;  %v8625_v20 = vadd.f32 %v8502_v2, %v1164_v27  ;;  %v1077_v22 = vsub.f32 %v8343_v25, %v8424_v0 }
 0x243   : > { %v7481_v43 = vpop.eup %7480  ;;  %v8621_v40 = vadd.f32 1.0, %v7479_v7  ;;  %7482 = vrcp.f32 %v8600_v61  ;;  %v1120_v58 = vmul.f32 %v8454_v41, %v1054_v46  ;;  %v8634_v59 = vmul.f32 %v8454_v41, %v1055_v31 }
 0x244   : > { %v8630_v26 = vadd.f32 1.0, %v7481_v43  ;;  %7484 = vrcp.f32 %v8608_v6  ;;  %v1539_v7 = vand.u32 2147483648, %v8600_v61  ;;  %v6493_v23 = vmul.f32 -1.442695, %v8603_v54 }
 0x245   : > { %7486 = vrcp.f32 %v8621_v40  ;;  %v8640_v27 = vmul.f32 %v8454_v41, %v1068_v32  ;;  %v8643_v0 = vmul.f32 %v8454_v41, %v1069_v49  ;;  %v1537_v46 = vand.u32 2147483647, %v8600_v61 }
 0x246   : > { %v1554_v43 = vand.u32 2147483648, %v8608_v6  ;;  %v8648_v25 = vmul.f32 %v8454_v41, %v1076_v57  ;;  %v1552_v31 = vand.u32 2147483647, %v8608_v6  ;;  %7488 = vrcp.f32 %v8630_v26 }
 0x247   : > { %v6494_v38 = vmul.f32 -1.442695, %v8625_v20  ;;  %v8654_v37 = vmul.f32 %v8454_v41, %v1077_v22  ;;  %vm1533_vm7 = vweird.f32 %v8600_v61  ;;  %v1567_v32 = vand.u32 2147483647, %v8621_v40 }
 0x248   : > { %v8659_v49 = vmul.f32 %v8489_v21, %v1120_v58  ;;  %v1540_v11 = vor.u32 1.1754944e-38, %v1539_v7  ;;  %vm1548_vm8 = vweird.f32 %v8608_v6  ;;  %7490 = vpow2.f32 %v6493_v23 }
 0x249   : > { %v7483_v12 = vpop.eup %7482  ;;  %v8664_v57 = vadd.f32 %v8502_v2, %v8540_v1  ;;  %v8668_v41 = vadd.f32 %v8502_v2, %v8545_v60  ;;  %vm8671_vm9 = vcmp.eq.f32.partialorder %v1537_v46, 8.507059e+37  ;;  %v1555_v58 = vor.u32 1.1754944e-38, %v1554_v43 }
 0x24a   : > { %v7485_v22 = vpop.eup %7484  ;;  %v1529_v10 = vmul.f32 %v7483_v12, %v8600_v61  ;;  %vm1563_vm10 = vweird.f32 %v8621_v40  ;;  %v1569_v23 = vand.u32 2147483648, %v8621_v40  ;;  %vm8678_vm11 = vcmp.eq.f32.partialorder %v1552_v31, 8.507059e+37 }
 0x24b   : > { %14877 = vst [vmem:[#allocation49_spill] sm:$0xff] %v8664_v57  ;;  %v7487_v7 = vpop.eup %7486  ;;  %v1544_v1 = vmul.f32 %v7485_v22, %v8608_v6  ;;  %v1582_v60 = vand.u32 2147483647, %v8630_v26  ;;  %v1584_v50 = vand.u32 2147483648, %v8630_v26  ;;  %7492 = vpow2.f32 %v6494_v38 }
 0x24c   : > { %14878 = vst [vmem:[#allocation50_spill] sm:$0xff] %v8668_v41  ;;  %v1530_v46 = vsub.f32 1.0, %v1529_v10  ;;  %vm1534_vm12 = vweird.f32 %v7483_v12  ;;  %v1559_v43 = vmul.f32 %v7487_v7, %v8621_v40  ;;  %vm8685_vm13 = vcmp.eq.f32.partialorder %v1567_v32, 8.507059e+37  ;;  %v7489_v17 = vpop.eup %7488 }
 0x24d   : > { %vm1578_vm14 = vweird.f32 %v8630_v26  ;;  %v8692_v31 = vadd.f32 %v8502_v2, %v8549_v62  ;;  %v1545_v16 = vsub.f32 1.0, %v1544_v1  ;;  %v8696_v63 = vadd.f32 %v8502_v2, %v8552_v4  ;;  %vm1535_vm4 = vmor %vm1533_vm7, %vm1534_vm12 }
 0x24e   : > { %v8700_v10 = vadd.f32 %v8502_v2, %v8555_v30  ;;  %v8704_v38 = vadd.f32 %v8502_v2, %v8558_v53  ;;  %v1531_v32 = vmul.f32 %v7483_v12, %v1530_v46  ;;  %vm1549_vm15 = vweird.f32 %v7485_v22  ;;  %v7491_v48 = vpop.eup %7490 }
 0x24f   : > { %v1560_v55 = vsub.f32 1.0, %v1559_v43  ;;  %v1574_v62 = vmul.f32 %v7489_v17, %v8630_v26  ;;  %v1546_v1 = vmul.f32 %v7485_v22, %v1545_v16  ;;  %vm1564_vm3 = vweird.f32 %v7487_v7  ;;  %vm1550_vm6 = vmor %vm1548_vm8, %vm1549_vm15 }
 0x250   : > { %v8709_v4 = vadd.f32 %v8502_v2, %v8561_v9  ;;  %v8713_v30 = vadd.f32 %v8502_v2, %v8565_v52  ;;  %v1532_v42 = vadd.f32 %v7483_v12, %v1531_v32  ;;  %v8715_v46 = vadd.f32 1.0, %v7491_v48  ;;  %vm1565_vm7 = vmor %vm1563_vm10, %vm1564_vm3 }
 0x251   : > { %v1561_v53 = vmul.f32 %v7487_v7, %v1560_v55  ;;  %v1575_v47 = vsub.f32 1.0, %v1574_v62  ;;  %v7493_v43 = vpop.eup %7492  ;;  %v1547_v16 = vadd.f32 %v7485_v22, %v1546_v1  ;;  %vm1579_vm5 = vweird.f32 %v7489_v17 }
 0x252   : > { %v8722_v9 = vadd.f32 %v8502_v2, %v8568_v24  ;;  %v8726_v52 = vadd.f32 %v8502_v2, %v8571_v35  ;;  %v1536_v32 = vsel %vm1535_vm4, %v7483_v12, %v1532_v42  ;;  %v8731_v62 = vadd.f32 1.0, %v7493_v43  ;;  %vm1580_vm8 = vmor %vm1578_vm14, %vm1579_vm5 }
 0x253   : > { %v1562_v48 = vadd.f32 %v7487_v7, %v1561_v53  ;;  %v1576_v55 = vmul.f32 %v7489_v17, %v1575_v47  ;;  %v1541_v61 = vsel %vm8671_vm9, %v1540_v11, %v1536_v32  ;;  %v1551_v1 = vsel %vm1550_vm6, %v7485_v22, %v1547_v16 }
 0x254   : > { %v1570_v24 = vor.u32 1.1754944e-38, %v1569_v23  ;;  %7494 = vrcp.f32 %v8715_v46  ;;  %v1556_v42 = vsel %vm8678_vm11, %v1555_v58, %v1551_v1  ;;  %v8742_v47 = vmul.f32 %v1541_v61, %v8521_v14 }
 0x255   : > { %v1566_v12 = vsel %vm1565_vm7, %v7487_v7, %v1562_v48  ;;  %v1577_v6 = vadd.f32 %v7489_v17, %v1576_v55  ;;  %vm1583_vm9 = vcmp.eq.f32.partialorder %v1582_v60, 8.507059e+37  ;;  %v1585_v11 = vor.u32 1.1754944e-38, %v1584_v50 }
 0x256   : > { %v1571_v44 = vsel %vm8685_vm13, %v1570_v24, %v1566_v12  ;;  %v1841_v40 = vmul.f32 %v1556_v42, %v8524_v15  ;;  %v1987_v22 = vrot.slane %v8742_v47, 7  ;;  %7496 = vrcp.f32 %v8731_v62 }
 0x257   : > { %v1581_v35 = vsel %vm1580_vm8, %v7489_v17, %v1577_v6  ;;  %v1842_v51 = vmul.f32 %v1571_v44, %v8527_v34  ;;  %v1156_v13 = vmul.f32 %v8489_v21, %v8634_v59  ;;  %v1169_v26 = vmul.f32 %v8489_v21, %v8640_v27 }
 0x258   : > { %v1586_v14 = vsel %vm1583_vm9, %v1585_v11, %v1581_v35  ;;  %v1988_v58 = vrot.slane %v1841_v40, 7  ;;  %vm14567_vm10 = vcmask 1046528   ;;  %v1170_v17 = vmul.f32 %v8489_v21, %v8643_v0 }
 0x259   : > { %v8758_v23 = vmul.f32 %v1586_v14, %v8530_v18  ;;  %v1990_v50 = vrot.slane %v1842_v51, 7  ;;  %v1177_v59 = vmul.f32 %v8489_v21, %v8648_v25  ;;  %v8774_v18 = vadd.f32 %v8502_v2, %v8659_v49 }
 0x25a   : > { %v7495_v15 = vpop.eup %7494  ;;  %v8765_v34 = vsel %vm14718_vm2, %v1987_v22, %v1988_v58  ;;  %v8768_v7 = vsel %vm14718_vm2, %v1988_v58, 0.0  ;;  %v8785_v32 = vadd.f32 %v8502_v2, %v1156_v13  ;;  %v8788_v25 = vadd.f32 %v8502_v2, %v1169_v26 }
 0x25b   : > { %14885 = vst [vmem:[#allocation51_spill] sm:$0xff] %v8765_v34  ;;  %v1991_v27 = vrot.slane %v8758_v23, 7  ;;  %v8778_v0 = vsel %vm14718_vm2, 0.0, %v1990_v50  ;;  %v2170_v60 = vrot.slane %v8765_v34, 1  ;;  %v2172_v53 = vrot.slane %v8768_v7, 1 }
 0x25c   : > { %14886 = vst [vmem:[#allocation52_spill] sm:$0xff] %v8768_v7  ;;  %v2174_v43 = vrot.slane %v8778_v0, 1  ;;  %v1499_v16 = vmul.f32 %v7495_v15, %v8715_v46  ;;  %v7497_v49 = vpop.eup %7496  ;;  %vm1503_vm11 = vweird.f32 %v8715_v46  ;;  %v1507_v55 = vand.u32 2147483647, %v8715_v46 }
 0x25d   : > { %14887 = vst [vmem:[#allocation53_spill] sm:$0xff] %v8778_v0  ;;  %v8793_v48 = vsel %vm14718_vm2, %v1990_v50, %v1991_v27  ;;  %v1509_v61 = vand.u32 2147483648, %v8715_v46  ;;  %v8801_v1 = vsel %vm14567_vm10, %v2170_v60, %v2172_v53  ;;  %v1514_v12 = vmul.f32 %v7497_v49, %v8731_v62 }
 0x25e   : > { %14888 = vst [vmem:[#allocation54_spill] sm:$0xff] %v8793_v48  ;;  %v2175_v24 = vrot.slane %v8793_v48, 1  ;;  %v1500_v42 = vsub.f32 1.0, %v1499_v16  ;;  %vm1504_vm12 = vweird.f32 %v7495_v15  ;;  %v8807_v6 = vadd.f32 %v8502_v2, %v8574_v3 }
 0x25f   : > { %14889 = vst [vmem:[#allocation55_spill] sm:$0xff] %v8801_v1  ;;  %v8811_v44 = vadd.f32 %v8502_v2, %v8577_v36  ;;  %v8815_v11 = vadd.f32 %v8502_v2, %v8583_v28  ;;  %v1515_v51 = vsub.f32 1.0, %v1514_v12  ;;  %v8824_v14 = vadd.f32 %v8502_v2, %v8586_v29  ;;  %vm1505_vm14 = vmor %vm1503_vm11, %vm1504_vm12 }
 0x260   : > { %v8820_v40 = vsel %vm14567_vm10, %v2174_v43, %v2175_v24  ;;  %v1501_v35 = vmul.f32 %v7495_v15, %v1500_v42  ;;  %v1524_v36 = vand.u32 2147483648, %v8731_v62  ;;  %v6485_v58 = vmul.f32 -1.442695, %v8774_v18 }
 0x261   : > { %14890 = vst [vmem:[#allocation56_spill] sm:$0xff] %v8815_v11  ;;  %v6763_v3 = vpack.i.bf16 %v8820_v40, %v8801_v1  ;;  %v6486_v28 = vmul.f32 -1.442695, %v8785_v32  ;;  %v1516_v26 = vmul.f32 %v7497_v49, %v1515_v51  ;;  %vm1519_vm13 = vweird.f32 %v7497_v49 }
 0x262   : > { %14891 = vst [vmem:[#allocation57_spill] sm:$0xff] %v8820_v40  ;;  %v1502_v13 = vadd.f32 %v7495_v15, %v1501_v35  ;;  %v1522_v50 = vand.u32 2147483647, %v8731_v62  ;;  %vm1508_vm15 = vcmp.eq.f32.partialorder %v1507_v55, 8.507059e+37  ;;  %v1510_v29 = vor.u32 1.1754944e-38, %v1509_v61 }
 0x263   : > { %14892 = vst [vmem:[#allocation58_spill] sm:$0xff] %v8824_v14  ;;  %6764 = vrot.lane.b32.xlu0 %v6763_v3, %s7837_s28  ;;  %v8837_v53 = vadd.f32 %v8502_v2, %v1170_v17  ;;  %7498 = vpow2.f32 %v6485_v58  ;;  %v1517_v16 = vadd.f32 %v7497_v49, %v1516_v26  ;;  %vm1518_vm3 = vweird.f32 %v8731_v62 }
 0x264   : > { %v1506_v43 = vsel %vm1505_vm14, %v7495_v15, %v1502_v13  ;;  %7500 = vpow2.f32 %v6486_v28  ;;  %v1178_v42 = vmul.f32 %v8489_v21, %v8654_v37  ;;  %vm1520_vm4 = vmor %vm1518_vm3, %vm1519_vm13  ;;  %v1525_v35 = vor.u32 1.1754944e-38, %v1524_v36 }
 0x265   : > { %v1511_v12 = vsel %vm1508_vm15, %v1510_v29, %v1506_v43  ;;  %v8846_v46 = vsel %vm14718_vm2, 0.0, %v1987_v22  ;;  %v1521_v17 = vsel %vm1520_vm4, %v7497_v49, %v1517_v16  ;;  %vm1523_vm5 = vcmp.eq.f32.partialorder %v1522_v50, 8.507059e+37 }
 0x266   : > { %14893 = vst [vmem:[#allocation59_spill] sm:$0xff] %v8846_v46  ;;  %v8849_v15 = vmul.f32 %v1511_v12, %v8603_v54  ;;  %v6499_v62 = vmul.f32 -1.442695, %v8788_v25  ;;  %v1526_v55 = vsel %vm1523_vm5, %v1525_v35, %v1521_v17  ;;  %v6500_v61 = vmul.f32 -1.442695, %v8837_v53 }
 0x267   : > { %v1839_v37 = vmul.f32 %v1526_v55, %v8625_v20  ;;  %v2169_v47 = vrot.slane %v8846_v46, 1  ;;  %v8857_v22 = vadd.f32 %v8502_v2, %v1177_v59  ;;  %v8860_v54 = vadd.f32 %v8502_v2, %v1178_v42 }
 0x268   : > { %14894 = vst [vmem:[#allocation60_spill] sm:$0xff] %v8849_v15  ;;  %v14490_v21 = vrot.slane %v8849_v15, 7  ;;  %7502 = vpow2.f32 %v6499_v62  ;;  %v8890_v16 = vsel %vm14718_vm2, %v1991_v27, 0.0 }
 0x269   : > { %v7499_v51 = vpop.eup %7498  ;;  %v1985_v3 = vrot.slane %v1839_v37, 7  ;;  %7504 = vpow2.f32 %v6500_v61  ;;  %v8877_v2 = vsel %vm14567_vm10, %v2169_v47, %v2170_v60  ;;  %v6507_v26 = vmul.f32 -1.442695, %v8857_v22  ;;  %14899 = vst [vmem:[#allocation65_spill] sm:$0xff] %v8890_v16 }
 0x26a   : > { %v7501_v49 = vpop.eup %7500  ;;  %v1318_v36 = vadd.f32 1.0, %v7499_v51  ;;  %14897 = vst [vmem:[#allocation63_spill] sm:$0xff] %v8877_v2  ;;  %v6508_v50 = vmul.f32 -1.442695, %v8860_v54  ;;  %v2177_v17 = vrot.slane %v8890_v16, 1 }
 0x26b   : > { %v8862_v58 = vadd.f32 1.0, %v7501_v49  ;;  %v8867_v20 = vsel %vm14718_vm2, %v14490_v21, %v1985_v3  ;;  %v8870_v28 = vsel %vm14718_vm2, %v1985_v3, 0.0  ;;  %v8906_v3 = vmul.f32 -1.442695, %v8593_v33 }
 0x26c   : > { %14895 = vst [vmem:[#allocation61_spill] sm:$0xff] %v8867_v20  ;;  %7506 = vrcp.f32 %v1318_v36  ;;  %v14489_v59 = vrot.slane %v8867_v20, 1  ;;  %v2167_v13 = vrot.slane %v8870_v28, 1  ;;  %v1387_v23 = vand.u32 2147483647, %v1318_v36 }
 0x26d   : > { %14896 = vst [vmem:[#allocation62_spill] sm:$0xff] %v8870_v28  ;;  %7508 = vrcp.f32 %v8862_v58  ;;  %v1389_v61 = vand.u32 2147483648, %v1318_v36  ;;  %v1402_v37 = vand.u32 2147483647, %v8862_v58  ;;  %v1404_v51 = vand.u32 2147483648, %v8862_v58 }
 0x26e   : > { %v7503_v29 = vpop.eup %7502  ;;  %v8885_v43 = vsel %vm14567_vm10, %v14489_v59, %v2167_v13  ;;  %7510 = vpow2.f32 %v6507_v26  ;;  %v8909_v13 = vmul.f32 -1.442695, %v8596_v56  ;;  %vm1383_vm6 = vweird.f32 %v1318_v36 }
 0x26f   : > { %14898 = vst [vmem:[#allocation64_spill] sm:$0xff] %v8885_v43  ;;  %v6758_v60 = vpack.i.bf16 %v8877_v2, %v8885_v43  ;;  %v7505_v42 = vpop.eup %7504  ;;  %v8894_v12 = vadd.f32 1.0, %v7503_v29  ;;  %7512 = vpow2.f32 %v6508_v50  ;;  %vm1398_vm7 = vweird.f32 %v8862_v58 }
 0x270   : > { %v8898_v62 = vadd.f32 1.0, %v7505_v42  ;;  %v8915_v26 = vsel %vm14567_vm10, %v2175_v24, %v2177_v17  ;;  %v8918_v50 = vmul.f32 -1.442695, %v8606_v45  ;;  %vm8920_vm9 = vcmp.eq.f32.partialorder %v1387_v23, 8.507059e+37 }
 0x271   : > { %6759 = vrot.lane.b32.xlu2 %v6758_v60, %s7837_s28  ;;  %7514 = vrcp.f32 %v8894_v12  ;;  %14900 = vst [vmem:[#allocation66_spill] sm:$0xff] %v8915_v26  ;;  %v1390_v21 = vor.u32 1.1754944e-38, %v1389_v61  ;;  %vm8924_vm11 = vcmp.eq.f32.partialorder %v1402_v37, 8.507059e+37  ;;  %v1405_v40 = vor.u32 1.1754944e-38, %v1404_v51 }
 0x272   : > { %v7507_v35 = vpop.eup %7506  ;;  %7516 = vrcp.f32 %v8898_v62  ;;  %vm1593_vm14 = vweird.f32 %v8894_v12  ;;  %v1597_v61 = vand.u32 2147483647, %v8894_v12  ;;  %vm1608_vm3 = vweird.f32 %v8898_v62 }
 0x273   : > { %v1379_v55 = vmul.f32 %v7507_v35, %v1318_v36  ;;  %v7509_v27 = vpop.eup %7508  ;;  %vm1384_vm8 = vweird.f32 %v7507_v35 }
 0x274   : > { %v1394_v49 = vmul.f32 %v7509_v27, %v8862_v58  ;;  %v7511_v29 = vpop.eup %7510  ;;  %vm1399_vm12 = vweird.f32 %v7509_v27  ;;  %vm1385_vm13 = vmor %vm1383_vm6, %vm1384_vm8  ;;  %vm1598_vm6 = vcmp.eq.f32.partialorder %v1597_v61, 8.507059e+37 }
 0x275   : > { %v1380_v47 = vsub.f32 1.0, %v1379_v55  ;;  %v7513_v59 = vpop.eup %7512  ;;  %v8928_v24 = vadd.f32 1.0, %v7511_v29  ;;  %v1599_v29 = vand.u32 2147483648, %v8894_v12  ;;  %vm1400_vm15 = vmor %vm1398_vm7, %vm1399_vm12 }
 0x276   : > { %v1395_v55 = vsub.f32 1.0, %v1394_v49 }
 0x277   : > { %v1381_v60 = vmul.f32 %v7507_v35, %v1380_v47  ;;  %v7515_v17 = vpop.eup %7514  ;;  %v8930_v47 = vadd.f32 1.0, %v7513_v59  ;;  %7518 = vrcp.f32 %v8928_v24  ;;  %vm1713_vm12 = vweird.f32 %v8928_v24 }
 0x278   : > { %v1396_v2 = vmul.f32 %v7509_v27, %v1395_v55  ;;  %v7517_v23 = vpop.eup %7516  ;;  %v1589_v49 = vmul.f32 %v7515_v17, %v8894_v12  ;;  %v1612_v55 = vand.u32 2147483647, %v8898_v62  ;;  %vm1594_vm4 = vweird.f32 %v7515_v17 }
 0x279   : > { %v1382_v1 = vadd.f32 %v7507_v35, %v1381_v60  ;;  %v1604_v60 = vmul.f32 %v7517_v23, %v8898_v62  ;;  %7520 = vrcp.f32 %v8930_v47  ;;  %vm1609_vm5 = vweird.f32 %v7517_v23  ;;  %vm1595_vm8 = vmor %vm1593_vm14, %vm1594_vm4 }
 0x27a   : > { %v1397_v51 = vadd.f32 %v7509_v27, %v1396_v2  ;;  %v1590_v36 = vsub.f32 1.0, %v1589_v49  ;;  %vm8953_vm7 = vcmp.eq.f32.partialorder %v1612_v55, 8.507059e+37  ;;  %7522 = vpow2.f32 %v8918_v50 }
 0x27b   : > { %v1386_v37 = vsel %vm1385_vm13, %v7507_v35, %v1382_v1  ;;  %v1605_v1 = vsub.f32 1.0, %v1604_v60  ;;  %7524 = vpow2.f32 %v8906_v3  ;;  %v6489_v50 = vmul.f32 -1.442695, %v8614_v19 }
 0x27c   : > { %v1391_v59 = vsel %vm8920_vm9, %v1390_v21, %v1386_v37  ;;  %v1401_v43 = vsel %vm1400_vm15, %v7509_v27, %v1397_v51  ;;  %v1591_v35 = vmul.f32 %v7515_v17, %v1590_v36  ;;  %v1614_v21 = vand.u32 2147483648, %v8898_v62  ;;  %vm1610_vm9 = vmor %vm1608_vm3, %vm1609_vm5 }
 0x27d   : > { %v1830_v16 = vmul.f32 %v1391_v59, %v8774_v18  ;;  %v1406_v2 = vsel %vm8924_vm11, %v1405_v40, %v1401_v43  ;;  %v1606_v49 = vmul.f32 %v7517_v23, %v1605_v1  ;;  %v7519_v37 = vpop.eup %7518  ;;  %v1600_v18 = vor.u32 1.1754944e-38, %v1599_v29 }
 0x27e   : > { %v8951_v58 = vmul.f32 %v1406_v2, %v8785_v32  ;;  %v1592_v27 = vadd.f32 %v7515_v17, %v1591_v35  ;;  %v1709_v43 = vmul.f32 %v7519_v37, %v8928_v24  ;;  %v1615_v61 = vor.u32 1.1754944e-38, %v1614_v21 }
 0x27f   : > { %v1972_v42 = vrot.slane %v1830_v16, 7  ;;  %v1607_v32 = vadd.f32 %v7517_v23, %v1606_v49  ;;  %v1719_v29 = vand.u32 2147483648, %v8928_v24  ;;  %v7521_v59 = vpop.eup %7520  ;;  %v1717_v62 = vand.u32 2147483647, %v8928_v24 }
 0x280   : > { %v1973_v39 = vrot.slane %v8951_v58, 7  ;;  %v1596_v60 = vsel %vm1595_vm8, %v7515_v17, %v1592_v27  ;;  %v1710_v1 = vsub.f32 1.0, %v1709_v43  ;;  %v1724_v35 = vmul.f32 %v7521_v59, %v8930_v47 }
 0x281   : > { %v8959_v40 = vsel %vm14718_vm2, 0.0, %v1972_v42  ;;  %v1601_v12 = vsel %vm1598_vm6, %v1600_v18, %v1596_v60  ;;  %v1611_v55 = vsel %vm1610_vm9, %v7517_v23, %v1607_v32  ;;  %vm1714_vm11 = vweird.f32 %v7519_v37 }
 0x282   : > { %14907 = vst [vmem:[#allocation67_spill] sm:$0xff] %v8959_v40  ;;  %v2144_v16 = vrot.slane %v8959_v40, 1  ;;  %v8971_v36 = vsel %vm14718_vm2, %v1972_v42, %v1973_v39  ;;  %v1616_v17 = vsel %vm8953_vm7, %v1615_v61, %v1611_v55  ;;  %v1711_v21 = vmul.f32 %v7519_v37, %v1710_v1  ;;  %vm1715_vm13 = vmor %vm1713_vm12, %vm1714_vm11 }
 0x283   : > { %14908 = vst [vmem:[#allocation68_spill] sm:$0xff] %v8971_v36  ;;  %v14501_v2 = vrot.slane %v8971_v36, 1  ;;  %v1844_v49 = vmul.f32 %v1601_v12, %v8788_v25  ;;  %v8980_v27 = vmul.f32 %v1616_v17, %v8837_v53  ;;  %v1720_v42 = vor.u32 1.1754944e-38, %v1719_v29 }
 0x284   : > { %v1725_v18 = vsub.f32 1.0, %v1724_v35  ;;  %v1712_v32 = vadd.f32 %v7519_v37, %v1711_v21  ;;  %v1732_v43 = vand.u32 2147483647, %v8930_v47  ;;  %v1734_v25 = vand.u32 2147483648, %v8930_v47 }
 0x285   : > { %v8985_v23 = vsel %vm14567_vm10, %v2144_v16, %v14501_v2  ;;  %vm1729_vm14 = vweird.f32 %v7521_v59  ;;  %v1993_v60 = vrot.slane %v1844_v49, 7  ;;  %v14500_v61 = vrot.slane %v8980_v27, 7 }
 0x286   : > { %14909 = vst [vmem:[#allocation69_spill] sm:$0xff] %v8985_v23  ;;  %v6768_v51 = vpack.i.bf16 %v8915_v26, %v8985_v23  ;;  %v1726_v53 = vmul.f32 %v7521_v59, %v1725_v18  ;;  %v6488_v24 = vmul.f32 -1.442695, %v8611_v8  ;;  %v6505_v16 = vmul.f32 -1.442695, %v8709_v4 }
 0x287   : > { %v1716_v29 = vsel %vm1715_vm13, %v7519_v37, %v1712_v32  ;;  %vm1718_vm15 = vcmp.eq.f32.partialorder %v1717_v62, 8.507059e+37  ;;  %vm1728_vm3 = vweird.f32 %v8930_v47  ;;  %v6506_v1 = vmul.f32 -1.442695, %v8713_v30  ;;  %v7523_v32 = vpop.eup %7522 }
 0x288   : > { %6769 = vrot.lane.b32.xlu1 %v6768_v51, %s7837_s28  ;;  %v1721_v12 = vsel %vm1718_vm15, %v1720_v42, %v1716_v29  ;;  %v1727_v55 = vadd.f32 %v7521_v59, %v1726_v53  ;;  %vm1730_vm4 = vmor %vm1728_vm3, %vm1729_vm14  ;;  %v1735_v17 = vor.u32 1.1754944e-38, %v1734_v25  ;;  %vm1733_vm5 = vcmp.eq.f32.partialorder %v1732_v43, 8.507059e+37  ;;  %v7525_v25 = vpop.eup %7524 }
 0x289   : > { %v1852_v35 = vmul.f32 %v1721_v12, %v8857_v22  ;;  %v9004_v37 = vsel %vm14718_vm2, %v1993_v60, %v14500_v61  ;;  %v9007_v62 = vsel %vm14718_vm2, 0.0, %v1993_v60  ;;  %7526 = vpow2.f32 %v8909_v13 }
 0x28a   : > { %v1731_v21 = vsel %vm1730_vm4, %v7521_v59, %v1727_v55  ;;  %14910 = vst [vmem:[#allocation70_spill] sm:$0xff] %v9004_v37  ;;  %v6490_v22 = vmul.f32 -1.442695, %v8617_v5  ;;  %v6491_v3 = vmul.f32 -1.442695, %v8664_v57  ;;  %7528 = vpow2.f32 %v6488_v24 }
 0x28b   : > { %14911 = vst [vmem:[#allocation71_spill] sm:$0xff] %v9007_v62  ;;  %v1736_v47 = vsel %vm1733_vm5, %v1735_v17, %v1731_v21  ;;  %v2005_v49 = vrot.slane %v1852_v35, 7  ;;  %v2179_v18 = vrot.slane %v9007_v62, 1  ;;  %v14499_v51 = vrot.slane %v9004_v37, 1 }
 0x28c   : > { %v9014_v59 = vmul.f32 %v1736_v47, %v8860_v54  ;;  %7530 = vpow2.f32 %v6505_v16  ;;  %v6492_v43 = vmul.f32 -1.442695, %v8668_v41  ;;  %v6501_v53 = vmul.f32 -1.442695, %v8692_v31 }
 0x28d   : > { %v9017_v42 = vsel %vm14718_vm2, 0.0, %v2005_v49  ;;  %7532 = vpow2.f32 %v6506_v1  ;;  %v6502_v60 = vmul.f32 -1.442695, %v8696_v63  ;;  %v9034_v29 = vsel %vm14567_vm10, %v2179_v18, %v14499_v51 }
 0x28e   : > { %14912 = vst [vmem:[#allocation72_spill] sm:$0xff] %v9017_v42  ;;  %v14498_v13 = vrot.slane %v9014_v59, 7  ;;  %v2199_v54 = vrot.slane %v9017_v42, 1  ;;  %7534 = vpow2.f32 %v6489_v50  ;;  %v9037_v55 = vadd.f32 1.0, %v7523_v32 }
 0x28f   : > { %7536 = vpow2.f32 %v6490_v22  ;;  %v7527_v16 = vpop.eup %7526  ;;  %14913 = vst [vmem:[#allocation73_spill] sm:$0xff] %v9034_v29  ;;  %v6503_v50 = vmul.f32 -1.442695, %v8700_v10  ;;  %v9071_v58 = vmul.f32 -1.442695, %v8811_v44  ;;  %v9080_v61 = vadd.f32 1.0, %v7525_v25 }
 0x290   : > { %v9029_v24 = vsel %vm14718_vm2, %v2005_v49, %v14498_v13  ;;  %7538 = vpow2.f32 %v6491_v3  ;;  %v7529_v1 = vpop.eup %7528  ;;  %v6504_v3 = vmul.f32 -1.442695, %v8704_v38  ;;  %v9078_v51 = vmul.f32 -1.442695, %v8815_v11 }
 0x291   : > { %v14497_v12 = vrot.slane %v9029_v24, 1  ;;  %7540 = vpow2.f32 %v6492_v43  ;;  %v9058_v43 = vsel %vm14718_vm2, %v1973_v39, 0.0  ;;  %v1419_v2 = vand.u32 2147483648, %v9037_v55 }
 0x292   : > { %v7531_v17 = vpop.eup %7530  ;;  %7542 = vpow2.f32 %v6501_v53  ;;  %14915 = vst [vmem:[#allocation75_spill] sm:$0xff] %v9058_v43  ;;  %v9060_v53 = vadd.f32 1.0, %v7529_v1  ;;  %v2147_v39 = vrot.slane %v9058_v43, 1  ;;  %v1417_v1 = vand.u32 2147483647, %v9037_v55 }
 0x293   : > { %v9042_v35 = vsel %vm14567_vm10, %v2199_v54, %v14497_v12  ;;  %v7533_v21 = vpop.eup %7532  ;;  %7544 = vpow2.f32 %v6502_v60  ;;  %v9047_v49 = vadd.f32 1.0, %v7531_v17  ;;  %v6509_v60 = vmul.f32 -1.442695, %v8722_v9 }
 0x294   : > { %14914 = vst [vmem:[#allocation74_spill] sm:$0xff] %v9042_v35  ;;  %v6778_v47 = vpack.i.bf16 %v9042_v35, %v9034_v29  ;;  %v7535_v22 = vpop.eup %7534  ;;  %v9050_v18 = vadd.f32 1.0, %v7533_v21  ;;  %7546 = vrcp.f32 %v9037_v55  ;;  %v6510_v21 = vmul.f32 -1.442695, %v8726_v52 }
 0x295   : > { %v7537_v32 = vpop.eup %7536  ;;  %7548 = vrcp.f32 %v9047_v49  ;;  %v9084_v35 = vadd.f32 1.0, %v7527_v16  ;;  %vm1413_vm6 = vweird.f32 %v9037_v55  ;;  %vm9100_vm7 = vcmp.eq.f32.partialorder %v1417_v1, 8.507059e+37 }
 0x296   : > { %6779 = vrot.lane.b32.xlu0 %v6778_v47, %s7837_s28  ;;  %v7539_v54 = vpop.eup %7538  ;;  %7550 = vrcp.f32 %v9050_v18  ;;  %v6511_v47 = vmul.f32 -1.442695, %v8807_v6  ;;  %v9089_v26 = vadd.f32 1.0, %v7537_v32  ;;  %v1420_v0 = vor.u32 1.1754944e-38, %v1419_v2 }
 0x297   : > { %v9064_v17 = vpop.eup %7540  ;;  %7552 = vpow2.f32 %v6503_v50  ;;  %v9091_v23 = vadd.f32 1.0, %v7539_v54  ;;  %v1432_v48 = vand.u32 2147483647, %v9060_v53  ;;  %v1687_v34 = vand.u32 2147483647, %v9047_v49 }
 0x298   : > { %v9068_v12 = vpop.eup %7542  ;;  %7554 = vpow2.f32 %v6504_v3  ;;  %v9086_v3 = vadd.f32 1.0, %v7535_v22  ;;  %vm1428_vm8 = vweird.f32 %v9060_v53  ;;  %v1434_v1 = vand.u32 2147483648, %v9060_v53 }
 0x299   : > { %v9075_v13 = vpop.eup %7544  ;;  %7556 = vrcp.f32 %v9060_v53  ;;  %v1704_v28 = vand.u32 2147483648, %v9050_v18  ;;  %vm1683_vm11 = vweird.f32 %v9047_v49  ;;  %v1702_v20 = vand.u32 2147483647, %v9050_v18 }
 0x29a   : > { %v7547_v50 = vpop.eup %7546  ;;  %7558 = vpow2.f32 %v6509_v60  ;;  %v14916_v60 = vrot.slane %v8971_v36, 1  ;;  %vm1688_vm14 = vcmp.eq.f32.partialorder %v1687_v34, 8.507059e+37  ;;  %vm1698_vm15 = vweird.f32 %v9050_v18 }
 0x29b   : > { %v7549_v29 = vpop.eup %7548  ;;  %7560 = vpow2.f32 %v6510_v21  ;;  %v1409_v25 = vmul.f32 %v7547_v50, %v9037_v55  ;;  %vm1414_vm9 = vweird.f32 %v7547_v50  ;;  %v1705_v14 = vor.u32 1.1754944e-38, %v1704_v28 }
 0x29c   : > { %v7551_v42 = vpop.eup %7550  ;;  %7562 = vpow2.f32 %v6511_v47  ;;  %v1679_v62 = vmul.f32 %v7549_v29, %v9047_v49  ;;  %v9098_v16 = vsel %vm14567_vm10, %v14916_v60, %v2147_v39  ;;  %v1689_v39 = vand.u32 2147483648, %v9047_v49  ;;  %vm1415_vm3 = vmor %vm1413_vm6, %vm1414_vm9 }
 0x29d   : > { %14917 = vst [vmem:[#allocation76_spill] sm:$0xff] %v9098_v16  ;;  %v9104_v21 = vpop.eup %7552  ;;  %v1694_v32 = vmul.f32 %v7551_v42, %v9050_v18  ;;  %v1410_v54 = vsub.f32 1.0, %v1409_v25  ;;  %vm1684_vm12 = vweird.f32 %v7549_v29  ;;  %vm1699_vm13 = vweird.f32 %v7551_v42 }
 0x29e   : > { %v9108_v47 = vpop.eup %7554  ;;  %v1680_v7 = vsub.f32 1.0, %v1679_v62  ;;  %vm1685_vm4 = vmor %vm1683_vm11, %vm1684_vm12  ;;  %v1690_v49 = vor.u32 1.1754944e-38, %v1689_v39  ;;  %vm1703_vm1 = vcmp.eq.f32.partialorder %v1702_v20, 8.507059e+37  ;;  %7564 = vpow2.f32 %v9071_v58 }
 0x29f   : > { %v7557_v60 = vpop.eup %7556  ;;  %v1695_v46 = vsub.f32 1.0, %v1694_v32  ;;  %v1411_v11 = vmul.f32 %v7547_v50, %v1410_v54  ;;  %vm1700_vm5 = vmor %vm1698_vm15, %vm1699_vm13  ;;  %7566 = vpow2.f32 %v9078_v51 }
 0x2a0   : > { %v7559_v2 = vpop.eup %7558  ;;  %v1681_v25 = vmul.f32 %v7549_v29, %v1680_v7  ;;  %v1424_v62 = vmul.f32 %v7557_v60, %v9060_v53  ;;  %vm1429_vm0 = vweird.f32 %v7557_v60  ;;  %7568 = vrcp.f32 %v9080_v61 }
 0x2a1   : > { %v7561_v43 = vpop.eup %7560  ;;  %v1696_v40 = vmul.f32 %v7551_v42, %v1695_v46  ;;  %v1412_v36 = vadd.f32 %v7547_v50, %v1411_v11  ;;  %vm1430_vm6 = vmor %vm1428_vm8, %vm1429_vm0  ;;  %v9148_v58 = vadd.f32 1.0, %v7559_v2  ;;  %v9176_v2 = vadd.f32 1.0, %v9104_v21 }
 0x2a2   : > { %v9118_v15 = vpop.eup %7562  ;;  %v1682_v32 = vadd.f32 %v7549_v29, %v1681_v25  ;;  %v1425_v7 = vsub.f32 1.0, %v1424_v62 }
 0x2a3   : > { %v1697_v54 = vadd.f32 %v7551_v42, %v1696_v40  ;;  %v1416_v46 = vsel %vm1415_vm3, %v7547_v50, %v1412_v36  ;;  %vm1743_vm8 = vweird.f32 %v9148_v58 }
 0x2a4   : > { %v1686_v56 = vsel %vm1685_vm4, %v7549_v29, %v1682_v32  ;;  %v1421_v11 = vsel %vm9100_vm7, %v1420_v0, %v1416_v46  ;;  %v1426_v25 = vmul.f32 %v7557_v60, %v1425_v7  ;;  %v1435_v0 = vor.u32 1.1754944e-38, %v1434_v1  ;;  %v7565_v22 = vpop.eup %7564 }
 0x2a5   : > { %v1691_v34 = vsel %vm1688_vm14, %v1690_v49, %v1686_v56  ;;  %v1701_v18 = vsel %vm1700_vm5, %v7551_v42, %v1697_v54  ;;  %v1832_v55 = vmul.f32 %v1421_v11, %v8606_v45  ;;  %v14921_v56 = vrot.slane %v8980_v27, 7  ;;  %v9194_v21 = vpop.eup %7566 }
 0x2a6   : > { %v1706_v62 = vsel %vm1703_vm1, %v1705_v14, %v1701_v18  ;;  %v9130_v40 = vmul.f32 %v1691_v34, %v8709_v4  ;;  %v1427_v28 = vadd.f32 %v7557_v60, %v1426_v25  ;;  %v9142_v14 = vadd.f32 1.0, %v9068_v12  ;;  %14928 = vst [vmem:[#allocation84_spill] sm:$0xff] %v9194_v21  ;;  %v9212_v18 = vpop.eup %7568 }
 0x2a7   : > { %v1851_v36 = vmul.f32 %v1706_v62, %v8713_v30  ;;  %v1975_v29 = vrot.slane %v1832_v55, 7  ;;  %v9138_v20 = vsel %vm14718_vm2, %v14921_v56, 0.0  ;;  %vm1433_vm1 = vcmp.eq.f32.partialorder %v1432_v48, 8.507059e+37 }
 0x2a8   : > { %14920 = vst [vmem:[#allocation77_spill] sm:$0xff] %v9130_v40  ;;  %v14534_v45 = vrot.slane %v9130_v40, 7  ;;  %v1431_v4 = vsel %vm1430_vm6, %v7557_v60, %v1427_v28  ;;  %v9146_v42 = vadd.f32 1.0, %v9075_v13  ;;  %v2182_v12 = vrot.slane %v9138_v20, 1 }
 0x2a9   : > { %14922 = vst [vmem:[#allocation78_spill] sm:$0xff] %v9138_v20  ;;  %v2003_v30 = vrot.slane %v1851_v36, 7  ;;  %v1436_v53 = vsel %vm1433_vm1, %v1435_v0, %v1431_v4  ;;  %v9154_v50 = vsel %vm14718_vm2, 0.0, %v1975_v29  ;;  %v9165_v13 = vadd.f32 1.0, %v7561_v43 }
 0x2aa   : > { %v9151_v27 = vmul.f32 %v1436_v53, %v8611_v8  ;;  %14923 = vst [vmem:[#allocation79_spill] sm:$0xff] %v9154_v50  ;;  %7570 = vrcp.f32 %v9142_v14  ;;  %v9173_v60 = vadd.f32 1.0, %v9064_v17  ;;  %v2149_v43 = vrot.slane %v9154_v50, 1 }
 0x2ab   : > { %v9160_v48 = vsel %vm14718_vm2, %v14534_v45, %v2003_v30  ;;  %v9163_v51 = vsel %vm14718_vm2, %v2003_v30, 0.0  ;;  %7572 = vrcp.f32 %v9146_v42  ;;  %v9186_v7 = vadd.f32 1.0, %v9108_v47 }
 0x2ac   : > { %14924 = vst [vmem:[#allocation80_spill] sm:$0xff] %v9160_v48  ;;  %v14533_v8 = vrot.slane %v9160_v48, 1  ;;  %v2197_v39 = vrot.slane %v9163_v51, 1  ;;  %v14536_v1 = vrot.slane %v9151_v27, 7  ;;  %7574 = vrcp.f32 %v9084_v35 }
 0x2ad   : > { %14925 = vst [vmem:[#allocation81_spill] sm:$0xff] %v9163_v51  ;;  %v14929_v46 = vrot.slane %v9004_v37, 1  ;;  %7576 = vrcp.f32 %v9148_v58  ;;  %v9206_v47 = vadd.f32 1.0, %v9118_v15  ;;  %v9208_v25 = vadd.f32 1.0, %v7565_v22 }
 0x2ae   : > { %v9183_v32 = vsel %vm14567_vm10, %v14533_v8, %v2197_v39  ;;  %v9191_v17 = vsel %vm14718_vm2, %v1975_v29, %v14536_v1  ;;  %7578 = vrcp.f32 %v9165_v13  ;;  %vm1623_vm0 = vweird.f32 %v9142_v14 }
 0x2af   : > { %14926 = vst [vmem:[#allocation82_spill] sm:$0xff] %v9183_v32  ;;  %v6773_v49 = vpack.i.bf16 %v9098_v16, %v9183_v32  ;;  %v14535_v54 = vrot.slane %v9191_v17, 1  ;;  %v9202_v11 = vsel %vm14567_vm10, %v14929_v46, %v2182_v12  ;;  %7580 = vrcp.f32 %v9086_v3 }
 0x2b0   : > { %14927 = vst [vmem:[#allocation83_spill] sm:$0xff] %v9191_v17  ;;  %v7571_v28 = vpop.eup %7570  ;;  %7582 = vrcp.f32 %v9089_v26  ;;  %v1629_v46 = vand.u32 2147483648, %v9142_v14  ;;  %vm1638_vm7 = vweird.f32 %v9146_v42  ;;  %v1644_v15 = vand.u32 2147483648, %v9146_v42 }
 0x2b1   : > { %14930 = vst [vmem:[#allocation85_spill] sm:$0xff] %v9202_v11  ;;  %6774 = vrot.lane.b32.xlu2 %v6773_v49, %s7837_s28  ;;  %v9218_v55 = vsel %vm14567_vm10, %v2149_v43, %v14535_v54  ;;  %v7573_v56 = vpop.eup %7572  ;;  %7584 = vrcp.f32 %v9091_v23  ;;  %v1627_v49 = vand.u32 2147483647, %v9142_v14  ;;  %v1619_v8 = vmul.f32 %v7571_v28, %v9142_v14 }
 0x2b2   : > { %14931 = vst [vmem:[#allocation86_spill] sm:$0xff] %v9218_v55  ;;  %v6783_v36 = vpack.i.bf16 %v9202_v11, %v9218_v55  ;;  %v9232_v12 = vpop.eup %7574  ;;  %7586 = vrcp.f32 %v9173_v60  ;;  %v1634_v22 = vmul.f32 %v7573_v56, %v9146_v42  ;;  %v1747_v54 = vand.u32 2147483647, %v9148_v58 }
 0x2b3   : > { %v7577_v43 = vpop.eup %7576  ;;  %v1749_v1 = vand.u32 2147483648, %v9148_v58  ;;  %v1620_v30 = vsub.f32 1.0, %v1619_v8  ;;  %vm1758_vm9 = vweird.f32 %v9165_v13  ;;  %v1762_v53 = vand.u32 2147483647, %v9165_v13 }
 0x2b4   : > { %6784 = vrot.lane.b32.xlu1 %v6783_v36, %s7837_s28  ;;  %v7579_v45 = vpop.eup %7578  ;;  %v1642_v36 = vand.u32 2147483647, %v9146_v42  ;;  %v1739_v29 = vmul.f32 %v7577_v43, %v9148_v58  ;;  %v1635_v4 = vsub.f32 1.0, %v1634_v22  ;;  %v1764_v32 = vand.u32 2147483648, %v9165_v13 }
 0x2b5   : > { %v9247_v34 = vpop.eup %7580  ;;  %v1754_v0 = vmul.f32 %v7579_v45, %v9165_v13  ;;  %v1621_v11 = vmul.f32 %v7571_v28, %v1620_v30  ;;  %vm1624_vm11 = vweird.f32 %v7571_v28  ;;  %vm9262_vm12 = vcmp.eq.f32.partialorder %v1627_v49, 8.507059e+37 }
 0x2b6   : > { %v9252_v39 = vpop.eup %7582  ;;  %v1740_v55 = vsub.f32 1.0, %v1739_v29  ;;  %v1636_v51 = vmul.f32 %v7573_v56, %v1635_v4  ;;  %vm1639_vm13 = vweird.f32 %v7573_v56  ;;  %v1630_v22 = vor.u32 1.1754944e-38, %v1629_v46  ;;  %vm1625_vm15 = vmor %vm1623_vm0, %vm1624_vm11 }
 0x2b7   : > { %v9257_v62 = vpop.eup %7584  ;;  %v1755_v20 = vsub.f32 1.0, %v1754_v0  ;;  %v1622_v37 = vadd.f32 %v7571_v28, %v1621_v11  ;;  %vm1744_vm14 = vweird.f32 %v7577_v43  ;;  %vm1643_vm3 = vcmp.eq.f32.partialorder %v1642_v36, 8.507059e+37  ;;  %vm1640_vm5 = vmor %vm1638_vm7, %vm1639_vm13 }
 0x2b8   : > { %v9260_v16 = vpop.eup %7586  ;;  %v1741_v50 = vmul.f32 %v7577_v43, %v1740_v55  ;;  %v1637_v48 = vadd.f32 %v7573_v56, %v1636_v51  ;;  %vm1759_vm4 = vweird.f32 %v7579_v45  ;;  %v1645_v49 = vor.u32 1.1754944e-38, %v1644_v15  ;;  %vm1745_vm1 = vmor %vm1743_vm8, %vm1744_vm14 }
 0x2b9   : > { %v1756_v30 = vmul.f32 %v7579_v45, %v1755_v20  ;;  %v1626_v29 = vsel %vm1625_vm15, %v7571_v28, %v1622_v37  ;;  %vm1748_vm6 = vcmp.eq.f32.partialorder %v1747_v54, 8.507059e+37  ;;  %v1750_v14 = vor.u32 1.1754944e-38, %v1749_v1  ;;  %vm1760_vm0 = vmor %vm1758_vm9, %vm1759_vm4 }
 0x2ba   : > { %v1742_v40 = vadd.f32 %v7577_v43, %v1741_v50  ;;  %v1631_v11 = vsel %vm9262_vm12, %v1630_v22, %v1626_v29  ;;  %v1641_v0 = vsel %vm1640_vm5, %v7573_v56, %v1637_v48  ;;  %v1765_v37 = vor.u32 1.1754944e-38, %v1764_v32 }
 0x2bb   : > { %v1757_v55 = vadd.f32 %v7579_v45, %v1756_v30  ;;  %v1646_v51 = vsel %vm1643_vm3, %v1645_v49, %v1641_v0  ;;  %v1846_v20 = vmul.f32 %v1631_v11, %v8692_v31  ;;  %vm1763_vm7 = vcmp.eq.f32.partialorder %v1762_v53, 8.507059e+37 }
 0x2bc   : > { %v1746_v4 = vsel %vm1745_vm1, %v7577_v43, %v1742_v40  ;;  %v9278_v54 = vmul.f32 %v1646_v51, %v8696_v63  ;;  %v1494_v40 = vand.u32 2147483648, %v9173_v60  ;;  %7588 = vrcp.f32 %v9176_v2 }
 0x2bd   : > { %v1751_v42 = vsel %vm1748_vm6, %v1750_v14, %v1746_v4  ;;  %v1761_v50 = vsel %vm1760_vm0, %v7579_v45, %v1757_v55  ;;  %v1996_v15 = vrot.slane %v1846_v20, 7  ;;  %7590 = vrcp.f32 %v9186_v7 }
 0x2be   : > { %v1766_v58 = vsel %vm1763_vm7, %v1765_v37, %v1761_v50  ;;  %v1854_v1 = vmul.f32 %v1751_v42, %v8722_v9  ;;  %v14553_v31 = vrot.slane %v9278_v54, 7  ;;  %7592 = vrcp.f32 %v9206_v47 }
 0x2bf   : > { %v9285_v13 = vmul.f32 %v1766_v58, %v8726_v52  ;;  %v9291_v32 = vsel %vm14718_vm2, 0.0, %v1996_v15  ;;  %v1659_v56 = vand.u32 2147483648, %v9176_v2  ;;  %7594 = vrcp.f32 %v9208_v25 }
 0x2c0   : > { %v2008_v63 = vrot.slane %v1854_v1, 7  ;;  %14934 = vst [vmem:[#allocation87_spill] sm:$0xff] %v9291_v32  ;;  %v9297_v9 = vsel %vm14718_vm2, %v1996_v15, %v14553_v31  ;;  %v2184_v28 = vrot.slane %v9291_v32, 1  ;;  %v1672_v46 = vand.u32 2147483647, %v9186_v7 }
 0x2c1   : > { %v14551_v52 = vrot.slane %v9285_v13, 7  ;;  %v14552_v43 = vrot.slane %v9297_v9, 1  ;;  %v1674_v36 = vand.u32 2147483648, %v9186_v7  ;;  %v1779_v29 = vand.u32 2147483648, %v9206_v47 }
 0x2c2   : > { %v9304_v53 = vsel %vm14718_vm2, 0.0, %v2008_v63  ;;  %v9323_v0 = vpop.eup %7588  ;;  %v1794_v55 = vand.u32 2147483648, %v9208_v25  ;;  %v9329_v51 = vmul.f32 %v9212_v18, %v9080_v61  ;;  %v14937_v4 = vand.u32 2147483648, %v9080_v61 }
 0x2c3   : > { %14935 = vst [vmem:[#allocation88_spill] sm:$0xff] %v9304_v53  ;;  %v9312_v8 = vsel %vm14718_vm2, %v2008_v63, %v14551_v52  ;;  %v2204_v22 = vrot.slane %v9304_v53, 1  ;;  %v9320_v49 = vsel %vm14567_vm10, %v2184_v28, %v14552_v43  ;;  %v9335_v20 = vpop.eup %7590  ;;  %v9344_v50 = vmul.f32 %v9232_v12, %v9084_v35 }
 0x2c4   : > { %14936 = vst [vmem:[#allocation89_spill] sm:$0xff] %v9320_v49  ;;  %v14550_v11 = vrot.slane %v9312_v8, 1  ;;  %v9333_v37 = vor.u32 1.1754944e-38, %v14937_v4  ;;  %v14940_v58 = vand.u32 2147483648, %v9084_v35  ;;  %v1439_v15 = vmul.f32 %v9247_v34, %v9086_v3  ;;  %v9352_v63 = vpop.eup %7592 }
 0x2c5   : > { %vm1444_vm8 = vweird.f32 %v9247_v34  ;;  %v1454_v48 = vmul.f32 %v9252_v39, %v9089_v26  ;;  %vm1443_vm9 = vweird.f32 %v9086_v3  ;;  %vm1459_vm11 = vweird.f32 %v9252_v39 }
 0x2c6   : > { %14938 = vst [vmem:[#allocation90_spill] sm:$0xff] %v9333_v37  ;;  %v9340_v42 = vsel %vm14567_vm10, %v2204_v22, %v14550_v11  ;;  %v9348_v1 = vor.u32 1.1754944e-38, %v14940_v58  ;;  %v14942_v22 = vand.u32 2147483648, %v9086_v3  ;;  %v9363_v11 = vpop.eup %7594  ;;  %v14943_v58 = vand.u32 2147483648, %v9089_v26 }
 0x2c7   : > { %14939 = vst [vmem:[#allocation91_spill] sm:$0xff] %v9340_v42  ;;  %v6793_v28 = vpack.i.bf16 %v9340_v42, %v9320_v49  ;;  %v1469_v14 = vmul.f32 %v9257_v62, %v9091_v23  ;;  %v14944_v30 = vand.u32 2147483648, %v9091_v23  ;;  %vm1458_vm12 = vweird.f32 %v9089_v26 }
 0x2c8   : > { %14941 = vst [vmem:[#allocation92_spill] sm:$0xff] %v9348_v1  ;;  %v9359_v4 = vor.u32 1.1754944e-38, %v14942_v22  ;;  %v9369_v52 = vor.u32 1.1754944e-38, %v14943_v58  ;;  %v1484_v43 = vmul.f32 %v9260_v16, %v9173_v60  ;;  %v9381_v31 = vor.u32 1.1754944e-38, %v1494_v40 }
 0x2c9   : > { %v9375_v22 = vor.u32 1.1754944e-38, %v14944_v30  ;;  %6794 = vrot.lane.b32.xlu0 %v6793_v28, %s7837_s28  ;;  %v1649_v58 = vmul.f32 %v9323_v0, %v9176_v2  ;;  %vm1654_vm13 = vweird.f32 %v9323_v0  ;;  %v9386_v45 = vor.u32 1.1754944e-38, %v1659_v56 }
 0x2ca   : > { %14946 = vst [vmem:[#allocation94_spill] sm:$0xff] %v9381_v31  ;;  %v1664_v30 = vmul.f32 %v9335_v20, %v9186_v7  ;;  %vm1669_vm14 = vweird.f32 %v9335_v20  ;;  %v9391_v42 = vor.u32 1.1754944e-38, %v1674_v36  ;;  %vm1653_vm15 = vweird.f32 %v9176_v2 }
 0x2cb   : > { %14945 = vst [vmem:[#allocation93_spill] sm:$0xff] %v9375_v22  ;;  %v14947_v28 = vand.u32 2147483647, %v9086_v3  ;;  %v14950_v49 = vand.u32 2147483647, %v9089_v26  ;;  %v1769_v53 = vmul.f32 %v9352_v63, %v9206_v47  ;;  %v1784_v36 = vmul.f32 %v9363_v11, %v9208_v25  ;;  %vm9503_vm0 = vmor %vm1653_vm15, %vm1654_vm13 }
 0x2cc   : > { %v14953_v32 = vrot.slane %v9151_v27, 7  ;;  %vm1668_vm5 = vweird.f32 %v9186_v7  ;;  %v1440_v57 = vsub.f32 1.0, %v1439_v15  ;;  %v1455_v31 = vsub.f32 1.0, %v1454_v48 }
 0x2cd   : > { %vm9396_vm3 = vcmp.eq.f32.partialorder %v14947_v28, 8.507059e+37  ;;  %vm9402_vm4 = vcmp.eq.f32.partialorder %v14950_v49, 8.507059e+37  ;;  %v14955_v28 = vrot.slane %v9014_v59, 7  ;;  %v1350_v1 = vsub.f32 1.0, %v9329_v51  ;;  %vm1670_vm13 = vmor %vm1668_vm5, %vm1669_vm14 }
 0x2ce   : > { %v9413_v21 = vsel %vm14718_vm2, %v14953_v32, 0.0  ;;  %v1365_v27 = vsub.f32 1.0, %v9344_v50  ;;  %v1470_v22 = vsub.f32 1.0, %v1469_v14  ;;  %v1485_v32 = vsub.f32 1.0, %v1484_v43 }
 0x2cf   : > { %14954 = vst [vmem:[#allocation95_spill] sm:$0xff] %v9413_v21  ;;  %v9418_v33 = vsel %vm14718_vm2, %v14955_v28, 0.0  ;;  %v2152_v49 = vrot.slane %v9413_v21, 1  ;;  %v14957_v37 = vand.u32 2147483647, %v9176_v2  ;;  %vm9431_vm1 = vcmp.eq.f32.partialorder %v1672_v46, 8.507059e+37 }
 0x2d0   : > { %14956 = vst [vmem:[#allocation96_spill] sm:$0xff] %v9418_v33  ;;  %v2202_v41 = vrot.slane %v9418_v33, 1  ;;  %v14962_v33 = vrot.slane %v9191_v17, 1  ;;  %v14964_v51 = vrot.slane %v9029_v24, 1  ;;  %v1650_v43 = vsub.f32 1.0, %v1649_v58 }
 0x2d1   : > { %vm9427_vm6 = vcmp.eq.f32.partialorder %v14957_v37, 8.507059e+37  ;;  %v1665_v50 = vsub.f32 1.0, %v1664_v30  ;;  %v1770_v15 = vsub.f32 1.0, %v1769_v53  ;;  %v1441_v46 = vmul.f32 %v9247_v34, %v1440_v57  ;;  %v15023_v57 = vld [vmem:[#allocation90_spill] sm:$0xff] }
 0x2d2   : > { %v9438_v48 = vsel %vm14567_vm10, %v14962_v33, %v2152_v49  ;;  %v9443_v14 = vsel %vm14567_vm10, %v14964_v51, %v2202_v41  ;;  %v1456_v21 = vmul.f32 %v9252_v39, %v1455_v31  ;;  %v9450_v17 = vor.u32 1.1754944e-38, %v1779_v29  ;;  %vm9465_vm10 = vmor %vm1443_vm9, %vm1444_vm8 }
 0x2d3   : > { %14963 = vst [vmem:[#allocation97_spill] sm:$0xff] %v9438_v48  ;;  %v6788_v37 = vpack.i.bf16 %v9438_v48, %v9443_v14  ;;  %v9452_v33 = vor.u32 1.1754944e-38, %v1794_v55  ;;  %v1785_v49 = vsub.f32 1.0, %v1784_v36  ;;  %v14966_v41 = vrot.slane %v9278_v54, 7  ;;  %vm9479_vm8 = vmor %vm1458_vm12, %vm1459_vm11 }
 0x2d4   : > { %14965 = vst [vmem:[#allocation98_spill] sm:$0xff] %v9443_v14  ;;  %v1442_v31 = vadd.f32 %v9247_v34, %v1441_v46  ;;  %v1457_v53 = vadd.f32 %v9252_v39, %v1456_v21  ;;  %v1351_v29 = vmul.f32 %v9212_v18, %v1350_v1  ;;  %vm1353_vm7 = vweird.f32 %v9080_v61 }
 0x2d5   : > { %v9457_v58 = vsel %vm14718_vm2, %v14966_v41, 0.0  ;;  %6789 = vrot.lane.b32.xlu2 %v6788_v37, %s7837_s28  ;;  %v1366_v55 = vmul.f32 %v9232_v12, %v1365_v27  ;;  %v1471_v21 = vmul.f32 %v9257_v62, %v1470_v22  ;;  %v1651_v30 = vmul.f32 %v9323_v0, %v1650_v43 }
 0x2d6   : > { %v2187_v54 = vrot.slane %v9457_v58, 1  ;;  %v1666_v1 = vmul.f32 %v9335_v20, %v1665_v50  ;;  %vm1368_vm9 = vweird.f32 %v9084_v35  ;;  %v1446_v26 = vsel %vm9465_vm10, %v9247_v34, %v1442_v31 }
 0x2d7   : > { %v1461_v36 = vsel %vm9479_vm8, %v9252_v39, %v1457_v53  ;;  %v1486_v27 = vmul.f32 %v9260_v16, %v1485_v32  ;;  %v1771_v22 = vmul.f32 %v9352_v63, %v1770_v15  ;;  %vm1473_vm11 = vweird.f32 %v9091_v23 }
 0x2d8   : > { %vm1789_vm12 = vweird.f32 %v9363_v11  ;;  %v1451_v34 = vsel %vm9396_vm3, %v9359_v4, %v1446_v26  ;;  %v1466_v39 = vsel %vm9402_vm4, %v9369_v52, %v1461_v36  ;;  %v1652_v32 = vadd.f32 %v9323_v0, %v1651_v30 }
 0x2d9   : > { %v1667_v43 = vadd.f32 %v9335_v20, %v1666_v1  ;;  %vm1773_vm10 = vweird.f32 %v9206_v47  ;;  %v1834_v2 = vmul.f32 %v1451_v34, %v8614_v19  ;;  %v1835_v4 = vmul.f32 %v1466_v39, %v8617_v5 }
 0x2da   : > { %v14973_v40 = vrot.slane %v9297_v9, 1  ;;  %vm14974_vm15 = vcmask 1046528   ;;  %v1786_v56 = vmul.f32 %v9363_v11, %v1785_v49  ;;  %v1656_v50 = vsel %vm9503_vm0, %v9323_v0, %v1652_v32 }
 0x2db   : > { %v1671_v7 = vsel %vm1670_vm13, %v9335_v20, %v1667_v43  ;;  %v9535_v37 = vadd.f32 %v9212_v18, %v1351_v29  ;;  %v9538_v5 = vadd.f32 %v9232_v12, %v1366_v55  ;;  %v1978_v19 = vrot.slane %v1834_v2, 7 }
 0x2dc   : > { %v9526_v52 = vsel %vm14974_vm15, %v14973_v40, %v2187_v54  ;;  %v1979_v15 = vrot.slane %v1835_v4, 7  ;;  %v1661_v46 = vsel %vm9427_vm6, %v9386_v45, %v1656_v50  ;;  %v1676_v0 = vsel %vm9431_vm1, %v9391_v42, %v1671_v7 }
 0x2dd   : > { %14975 = vst [vmem:[#allocation99_spill] sm:$0xff] %v9526_v52  ;;  %v14976_v20 = vand.u32 2147483647, %v9206_v47  ;;  %v14979_v41 = vand.u32 2147483647, %v9208_v25  ;;  %v1848_v31 = vmul.f32 %v1661_v46, %v8700_v10  ;;  %v9561_v45 = vmul.f32 %v1676_v0, %v8704_v38 }
 0x2de   : > { %v1472_v59 = vadd.f32 %v9257_v62, %v1471_v21  ;;  %v1487_v42 = vadd.f32 %v9260_v16, %v1486_v27  ;;  %v9566_v28 = vsel %vm14718_vm2, %v1978_v19, %v1979_v15  ;;  %v9569_v53 = vsel %vm14718_vm2, 0.0, %v1978_v19 }
 0x2df   : > { %vm9549_vm4 = vcmp.eq.f32.partialorder %v14976_v20, 8.507059e+37  ;;  %vm9555_vm5 = vcmp.eq.f32.partialorder %v14979_v41, 8.507059e+37  ;;  %v9572_v54 = vsel %vm14718_vm2, %v1979_v15, 0.0  ;;  %v1772_v29 = vadd.f32 %v9352_v63, %v1771_v22 }
 0x2e0   : > { %v14982_v10 = vand.u32 2147483647, %v9080_v61  ;;  %v14985_v3 = vand.u32 2147483647, %v9091_v23  ;;  %v2154_v21 = vrot.slane %v9569_v53, 1  ;;  %v2155_v30 = vrot.slane %v9566_v28, 1 }
 0x2e1   : > { %v1999_v1 = vrot.slane %v1848_v31, 7  ;;  %v2000_v26 = vrot.slane %v9561_v45, 7  ;;  %v14988_v36 = vand.u32 2147483647, %v9084_v35  ;;  %vm14991_vm13 = vweird.f32 %v9212_v18 }
 0x2e2   : > { %vm9577_vm6 = vcmp.eq.f32.partialorder %v14982_v10, 8.507059e+37  ;;  %vm9583_vm1 = vcmp.eq.f32.partialorder %v14985_v3, 8.507059e+37  ;;  %vm9600_vm15 = vmor %vm1353_vm7, %vm14991_vm13  ;;  %v2157_v51 = vrot.slane %v9572_v54, 1  ;;  %v1787_v34 = vadd.f32 %v9363_v11, %v1786_v56 }
 0x2e3   : > { %vm9592_vm0 = vcmp.eq.f32.partialorder %v14988_v36, 8.507059e+37  ;;  %v14994_v39 = vrot.slane %v9285_v13, 7  ;;  %vm14995_vm14 = vweird.f32 %v9232_v12  ;;  %vm14998_vm7 = vcmask 1046528  }
 0x2e4   : > { %vm9615_vm8 = vmor %vm1368_vm9, %vm14995_vm14  ;;  %v9620_v61 = vsel %vm14998_vm7, %v2154_v21, %v2155_v30  ;;  %v9623_v2 = vsel %vm14718_vm2, %v1999_v1, %v2000_v26  ;;  %v9626_v4 = vsel %vm14718_vm2, 0.0, %v1999_v1  ;;  %v7838_v13 = vmov 0.0   ;;  %v15025_v1 = vld [vmem:[#allocation92_spill] sm:$0xff] }
 0x2e5   : > { %v9609_v32 = vsel %vm14718_vm2, %v14994_v39, 0.0  ;;  %14999 = vst [vmem:[#allocation100_spill] sm:$0xff] %v9620_v61  ;;  %v9628_v40 = vrot.slane %v7838_v13, 7  ;;  %vm15001_vm13 = vweird.f32 %v9257_v62  ;;  %v6798_v56 = vpack.i.bf16 %v9526_v52, %v9620_v61  ;;  %vm15004_vm14 = vmmov %vm14998_vm7  ;;  %v15030_v39 = vld [vmem:[#allocation50_spill] sm:$0xff] }
 0x2e6   : > { %vm9634_vm9 = vmor %vm1473_vm11, %vm15001_vm13  ;;  %v9641_v50 = vsel %vm15004_vm14, %v2155_v30, %v2157_v51  ;;  %v2189_v7 = vrot.slane %v9626_v4, 1  ;;  %v2190_v19 = vrot.slane %v9623_v2, 1  ;;  %vm15006_vm7 = vweird.f32 %v9352_v63  ;;  %v10021_v61 = vld [vmem:[%s14437_s8] sm:$0xff] }
 0x2e7   : > { %15000 = vst [vmem:[#allocation101_spill] sm:$0xff] %v9628_v40  ;;  %vm9649_vm3 = vmor %vm1773_vm10, %vm15006_vm7  ;;  %v9655_v15 = vsel %vm14718_vm2, 0.0, %v9628_v40  ;;  %v2135_v46 = vrot.slane %v9628_v40, 1  ;;  %v2207_v0 = vrot.slane %v9609_v32, 1  ;;  %v1356_v20 = vsel %vm9600_vm15, %v9212_v18, %v9535_v37  ;;  %6799 = vrot.lane.b32.xlu1 %v6798_v56, %s7837_s28  ;;  %v15031_v56 = vld [vmem:[#allocation47_spill] sm:$0xff] }
 0x2e8   : > { %15005 = vst [vmem:[#allocation102_spill] sm:$0xff] %v9641_v50  ;;  %vm15010_vm11 = vweird.f32 %v9208_v25  ;;  %vm15011_vm13 = vmmov %vm15004_vm14  ;;  %v2134_v41 = vrot.slane %v9655_v15, 1  ;;  %v1371_v31 = vsel %vm9615_vm8, %v9232_v12, %v9538_v5  ;;  %v1476_v18 = vsel %vm9634_vm9, %v9257_v62, %v1472_v59  ;;  %v15034_v25 = vld [vmem:[#allocation77_spill] sm:$0xff] }
 0x2e9   : > { %15009 = vst [vmem:[#allocation103_spill] sm:$0xff] %v9655_v15  ;;  %vm1790_vm10 = vmor %vm15010_vm11, %vm1789_vm12  ;;  %v9669_v47 = vsel %vm15011_vm13, %v2189_v7, %v2190_v19  ;;  %vm15013_vm15 = vweird.f32 %v9260_v16  ;;  %vm15014_vm12 = vweird.f32 %v9173_v60  ;;  %v15017_v45 = vrot.slane %v9312_v8, 1 }
 0x2ea   : > { %15012 = vst [vmem:[#allocation104_spill] sm:$0xff] %v9669_v47  ;;  %vm9683_vm14 = vmor %vm15014_vm12, %vm15013_vm15  ;;  %v6808_v37 = vpack.i.bf16 %v9669_v47, %v9641_v50  ;;  %v1776_v62 = vsel %vm9649_vm3, %v9352_v63, %v1772_v29  ;;  %v1791_v12 = vsel %vm1790_vm10, %v9363_v11, %v1787_v34  ;;  %v15022_v49 = vand.u32 2147483647, %v9173_v60  ;;  %v15026_v60 = vld [vmem:[#allocation94_spill] sm:$0xff]  ;;  %v15029_v34 = vld [vmem:[#allocation49_spill] sm:$0xff] }
 0x2eb   : > { %vm15018_vm7 = vmmov %vm15011_vm13  ;;  %v1491_v59 = vsel %vm9683_vm14, %v9260_v16, %v1487_v42  ;;  %v1781_v3 = vsel %vm9549_vm4, %v9450_v17, %v1776_v62  ;;  %v1796_v21 = vsel %vm9555_vm5, %v9452_v33, %v1791_v12  ;;  %v9717_v16 = vsel %vm14718_vm2, %v9628_v40, 0.0  ;;  %v15024_v42 = vld [vmem:[#allocation93_spill] sm:$0xff] }
 0x2ec   : > { %v9692_v10 = vsel %vm15018_vm7, %v15017_v45, %v2207_v0  ;;  %vm15020_vm8 = vmmov %vm15018_vm7  ;;  %6809 = vrot.lane.b32.xlu0 %v6808_v37, %s7837_s28  ;;  %v1856_v63 = vmul.f32 %v1781_v3, %v8807_v6  ;;  %v1857_v29 = vmul.f32 %v1796_v21, %v8811_v44  ;;  %vm1493_vm3 = vcmp.eq.f32.partialorder %v15022_v49, 8.507059e+37 }
 0x2ed   : > { %15019 = vst [vmem:[#allocation105_spill] sm:$0xff] %v9692_v10  ;;  %v9699_v5 = vsel %vm15020_vm8, %v2134_v41, %v2135_v46  ;;  %v2137_v17 = vrot.slane %v9717_v16, 1  ;;  %v1361_v33 = vsel %vm9577_vm6, %v15023_v57, %v1356_v20  ;;  %v1481_v30 = vsel %vm9583_vm1, %v15024_v42, %v1476_v18  ;;  %vm15027_vm4 = vmmov %vm15018_vm7  ;;  %v15032_v41 = vld [vmem:[#allocation84_spill] sm:$0xff]  ;;  %v15040_v42 = vld [vmem:[#allocation58_spill] sm:$0xff] }
 0x2ee   : > { %15021 = vst [vmem:[#allocation106_spill] sm:$0xff] %v9699_v5  ;;  %v6803_v11 = vpack.i.bf16 %v9692_v10, %v9699_v5  ;;  %v2011_v6 = vrot.slane %v1856_v63, 7  ;;  %v2012_v44 = vrot.slane %v1857_v29, 7  ;;  %v1376_v36 = vsel %vm9592_vm0, %v15025_v1, %v1371_v31  ;;  %vm15036_vm5 = vmmov %vm15027_vm4  ;;  %v15063_v5 = vld [vmem:[#allocation83_spill] sm:$0xff] }
 0x2ef   : > { %v1496_v22 = vsel %vm1493_vm3, %v15026_v60, %v1491_v59  ;;  %v9734_v51 = vsel %vm15027_vm4, %v2135_v46, %v2137_v17  ;;  %v1836_v38 = vmul.f32 %v1481_v30, %v15029_v34  ;;  %v9739_v55 = vsel %vm14718_vm2, %v2000_v26, 0.0  ;;  %v15033_v26 = vld [vmem:[#allocation48_spill] sm:$0xff]  ;;  %vm15038_vm6 = vmmov %vm15027_vm4 }
 0x2f0   : > { %6804 = vrot.lane.b32.xlu2 %v6803_v11, %s7837_s28  ;;  %15028 = vst [vmem:[#allocation90_spill] sm:$0xff] %v9734_v51  ;;  %v1837_v43 = vmul.f32 %v1496_v22, %v15030_v39  ;;  %v9742_v13 = vsel %vm14718_vm2, %v2011_v6, %v2012_v44  ;;  %v9745_v35 = vsel %vm14718_vm2, 0.0, %v2011_v6  ;;  %v2192_v27 = vrot.slane %v9739_v55, 1  ;;  %vm15041_vm1 = vmmov %vm15027_vm4 }
 0x2f1   : > { %v1828_v7 = vmul.f32 %v1361_v33, %v15031_v56  ;;  %v2209_v23 = vrot.slane %v9745_v35, 1  ;;  %v2210_v46 = vrot.slane %v9742_v13, 1  ;;  %v1981_v0 = vrot.slane %v1836_v38, 7  ;;  %vm15043_vm0 = vmmov %vm15041_vm1 }
 0x2f2   : > { %v1982_v20 = vrot.slane %v1837_v43, 7  ;;  %v9752_v31 = vadd.f32 1.0, %v15032_v41  ;;  %v1829_v18 = vmul.f32 %v1376_v36, %v15033_v26  ;;  %v15035_v37 = vrot.slane %v15034_v25, 7  ;;  %v15045_v43 = vld [vmem:[#allocation80_spill] sm:$0xff]  ;;  %vm15047_vm9 = vmmov %vm15043_vm0 }
 0x2f3   : > { %v9761_v62 = vsel %vm15036_vm5, %v2209_v23, %v2210_v46  ;;  %v9767_v59 = vsel %vm14718_vm2, 0.0, %v1981_v0  ;;  %v9777_v29 = vsel %vm15038_vm6, %v2190_v19, %v2192_v27  ;;  %v1969_v57 = vrot.slane %v1828_v7, 7  ;;  %v1875_v19 = vld [vmem:[%s14437_s8 + $0x78] sm:$0xff]  ;;  %vm15049_vm11 = vmmov %vm15043_vm0 }
 0x2f4   : > { %v9758_v45 = vsel %vm14718_vm2, 0.0, %v15035_v37  ;;  %15037 = vst [vmem:[#allocation93_spill] sm:$0xff] %v9761_v62  ;;  %v9764_v12 = vsel %vm14718_vm2, %v1981_v0, %v1982_v20  ;;  %v9770_v3 = vsel %vm14718_vm2, %v1982_v20, 0.0  ;;  %v6813_v21 = vpack.i.bf16 %v9761_v62, %v9734_v51  ;;  %6656 = vmatpush.msra.mxu2 %v1875_v19  ;;  %6657 = vmatpush.msra.mxu3 %v1875_v19  ;;  %vm15050_vm10 = vmmov %vm15043_vm0  ;;  %v1868_v62 = vld [vmem:[%s14437_s8 + $0x40] sm:$0xff] }
 0x2f5   : > { %v2159_v11 = vrot.slane %v9767_v59, 1  ;;  %v2160_v63 = vrot.slane %v9764_v12, 1  ;;  %15039 = vst [vmem:[#allocation92_spill] sm:$0xff] %v9777_v29  ;;  %v2162_v49 = vrot.slane %v9770_v3, 1  ;;  %v2194_v17 = vrot.slane %v9758_v45, 1  ;;  %2830 = vmatpush.msrb.mxu0 %v1875_v19  ;;  %6655 = vmatpush.msrb.mxu1 %v1875_v19  ;;  %vm15052_vm13 = vmmov %vm15043_vm0 }
 0x2f6   : > { %v1970_v33 = vrot.slane %v1829_v18, 7  ;;  %v6514_v30 = vmul.f32 -1.442695, %v15040_v42  ;;  %7596 = vrcp.f32 %v9752_v31  ;;  %6814 = vrot.lane.b32.xlu1 %v6813_v21, %s7837_s28  ;;  %v9788_v1 = vsel %vm14718_vm2, %v2012_v44, 0.0  ;;  %vm15058_vm12 = vmmov %vm15043_vm0 }
 0x2f7   : > { %v9785_v6 = vsel %vm15041_vm1, %v2159_v11, %v2160_v63  ;;  %v9799_v22 = vsel %vm14718_vm2, 0.0, %v1969_v57  ;;  %v2212_v38 = vrot.slane %v9788_v1, 1  ;;  %v9806_v39 = vsel %vm15043_vm0, %v2160_v63, %v2162_v49  ;;  %v1874_v49 = vld [vmem:[%s14437_s8 + $0x70] sm:$0xff] }
 0x2f8   : > { %15042 = vst [vmem:[#allocation94_spill] sm:$0xff] %v9785_v6  ;;  %v6818_v36 = vpack.i.bf16 %v9777_v29, %v9785_v6  ;;  %v9796_v60 = vsel %vm14718_vm2, %v1969_v57, %v1970_v33  ;;  %v2139_v34 = vrot.slane %v9799_v22, 1  ;;  %v15046_v27 = vrot.slane %v15045_v43, 1  ;;  %6659 = vmatpush.msra.mxu2 %v1874_v49  ;;  %6660 = vmatpush.msra.mxu3 %v1874_v49 }
 0x2f9   : > { %v2140_v44 = vrot.slane %v9796_v60, 1  ;;  %15044 = vst [vmem:[#allocation49_spill] sm:$0xff] %v9806_v39  ;;  %v2085_v7 = vsel %vm14718_vm2, %v1970_v33, 0.0  ;;  %7598 = vpow2.f32 %v6514_v30  ;;  %v9818_v0 = vsel %vm15050_vm10, %v2210_v46, %v2212_v38  ;;  %v15053_v46 = vld [vmem:[#allocation60_spill] sm:$0xff]  ;;  %2831 = vmatpush.msrb.mxu0 %v1874_v49  ;;  %6658 = vmatpush.msrb.mxu1 %v1874_v49  ;;  %v1871_v38 = vld [vmem:[%s14437_s8 + $0x58] sm:$0xff] }
 0x2fa   : > { %6819 = vrot.lane.b32.xlu2 %v6818_v36, %s7837_s28  ;;  %v9811_v56 = vsel %vm15047_vm9, %v2194_v17, %v15046_v27  ;;  %15051 = vst [vmem:[#allocation47_spill] sm:$0xff] %v9818_v0  ;;  %v2142_v20 = vrot.slane %v2085_v7, 1  ;;  %v2220_v37 = vrot.slane %v9799_v22, 2  ;;  %v2221_v21 = vrot.slane %v9796_v60, 2  ;;  %v1873_v17 = vld [vmem:[%s14437_s8 + $0x68] sm:$0xff] }
 0x2fb   : > { %15048 = vst [vmem:[#allocation50_spill] sm:$0xff] %v9811_v56  ;;  %v9815_v23 = vsel %vm15049_vm11, %v2139_v34, %v2140_v44  ;;  %v6828_v18 = vpack.i.bf16 %v9811_v56, %v9806_v39  ;;  %v15054_v11 = vrot.slane %v15053_v46, 7  ;;  %vm14708_vm15 = vcmask 1045504   ;;  %v1872_v34 = vld [vmem:[%s14437_s8 + $0x60] sm:$0xff]  ;;  %6662 = vmatpush.msra.mxu2 %v1873_v17  ;;  %6663 = vmatpush.msra.mxu3 %v1873_v17 }
 0x2fc   : > { %v6823_v41 = vpack.i.bf16 %v9818_v0, %v9815_v23  ;;  %v9822_v26 = vpop.eup %7596  ;;  %v9827_v25 = vsel %vm15052_vm13, %v2140_v44, %v2142_v20  ;;  %v2223_v36 = vrot.slane %v2085_v7, 2  ;;  %v9853_v44 = vsel %vm14708_vm15, %v2220_v37, %v2221_v21  ;;  %2832 = vmatpush.msrb.mxu0 %v1873_v17  ;;  %v15055_v20 = vld [vmem:[#allocation68_spill] sm:$0xff]  ;;  %6661 = vmatpush.msrb.mxu1 %v1873_v17  ;;  %v15056_v37 = vld [vmem:[#allocation61_spill] sm:$0xff] }
 0x2fd   : > { %v9835_v63 = vsel %vm14718_vm2, 0.0, %v15054_v11  ;;  %v1799_v57 = vmul.f32 %v9822_v26, %v9752_v31  ;;  %v6833_v33 = vpack.i.bf16 %v9799_v22, %v9827_v25  ;;  %6665 = vmatpush.msra.mxu2 %v1872_v34  ;;  %v15057_v46 = vrot.slane %v15056_v37, 1  ;;  %6666 = vmatpush.msra.mxu3 %v1872_v34 }
 0x2fe   : > { %6824 = vrot.lane.b32.xlu0 %v6823_v41, %s7837_s28  ;;  %6829 = vrot.lane.b32.xlu1 %v6828_v18, %s7837_s28  ;;  %v2164_v19 = vrot.slane %v9835_v63, 1  ;;  %v2226_v41 = vrot.slane %v15055_v20, 2  ;;  %v6838_v18 = vpack.i.bf16 %v9853_v44, %v9796_v60  ;;  %v9870_v49 = vsel %vm14708_vm15, %v2221_v21, %v2223_v36  ;;  %v1869_v21 = vld [vmem:[%s14437_s8 + $0x48] sm:$0xff] }
 0x2ff   : > { %v7599_v30 = vpop.eup %7598  ;;  %v1800_v7 = vsub.f32 1.0, %v1799_v57  ;;  %2833 = vmatpush.msrb.mxu0 %v1872_v34  ;;  %v15061_v57 = vld [vmem:[#allocation75_spill] sm:$0xff]  ;;  %6668 = vmatpush.msra.mxu2 %v1871_v38  ;;  %v2231_v0 = vrot.slane %v15063_v5, 2  ;;  %vm1804_vm14 = vweird.f32 %v9822_v26  ;;  %v1809_v56 = vand.u32 2147483648, %v9752_v31 }
 0x300   : > { %v9859_v27 = vadd.f32 1.0, %v7599_v30  ;;  %v9867_v11 = vsel %vm15058_vm12, %v2164_v19, %v15057_v46  ;;  %v2228_v17 = vrot.slane %v15061_v57, 2  ;;  %v1870_v30 = vld [vmem:[%s14437_s8 + $0x50] sm:$0xff]  ;;  %6669 = vmatpush.msra.mxu3 %v1871_v38  ;;  %6664 = vmatpush.msrb.mxu1 %v1872_v34  ;;  %v15062_v46 = vld [vmem:[#allocation79_spill] sm:$0xff]  ;;  %v2235_v29 = vrot.slane %v9569_v53, 2 }
 0x301   : > { %15059 = vst [vmem:[#allocation84_spill] sm:$0xff] %v9867_v11  ;;  %6671 = vmatpush.msra.mxu2 %v1870_v30  ;;  %v1801_v36 = vmul.f32 %v9822_v26, %v1800_v7  ;;  %v2230_v57 = vrot.slane %v15062_v46, 2  ;;  %2834 = vmatpush.msrb.mxu0 %v1871_v38  ;;  %vm1803_vm7 = vweird.f32 %v9752_v31  ;;  %v2238_v52 = vrot.slane %v9572_v54, 2  ;;  %v9967_v54 = vld [vmem:[%s14437_s8 + $0x18] sm:$0xff] }
 0x302   : > { %6834 = vrot.lane.b32.xlu2 %v6833_v33, %s7837_s28  ;;  %v15060_v33 = vld [vmem:[#allocation67_spill] sm:$0xff]  ;;  %7600 = vrcp.f32 %v9859_v27  ;;  %6672 = vmatpush.msra.mxu3 %v1870_v30  ;;  %v9896_v10 = vsel %vm14708_vm15, %v2226_v41, %v2228_v17  ;;  %vm9937_vm8 = vmor %vm1803_vm7, %vm1804_vm14  ;;  %v1810_v39 = vor.u32 1.1754944e-38, %v1809_v56  ;;  %vm1818_vm5 = vweird.f32 %v9859_v27 }
 0x303   : > { %v2225_v51 = vrot.slane %v15060_v33, 2  ;;  %v6843_v19 = vpack.i.bf16 %v9870_v49, %v15060_v33  ;;  %6674 = vmatpush.msra.mxu2 %v1869_v21  ;;  %6667 = vmatpush.msrb.mxu1 %v1871_v38  ;;  %v1802_v7 = vadd.f32 %v9822_v26, %v1801_v36  ;;  %v9911_v17 = vsel %vm14708_vm15, %v2230_v57, %v2231_v0 }
 0x304   : > { %6675 = vmatpush.msra.mxu3 %v1869_v21  ;;  %2835 = vmatpush.msrb.mxu0 %v1870_v30  ;;  %v2236_v36 = vrot.slane %v9566_v28, 2  ;;  %v1807_v57 = vand.u32 2147483647, %v9752_v31  ;;  %v6858_v31 = vpack.i.bf16 %v9911_v17, %v15063_v5  ;;  %v2246_v50 = vrot.slane %v15056_v37, 2 }
 0x305   : > { %6677 = vmatpush.msra.mxu2 %v1868_v62  ;;  %6670 = vmatpush.msrb.mxu1 %v1870_v30  ;;  %v9927_v30 = vld [vmem:[%s14437_s8 + $0x30] sm:$0xff]  ;;  %vm15071_vm1 = vcmask 523264  }
 0x306   : > { %2395 = vrot.lane.b32.xlu0 %v9867_v11, %s7837_s28  ;;  %6839 = vrot.lane.b32.xlu1 %v6838_v18, %s7837_s28  ;;  %v9888_v18 = vsel %vm14708_vm15, %v2225_v51, %v2226_v41  ;;  %v9902_v51 = vld [vmem:[%s14437_s8 + $0x38] sm:$0xff]  ;;  %v6853_v41 = vpack.i.bf16 %v9896_v10, %v15062_v46  ;;  %v9954_v11 = vld [vmem:[%s14437_s8 + $0x20] sm:$0xff]  ;;  %v9958_v6 = vsel %vm14708_vm15, %v2235_v29, %v2236_v36  ;;  %vm1808_vm3 = vcmp.eq.f32.partialorder %v1807_v57, 8.507059e+37  ;;  %vm15081_vm9 = vmmov %vm15071_vm1 }
 0x307   : > { %v6848_v34 = vpack.i.bf16 %v9888_v18, %v15055_v20  ;;  %6678 = vmatpush.msra.mxu3 %v1868_v62  ;;  %6680 = vmatpush.msra.mxu2 %v9902_v51  ;;  %v9978_v57 = vsel %vm14708_vm15, %v2236_v36, %v2238_v52  ;;  %v15068_v52 = vld [vmem:[#allocation56_spill] sm:$0xff]  ;;  %vm15083_vm11 = vmmov %vm15071_vm1 }
 0x308   : > { %v9914_v38 = vpop.eup %7600  ;;  %2836 = vmatpush.msrb.mxu0 %v1869_v21  ;;  %6673 = vmatpush.msrb.mxu1 %v1869_v21  ;;  %v6868_v21 = vpack.i.bf16 %v9958_v6, %v9566_v28  ;;  %15067 = vst [vmem:[#allocation48_spill] sm:$0xff] %v9978_v57  ;;  %vm15098_vm10 = vmmov %vm15071_vm1 }
 0x309   : > { %6681 = vmatpush.msra.mxu3 %v9902_v51  ;;  %6683 = vmatpush.msra.mxu2 %v9927_v30  ;;  %vm1819_vm4 = vweird.f32 %v9914_v38  ;;  %vm15099_vm13 = vmmov %vm15071_vm1 }
 0x30a   : > { %6844 = vrot.lane.b32.xlu2 %v6843_v19, %s7837_s28  ;;  %v15064_v19 = vld [vmem:[#allocation95_spill] sm:$0xff]  ;;  %2837 = vmatpush.msrb.mxu0 %v1868_v62  ;;  %vm1820_vm6 = vmor %vm1818_vm5, %vm1819_vm4 }
 0x30b   : > { %v2233_v14 = vrot.slane %v15064_v19, 2  ;;  %6684 = vmatpush.msra.mxu3 %v9927_v30  ;;  %6676 = vmatpush.msrb.mxu1 %v1868_v62  ;;  %v2240_v19 = vrot.slane %v9767_v59, 2  ;;  %vm15104_vm12 = vmmov %vm15071_vm1 }
 0x30c   : > { %2838 = vmatpush.msrb.mxu0 %v9902_v51  ;;  %vm15105_vm14 = vmmov %vm15071_vm1 }
 0x30d   : > { %v9948_v47 = vsel %vm14708_vm15, %v2231_v0, %v2233_v14  ;;  %v1814_v14 = vmul.f32 %v9914_v38, %v9859_v27  ;;  %v2241_v0 = vrot.slane %v9764_v12, 2  ;;  %6679 = vmatpush.msrb.mxu1 %v9902_v51  ;;  %vm15108_vm7 = vmmov %vm15071_vm1 }
 0x30e   : > { %6849 = vrot.lane.b32.xlu0 %v6848_v34, %s7837_s28  ;;  %6854 = vrot.lane.b32.xlu1 %v6853_v41, %s7837_s28  ;;  %v9932_v34 = vld [vmem:[%s14437_s8 + $0x28] sm:$0xff]  ;;  %v1806_v41 = vsel %vm9937_vm8, %v9822_v26, %v1802_v7  ;;  %v6863_v29 = vpack.i.bf16 %v9948_v47, %v9569_v53  ;;  %v2243_v7 = vrot.slane %v9770_v3, 2  ;;  %v1824_v3 = vand.u32 2147483648, %v9859_v27  ;;  %vm15112_vm8 = vmmov %vm15071_vm1 }
 0x30f   : > { %6686 = vmatpush.msra.mxu2 %v9932_v34  ;;  %6687 = vmatpush.msra.mxu3 %v9932_v34  ;;  %v1811_v56 = vsel %vm1808_vm3, %v1810_v39, %v1806_v41  ;;  %v1815_v26 = vsub.f32 1.0, %v1814_v14  ;;  %v1822_v39 = vand.u32 2147483647, %v9859_v27  ;;  %v9998_v41 = vpop.permute.xlu2 %6759  ;;  %v10003_v14 = vld [vmem:[%s14437_s8 + $0x8] sm:$0xff]  ;;  %vm15113_vm3 = vmmov %vm15071_vm1 }
 0x310   : > { %v9990_v36 = vmul.f32 %v1811_v56, %v15068_v52  ;;  %v6873_v56 = vpack.i.bf16 %v9978_v57, %v9767_v59  ;;  %v2245_v52 = vrot.slane %v9835_v63, 2  ;;  %2839 = vmatpush.msrb.mxu0 %v9927_v30  ;;  %v1825_v27 = vor.u32 1.1754944e-38, %v1824_v3  ;;  %6682 = vmatpush.msrb.mxu1 %v9927_v30  ;;  %v15074_v30 = vld [vmem:[#allocation62_spill] sm:$0xff]  ;;  %vm15114_vm4 = vmmov %vm15071_vm1 }
 0x311   : > { %6689 = vmatpush.msra.mxu2 %v9954_v11  ;;  %6690 = vmatpush.msra.mxu3 %v9954_v11  ;;  %v1816_v62 = vmul.f32 %v9914_v38, %v1815_v26  ;;  %v10028_v51 = vsel %vm14708_vm15, %v2241_v0, %v2243_v7  ;;  %vm1823_vm0 = vcmp.eq.f32.partialorder %v1822_v39, 8.507059e+37  ;;  %vm15118_vm5 = vmmov %vm15071_vm1 }
 0x312   : > { %6859 = vrot.lane.b32.xlu2 %v6858_v31, %s7837_s28  ;;  %v9996_v31 = vld [vmem:[%s14437_s8 + $0x10] sm:$0xff]  ;;  %15070 = vst [vmem:[#allocation58_spill] sm:$0xff] %v10028_v51  ;;  %2840 = vmatpush.msrb.mxu0 %v9932_v34  ;;  %v10050_v39 = vsel %vm14708_vm15, %v2245_v52, %v2246_v50  ;;  %v1931_v52 = vld [vmem:[%s14437_s8 + $0x238] sm:$0xff] }
 0x313   : > { %6692 = vmatpush.msra.mxu2 %v9967_v54  ;;  %6693 = vmatpush.msra.mxu3 %v9967_v54  ;;  %v1817_v26 = vadd.f32 %v9914_v38, %v1816_v62  ;;  %15073 = vst [vmem:[#allocation60_spill] sm:$0xff] %v10050_v39 }
 0x314   : > { %6685 = vmatpush.msrb.mxu1 %v9932_v34  ;;  %2841 = vmatpush.msrb.mxu0 %v9954_v11  ;;  %v15077_v34 = vrot.slane %v9990_v36, 7 }
 0x315   : > { %6695 = vmatpush.msra.mxu2 %v9996_v31  ;;  %6696 = vmatpush.msra.mxu3 %v9996_v31  ;;  %v1821_v62 = vsel %vm1820_vm6, %v9914_v38, %v1817_v26  ;;  %v6883_v38 = vpack.i.bf16 %v10028_v51, %v9835_v63  ;;  %v15079_v51 = vld [vmem:[#allocation52_spill] sm:$0xff]  ;;  %vm15121_vm6 = vmmov %vm15071_vm1 }
 0x316   : > { %6864 = vrot.lane.b32.xlu0 %v6863_v29, %s7837_s28  ;;  %6869 = vrot.lane.b32.xlu1 %v6868_v21, %s7837_s28  ;;  %v6761_v29 = vunpack.i.l.bf16 %v9998_v41  ;;  %v10014_v21 = vsel %vm14708_vm15, %v2240_v19, %v2241_v0  ;;  %v1826_v57 = vsel %vm1823_vm0, %v1825_v27, %v1821_v62  ;;  %v15076_v27 = vld [vmem:[#allocation51_spill] sm:$0xff]  ;;  %vm15122_vm0 = vmmov %vm15071_vm1 }
 0x317   : > { %15069 = vst [vmem:[#allocation77_spill] sm:$0xff] %v10014_v21  ;;  %6698 = vmatpush.msra.mxu2 %v10003_v14  ;;  %6699 = vmatpush.msra.mxu3 %v10003_v14  ;;  %v6878_v0 = vpack.i.bf16 %v10014_v21, %v9764_v12  ;;  %v10045_v7 = vmul.f32 %v1826_v57, %v15040_v42  ;;  %v2251_v62 = vrot.slane %v15076_v27, 2  ;;  %v10061_v57 = vpop.permute.xlu2 %6774  ;;  %v2253_v21 = vrot.slane %v15079_v51, 2 }
 0x318   : > { %v10034_v19 = vsel %vm15071_vm1, %v15056_v37, %v6761_v29  ;;  %v15075_v29 = vld [vmem:[#allocation59_spill] sm:$0xff]  ;;  %v6776_v3 = vunpack.i.l.bf16 %v10061_v57  ;;  %6688 = vmatpush.msrb.mxu1 %v9954_v11  ;;  %2842 = vmatpush.msrb.mxu0 %v9967_v54 }
 0x319   : > { %15072 = vst [vmem:[#allocation80_spill] sm:$0xff] %v10034_v19  ;;  %6701 = vmatpush.msra.mxu2 %v10021_v61  ;;  %6702 = vmatpush.msra.mxu3 %v10021_v61  ;;  %v2250_v26 = vrot.slane %v15075_v29, 2  ;;  %v14592_v42 = vrot.slane %v10045_v7, 7 }
 0x31a   : > { %6874 = vrot.lane.b32.xlu2 %v6873_v56, %s7837_s28  ;;  %v2248_v56 = vrot.slane %v15074_v30, 2  ;;  %2885 = vmatmul.f32.vlgmr.msra.gmra.mxu2 %v10034_v19  ;;  %v6762_v30 = vunpack.i.h.bf16 %v9998_v41  ;;  %v10090_v11 = vsel %vm15081_vm9, %v15045_v43, %v6776_v3  ;;  %v15085_v3 = vld [vmem:[#allocation54_spill] sm:$0xff]  ;;  %vm15123_vm9 = vcmask 1046528  }
 0x31b   : > { %3290 = vmatpush.msrb.mxu2 %v1931_v52  ;;  %15082 = vst [vmem:[#allocation67_spill] sm:$0xff] %v10090_v11  ;;  %6691 = vmatpush.msrb.mxu1 %v9967_v54  ;;  %v10106_v54 = vsel %vm14708_vm15, %v2251_v62, %v2253_v21 }
 0x31c   : > { %v10080_v19 = vsel %vm14708_vm15, %v2246_v50, %v2248_v56  ;;  %2921 = vmatmul.f32.vlgmr.msra.gmra.mxu3 %v10090_v11  ;;  %2843 = vmatpush.msrb.mxu0 %v9996_v31  ;;  %v10099_v41 = vsel %vm15083_vm11, %v15075_v29, %v6762_v30  ;;  %v2256_v56 = vrot.slane %v15085_v3, 2  ;;  %15086 = vst [vmem:[#allocation79_spill] sm:$0xff] %v10106_v54  ;;  %v15095_v11 = vld [vmem:[#allocation87_spill] sm:$0xff]  ;;  %vm15124_vm11 = vmmov %vm15123_vm9 }
 0x31d   : > { %15078 = vst [vmem:[#allocation68_spill] sm:$0xff] %v10080_v19  ;;  %v6893_v50 = vpack.i.bf16 %v10080_v19, %v15075_v29  ;;  %6694 = vmatpush.msrb.mxu1 %v9996_v31  ;;  %v15088_v29 = vld [vmem:[#allocation65_spill] sm:$0xff] }
 0x31e   : > { %6879 = vrot.lane.b32.xlu0 %v6878_v0, %s7837_s28  ;;  %6884 = vrot.lane.b32.xlu1 %v6883_v38, %s7837_s28  ;;  %v6888_v0 = vpack.i.bf16 %v10050_v39, %v15056_v37  ;;  %v10077_v38 = vsel %vm14718_vm2, %v15077_v34, %v14592_v42  ;;  %v10085_v37 = vsel %vm14708_vm15, %v2250_v26, %v2251_v62  ;;  %v15087_v26 = vld [vmem:[#allocation53_spill] sm:$0xff]  ;;  %v15090_v62 = vld [vmem:[#allocation71_spill] sm:$0xff]  ;;  %v15091_v34 = vld [vmem:[#allocation70_spill] sm:$0xff] }
 0x31f   : > { %15080 = vst [vmem:[#allocation61_spill] sm:$0xff] %v10085_v37  ;;  %v6898_v51 = vpack.i.bf16 %v10085_v37, %v15076_v27  ;;  %v2255_v52 = vrot.slane %v15087_v26, 2  ;;  %2844 = vmatpush.msrb.mxu0 %v10003_v14  ;;  %6697 = vmatpush.msrb.mxu1 %v10003_v14  ;;  %v6903_v31 = vpack.i.bf16 %v10106_v54, %v15087_v26  ;;  %v2260_v30 = vrot.slane %v15090_v62, 2 }
 0x320   : > { %15084 = vst [vmem:[#allocation75_spill] sm:$0xff] %v10099_v41  ;;  %v2265_v54 = vrot.slane %v15095_v11, 2  ;;  %v2268_v37 = vrot.slane %v9457_v58, 2 }
 0x321   : > { %2845 = vmatpush.msrb.mxu0 %v10021_v61  ;;  %6700 = vmatpush.msrb.mxu1 %v10021_v61  ;;  %v10120_v21 = vsel %vm14708_vm15, %v2255_v52, %v2256_v56  ;;  %v15094_v52 = vld [vmem:[#allocation78_spill] sm:$0xff] }
 0x322   : > { %6889 = vrot.lane.b32.xlu2 %v6888_v0, %s7837_s28  ;;  %2888 = vmatmul.f32.gmra.mxu2 %v10099_v41  ;;  %v2258_v0 = vrot.slane %v15088_v29, 2  ;;  %15089 = vst [vmem:[#allocation83_spill] sm:$0xff] %v10120_v21  ;;  %v6908_v14 = vpack.i.bf16 %v10120_v21, %v15085_v3  ;;  %v2263_v42 = vrot.slane %v15094_v52, 2  ;;  %v10143_v21 = vpop.permute.xlu1 %6769 }
 0x324   : > { %v10125_v29 = vsel %vm14708_vm15, %v2256_v56, %v2258_v0  ;;  %v2266_v56 = vrot.slane %v9297_v9, 2  ;;  %v1930_v0 = vld [vmem:[%s14437_s8 + $0x230] sm:$0xff] }
 0x325   : > { %15092 = vst [vmem:[#allocation95_spill] sm:$0xff] %v10125_v29  ;;  %3291 = vmatpush.msrb.mxu2 %v1930_v0 }
 0x326   : > { %6894 = vrot.lane.b32.xlu0 %v6893_v50, %s7837_s28  ;;  %6899 = vrot.lane.b32.xlu1 %v6898_v51, %s7837_s28  ;;  %v2261_v50 = vrot.slane %v15091_v34, 2  ;;  %v6913_v51 = vpack.i.bf16 %v10125_v29, %v15090_v62 }
 0x328   : > { %v10133_v61 = vsel %vm14708_vm15, %v2260_v30, %v2261_v50  ;;  %v10149_v29 = vsel %vm14708_vm15, %v2261_v50, %v2263_v42  ;;  %v10172_v50 = vsel %vm14708_vm15, %v2266_v56, %v2268_v37 }
 0x329   : > { %15093 = vst [vmem:[#allocation56_spill] sm:$0xff] %v10133_v61  ;;  %v6918_v30 = vpack.i.bf16 %v10133_v61, %v15091_v34  ;;  %v6923_v58 = vpack.i.bf16 %v10149_v29, %v15095_v11  ;;  %v6933_v37 = vpack.i.bf16 %v10172_v50, %v9626_v4 }
 0x32a   : > { %6904 = vrot.lane.b32.xlu2 %v6903_v31, %s7837_s28  ;;  %v6765_v31 = vpop.permute.xlu0 %6764  ;;  %15096 = vst [vmem:[#allocation62_spill] sm:$0xff] %v10149_v29  ;;  %v10208_v29 = vpop.permute.xlu1 %6784 }
 0x32b   : > { %v6766_v52 = vunpack.i.l.bf16 %v6765_v31  ;;  %15101 = vst [vmem:[#allocation52_spill] sm:$0xff] %v10172_v50  ;;  %v6786_v61 = vunpack.i.l.bf16 %v10208_v29 }
 0x32d   : > { %v10162_v0 = vsel %vm15099_vm13, %v15076_v27, %v6766_v52  ;;  %v2273_v27 = vrot.slane %v9739_v55, 2  ;;  %v6767_v52 = vunpack.i.h.bf16 %v6765_v31  ;;  %v2275_v55 = vrot.slane %v9758_v45, 2  ;;  %vm15126_vm13 = vmmov %vm15122_vm0 }
 0x32e   : > { %6909 = vrot.lane.b32.xlu0 %v6908_v14, %s7837_s28  ;;  %6914 = vrot.lane.b32.xlu1 %v6913_v51, %s7837_s28  ;;  %v6771_v14 = vunpack.i.l.bf16 %v10143_v21  ;;  %v10153_v51 = vsel %vm14708_vm15, %v2265_v54, %v2266_v56  ;;  %15100 = vst [vmem:[#allocation51_spill] sm:$0xff] %v10162_v0  ;;  %v2271_v54 = vrot.slane %v9623_v2, 2  ;;  %v10260_v48 = vsel %vm15112_vm8, %v15062_v46, %v6786_v61  ;;  %vm15130_vm8 = vmmov %vm15122_vm0 }
 0x32f   : > { %15097 = vst [vmem:[#allocation59_spill] sm:$0xff] %v10153_v51  ;;  %2891 = vmatmul.f32.gmra.mxu2 %v10162_v0  ;;  %v6928_v42 = vpack.i.bf16 %v10153_v51, %v9297_v9  ;;  %v1929_v51 = vld [vmem:[%s14437_s8 + $0x228] sm:$0xff]  ;;  %v10202_v50 = vsel %vm15105_vm14, %v15087_v26, %v6767_v52  ;;  %vm15128_vm14 = vmmov %vm15122_vm0 }
 0x330   : > { %v10158_v41 = vsel %vm15098_vm10, %v15060_v33, %v6771_v14  ;;  %v2270_v33 = vrot.slane %v9626_v4, 2  ;;  %3292 = vmatpush.msrb.mxu2 %v1929_v51  ;;  %v10193_v31 = vsel %vm14708_vm15, %v2271_v54, %v2273_v27  ;;  %15106 = vst [vmem:[#allocation65_spill] sm:$0xff] %v10202_v50  ;;  %v15107_v51 = vld [vmem:[#allocation72_spill] sm:$0xff]  ;;  %v10214_v27 = vpop.permute.xlu2 %6789  ;;  %vm15125_vm10 = vmmov %vm15122_vm0 }
 0x331   : > { %2858 = vmatmul.f32.vlgmr.msrb.gmra.mxu1 %v10158_v41  ;;  %15103 = vst [vmem:[#allocation53_spill] sm:$0xff] %v10193_v31 }
 0x332   : > { %6919 = vrot.lane.b32.xlu2 %v6918_v30, %s7837_s28  ;;  %v6777_v30 = vunpack.i.h.bf16 %v10061_v57  ;;  %v10179_v14 = vpop.permute.xlu0 %6779  ;;  %v2276_v57 = vrot.slane %v15045_v43, 2 }
 0x333   : > { %v6782_v56 = vunpack.i.h.bf16 %v10179_v14 }
 0x334   : > { %v10220_v26 = vsel %vm14708_vm15, %v2275_v55, %v2276_v57  ;;  %v1907_v55 = vld [vmem:[%s14437_s8 + $0x178] sm:$0xff] }
 0x335   : > { %v6948_v0 = vpack.i.bf16 %v10220_v26, %v15045_v43  ;;  %3056 = vmatpush.msra.mxu0 %v1907_v55  ;;  %v6792_v55 = vunpack.i.h.bf16 %v10214_v27 }
 0x336   : > { %6924 = vrot.lane.b32.xlu0 %v6923_v58, %s7837_s28  ;;  %6929 = vrot.lane.b32.xlu1 %v6928_v42, %s7837_s28  ;;  %v10188_v58 = vsel %vm14708_vm15, %v2270_v33, %v2271_v54  ;;  %v10198_v42 = vsel %vm15104_vm12, %v15055_v20, %v6777_v30  ;;  %v10206_v33 = vsel %vm15108_vm7, %v15107_v51, %v6782_v56  ;;  %v15110_v30 = vld [vmem:[#allocation81_spill] sm:$0xff]  ;;  %v2281_v56 = vrot.slane %v9029_v24, 2  ;;  %vm15127_vm12 = vmmov %vm15122_vm0 }
 0x337   : > { %15102 = vst [vmem:[#allocation54_spill] sm:$0xff] %v10188_v58  ;;  %2894 = vmatmul.f32.gmra.mxu2 %v10202_v50  ;;  %v6938_v54 = vpack.i.bf16 %v10188_v58, %v9623_v2  ;;  %2924 = vmatmul.f32.gmra.mxu3 %v10206_v33  ;;  %v6943_v20 = vpack.i.bf16 %v10193_v31, %v9758_v45  ;;  %v2278_v52 = vrot.slane %v15110_v30, 2  ;;  %v6772_v58 = vunpack.i.h.bf16 %v10143_v21  ;;  %v1891_v21 = vld [vmem:[%s14437_s8 + $0xf8] sm:$0xff]  ;;  %v1906_v31 = vld [vmem:[%s14437_s8 + $0x170] sm:$0xff]  ;;  %v1928_v50 = vld [vmem:[%s14437_s8 + $0x220] sm:$0xff] }
 0x338   : > { %15109 = vst [vmem:[#allocation71_spill] sm:$0xff] %v10206_v33  ;;  %v1923_v33 = vld [vmem:[%s14437_s8 + $0x1f8] sm:$0xff]  ;;  %v6791_v30 = vunpack.i.l.bf16 %v10214_v27  ;;  %2943 = vmatpush.msrb.mxu3 %v1891_v21  ;;  %3293 = vmatpush.msrb.mxu2 %v1928_v50  ;;  %v1921_v27 = vld [vmem:[%s14437_s8 + $0x1e8] sm:$0xff]  ;;  %vm15129_vm7 = vmmov %vm15122_vm0 }
 0x339   : > { %2861 = vmatmul.f32.gmra.mxu1 %v10198_v42  ;;  %v10264_v43 = vsel %vm15113_vm3, %v15085_v3, %v6772_v58  ;;  %3057 = vmatpush.msra.mxu0 %v1906_v31  ;;  %v2286_v3 = vrot.slane %v9312_v8, 2  ;;  %v15115_v58 = vld [vmem:[#allocation88_spill] sm:$0xff]  ;;  %v2288_v31 = vrot.slane %v9609_v32, 2  ;;  %vm15131_vm3 = vmmov %vm15122_vm0 }
 0x33a   : > { %6934 = vrot.lane.b32.xlu2 %v6933_v37, %s7837_s28  ;;  %v2280_v37 = vrot.slane %v15107_v51, 2  ;;  %3169 = vmatpush.msra.mxu1 %v1923_v33  ;;  %v15111_v33 = vld [vmem:[#allocation96_spill] sm:$0xff]  ;;  %v10270_v50 = vsel %vm15114_vm4, %v9029_v24, %v6791_v30  ;;  %v15116_v30 = vrot.slane %v9990_v36, 7  ;;  %v6781_v36 = vunpack.i.l.bf16 %v10179_v14  ;;  %vm15132_vm4 = vmmov %vm15122_vm0 }
 0x33b   : > { %v2283_v19 = vrot.slane %v15111_v33, 2  ;;  %v10298_v32 = vsel %vm14708_vm15, %v2286_v3, %v2288_v31  ;;  %v1905_v33 = vld [vmem:[%s14437_s8 + $0x168] sm:$0xff]  ;;  %v1904_v31 = vld [vmem:[%s14437_s8 + $0x160] sm:$0xff]  ;;  %v2330_v14 = vrot.slane %v10077_v38, 1 }
 0x33c   : > { %v10255_v39 = vsel %vm14708_vm15, %v2280_v37, %v2281_v56  ;;  %v10305_v21 = vsel %vm14718_vm2, 0.0, %v15116_v30  ;;  %3058 = vmatpush.msra.mxu0 %v1905_v33 }
 0x33d   : > { %v6958_v46 = vpack.i.bf16 %v10255_v39, %v9029_v24  ;;  %v10279_v61 = vsel %vm14708_vm15, %v2281_v56, %v2283_v19  ;;  %v2291_v19 = vrot.slane %v9742_v13, 2  ;;  %v2290_v56 = vrot.slane %v9745_v35, 2 }
 0x33e   : > { %6939 = vrot.lane.b32.xlu0 %v6938_v54, %s7837_s28  ;;  %v1922_v54 = vld [vmem:[%s14437_s8 + $0x1f0] sm:$0xff]  ;;  %6944 = vrot.lane.b32.xlu1 %v6943_v20, %s7837_s28  ;;  %v10251_v20 = vsel %vm14708_vm15, %v2276_v57, %v2278_v52  ;;  %v2285_v57 = vrot.slane %v15115_v58, 2  ;;  %v10287_v52 = vpop.permute.xlu0 %6794 }
 0x33f   : > { %3170 = vmatpush.msra.mxu1 %v1922_v54  ;;  %2897 = vmatmul.f32.gmra.mxu2 %v10264_v43  ;;  %v10337_v33 = vsel %vm14708_vm15, %v2290_v56, %v2291_v19  ;;  %v1903_v56 = vld [vmem:[%s14437_s8 + $0x158] sm:$0xff] }
 0x340   : > { %2927 = vmatmul.f32.gmra.mxu3 %v10270_v50  ;;  %v10290_v24 = vsel %vm14708_vm15, %v2285_v57, %v2286_v3  ;;  %v6797_v57 = vunpack.i.h.bf16 %v10287_v52  ;;  %15120 = vst [vmem:[#allocation78_spill] sm:$0xff] %v10337_v33  ;;  %3059 = vmatpush.msra.mxu0 %v1904_v31  ;;  %v6978_v31 = vpack.i.bf16 %v10337_v33, %v9742_v13  ;;  %v1901_v33 = vld [vmem:[%s14437_s8 + $0x148] sm:$0xff] }
 0x341   : > { %2864 = vmatmul.f32.gmra.mxu1 %v10260_v48 }
 0x342   : > { %6949 = vrot.lane.b32.xlu2 %v6948_v0, %s7837_s28  ;;  %v6953_v0 = vpack.i.bf16 %v10251_v20, %v15107_v51  ;;  %v6963_v51 = vpack.i.bf16 %v10279_v61, %v15115_v58  ;;  %3171 = vmatpush.msra.mxu1 %v1921_v27  ;;  %v2329_v27 = vrot.slane %v10305_v21, 1 }
 0x343   : > { %3060 = vmatpush.msra.mxu0 %v1903_v56 }
 0x346   : > { %6954 = vrot.lane.b32.xlu0 %v6953_v0, %s7837_s28  ;;  %6959 = vrot.lane.b32.xlu1 %v6958_v46, %s7837_s28  ;;  %v1890_v0 = vld [vmem:[%s14437_s8 + $0xf0] sm:$0xff]  ;;  %v15117_v46 = vrot.slane %v10045_v7, 7  ;;  %v6973_v7 = vpack.i.bf16 %v10298_v32, %v9745_v35 }
 0x347   : > { %2944 = vmatpush.msrb.mxu3 %v1890_v0  ;;  %v10345_v0 = vsel %vm15121_vm6, %v15063_v5, %v6792_v55  ;;  %v10361_v5 = vsel %vm15122_vm0, %v15115_v58, %v6797_v57  ;;  %v1920_v55 = vld [vmem:[%s14437_s8 + $0x1e0] sm:$0xff]  ;;  %v2366_v58 = vrot.slane %v10305_v21, 2  ;;  %v2367_v57 = vrot.slane %v10077_v38, 2  ;;  %vm15134_vm6 = vmmov %vm15122_vm0 }
 0x348   : > { %v10319_v3 = vsel %vm14718_vm2, %v15117_v46, 0.0  ;;  %v2293_v46 = vrot.slane %v9788_v1, 2  ;;  %v10357_v1 = vsel %vm15071_vm1, %v15090_v62, %v6781_v36  ;;  %2930 = vmatmul.f32.gmra.mxu3 %v10361_v5  ;;  %v1902_v62 = vld [vmem:[%s14437_s8 + $0x150] sm:$0xff]  ;;  %v10374_v36 = vsel %vm15123_vm9, %v2329_v27, %v2330_v14  ;;  %3172 = vmatpush.msra.mxu1 %v1920_v55  ;;  %v1888_v27 = vld [vmem:[%s14437_s8 + $0xe0] sm:$0xff]  ;;  %vm15135_vm1 = vmmov %vm15122_vm0 }
 0x349   : > { %2867 = vmatmul.f32.gmra.mxu1 %v10345_v0  ;;  %2900 = vmatmul.f32.gmra.mxu2 %v10357_v1  ;;  %v10404_v55 = vsel %vm14708_vm15, %v2366_v58, %v2367_v57  ;;  %v1886_v58 = vld [vmem:[%s14437_s8 + $0xd0] sm:$0xff]  ;;  %vm15136_vm9 = vmmov %vm15122_vm0 }
 0x34a   : > { %v10292_v37 = vpop.permute.xlu2 %6804  ;;  %6964 = vrot.lane.b32.xlu2 %v6963_v51, %s7837_s28  ;;  %v6968_v51 = vpack.i.bf16 %v10290_v24, %v9312_v8  ;;  %3061 = vmatpush.msra.mxu0 %v1902_v62 }
 0x34b   : > { %v6806_v54 = vunpack.i.l.bf16 %v10292_v37 }
 0x34c   : > { %3062 = vmatpush.msra.mxu0 %v1901_v33 }
 0x34d   : > { %v10330_v30 = vsel %vm15118_vm5, %v9655_v15, %v6806_v54  ;;  %v2332_v54 = vrot.slane %v10319_v3, 1  ;;  %vm15133_vm5 = vmmov %vm15122_vm0 }
 0x34e   : > { %15119 = vst [vmem:[#allocation70_spill] sm:$0xff] %v10330_v30  ;;  %2846 = vmatmul.f32.vlgmr.msrb.gmra.mxu0 %v10330_v30  ;;  %6969 = vrot.lane.b32.xlu0 %v6968_v51, %s7837_s28  ;;  %v1889_v30 = vld [vmem:[%s14437_s8 + $0xe8] sm:$0xff]  ;;  %v10379_v51 = vsel %vm14708_vm15, %v2291_v19, %v2293_v46  ;;  %v6807_v19 = vunpack.i.h.bf16 %v10292_v37  ;;  %v6983_v46 = vpack.i.bf16 %v10305_v21, %v10374_v36  ;;  %v1927_v37 = vld [vmem:[%s14437_s8 + $0x218] sm:$0xff] }
 0x34f   : > { %6974 = vrot.lane.b32.xlu1 %v6973_v7, %s7837_s28  ;;  %2945 = vmatpush.msrb.mxu3 %v1889_v30  ;;  %v10382_v7 = vsel %vm15124_vm11, %v2330_v14, %v2332_v54  ;;  %v1919_v30 = vld [vmem:[%s14437_s8 + $0x1d8] sm:$0xff]  ;;  %v6787_v14 = vunpack.i.h.bf16 %v10208_v29  ;;  %v1900_v54 = vld [vmem:[%s14437_s8 + $0x140] sm:$0xff]  ;;  %vm15137_vm11 = vmmov %vm15122_vm0 }
 0x350   : > { %3173 = vmatpush.msra.mxu1 %v1919_v30  ;;  %v6988_v56 = vpack.i.bf16 %v10382_v7, %v10379_v51  ;;  %v1887_v29 = vld [vmem:[%s14437_s8 + $0xd8] sm:$0xff]  ;;  %3063 = vmatpush.msra.mxu0 %v1900_v54  ;;  %v10423_v62 = vsel %vm15126_vm13, %v9312_v8, %v6807_v19  ;;  %v1918_v8 = vld [vmem:[%s14437_s8 + $0x1d0] sm:$0xff]  ;;  %v2369_v30 = vrot.slane %v10319_v3, 2  ;;  %v1885_v19 = vld [vmem:[%s14437_s8 + $0xc8] sm:$0xff] }
 0x351   : > { %2946 = vmatpush.msrb.mxu3 %v1888_v27  ;;  %v10419_v33 = vsel %vm15125_vm10, %v15091_v34, %v6787_v14  ;;  %v6993_v27 = vpack.i.bf16 %v10404_v55, %v10077_v38  ;;  %v1898_v34 = vld [vmem:[%s14437_s8 + $0x130] sm:$0xff]  ;;  %3294 = vmatpush.msrb.mxu2 %v1927_v37  ;;  %v1897_v14 = vld [vmem:[%s14437_s8 + $0x128] sm:$0xff]  ;;  %v1884_v3 = vld [vmem:[%s14437_s8 + $0xc0] sm:$0xff] }
 0x352   : > { %6979 = vrot.lane.b32.xlu2 %v6978_v31, %s7837_s28  ;;  %v1899_v31 = vld [vmem:[%s14437_s8 + $0x138] sm:$0xff]  ;;  %2903 = vmatmul.f32.gmra.mxu2 %v10419_v33  ;;  %v1917_v54 = vld [vmem:[%s14437_s8 + $0x1c8] sm:$0xff]  ;;  %v10457_v37 = vsel %vm14708_vm15, %v2367_v57, %v2369_v30  ;;  %v1916_v57 = vld [vmem:[%s14437_s8 + $0x1c0] sm:$0xff] }
 0x353   : > { %2947 = vmatpush.msrb.mxu3 %v1887_v29  ;;  %3064 = vmatpush.msra.mxu0 %v1899_v31  ;;  %v1896_v29 = vld [vmem:[%s14437_s8 + $0x120] sm:$0xff]  ;;  %v1883_v31 = vld [vmem:[%s14437_s8 + $0xb8] sm:$0xff]  ;;  %vm15139_vm10 = vmmov %vm15122_vm0 }
 0x354   : > { %2933 = vmatmul.f32.gmra.mxu3 %v10423_v62  ;;  %3174 = vmatpush.msra.mxu1 %v1918_v8  ;;  %v1926_v8 = vld [vmem:[%s14437_s8 + $0x210] sm:$0xff]  ;;  %vm15140_vm13 = vmmov %vm15122_vm0 }
 0x355   : > { %2948 = vmatpush.msrb.mxu3 %v1886_v58  ;;  %3065 = vmatpush.msra.mxu0 %v1898_v34  ;;  %v1895_v58 = vld [vmem:[%s14437_s8 + $0x118] sm:$0xff] }
 0x356   : > { %6984 = vrot.lane.b32.xlu0 %v6983_v46, %s7837_s28  ;;  %v6796_v46 = vunpack.i.l.bf16 %v10287_v52  ;;  %3175 = vmatpush.msra.mxu1 %v1917_v54  ;;  %v1880_v54 = vld [vmem:[%s14437_s8 + $0xa0] sm:$0xff] }
 0x357   : > { %6989 = vrot.lane.b32.xlu1 %v6988_v56, %s7837_s28  ;;  %2949 = vmatpush.msrb.mxu3 %v1885_v19  ;;  %v1894_v19 = vld [vmem:[%s14437_s8 + $0x110] sm:$0xff] }
 0x358   : > { %3066 = vmatpush.msra.mxu0 %v1897_v14  ;;  %v10476_v34 = vsel %vm15128_vm14, %v15095_v11, %v6796_v46  ;;  %3176 = vmatpush.msra.mxu1 %v1916_v57  ;;  %v1881_v11 = vld [vmem:[%s14437_s8 + $0xa8] sm:$0xff]  ;;  %v6820_v57 = vpop.permute.xlu2 %6819  ;;  %vm15142_vm14 = vmmov %vm15122_vm0 }
 0x359   : > { %v6800_v56 = vpop.permute.xlu1 %6799  ;;  %2950 = vmatpush.msrb.mxu3 %v1884_v3  ;;  %3295 = vmatpush.msrb.mxu2 %v1926_v8  ;;  %v1893_v14 = vld [vmem:[%s14437_s8 + $0x108] sm:$0xff]  ;;  %v1878_v8 = vld [vmem:[%s14437_s8 + $0x90] sm:$0xff] }
 0x35a   : > { %6994 = vrot.lane.b32.xlu2 %v6993_v27, %s7837_s28  ;;  %v6801_v52 = vunpack.i.l.bf16 %v6800_v56  ;;  %3067 = vmatpush.msra.mxu0 %v1896_v29  ;;  %v6802_v46 = vunpack.i.h.bf16 %v6800_v56  ;;  %v1892_v29 = vld [vmem:[%s14437_s8 + $0x100] sm:$0xff]  ;;  %v1879_v56 = vld [vmem:[%s14437_s8 + $0x98] sm:$0xff] }
 0x35b   : > { %2906 = vmatmul.f32.gmra.mxu2 %v10476_v34  ;;  %2951 = vmatpush.msrb.mxu3 %v1883_v31 }
 0x35c   : > { %v10472_v27 = vsel %vm15127_vm12, %v9569_v53, %v6801_v52  ;;  %v1882_v53 = vld [vmem:[%s14437_s8 + $0xb0] sm:$0xff]  ;;  %3068 = vmatpush.msra.mxu0 %v1895_v58  ;;  %v1915_v52 = vld [vmem:[%s14437_s8 + $0x1b8] sm:$0xff]  ;;  %v10513_v58 = vsel %vm15130_vm8, %v9297_v9, %v6802_v46  ;;  %v1877_v9 = vld [vmem:[%s14437_s8 + $0x88] sm:$0xff] }
 0x35d   : > { %2870 = vmatmul.f32.gmra.mxu1 %v10472_v27  ;;  %2952 = vmatpush.msrb.mxu3 %v1882_v53  ;;  %vm15141_vm12 = vmmov %vm15122_vm0 }
 0x35e   : > { %2625 = vrot.lane.b32.xlu0 %v10457_v37, %s7837_s28  ;;  %v6810_v30 = vpop.permute.xlu0 %6809  ;;  %3069 = vmatpush.msra.mxu0 %v1894_v19  ;;  %vm15145_vm8 = vmmov %vm15122_vm0 }
 0x35f   : > { %v6811_v3 = vunpack.i.l.bf16 %v6810_v30  ;;  %2953 = vmatpush.msrb.mxu3 %v1881_v11  ;;  %3177 = vmatpush.msra.mxu1 %v1915_v52  ;;  %v1914_v11 = vld [vmem:[%s14437_s8 + $0x1b0] sm:$0xff]  ;;  %v6812_v46 = vunpack.i.h.bf16 %v6810_v30  ;;  %v1925_v30 = vld [vmem:[%s14437_s8 + $0x208] sm:$0xff] }
 0x360   : > { %3070 = vmatpush.msra.mxu0 %v1893_v14  ;;  %v6821_v14 = vunpack.i.l.bf16 %v6820_v57  ;;  %v1913_v52 = vld [vmem:[%s14437_s8 + $0x1a8] sm:$0xff]  ;;  %3296 = vmatpush.msrb.mxu2 %v1925_v30  ;;  %v2216_v30 = vrot.slane %v9628_v40, 2 }
 0x361   : > { %v10509_v31 = vsel %vm15129_vm7, %v9566_v28, %v6811_v3  ;;  %2954 = vmatpush.msrb.mxu3 %v1880_v54  ;;  %3178 = vmatpush.msra.mxu1 %v1914_v11  ;;  %v1912_v11 = vld [vmem:[%s14437_s8 + $0x1a0] sm:$0xff]  ;;  %vm15144_vm7 = vmmov %vm15122_vm0 }
 0x362   : > { %3071 = vmatpush.msra.mxu0 %v1892_v29  ;;  %v1876_v29 = vld [vmem:[%s14437_s8 + $0x80] sm:$0xff] }
 0x363   : > { %2909 = vmatmul.f32.gmra.mxu2 %v10513_v58  ;;  %2955 = vmatpush.msrb.mxu3 %v1879_v56 }
 0x364   : > { %3179 = vmatpush.msra.mxu1 %v1913_v52  ;;  %v1911_v52 = vld [vmem:[%s14437_s8 + $0x198] sm:$0xff] }
 0x365   : > { %2873 = vmatmul.f32.gmra.mxu1 %v10509_v31  ;;  %2956 = vmatpush.msrb.mxu3 %v1878_v8  ;;  %v10552_v8 = vsel %vm15134_vm6, %v9626_v4, %v6812_v46  ;;  %v6835_v4 = vpop.permute.xlu2 %6834  ;;  %v2215_v46 = vrot.slane %v9655_v15, 2  ;;  %vm15149_vm6 = vmmov %vm15122_vm0 }
 0x366   : > { %3180 = vmatpush.msra.mxu1 %v1912_v11 }
 0x367   : > { %2957 = vmatpush.msrb.mxu3 %v1877_v9  ;;  %v6822_v9 = vunpack.i.h.bf16 %v6820_v57  ;;  %v10586_v11 = vsel %vm14708_vm15, %v2215_v46, %v2216_v30 }
 0x368   : > { %v6815_v53 = vpop.permute.xlu1 %6814  ;;  %3181 = vmatpush.msra.mxu1 %v1911_v52  ;;  %15138 = vst [vmem:[#allocation87_spill] sm:$0xff] %v10586_v11  ;;  %v2218_v52 = vrot.slane %v9717_v16, 2 }
 0x369   : > { %v6817_v19 = vunpack.i.h.bf16 %v6815_v53  ;;  %v6816_v28 = vunpack.i.l.bf16 %v6815_v53  ;;  %2958 = vmatpush.msrb.mxu3 %v1876_v29 }
 0x36b   : > { %v10528_v3 = vsel %vm15131_vm3, %v9628_v40, %v6816_v28  ;;  %v10532_v54 = vsel %vm15132_vm4, %v9745_v35, %v6817_v19  ;;  %v10547_v35 = vsel %vm15133_vm5, %v9767_v59, %v6821_v14  ;;  %2912 = vmatmul.f32.gmra.mxu2 %v10552_v8  ;;  %vm15146_vm3 = vmmov %vm15122_vm0 }
 0x36c   : > { %2849 = vmatmul.f32.gmra.mxu0 %v10528_v3  ;;  %2936 = vmatmul.f32.gmra.mxu3 %v10532_v54  ;;  %vm15147_vm4 = vmmov %vm15122_vm0 }
 0x36d   : > { %2876 = vmatmul.f32.gmra.mxu1 %v10547_v35  ;;  %vm15148_vm5 = vmmov %vm15122_vm0 }
 0x370   : > { %v6825_v56 = vpop.permute.xlu0 %6824  ;;  %v6830_v53 = vpop.permute.xlu1 %6829 }
 0x371   : > { %v6827_v19 = vunpack.i.h.bf16 %v6825_v56  ;;  %v6826_v28 = vunpack.i.l.bf16 %v6825_v56  ;;  %v6831_v59 = vunpack.i.l.bf16 %v6830_v53  ;;  %v6837_v56 = vunpack.i.h.bf16 %v6835_v4 }
 0x373   : > { %v2667_v14 = vsel %vm15135_vm1, %v9799_v22, %v6826_v28  ;;  %v10562_v29 = vsel %vm15122_vm0, %v9742_v13, %v6827_v19  ;;  %v1924_v22 = vld [vmem:[%s14437_s8 + $0x200] sm:$0xff]  ;;  %v1910_v13 = vld [vmem:[%s14437_s8 + $0x190] sm:$0xff]  ;;  %v10578_v57 = vsel %vm15136_vm9, %v9764_v12, %v6831_v59  ;;  %v6836_v19 = vunpack.i.l.bf16 %v6835_v4  ;;  %vm15151_vm1 = vmmov %vm15122_vm0 }
 0x374   : > { %2852 = vmatmul.f32.gmra.mxu0 %v2667_v14  ;;  %2939 = vmatmul.f32.gmra.mxu3 %v10562_v29  ;;  %v10583_v28 = vsel %vm15137_vm11, %v9623_v2, %v6822_v9  ;;  %v1909_v14 = vld [vmem:[%s14437_s8 + $0x188] sm:$0xff]  ;;  %v1908_v12 = vld [vmem:[%s14437_s8 + $0x180] sm:$0xff]  ;;  %v6832_v59 = vunpack.i.h.bf16 %v6830_v53  ;;  %v2697_v9 = vsel %vm15140_vm13, %v10586_v11, %v6837_v56  ;;  %v10610_v53 = vsel %vm14708_vm15, %v2216_v30, %v2218_v52  ;;  %v6845_v56 = vpop.permute.xlu2 %6844  ;;  %vm15152_vm9 = vmmov %vm15122_vm0 }
 0x375   : > { %3297 = vmatpush.msrb.mxu2 %v1924_v22  ;;  %2879 = vmatmul.f32.gmra.mxu1 %v10578_v57  ;;  %v2668_v2 = vsel %vm15139_vm10, %v9796_v60, %v6836_v19  ;;  %15143 = vst [vmem:[#allocation72_spill] sm:$0xff] %v10610_v53  ;;  %v6847_v19 = vunpack.i.h.bf16 %v6845_v56  ;;  %vm15154_vm11 = vmmov %vm15122_vm0 }
 0x376   : > { %2915 = vmatmul.f32.gmra.mxu2 %v10583_v28  ;;  %3182 = vmatpush.msra.mxu1 %v1910_v13  ;;  %v10607_v60 = vsel %vm15142_vm14, %v9758_v45, %v6832_v59  ;;  %vm15155_vm10 = vmmov %vm15122_vm0 }
 0x377   : > { %v2730_v45 = vsel %vm15147_vm4, %v9827_v25, %v6847_v19  ;;  %vm15156_vm13 = vmmov %vm15122_vm0 }
 0x378   : > { %3183 = vmatpush.msra.mxu1 %v1909_v14  ;;  %v2396_v4 = vpop.permute.xlu0 %2395  ;;  %v6840_v46 = vpop.permute.xlu1 %6839  ;;  %vm15159_vm14 = vmmov %vm15122_vm0 }
 0x379   : > { %v10602_v22 = vsel %vm15141_vm12, %v9835_v63, %v2396_v4  ;;  %v6842_v13 = vunpack.i.h.bf16 %v6840_v46  ;;  %v6841_v14 = vunpack.i.l.bf16 %v6840_v46  ;;  %vm15158_vm12 = vmmov %vm15122_vm0 }
 0x37a   : > { %3184 = vmatpush.msra.mxu1 %v1908_v12  ;;  %v6846_v12 = vunpack.i.l.bf16 %v6845_v56  ;;  %vm15165_vm4 = vmmov %vm15122_vm0 }
 0x37b   : > { %v2729_v16 = vsel %vm15144_vm7, %v9815_v23, %v6842_v13  ;;  %v2698_v63 = vsel %vm15145_vm8, %v10610_v53, %v6841_v14  ;;  %vm15160_vm7 = vmmov %vm15122_vm0 }
 0x37c   : > { %2855 = vmatmul.f32.gmra.mxu0 %v2668_v2  ;;  %2959 = vmatmul.f32.vlgmr.msrb.gmra.mxu3 %v2697_v9  ;;  %v2699_v30 = vsel %vm15148_vm5, %v9853_v44, %v6846_v12  ;;  %v6860_v14 = vpop.permute.xlu2 %6859  ;;  %vm15162_vm8 = vmmov %vm15122_vm0 }
 0x37d   : > { %2882 = vmatmul.f32.gmra.mxu1 %v10602_v22  ;;  %vm15167_vm5 = vmmov %vm15122_vm0 }
 0x37e   : > { %2918 = vmatmul.f32.gmra.mxu2 %v10607_v60 }
 0x380   : > { %v6850_v23 = vpop.permute.xlu0 %6849  ;;  %v6855_v25 = vpop.permute.xlu1 %6854 }
 0x381   : > { %v6852_v59 = vunpack.i.h.bf16 %v6850_v23  ;;  %v6851_v4 = vunpack.i.l.bf16 %v6850_v23  ;;  %v6857_v44 = vunpack.i.h.bf16 %v6855_v25  ;;  %v6856_v46 = vunpack.i.l.bf16 %v6855_v25 }
 0x383   : > { %v2700_v9 = vsel %vm15122_vm0, %v9870_v49, %v6851_v4  ;;  %v2701_v13 = vsel %vm15155_vm10, %v9888_v18, %v6856_v46  ;;  %v6862_v49 = vunpack.i.h.bf16 %v6860_v14  ;;  %vm15178_vm10 = vmmov %vm15122_vm0 }
 0x384   : > { %3072 = vmatmul.f32.vlgmr.msra.gmra.mxu0 %v2729_v16  ;;  %2962 = vmatmul.f32.gmra.mxu3 %v2698_v63  ;;  %v6861_v16 = vunpack.i.l.bf16 %v6860_v14 }
 0x385   : > { %3185 = vmatmul.f32.vlgmr.msra.gmra.mxu1 %v10158_v41  ;;  %v15150_v41 = vld [vmem:[#allocation69_spill] sm:$0xff] }
 0x386   : > { %6515 = vmatmul.msk.f32.vlgmr.msrb.gmra.mxu2 %vm15146_vm3, %v9888_v18  ;;  %v2731_v2 = vsel %vm15151_vm1, %v15150_v41, %v6852_v59  ;;  %v2702_v56 = vsel %vm15159_vm14, %v9896_v10, %v6861_v16  ;;  %vm15163_vm3 = vmmov %vm15122_vm0 }
 0x387   : > { %vm15170_vm1 = vmmov %vm15122_vm0 }
 0x388   : > { %v6865_v12 = vpop.permute.xlu0 %6864  ;;  %v6870_v59 = vpop.permute.xlu1 %6869  ;;  %vm15185_vm14 = vmmov %vm15122_vm0 }
 0x389   : > { %v6867_v18 = vunpack.i.h.bf16 %v6865_v12  ;;  %v6872_v4 = vunpack.i.h.bf16 %v6870_v59  ;;  %v6871_v41 = vunpack.i.l.bf16 %v6870_v59 }
 0x38c   : > { %3075 = vmatmul.f32.gmra.mxu0 %v2730_v45  ;;  %2965 = vmatmul.f32.gmra.mxu3 %v2699_v30  ;;  %v6866_v45 = vunpack.i.l.bf16 %v6865_v12 }
 0x38d   : > { %3188 = vmatmul.f32.gmra.mxu1 %v10198_v42  ;;  %v15153_v42 = vld [vmem:[#allocation76_spill] sm:$0xff] }
 0x38e   : > { %6516 = vmatmul.msk.f32.gmra.mxu2 %vm15149_vm6, %v9896_v10  ;;  %v2732_v52 = vsel %vm15154_vm11, %v15153_v42, %v6857_v44  ;;  %v2703_v23 = vsel %vm15163_vm3, %v9911_v17, %v6866_v45  ;;  %vm15168_vm6 = vmmov %vm15122_vm0  ;;  %v6875_v44 = vpop.permute.xlu2 %6874 }
 0x38f   : > { %v2704_v25 = vsel %vm15168_vm6, %v9948_v47, %v6871_v41  ;;  %v6877_v42 = vunpack.i.h.bf16 %v6875_v44  ;;  %vm15176_vm11 = vmmov %vm15122_vm0 }
 0x390   : > { %vm15192_vm3 = vmmov %vm15122_vm0 }
 0x391   : > { %vm15198_vm6 = vmmov %vm15122_vm0 }
 0x394   : > { %3078 = vmatmul.f32.gmra.mxu0 %v2731_v2  ;;  %2968 = vmatmul.f32.gmra.mxu3 %v2700_v9  ;;  %v15164_v2 = vld [vmem:[#allocation48_spill] sm:$0xff] }
 0x395   : > { %3191 = vmatmul.f32.gmra.mxu1 %v10260_v48  ;;  %v15157_v48 = vld [vmem:[#allocation86_spill] sm:$0xff] }
 0x396   : > { %6517 = vmatmul.msk.f32.gmra.mxu2 %vm15152_vm9, %v9911_v17  ;;  %v2733_v63 = vsel %vm15158_vm12, %v15157_v48, %v6862_v49  ;;  %vm15172_vm9 = vmmov %vm15122_vm0  ;;  %v6880_v49 = vpop.permute.xlu0 %6879 }
 0x397   : > { %vm15182_vm12 = vmmov %vm15122_vm0 }
 0x39c   : > { %3081 = vmatmul.f32.gmra.mxu0 %v2732_v52  ;;  %2971 = vmatmul.f32.gmra.mxu3 %v2701_v13  ;;  %v6876_v52 = vunpack.i.l.bf16 %v6875_v44  ;;  %v15171_v13 = vld [vmem:[#allocation102_spill] sm:$0xff] }
 0x39d   : > { %3194 = vmatmul.f32.gmra.mxu1 %v10345_v0  ;;  %v10645_v19 = vpop.f32.mrf.mxu2  ;;  %v15161_v0 = vld [vmem:[#allocation97_spill] sm:$0xff]  ;;  %v2736_v14 = vsel %vm15122_vm0, %v15171_v13, %v6877_v42  ;;  %v15187_v42 = vld [vmem:[#allocation80_spill] sm:$0xff] }
 0x39e   : > { %6518 = vmatmul.msk.f32.gmra.mxu2 %vm15156_vm13, %v9948_v47  ;;  %v2734_v30 = vsel %vm15162_vm8, %v15161_v0, %v6867_v18  ;;  %v2705_v47 = vsel %vm15172_vm9, %v9958_v6, %v6876_v52  ;;  %v15177_v18 = vld [vmem:[#allocation94_spill] sm:$0xff]  ;;  %vm15179_vm13 = vmmov %vm15122_vm0  ;;  %v6885_v0 = vpop.permute.xlu1 %6884  ;;  %v15188_v52 = vld [vmem:[#allocation68_spill] sm:$0xff] }
 0x39f   : > { %v10678_v12 = vpop.f32.mrf.mxu3  ;;  %vm15189_vm8 = vmmov %vm15122_vm0 }
 0x3a0   : > { %15174 = vst [vmem:[#allocation96_spill] sm:$0xff] %v10678_v12  ;;  %vm15204_vm9 = vmmov %vm15122_vm0  ;;  %v10784_v12 = vld [vmem:[%s14438_s9] ss:$0 sm:$0xff] }
 0x3a4   : > { %3084 = vmatmul.f32.gmra.mxu0 %v2733_v63  ;;  %2974 = vmatmul.f32.gmra.mxu3 %v2702_v56  ;;  %v6882_v63 = vunpack.i.h.bf16 %v6880_v49  ;;  %v6881_v56 = vunpack.i.l.bf16 %v6880_v49  ;;  %v15191_v49 = vld [vmem:[#allocation84_spill] sm:$0xff] }
 0x3a5   : > { %3197 = vmatmul.f32.gmra.mxu1 %v10472_v27  ;;  %v10654_v10 = vpop.f32.mrf.mxu2  ;;  %v15166_v27 = vld [vmem:[#allocation100_spill] sm:$0xff] }
 0x3a6   : > { %6519 = vmatmul.msk.f32.gmra.mxu2 %vm15160_vm7, %v9958_v6  ;;  %v2735_v9 = vsel %vm15167_vm5, %v15166_v27, %v6872_v4  ;;  %v2737_v45 = vsel %vm15178_vm10, %v15177_v18, %v6882_v63  ;;  %v2706_v6 = vsel %vm15179_vm13, %v15164_v2, %v6881_v56  ;;  %v15184_v27 = vld [vmem:[#allocation49_spill] sm:$0xff]  ;;  %vm15186_vm7 = vmmov %vm15122_vm0  ;;  %v6895_v56 = vpop.permute.xlu0 %6894 }
 0x3a7   : > { %v6897_v18 = vunpack.i.h.bf16 %v6895_v56  ;;  %vm15196_vm5 = vmmov %vm15122_vm0 }
 0x3a8   : > { %vm15209_vm10 = vmmov %vm15122_vm0 }
 0x3a9   : > { %vm15212_vm13 = vmmov %vm15122_vm0 }
 0x3ac   : > { %3087 = vmatmul.f32.gmra.mxu0 %v2734_v30  ;;  %2977 = vmatmul.f32.gmra.mxu3 %v2703_v23  ;;  %v6887_v30 = vunpack.i.h.bf16 %v6885_v0  ;;  %v6886_v23 = vunpack.i.l.bf16 %v6885_v0  ;;  %v15195_v0 = vld [vmem:[#allocation61_spill] sm:$0xff] }
 0x3ad   : > { %3200 = vmatmul.f32.gmra.mxu1 %v10509_v31  ;;  %v15169_v31 = vld [vmem:[#allocation77_spill] sm:$0xff] }
 0x3ae   : > { %6520 = vmatmul.msk.f32.gmra.mxu2 %vm15165_vm4, %v15164_v2  ;;  %v10663_v17 = vpop.f32.mrf.mxu1  ;;  %v2707_v2 = vsel %vm15186_vm7, %v15169_v31, %v6886_v23  ;;  %vm15193_vm4 = vmmov %vm15122_vm0  ;;  %v15197_v23 = vld [vmem:[#allocation64_spill] sm:$0xff] }
 0x3af   : > { %vm15218_vm7 = vmmov %vm15122_vm0 }
 0x3b2   : > { %v10665_v46 = vpop.f32.mrf.mxu2 }
 0x3b4   : > { %3090 = vmatmul.f32.gmra.mxu0 %v2735_v9  ;;  %2980 = vmatmul.f32.gmra.mxu3 %v2704_v25  ;;  %v2738_v9 = vsel %vm15185_vm14, %v15184_v27, %v6887_v30  ;;  %v6890_v25 = vpop.permute.xlu2 %6889  ;;  %v2740_v27 = vsel %vm15198_vm6, %v15197_v23, %v6897_v18  ;;  %vm15216_vm14 = vmmov %vm15122_vm0 }
 0x3b5   : > { %3203 = vmatmul.f32.gmra.mxu1 %v10547_v35  ;;  %v15175_v35 = vld [vmem:[#allocation58_spill] sm:$0xff]  ;;  %v6892_v44 = vunpack.i.h.bf16 %v6890_v25  ;;  %vm15231_vm6 = vmmov %vm15122_vm0 }
 0x3b6   : > { %6521 = vmatmul.msk.f32.gmra.mxu2 %vm15170_vm1, %v15169_v31  ;;  %v10674_v16 = vpop.f32.mrf.mxu1  ;;  %vm15199_vm1 = vmmov %vm15122_vm0 }
 0x3b7   : > { %v2739_v63 = vsel %vm15192_vm3, %v15191_v49, %v6892_v44  ;;  %v15202_v49 = vld [vmem:[#allocation79_spill] sm:$0xff]  ;;  %vm15224_vm3 = vmmov %vm15122_vm0 }
 0x3ba   : > { %v10676_v48 = vpop.f32.mrf.mxu2  ;;  %v10688_v59 = vpop.f32.mrf.mxu3 }
 0x3bb   : > { %15173 = vst [vmem:[#allocation81_spill] sm:$0xff] %v10676_v48 }
 0x3bc   : > { %3093 = vmatmul.f32.gmra.mxu0 %v2736_v14  ;;  %2983 = vmatmul.f32.gmra.mxu3 %v2705_v47  ;;  %15180 = vst [vmem:[#allocation88_spill] sm:$0xff] %v10688_v59 }
 0x3bd   : > { %3206 = vmatmul.f32.gmra.mxu1 %v10578_v57  ;;  %v15181_v57 = vld [vmem:[#allocation60_spill] sm:$0xff] }
 0x3be   : > { %6522 = vmatmul.msk.f32.gmra.mxu2 %vm15176_vm11, %v15175_v35  ;;  %v10690_v4 = vpop.f32.mrf.mxu1  ;;  %vm15205_vm11 = vmmov %vm15122_vm0 }
 0x3c2   : > { %v10694_v41 = vpop.f32.mrf.mxu2 }
 0x3c3   : > { %15183 = vst [vmem:[#allocation69_spill] sm:$0xff] %v10694_v41  ;;  %v10703_v13 = vpop.f32.mrf.mxu3 }
 0x3c4   : > { %3096 = vmatmul.f32.gmra.mxu0 %v2737_v45  ;;  %2986 = vmatmul.f32.gmra.mxu3 %v2706_v6  ;;  %15190 = vst [vmem:[#allocation76_spill] sm:$0xff] %v10703_v13  ;;  %v6896_v45 = vunpack.i.l.bf16 %v6895_v56  ;;  %v15194_v6 = vld [vmem:[#allocation75_spill] sm:$0xff]  ;;  %v15223_v13 = vld [vmem:[#allocation56_spill] sm:$0xff] }
 0x3c5   : > { %3209 = vmatmul.f32.gmra.mxu1 %v10602_v22  ;;  %v6891_v22 = vunpack.i.l.bf16 %v6890_v25  ;;  %v15203_v56 = vld [vmem:[#allocation63_spill] sm:$0xff] }
 0x3c6   : > { %6523 = vmatmul.msk.f32.gmra.mxu2 %vm15182_vm12, %v15181_v57  ;;  %v10705_v14 = vpop.f32.mrf.mxu1  ;;  %vm15213_vm12 = vmmov %vm15122_vm0 }
 0x3c7   : > { %v2708_v31 = vsel %vm15193_vm4, %v15175_v35, %v6891_v22  ;;  %v6900_v35 = vpop.permute.xlu1 %6899  ;;  %vm15226_vm4 = vmmov %vm15122_vm0 }
 0x3c8   : > { %v6902_v44 = vunpack.i.h.bf16 %v6900_v35  ;;  %v6901_v22 = vunpack.i.l.bf16 %v6900_v35  ;;  %v15207_v35 = vld [vmem:[#allocation65_spill] sm:$0xff] }
 0x3ca   : > { %v2710_v18 = vsel %vm15205_vm11, %v15188_v52, %v6901_v22  ;;  %vm15238_vm11 = vmmov %vm15122_vm0 }
 0x3cc   : > { %3099 = vmatmul.f32.gmra.mxu0 %v2738_v9  ;;  %2989 = vmatmul.f32.gmra.mxu3 %v2707_v2  ;;  %v10707_v47 = vpop.f32.mrf.mxu2  ;;  %v2709_v9 = vsel %vm15199_vm1, %v15181_v57, %v6896_v45  ;;  %v10722_v2 = vpop.f32.mrf.mxu3  ;;  %v2741_v57 = vsel %vm15204_vm9, %v15203_v56, %v6902_v44  ;;  %v15211_v44 = vld [vmem:[#allocation55_spill] sm:$0xff]  ;;  %vm15233_vm1 = vmmov %vm15122_vm0 }
 0x3cd   : > { %3212 = vmatmul.f32.gmra.mxu1 %v15187_v42  ;;  %15200 = vst [vmem:[#allocation86_spill] sm:$0xff] %v10722_v2  ;;  %v15201_v42 = vld [vmem:[#allocation51_spill] sm:$0xff]  ;;  %v6905_v45 = vpop.permute.xlu2 %6904  ;;  %v6910_v56 = vpop.permute.xlu0 %6909  ;;  %vm15236_vm9 = vmmov %vm15122_vm0 }
 0x3ce   : > { %6524 = vmatmul.msk.f32.gmra.mxu2 %vm15189_vm8, %v15188_v52  ;;  %vm15219_vm8 = vmmov %vm15122_vm0 }
 0x3d4   : > { %3102 = vmatmul.f32.gmra.mxu0 %v2739_v63  ;;  %2992 = vmatmul.f32.gmra.mxu3 %v2708_v31  ;;  %v2847_v63 = vpop.f32.mrf.mxu0 }
 0x3d5   : > { %3215 = vmatmul.f32.gmra.mxu1 %v15194_v6  ;;  %v10716_v30 = vpop.f32.mrf.mxu2 }
 0x3d6   : > { %6525 = vmatmul.msk.f32.gmra.mxu2 %vm15196_vm5, %v15195_v0  ;;  %vm15227_vm5 = vmmov %vm15122_vm0 }
 0x3d7   : > { %v10737_v23 = vpop.f32.mrf.mxu3 }
 0x3d8   : > { %15206 = vst [vmem:[#allocation97_spill] sm:$0xff] %v10737_v23  ;;  %v15215_v23 = vld [vmem:[#allocation95_spill] sm:$0xff] }
 0x3da   : > { %v10724_v25 = vpop.f32.mrf.mxu1 }
 0x3dc   : > { %3105 = vmatmul.f32.gmra.mxu0 %v2740_v27  ;;  %2995 = vmatmul.f32.gmra.mxu3 %v2709_v9  ;;  %v6907_v27 = vunpack.i.h.bf16 %v6905_v45  ;;  %v6906_v9 = vunpack.i.l.bf16 %v6905_v45  ;;  %v6911_v45 = vunpack.i.l.bf16 %v6910_v56 }
 0x3dd   : > { %3218 = vmatmul.f32.gmra.mxu1 %v15201_v42  ;;  %v15208_v42 = vld [vmem:[#allocation83_spill] sm:$0xff] }
 0x3de   : > { %6526 = vmatmul.msk.f32.gmra.mxu2 %vm15122_vm0, %v15202_v49  ;;  %v10729_v31 = vpop.f32.mrf.mxu2  ;;  %v2742_v52 = vsel %vm15212_vm13, %v15211_v44, %v6907_v27  ;;  %v2711_v22 = vsel %vm15213_vm12, %v15195_v0, %v6906_v9  ;;  %v15217_v27 = vld [vmem:[#allocation57_spill] sm:$0xff]  ;;  %v2712_v0 = vsel %vm15219_vm8, %v15202_v49, %v6911_v45  ;;  %vm15242_vm13 = vmmov %vm15122_vm0 }
 0x3df   : > { %vm15244_vm12 = vmmov %vm15122_vm0 }
 0x3e0   : > { %vm15250_vm8 = vmmov %vm15122_vm0 }
 0x3e2   : > { %v10735_v6 = vpop.f32.mrf.mxu1 }
 0x3e4   : > { %3108 = vmatmul.f32.gmra.mxu0 %v2741_v57  ;;  %2998 = vmatmul.f32.gmra.mxu3 %v2710_v18  ;;  %v6912_v18 = vunpack.i.h.bf16 %v6910_v56 }
 0x3e5   : > { %3221 = vmatmul.f32.gmra.mxu1 %v15207_v35 }
 0x3e6   : > { %6527 = vmatmul.msk.f32.gmra.mxu2 %vm15209_vm10, %v15208_v42  ;;  %v10742_v15 = vpop.f32.mrf.mxu2  ;;  %v2743_v44 = vsel %vm15218_vm7, %v15217_v27, %v6912_v18  ;;  %v15225_v27 = vld [vmem:[#allocation66_spill] sm:$0xff]  ;;  %vm15239_vm10 = vmmov %vm15122_vm0 }
 0x3e7   : > { %15210 = vst [vmem:[#allocation48_spill] sm:$0xff] %v10742_v15  ;;  %vm15248_vm7 = vmmov %vm15122_vm0 }
 0x3e9   : > { %v2850_v40 = vpop.f32.mrf.mxu0 }
 0x3ea   : > { %v10748_v57 = vpop.f32.mrf.mxu1 }
 0x3ec   : > { %3111 = vmatmul.f32.gmra.mxu0 %v2742_v52  ;;  %3001 = vmatmul.f32.gmra.mxu3 %v2711_v22  ;;  %v6915_v52 = vpop.permute.xlu1 %6914 }
 0x3ed   : > { %3224 = vmatmul.f32.gmra.mxu1 %v10264_v43  ;;  %v6917_v56 = vunpack.i.h.bf16 %v6915_v52  ;;  %v6916_v43 = vunpack.i.l.bf16 %v6915_v52 }
 0x3ee   : > { %6528 = vmatmul.msk.f32.gmra.mxu2 %vm15216_vm14, %v15215_v23  ;;  %v10761_v9 = vpop.f32.mrf.mxu2  ;;  %vm15245_vm14 = vmmov %vm15122_vm0 }
 0x3ef   : > { %v10750_v35 = vpop.f32.mrf.mxu3  ;;  %15220 = vst [vmem:[#allocation77_spill] sm:$0xff] %v10761_v9  ;;  %v2744_v49 = vsel %vm15226_vm4, %v15225_v27, %v6917_v56  ;;  %v2713_v45 = vsel %vm15227_vm5, %v15208_v42, %v6916_v43  ;;  %v15230_v56 = vld [vmem:[#allocation62_spill] sm:$0xff]  ;;  %v2848_v43 = vadd.f32 %v10784_v12, %v2847_v63  ;;  %v15232_v27 = vld [vmem:[#allocation73_spill] sm:$0xff]  ;;  %v15235_v63 = vld [vmem:[#allocation59_spill] sm:$0xff] }
 0x3f0   : > { %15214 = vst [vmem:[#allocation100_spill] sm:$0xff] %v10750_v35  ;;  %vm15254_vm4 = vmmov %vm15122_vm0 }
 0x3f1   : > { %v10755_v2 = vpop.f32.mrf.mxu0  ;;  %vm15256_vm5 = vmmov %vm15122_vm0 }
 0x3f2   : > { %v10763_v22 = vpop.f32.mrf.mxu1 }
 0x3f3   : > { %15221 = vst [vmem:[#allocation102_spill] sm:$0xff] %v10763_v22 }
 0x3f4   : > { %3114 = vmatmul.f32.gmra.mxu0 %v2743_v44  ;;  %3004 = vmatmul.f32.gmra.mxu3 %v2712_v0  ;;  %v6920_v0 = vpop.permute.xlu2 %6919 }
 0x3f5   : > { %3227 = vmatmul.f32.gmra.mxu1 %v10357_v1  ;;  %v6921_v1 = vunpack.i.l.bf16 %v6920_v0 }
 0x3f6   : > { %6529 = vmatmul.msk.f32.gmra.mxu2 %vm15224_vm3, %v15223_v13  ;;  %vm15251_vm3 = vmmov %vm15122_vm0 }
 0x3f7   : > { %v10765_v35 = vpop.f32.mrf.mxu3 }
 0x3f8   : > { %15222 = vst [vmem:[#allocation58_spill] sm:$0xff] %v10765_v35  ;;  %v6922_v35 = vunpack.i.h.bf16 %v6920_v0 }
 0x3f9   : > { %v10770_v18 = vpop.f32.mrf.mxu0  ;;  %v10776_v44 = vpop.f32.mrf.mxu2 }
 0x3fa   : > { %15228 = vst [vmem:[#allocation94_spill] sm:$0xff] %v10776_v44  ;;  %v10778_v52 = vpop.f32.mrf.mxu1 }
 0x3fb   : > { %15229 = vst [vmem:[#allocation60_spill] sm:$0xff] %v10778_v52 }
 0x3fc   : > { %3117 = vmatmul.f32.gmra.mxu0 %v2744_v49  ;;  %3007 = vmatmul.f32.gmra.mxu3 %v2713_v45  ;;  %v2745_v49 = vsel %vm15233_vm1, %v15232_v27, %v6922_v35  ;;  %v2714_v45 = vsel %vm15122_vm0, %v15215_v23, %v6921_v1  ;;  %v2851_v27 = vadd.f32 %v10784_v12, %v2850_v40  ;;  %v15237_v1 = vld [vmem:[#allocation85_spill] sm:$0xff]  ;;  %vm15259_vm1 = vmmov %vm15122_vm0 }
 0x3fd   : > { %3230 = vmatmul.f32.gmra.mxu1 %v10419_v33  ;;  %v6925_v33 = vpop.permute.xlu0 %6924 }
 0x3fe   : > { %6530 = vmatmul.msk.f32.gmra.mxu2 %vm15231_vm6, %v15230_v56  ;;  %v6927_v15 = vunpack.i.h.bf16 %v6925_v33  ;;  %v6926_v41 = vunpack.i.l.bf16 %v6925_v33  ;;  %vm15257_vm6 = vmmov %vm15122_vm0 }
 0x3ff   : > { %v2960_v59 = vpop.f32.mrf.mxu3 }
 0x400   : > { %v2961_v44 = vadd.f32 %v2960_v59, %v2848_v43  ;;  %v2715_v59 = vsel %vm15239_vm10, %v15223_v13, %v6926_v41  ;;  %v10811_v41 = vld [vmem:[%s14433_s4 + $0x18] sm:$0xff]  ;;  %vm15265_vm10 = vmmov %vm15122_vm0 }
 0x401   : > { %v3073_v42 = vpop.f32.mrf.mxu0  ;;  %v10793_v0 = vpop.f32.mrf.mxu2  ;;  %3587 = vmatpush.msra.mxu3 %v10811_v41 }
 0x402   : > { %15234 = vst [vmem:[#allocation49_spill] sm:$0xff] %v10793_v0  ;;  %v3186_v9 = vpop.f32.mrf.mxu1  ;;  %v3074_v52 = vadd.f32 %v3073_v42, %v2961_v44  ;;  %v2746_v0 = vsel %vm15238_vm11, %v15237_v1, %v6927_v15  ;;  %vm15263_vm11 = vmmov %vm15122_vm0 }
 0x404   : > { %3120 = vmatmul.f32.gmra.mxu0 %v2745_v49  ;;  %3010 = vmatmul.f32.gmra.mxu3 %v2714_v45  ;;  %v3187_v23 = vadd.f32 %v3186_v9, %v3074_v52  ;;  %v6930_v49 = vpop.permute.xlu1 %6929  ;;  %v15241_v9 = vld [vmem:[#allocation52_spill] sm:$0xff]  ;;  %v15243_v52 = vld [vmem:[#allocation89_spill] sm:$0xff] }
 0x405   : > { %3233 = vmatmul.f32.gmra.mxu1 %v10476_v34  ;;  %v6932_v42 = vunpack.i.h.bf16 %v6930_v49  ;;  %v6931_v33 = vunpack.i.l.bf16 %v6930_v49 }
 0x406   : > { %6531 = vmatmul.msk.f32.gmra.mxu2 %vm15236_vm9, %v15235_v63  ;;  %vm15261_vm9 = vmmov %vm15122_vm0 }
 0x407   : > { %v2963_v48 = vpop.f32.mrf.mxu3 }
 0x408   : > { %v2964_v45 = vadd.f32 %v2963_v48, %v2851_v27  ;;  %v2854_v48 = vadd.f32 %v10784_v12, %v10755_v2  ;;  %v6935_v27 = vpop.permute.xlu2 %6934 }
 0x409   : > { %v3076_v35 = vpop.f32.mrf.mxu0  ;;  %v3299_v43 = vpop.f32.mrf.mxu2  ;;  %v6936_v49 = vunpack.i.l.bf16 %v6935_v27 }
 0x40a   : > { %v3189_v34 = vpop.f32.mrf.mxu1  ;;  %v10803_v44 = vadd.f32 %v3299_v43, %v3187_v23  ;;  %v3077_v40 = vadd.f32 %v3076_v35, %v2964_v45  ;;  %v6937_v43 = vunpack.i.h.bf16 %v6935_v27 }
 0x40c   : > { %3123 = vmatmul.f32.gmra.mxu0 %v2746_v0  ;;  %3013 = vmatmul.f32.gmra.mxu3 %v2715_v59  ;;  %15240 = vst [vmem:[#allocation80_spill] sm:$0xff] %v10803_v44  ;;  %v3190_v13 = vadd.f32 %v3189_v34, %v3077_v40  ;;  %v2747_v0 = vsel %vm15244_vm12, %v15243_v52, %v6932_v42  ;;  %v15247_v34 = vld [vmem:[#allocation54_spill] sm:$0xff]  ;;  %v15249_v40 = vld [vmem:[#allocation99_spill] sm:$0xff]  ;;  %v6940_v52 = vpop.permute.xlu0 %6939  ;;  %vm15268_vm12 = vmmov %vm15122_vm0 }
 0x40d   : > { %3236 = vmatmul.f32.gmra.mxu1 %v10513_v58  ;;  %v2716_v58 = vsel %vm15245_vm14, %v15230_v56, %v6931_v33  ;;  %v2857_v56 = vadd.f32 %v10784_v12, %v10770_v18  ;;  %vm15270_vm14 = vmmov %vm15122_vm0 }
 0x40e   : > { %6532 = vmatmul.msk.f32.gmra.mxu2 %vm15242_vm13, %v15241_v9  ;;  %vm15266_vm13 = vmmov %vm15122_vm0 }
 0x40f   : > { %v2966_v22 = vpop.f32.mrf.mxu3 }
 0x410   : > { %v2967_v23 = vadd.f32 %v2966_v22, %v2854_v48  ;;  %v2748_v22 = vsel %vm15250_vm8, %v15249_v40, %v6937_v43  ;;  %v2717_v48 = vsel %vm15251_vm3, %v15235_v63, %v6936_v49  ;;  %v2860_v63 = vadd.f32 %v10784_v12, %v10663_v17  ;;  %v15255_v49 = vld [vmem:[#allocation104_spill] sm:$0xff]  ;;  %vm15272_vm8 = vmmov %vm15122_vm0 }
 0x411   : > { %v3079_v15 = vpop.f32.mrf.mxu0  ;;  %v3302_v35 = vpop.f32.mrf.mxu2  ;;  %vm15274_vm3 = vmmov %vm15122_vm0 }
 0x412   : > { %v3192_v1 = vpop.f32.mrf.mxu1  ;;  %v10820_v59 = vadd.f32 %v3302_v35, %v3190_v13  ;;  %v3080_v45 = vadd.f32 %v3079_v15, %v2967_v23  ;;  %v6941_v35 = vunpack.i.l.bf16 %v6940_v52  ;;  %v15253_v23 = vld [vmem:[#allocation53_spill] sm:$0xff] }
 0x414   : > { %3126 = vmatmul.f32.gmra.mxu0 %v2747_v0  ;;  %3016 = vmatmul.f32.gmra.mxu3 %v2716_v58  ;;  %15246 = vst [vmem:[#allocation68_spill] sm:$0xff] %v10820_v59  ;;  %v3193_v33 = vadd.f32 %v3192_v1, %v3080_v45  ;;  %v6942_v58 = vunpack.i.h.bf16 %v6940_v52  ;;  %v2718_v45 = vsel %vm15257_vm6, %v15241_v9, %v6941_v35  ;;  %vm15278_vm6 = vmmov %vm15122_vm0 }
 0x415   : > { %3239 = vmatmul.f32.gmra.mxu1 %v10552_v8  ;;  %v2863_v9 = vadd.f32 %v10784_v12, %v10674_v16 }
 0x416   : > { %6533 = vmatmul.msk.f32.gmra.mxu2 %vm15248_vm7, %v15247_v34  ;;  %vm15271_vm7 = vmmov %vm15122_vm0 }
 0x417   : > { %v2969_v2 = vpop.f32.mrf.mxu3 }
 0x418   : > { %v2970_v0 = vadd.f32 %v2969_v2, %v2857_v56  ;;  %v2749_v2 = vsel %vm15256_vm5, %v15255_v49, %v6942_v58  ;;  %vm15276_vm5 = vmmov %vm15122_vm0 }
 0x419   : > { %v3082_v42 = vpop.f32.mrf.mxu0  ;;  %v3305_v13 = vpop.f32.mrf.mxu2 }
 0x41a   : > { %v3195_v8 = vpop.f32.mrf.mxu1  ;;  %v10831_v15 = vadd.f32 %v3305_v13, %v3193_v33  ;;  %v3083_v18 = vadd.f32 %v3082_v42, %v2970_v0  ;;  %v6945_v33 = vpop.permute.xlu1 %6944 }
 0x41c   : > { %3129 = vmatmul.f32.gmra.mxu0 %v2748_v22  ;;  %3019 = vmatmul.f32.gmra.mxu3 %v2717_v48  ;;  %15252 = vst [vmem:[#allocation84_spill] sm:$0xff] %v10831_v15  ;;  %v3196_v43 = vadd.f32 %v3195_v8, %v3083_v18  ;;  %v6947_v22 = vunpack.i.h.bf16 %v6945_v33  ;;  %v6946_v48 = vunpack.i.l.bf16 %v6945_v33  ;;  %v15260_v8 = vld [vmem:[#allocation92_spill] sm:$0xff]  ;;  %v6950_v18 = vpop.permute.xlu2 %6949 }
 0x41d   : > { %3242 = vmatmul.f32.gmra.mxu1 %v10583_v28  ;;  %v6951_v49 = vunpack.i.l.bf16 %v6950_v18 }
 0x41e   : > { %6534 = vmatmul.msk.f32.gmra.mxu2 %vm15254_vm4, %v15253_v23  ;;  %v2750_v58 = vsel %vm15122_vm0, %v15260_v8, %v6947_v22  ;;  %v2719_v35 = vsel %vm15261_vm9, %v15247_v34, %v6946_v48  ;;  %v2866_v34 = vadd.f32 %v10784_v12, %v10690_v4  ;;  %vm15275_vm4 = vmmov %vm15122_vm0 }
 0x41f   : > { %v2972_v27 = vpop.f32.mrf.mxu3  ;;  %v2720_v22 = vsel %vm15266_vm13, %v15253_v23, %v6951_v49  ;;  %v2869_v23 = vadd.f32 %v10784_v12, %v10705_v14  ;;  %vm15282_vm9 = vmmov %vm15122_vm0 }
 0x420   : > { %v2973_v40 = vadd.f32 %v2972_v27, %v2860_v63  ;;  %vm15287_vm13 = vmmov %vm15122_vm0 }
 0x421   : > { %v3085_v1 = vpop.f32.mrf.mxu0  ;;  %v3308_v56 = vpop.f32.mrf.mxu2 }
 0x422   : > { %v3198_v28 = vpop.f32.mrf.mxu1  ;;  %v10842_v42 = vadd.f32 %v3308_v56, %v3196_v43  ;;  %v3086_v17 = vadd.f32 %v3085_v1, %v2973_v40  ;;  %v6952_v43 = vunpack.i.h.bf16 %v6950_v18  ;;  %v15264_v40 = vld [vmem:[#allocation50_spill] sm:$0xff] }
 0x424   : > { %3132 = vmatmul.f32.gmra.mxu0 %v2749_v2  ;;  %3022 = vmatmul.f32.gmra.mxu3 %v2718_v45  ;;  %15258 = vst [vmem:[#allocation75_spill] sm:$0xff] %v10842_v42  ;;  %v3199_v0 = vadd.f32 %v3198_v28, %v3086_v17  ;;  %v15262_v45 = vld [vmem:[#allocation67_spill] sm:$0xff]  ;;  %v2751_v28 = vsel %vm15265_vm10, %v15264_v40, %v6952_v43  ;;  %vm15285_vm10 = vmmov %vm15122_vm0 }
 0x425   : > { %3245 = vmatmul.f32.gmra.mxu1 %v10607_v60 }
 0x426   : > { %6535 = vmatmul.msk.f32.gmra.mxu2 %vm15259_vm1, %v10220_v26  ;;  %vm15279_vm1 = vmmov %vm15122_vm0 }
 0x427   : > { %v2975_v13 = vpop.f32.mrf.mxu3 }
 0x428   : > { %v2976_v63 = vadd.f32 %v2975_v13, %v2863_v9  ;;  %v6955_v13 = vpop.permute.xlu0 %6954 }
 0x429   : > { %v3088_v52 = vpop.f32.mrf.mxu0  ;;  %v3311_v27 = vpop.f32.mrf.mxu2  ;;  %v6956_v8 = vunpack.i.l.bf16 %v6955_v13 }
 0x42a   : > { %v3201_v60 = vpop.f32.mrf.mxu1  ;;  %v10853_v1 = vadd.f32 %v3311_v27, %v3199_v0  ;;  %v3089_v16 = vadd.f32 %v3088_v52, %v2976_v63  ;;  %v6957_v0 = vunpack.i.h.bf16 %v6955_v13  ;;  %v15269_v63 = vld [vmem:[#allocation82_spill] sm:$0xff] }
 0x42b   : > { %v2721_v43 = vsel %vm15271_vm7, %v10220_v26, %v6956_v8  ;;  %vm15291_vm7 = vmmov %vm15122_vm0 }
 0x42c   : > { %3135 = vmatmul.f32.gmra.mxu0 %v2750_v58  ;;  %3025 = vmatmul.f32.gmra.mxu3 %v2719_v35  ;;  %v3202_v33 = vadd.f32 %v3201_v60, %v3089_v16  ;;  %v15267_v35 = vld [vmem:[#allocation71_spill] sm:$0xff]  ;;  %v2752_v60 = vsel %vm15270_vm14, %v15269_v63, %v6957_v0  ;;  %vm15289_vm14 = vmmov %vm15122_vm0 }
 0x42d   : > { %3248 = vmatmul.f32.gmra.mxu1 %v15262_v45 }
 0x42e   : > { %6536 = vmatmul.msk.f32.gmra.mxu2 %vm15263_vm11, %v10251_v20  ;;  %vm15283_vm11 = vmmov %vm15122_vm0 }
 0x42f   : > { %v2978_v2 = vpop.f32.mrf.mxu3 }
 0x430   : > { %v2979_v17 = vadd.f32 %v2978_v2, %v2866_v34  ;;  %v6960_v2 = vpop.permute.xlu1 %6959  ;;  %v6970_v63 = vpop.permute.xlu0 %6969 }
 0x431   : > { %v3091_v56 = vpop.f32.mrf.mxu0  ;;  %v3314_v48 = vpop.f32.mrf.mxu2  ;;  %v6962_v34 = vunpack.i.h.bf16 %v6960_v2 }
 0x432   : > { %v3204_v52 = vpop.f32.mrf.mxu1  ;;  %v10864_v9 = vadd.f32 %v3314_v48, %v3202_v33  ;;  %v3092_v4 = vadd.f32 %v3091_v56, %v2979_v17  ;;  %v6961_v33 = vunpack.i.l.bf16 %v6960_v2 }
 0x434   : > { %3138 = vmatmul.f32.gmra.mxu0 %v2751_v28  ;;  %3028 = vmatmul.f32.gmra.mxu3 %v2720_v22  ;;  %v3205_v18 = vadd.f32 %v3204_v52, %v3092_v4  ;;  %v15273_v22 = vld [vmem:[#allocation74_spill] sm:$0xff]  ;;  %v2722_v13 = vsel %vm15275_vm4, %v10251_v20, %v6961_v33  ;;  %v6965_v52 = vpop.permute.xlu2 %6964  ;;  %vm15294_vm4 = vmmov %vm15122_vm0 }
 0x435   : > { %3251 = vmatmul.f32.gmra.mxu1 %v15267_v35  ;;  %v2753_v48 = vsel %vm15274_vm3, %v15273_v22, %v6962_v34  ;;  %v6967_v8 = vunpack.i.h.bf16 %v6965_v52  ;;  %v15277_v20 = vld [vmem:[#allocation98_spill] sm:$0xff]  ;;  %vm15293_vm3 = vmmov %vm15122_vm0 }
 0x436   : > { %6537 = vmatmul.msk.f32.gmra.mxu2 %vm15268_vm12, %v10255_v39  ;;  %vm15288_vm12 = vmmov %vm15122_vm0 }
 0x437   : > { %v2981_v58 = vpop.f32.mrf.mxu3 }
 0x438   : > { %v2982_v45 = vadd.f32 %v2981_v58, %v2869_v23  ;;  %v6966_v58 = vunpack.i.l.bf16 %v6965_v52  ;;  %v15286_v52 = vld [vmem:[#allocation105_spill] sm:$0xff] }
 0x439   : > { %v3094_v27 = vpop.f32.mrf.mxu0  ;;  %v3317_v49 = vpop.f32.mrf.mxu2 }
 0x43a   : > { %v3207_v16 = vpop.f32.mrf.mxu1  ;;  %v10875_v56 = vadd.f32 %v3317_v49, %v3205_v18  ;;  %v3095_v14 = vadd.f32 %v3094_v27, %v2982_v45  ;;  %v2754_v27 = vsel %vm15278_vm6, %v15277_v20, %v6967_v8  ;;  %v2723_v23 = vsel %vm15279_vm1, %v10255_v39, %v6966_v58  ;;  %v10917_v39 = vld [vmem:[%s14433_s4 + $0x10] sm:$0xff]  ;;  %v15281_v45 = vld [vmem:[#allocation91_spill] sm:$0xff]  ;;  %vm15297_vm6 = vmmov %vm15122_vm0 }
 0x43b   : > { %15280 = vst [vmem:[#allocation61_spill] sm:$0xff] %v10917_v39  ;;  %3588 = vmatpush.msra.mxu3 %v10917_v39  ;;  %vm15298_vm1 = vmmov %vm15122_vm0 }
 0x43c   : > { %3141 = vmatmul.f32.gmra.mxu0 %v2752_v60  ;;  %3031 = vmatmul.f32.gmra.mxu3 %v2721_v43  ;;  %v3208_v26 = vadd.f32 %v3207_v16, %v3095_v14  ;;  %v6972_v43 = vunpack.i.h.bf16 %v6970_v63  ;;  %v6980_v20 = vpop.permute.xlu2 %6979 }
 0x43d   : > { %3254 = vmatmul.f32.gmra.mxu1 %v10270_v50 }
 0x43e   : > { %6538 = vmatmul.msk.f32.gmra.mxu2 %vm15272_vm8, %v10279_v61  ;;  %v2755_v16 = vsel %vm15282_vm9, %v15281_v45, %v6972_v43  ;;  %v15290_v45 = vld [vmem:[#allocation93_spill] sm:$0xff]  ;;  %vm15292_vm8 = vmmov %vm15122_vm0 }
 0x43f   : > { %v10877_v40 = vpop.f32.mrf.mxu3  ;;  %vm15299_vm9 = vmmov %vm15122_vm0 }
 0x441   : > { %v10882_v28 = vpop.f32.mrf.mxu0  ;;  %v3320_v17 = vpop.f32.mrf.mxu2 }
 0x442   : > { %v10888_v0 = vpop.f32.mrf.mxu1  ;;  %v10890_v50 = vadd.f32 %v3320_v17, %v3208_v26 }
 0x444   : > { %3144 = vmatmul.f32.gmra.mxu0 %v2753_v48  ;;  %3034 = vmatmul.f32.gmra.mxu3 %v2722_v13  ;;  %v15284_v13 = vld [vmem:[#allocation78_spill] sm:$0xff] }
 0x445   : > { %3257 = vmatmul.f32.gmra.mxu1 %v10361_v5  ;;  %v6971_v5 = vunpack.i.l.bf16 %v6970_v63  ;;  %v6985_v63 = vpop.permute.xlu0 %6984 }
 0x446   : > { %6539 = vmatmul.msk.f32.gmra.mxu2 %vm15276_vm5, %v10290_v24  ;;  %vm15296_vm5 = vmmov %vm15122_vm0 }
 0x447   : > { %v10892_v35 = vpop.f32.mrf.mxu3  ;;  %v2724_v34 = vsel %vm15283_vm11, %v10279_v61, %v6971_v5  ;;  %vm15300_vm11 = vmmov %vm15122_vm0 }
 0x449   : > { %v10897_v4 = vpop.f32.mrf.mxu0  ;;  %v10903_v18 = vpop.f32.mrf.mxu2 }
 0x44a   : > { %v10905_v60 = vpop.f32.mrf.mxu1 }
 0x44c   : > { %3147 = vmatmul.f32.gmra.mxu0 %v2754_v27  ;;  %3037 = vmatmul.f32.gmra.mxu3 %v2723_v23  ;;  %v6982_v23 = vunpack.i.h.bf16 %v6980_v20 }
 0x44d   : > { %3260 = vmatmul.f32.gmra.mxu1 %v10423_v62  ;;  %v6975_v62 = vpop.permute.xlu1 %6974 }
 0x44e   : > { %6540 = vmatmul.msk.f32.gmra.mxu2 %vm15122_vm0, %v10298_v32  ;;  %v6977_v26 = vunpack.i.h.bf16 %v6975_v62  ;;  %v6976_v22 = vunpack.i.l.bf16 %v6975_v62 }
 0x44f   : > { %v10907_v49 = vpop.f32.mrf.mxu3 }
 0x450   : > { %v2756_v61 = vsel %vm15287_vm13, %v15286_v52, %v6977_v26  ;;  %v2725_v8 = vsel %vm15288_vm12, %v10290_v24, %v6976_v22  ;;  %v6986_v24 = vunpack.i.l.bf16 %v6985_v63  ;;  %vm15305_vm13 = vmmov %vm15122_vm0 }
 0x451   : > { %v10912_v2 = vpop.f32.mrf.mxu0  ;;  %v10924_v33 = vpop.f32.mrf.mxu2  ;;  %vm15308_vm12 = vmmov %vm15122_vm0 }
 0x452   : > { %v10926_v14 = vpop.f32.mrf.mxu1 }
 0x454   : > { %3150 = vmatmul.f32.gmra.mxu0 %v2755_v16  ;;  %3040 = vmatmul.f32.gmra.mxu3 %v2724_v34  ;;  %v2757_v16 = vsel %vm15291_vm7, %v15290_v45, %v6982_v23  ;;  %v15295_v23 = vld [vmem:[#allocation47_spill] sm:$0xff]  ;;  %vm15319_vm7 = vmmov %vm15122_vm0 }
 0x455   : > { %3263 = vmatmul.f32.gmra.mxu1 %v10532_v54  ;;  %v6981_v54 = vunpack.i.l.bf16 %v6980_v20  ;;  %v6990_v26 = vpop.permute.xlu1 %6989 }
 0x456   : > { %6541 = vmatmul.msk.f32.gmra.mxu2 %vm15285_vm10, %v15284_v13  ;;  %v6991_v52 = vunpack.i.l.bf16 %v6990_v26  ;;  %vm15303_vm10 = vmmov %vm15122_vm0 }
 0x457   : > { %v10928_v48 = vpop.f32.mrf.mxu3  ;;  %v2726_v34 = vsel %vm15292_vm8, %v10298_v32, %v6981_v54  ;;  %v6992_v32 = vunpack.i.h.bf16 %v6990_v26  ;;  %vm15323_vm8 = vmmov %vm15122_vm0 }
 0x458   : > { %v2758_v54 = vsel %vm15296_vm5, %v15295_v23, %v6991_v52  ;;  %v6056_v52 = vld [vmem:[%s14443_s14 + $0x30] sm:$0xff]  ;;  %vm15331_vm5 = vmmov %vm15122_vm0 }
 0x459   : > { %v10933_v17 = vpop.f32.mrf.mxu0  ;;  %v10939_v58 = vpop.f32.mrf.mxu2 }
 0x45a   : > { %v10941_v27 = vpop.f32.mrf.mxu1 }
 0x45c   : > { %3153 = vmatmul.f32.gmra.mxu0 %v2756_v61  ;;  %3043 = vmatmul.f32.gmra.mxu3 %v2725_v8  ;;  %v6987_v61 = vunpack.i.h.bf16 %v6985_v63 }
 0x45d   : > { %3266 = vmatmul.f32.gmra.mxu1 %v10562_v29  ;;  %v2761_v29 = vsel %vm15293_vm3, %v10305_v21, %v6986_v24  ;;  %v6995_v21 = vpop.permute.xlu2 %6994  ;;  %v2762_v24 = vsel %vm15298_vm1, %v10077_v38, %v6992_v32  ;;  %vm15325_vm3 = vmmov %vm15122_vm0  ;;  %vm15341_vm1 = vcmask 261120  }
 0x45e   : > { %6542 = vmatmul.msk.f32.gmra.mxu2 %vm15289_vm14, %v10379_v51  ;;  %v2727_v45 = vsel %vm15297_vm6, %v15284_v13, %v6987_v61  ;;  %v6057_v13 = vld [vmem:[%s14443_s14 + $0x38] sm:$0xff]  ;;  %vm15314_vm14 = vmmov %vm15122_vm0 }
 0x45f   : > { %v10943_v43 = vpop.f32.mrf.mxu3  ;;  %6166 = vmatpush.msra.mxu2 %v6057_v13  ;;  %vm15336_vm6 = vmmov %vm15122_vm0 }
 0x461   : > { %v10948_v5 = vpop.f32.mrf.mxu0  ;;  %v10954_v62 = vpop.f32.mrf.mxu2  ;;  %6167 = vmatpush.msra.mxu2 %v6056_v52  ;;  %v6052_v52 = vld [vmem:[%s14443_s14 + $0x10] sm:$0xff] }
 0x462   : > { %v10956_v22 = vpop.f32.mrf.mxu1 }
 0x464   : > { %3156 = vmatmul.f32.gmra.mxu0 %v2757_v16  ;;  %3046 = vmatmul.f32.gmra.mxu3 %v2726_v34  ;;  %v6996_v34 = vunpack.i.l.bf16 %v6995_v21 }
 0x465   : > { %3269 = vmatmul.f32.gmra.mxu1 %v2761_v29 }
 0x466   : > { %6543 = vmatmul.msk.f32.gmra.mxu2 %vm15294_vm4, %v10404_v55  ;;  %v6997_v55 = vunpack.i.h.bf16 %v6995_v21  ;;  %v2728_v61 = vsel %vm15300_vm11, %v10379_v51, %v6996_v34  ;;  %v6054_v51 = vld [vmem:[%s14443_s14 + $0x20] sm:$0xff]  ;;  %v6053_v34 = vld [vmem:[%s14443_s14 + $0x18] sm:$0xff]  ;;  %vm15327_vm4 = vmmov %vm15122_vm0 }
 0x467   : > { %v10960_v8 = vpop.f32.mrf.mxu3  ;;  %vm15345_vm11 = vmmov %vm15341_vm1 }
 0x468   : > { %v2759_v38 = vsel %vm15299_vm9, %v10374_v36, %v6997_v55  ;;  %v6055_v36 = vld [vmem:[%s14443_s14 + $0x28] sm:$0xff]  ;;  %vm15343_vm9 = vmmov %vm15341_vm1 }
 0x469   : > { %v10964_v20 = vpop.f32.mrf.mxu0  ;;  %v10970_v16 = vpop.f32.mrf.mxu2  ;;  %6168 = vmatpush.msra.mxu2 %v6055_v36 }
 0x46a   : > { %v10972_v63 = vpop.f32.mrf.mxu1 }
 0x46b   : > { %6169 = vmatpush.msra.mxu2 %v6054_v51  ;;  %v15313_v51 = vld [vmem:[#allocation14_spill] sm:$0xff] }
 0x46c   : > { %3159 = vmatmul.f32.gmra.mxu0 %v2758_v54  ;;  %3049 = vmatmul.f32.gmra.mxu3 %v2727_v45  ;;  %v15302_v54 = vld [vmem:[#allocation70_spill] sm:$0xff]  ;;  %v2626_v45 = vpop.permute.xlu0 %2625 }
 0x46d   : > { %3272 = vmatmul.f32.gmra.mxu1 %v2762_v24  ;;  %v2760_v24 = vsel %vm15305_vm13, %v10382_v7, %v2626_v45  ;;  %6170 = vmatpush.msra.mxu2 %v6053_v34  ;;  %vm15347_vm13 = vmmov %vm15341_vm1 }
 0x46e   : > { %6544 = vmatmul.msk.f32.gmra.mxu2 %vm15122_vm0, %v10457_v37 }
 0x46f   : > { %v10976_v29 = vpop.f32.mrf.mxu3  ;;  %6171 = vmatpush.msra.mxu2 %v6052_v52 }
 0x471   : > { %v10980_v26 = vpop.f32.mrf.mxu0  ;;  %v10992_v32 = vpop.f32.mrf.mxu2 }
 0x472   : > { %15301 = vst [vmem:[#allocation64_spill] sm:$0xff] %v10992_v32  ;;  %v10994_v37 = vpop.f32.mrf.mxu1 }
 0x474   : > { %3162 = vmatmul.f32.gmra.mxu0 %v2759_v38  ;;  %3052 = vmatmul.f32.gmra.mxu3 %v2728_v61  ;;  %v6051_v61 = vld [vmem:[%s14443_s14 + $0x8] sm:$0xff] }
 0x475   : > { %3275 = vmatmul.f32.gmra.mxu1 %v15302_v54  ;;  %v6050_v54 = vld [vmem:[%s14443_s14] sm:$0xff]  ;;  %6172 = vmatpush.msra.mxu2 %v6051_v61  ;;  %v11053_v61 = vld [vmem:[%s14433_s4 + $0x8] sm:$0xff] }
 0x476   : > { %6545 = vmatmul.msk.f32.gmra.mxu2 %vm15303_vm10, %v10586_v11  ;;  %v15318_v11 = vld [vmem:[#allocation16_spill] sm:$0xff]  ;;  %15320 = vst [vmem:[#allocation62_spill] sm:$0xff] %v11053_v61  ;;  %3589 = vmatpush.msra.mxu3 %v11053_v61  ;;  %vm15346_vm10 = vmmov %vm15341_vm1 }
 0x477   : > { %v10996_v23 = vpop.f32.mrf.mxu3  ;;  %6173 = vmatpush.msra.mxu2 %v6050_v54  ;;  %v2902_v54 = vadd.f32 %v10784_v12, %v10707_v47 }
 0x479   : > { %v11001_v21 = vpop.f32.mrf.mxu0  ;;  %v11011_v55 = vpop.f32.mrf.mxu2 }
 0x47a   : > { %15304 = vst [vmem:[#allocation51_spill] sm:$0xff] %v11001_v21  ;;  %v11016_v13 = vpop.f32.mrf.mxu1 }
 0x47b   : > { %15306 = vst [vmem:[#allocation79_spill] sm:$0xff] %v11011_v55  ;;  %v2905_v55 = vadd.f32 %v10784_v12, %v10716_v30 }
 0x47c   : > { %3165 = vmatmul.f32.gmra.mxu0 %v2760_v24  ;;  %15307 = vst [vmem:[#allocation63_spill] sm:$0xff] %v11016_v13 }
 0x47d   : > { %3278 = vmatmul.f32.gmra.mxu1 %v10528_v3 }
 0x47e   : > { %6546 = vmatmul.msk.f32.gmra.mxu2 %vm15308_vm12, %v10610_v53  ;;  %vm15349_vm12 = vmmov %vm15341_vm1 }
 0x47f   : > { %v11021_v38 = vpop.f32.mrf.mxu3 }
 0x481   : > { %v11026_v7 = vpop.f32.mrf.mxu0  ;;  %v11034_v45 = vpop.f32.mrf.mxu2 }
 0x482   : > { %15309 = vst [vmem:[#allocation65_spill] sm:$0xff] %v11026_v7  ;;  %v11036_v36 = vpop.f32.mrf.mxu1  ;;  %v15322_v7 = vld [vmem:[#allocation15_spill] sm:$0xff] }
 0x483   : > { %15310 = vst [vmem:[#allocation83_spill] sm:$0xff] %v11034_v45 }
 0x484   : > { %15311 = vst [vmem:[#allocation55_spill] sm:$0xff] %v11036_v36 }
 0x486   : > { %6615 = vmatmul.msk.f32.vlgmr.msra.gmra.mxu2 %vm15314_vm14, %v15313_v51  ;;  %vm15350_vm14 = vmmov %vm15341_vm1 }
 0x487   : > { %v11038_v3 = vpop.f32.mrf.mxu3 }
 0x488   : > { %15312 = vst [vmem:[#allocation95_spill] sm:$0xff] %v11038_v3 }
 0x489   : > { %v11042_v24 = vpop.f32.mrf.mxu0  ;;  %v11044_v34 = vpop.f32.mrf.mxu2 }
 0x48a   : > { %15315 = vst [vmem:[#allocation57_spill] sm:$0xff] %v11042_v24  ;;  %v11046_v52 = vpop.f32.mrf.mxu1 }
 0x48b   : > { %15316 = vst [vmem:[#allocation56_spill] sm:$0xff] %v11044_v34 }
 0x48c   : > { %15317 = vst [vmem:[#allocation66_spill] sm:$0xff] %v11046_v52 }
 0x48e   : > { %6616 = vmatmul.msk.f32.gmra.mxu2 %vm15319_vm7, %v15318_v11  ;;  %vm15353_vm7 = vmmov %vm15341_vm1 }
 0x48f   : > { %v3014_v53 = vpop.f32.mrf.mxu3 }
 0x490   : > { %v3015_v34 = vadd.f32 %v3014_v53, %v2902_v54 }
 0x491   : > { %v3127_v45 = vpop.f32.mrf.mxu0  ;;  %v11058_v51 = vpop.f32.mrf.mxu2 }
 0x492   : > { %15321 = vst [vmem:[#allocation73_spill] sm:$0xff] %v11058_v51  ;;  %v3240_v24 = vpop.f32.mrf.mxu1  ;;  %v3128_v36 = vadd.f32 %v3127_v45, %v3015_v34  ;;  %v15324_v51 = vld [vmem:[#allocation17_spill] sm:$0xff]  ;;  %v2908_v45 = vadd.f32 %v10784_v12, %v10729_v31  ;;  %v15326_v34 = vld [vmem:[#allocation18_spill] sm:$0xff] }
 0x494   : > { %v3241_v13 = vadd.f32 %v3240_v24, %v3128_v36 }
 0x496   : > { %6617 = vmatmul.msk.f32.gmra.mxu2 %vm15323_vm8, %v15322_v7  ;;  %v3399_v7 = vld [vmem:[%s14434_s5] sm:$0xff]  ;;  %vm15354_vm8 = vmmov %vm15341_vm1 }
 0x497   : > { %v3017_v52 = vpop.f32.mrf.mxu3  ;;  %3697 = vmatpush.msrb.mxu1 %v3399_v7  ;;  %3641 = vmatpush.msrb.mxu0 %v3399_v7 }
 0x498   : > { %v3018_v3 = vadd.f32 %v3017_v52, %v2905_v55 }
 0x499   : > { %v3130_v11 = vpop.f32.mrf.mxu0  ;;  %v3353_v39 = vpop.f32.mrf.mxu2 }
 0x49a   : > { %v3243_v21 = vpop.f32.mrf.mxu1  ;;  %v11064_v47 = vadd.f32 %v3353_v39, %v3241_v13  ;;  %v3131_v32 = vadd.f32 %v3130_v11, %v3018_v3 }
 0x49c   : > { %v3244_v30 = vadd.f32 %v3243_v21, %v3131_v32  ;;  %v15330_v21 = vld [vmem:[#allocation19_spill] sm:$0xff] }
 0x49e   : > { %6618 = vmatmul.msk.f32.gmra.mxu2 %vm15325_vm3, %v15324_v51  ;;  %vm15355_vm3 = vmmov %vm15341_vm1 }
 0x49f   : > { %v3020_v61 = vpop.f32.mrf.mxu3 }
 0x4a0   : > { %v3021_v36 = vadd.f32 %v3020_v61, %v2908_v45 }
 0x4a1   : > { %v3133_v53 = vpop.f32.mrf.mxu0  ;;  %v3356_v55 = vpop.f32.mrf.mxu2 }
 0x4a2   : > { %v3246_v39 = vpop.f32.mrf.mxu1  ;;  %v11073_v13 = vadd.f32 %v3356_v55, %v3244_v30  ;;  %v3134_v24 = vadd.f32 %v3133_v53, %v3021_v36  ;;  %v15335_v30 = vld [vmem:[#allocation21_spill] sm:$0xff] }
 0x4a4   : > { %v3247_v54 = vadd.f32 %v3246_v39, %v3134_v24  ;;  %v3472_v24 = vmul.f32 %v10820_v59, %v10820_v59 }
 0x4a6   : > { %6619 = vmatmul.msk.f32.gmra.mxu2 %vm15327_vm4, %v15326_v34  ;;  %v3471_v34 = vmul.f32 %v10803_v44, %v10803_v44  ;;  %vm15357_vm4 = vmmov %vm15122_vm0 }
 0x4a7   : > { %v11075_v3 = vpop.f32.mrf.mxu3 }
 0x4a9   : > { %v11079_v52 = vpop.f32.mrf.mxu0  ;;  %v3359_v51 = vpop.f32.mrf.mxu2 }
 0x4aa   : > { %v11081_v11 = vpop.f32.mrf.mxu1  ;;  %v11083_v31 = vadd.f32 %v3359_v51, %v3247_v54  ;;  %v2872_v51 = vadd.f32 %v10784_v12, %v10724_v25  ;;  %v3405_v25 = vsel %vm15346_vm10, %v10831_v15, 0.0 }
 0x4ab   : > { %15328 = vst [vmem:[#allocation59_spill] sm:$0xff] %v11081_v11 }
 0x4ac   : > { %15329 = vst [vmem:[#allocation85_spill] sm:$0xff] %v11083_v31 }
 0x4ae   : > { %6620 = vmatmul.msk.f32.gmra.mxu2 %vm15331_vm5, %v15330_v21  ;;  %v3403_v21 = vsel %vm15341_vm1, %v10820_v59, 0.0  ;;  %v3474_v59 = vmul.f32 %v10842_v42, %v10842_v42  ;;  %vm15359_vm5 = vmmov %vm15341_vm1 }
 0x4af   : > { %v11085_v32 = vpop.f32.mrf.mxu3 }
 0x4b1   : > { %v11089_v61 = vpop.f32.mrf.mxu0  ;;  %v11091_v7 = vpop.f32.mrf.mxu2 }
 0x4b2   : > { %15332 = vst [vmem:[#allocation52_spill] sm:$0xff] %v11089_v61  ;;  %v11093_v53 = vpop.f32.mrf.mxu1 }
 0x4b3   : > { %15333 = vst [vmem:[#allocation89_spill] sm:$0xff] %v11091_v7  ;;  %v3402_v7 = vsel %vm15343_vm9, %v10803_v44, 0.0  ;;  %v3503_v44 = vsel %vm15347_vm13, %v3471_v34, 0.0 }
 0x4b4   : > { %15334 = vst [vmem:[#allocation54_spill] sm:$0xff] %v11093_v53  ;;  %v2985_v53 = vadd.f32 %v10877_v40, %v2872_v51  ;;  %v3404_v11 = vadd.f32 %v3403_v21, %v3402_v7  ;;  %v15352_v21 = vld [vmem:[#allocation102_spill] sm:$0xff] }
 0x4b6   : > { %6621 = vmatmul.msk.f32.gmra.mxu2 %vm15336_vm6, %v15335_v30  ;;  %v3473_v30 = vmul.f32 %v10831_v15, %v10831_v15  ;;  %v3407_v15 = vsel %vm15350_vm14, %v10842_v42, 0.0  ;;  %v3406_v34 = vadd.f32 %v3405_v25, %v3404_v11  ;;  %v3508_v42 = vsel %vm15353_vm7, %v3474_v59, 0.0  ;;  %vm15361_vm6 = vmmov %vm15341_vm1 }
 0x4b7   : > { %v11095_v45 = vpop.f32.mrf.mxu3  ;;  %v3411_v25 = vsel %vm15359_vm5, %v10864_v9, 0.0 }
 0x4b9   : > { %v11099_v55 = vpop.f32.mrf.mxu0  ;;  %v11101_v36 = vpop.f32.mrf.mxu2 }
 0x4ba   : > { %15337 = vst [vmem:[#allocation99_spill] sm:$0xff] %v11099_v55  ;;  %v11103_v39 = vpop.f32.mrf.mxu1  ;;  %v3504_v55 = vsel %vm15345_vm11, %v3472_v24, 0.0  ;;  %v3506_v24 = vsel %vm15349_vm12, %v3473_v30, 0.0  ;;  %v2881_v30 = vadd.f32 %v10784_v12, %v15352_v21  ;;  %vm15366_vm11 = vmmov %vm15357_vm4 }
 0x4bb   : > { %15338 = vst [vmem:[#allocation53_spill] sm:$0xff] %v11101_v36  ;;  %v15342_v36 = vld [vmem:[#allocation22_spill] sm:$0xff]  ;;  %v3505_v7 = vadd.f32 %v3504_v55, %v3503_v44 }
 0x4bc   : > { %15339 = vst [vmem:[#allocation104_spill] sm:$0xff] %v11103_v39  ;;  %v2875_v39 = vadd.f32 %v10784_v12, %v10735_v6  ;;  %v2878_v6 = vadd.f32 %v10784_v12, %v10748_v57  ;;  %v2893_v57 = vadd.f32 %v10784_v12, %v10665_v46 }
 0x4be   : > { %6622 = vmatmul.msk.f32.gmra.mxu2 %vm15122_vm0, %v15342_v36  ;;  %v2887_v36 = vadd.f32 %v10784_v12, %v10645_v19  ;;  %v2988_v40 = vadd.f32 %v10892_v35, %v2875_v39  ;;  %v2890_v19 = vadd.f32 %v10784_v12, %v10654_v10  ;;  %v2991_v61 = vadd.f32 %v10907_v49, %v2878_v6  ;;  %vm15362_vm0 = vmmov %vm15341_vm1 }
 0x4bf   : > { %v11109_v54 = vpop.f32.mrf.mxu3  ;;  %v3507_v35 = vadd.f32 %v3506_v24, %v3505_v7  ;;  %v3408_v39 = vadd.f32 %v3407_v15, %v3406_v34  ;;  %v3476_v10 = vmul.f32 %v10864_v9, %v10864_v9  ;;  %v15358_v15 = vld [vmem:[#allocation60_spill] sm:$0xff]  ;;  %v3477_v6 = vmul.f32 %v10875_v56, %v10875_v56  ;;  %v15360_v24 = vld [vmem:[#allocation81_spill] sm:$0xff]  ;;  %vm15364_vm9 = vmmov %vm15362_vm0 }
 0x4c0   : > { %15340 = vst [vmem:[#allocation92_spill] sm:$0xff] %v11109_v54  ;;  %v3475_v54 = vmul.f32 %v10853_v1, %v10853_v1  ;;  %v3101_v59 = vadd.f32 %v10897_v4, %v2988_v40  ;;  %v2884_v49 = vadd.f32 %v10784_v12, %v15358_v15  ;;  %v2896_v40 = vadd.f32 %v10784_v12, %v15360_v24  ;;  %vm15367_vm10 = vmmov %vm15362_vm0 }
 0x4c1   : > { %v11123_v31 = vpop.f32.mrf.mxu0  ;;  %v3509_v55 = vadd.f32 %v3508_v42, %v3507_v35  ;;  %v3512_v7 = vsel %vm15361_vm6, %v3476_v10, 0.0  ;;  %vm15368_vm13 = vmmov %vm15362_vm0 }
 0x4c2   : > { %15344 = vst [vmem:[#allocation67_spill] sm:$0xff] %v11123_v31  ;;  %v11136_v31 = vpop.f32.mrf.mxu2  ;;  %v11144_v51 = vpop.f32.mrf.mxu1  ;;  %v3510_v44 = vsel %vm15355_vm3, %v3475_v54, 0.0  ;;  %v3214_v4 = vadd.f32 %v10905_v60, %v3101_v59  ;;  %v2997_v34 = vadd.f32 %v10943_v43, %v2884_v49  ;;  %v3478_v43 = vmul.f32 %v10890_v50, %v10890_v50  ;;  %v15365_v49 = vld [vmem:[#allocation24_spill] sm:$0xff]  ;;  %vm15369_vm12 = vmmov %vm15362_vm0 }
 0x4c3   : > { %15348 = vst [vmem:[#allocation50_spill] sm:$0xff] %v11136_v31  ;;  %v3098_v31 = vadd.f32 %v10882_v28, %v2985_v53  ;;  %v2994_v28 = vadd.f32 %v10928_v48, %v2881_v30  ;;  %v15356_v53 = vld [vmem:[#allocation20_spill] sm:$0xff]  ;;  %v3511_v42 = vadd.f32 %v3510_v44, %v3509_v55  ;;  %v15363_v44 = vld [vmem:[#allocation69_spill] sm:$0xff]  ;;  %v3415_v59 = vsel %vm15364_vm9, %v10890_v50, 0.0  ;;  %vm15370_vm14 = vmmov %vm15362_vm0 }
 0x4c4   : > { %15351 = vst [vmem:[#allocation71_spill] sm:$0xff] %v11144_v51  ;;  %v3409_v51 = vsel %vm15354_vm8, %v10853_v1, 0.0  ;;  %v11188_v60 = vadd.f32 %v10924_v33, %v3214_v4  ;;  %v3516_v55 = vsel %vm15367_vm10, %v3478_v43, 0.0  ;;  %vm15371_vm7 = vmmov %vm15362_vm0 }
 0x4c5   : > { %v3211_v11 = vadd.f32 %v10888_v0, %v3098_v31  ;;  %v3410_v0 = vadd.f32 %v3409_v51, %v3408_v39  ;;  %v3104_v31 = vadd.f32 %v10912_v2, %v2991_v61  ;;  %v3413_v2 = vsel %vm15341_vm1, %v10875_v56, 0.0  ;;  %vm15376_vm8 = vmmov %vm15362_vm0 }
 0x4c6   : > { %6623 = vmatmul.msk.f32.gmra.mxu2 %vm15357_vm4, %v15356_v53  ;;  %v3514_v61 = vsel %vm15362_vm0, %v3477_v6, 0.0  ;;  %v3000_v39 = vadd.f32 %v10960_v8, %v2887_v36  ;;  %v3513_v10 = vadd.f32 %v3512_v7, %v3511_v42  ;;  %v3003_v53 = vadd.f32 %v10976_v29, %v2890_v19  ;;  %v3395_v6 = vld [vmem:[%s14433_s4] sm:$0xff]  ;;  %vm15377_vm3 = vmmov %vm15362_vm0 }
 0x4c7   : > { %v11159_v46 = vpop.f32.mrf.mxu3  ;;  %v11177_v48 = vadd.f32 %v10903_v18, %v3211_v11  ;;  %v3412_v30 = vadd.f32 %v3411_v25, %v3410_v0  ;;  %v3217_v51 = vadd.f32 %v10926_v14, %v3104_v31  ;;  %v3107_v18 = vadd.f32 %v10933_v17, %v2994_v28  ;;  %3590 = vmatpush.msra.mxu3 %v3395_v6  ;;  %vm15382_vm4 = vmmov %vm15362_vm0 }
 0x4c8   : > { %v2899_v11 = vadd.f32 %v10784_v12, %v15363_v44  ;;  %v3110_v28 = vadd.f32 %v10948_v5, %v2997_v34  ;;  %v3515_v15 = vadd.f32 %v3514_v61, %v3513_v10  ;;  %v3113_v5 = vadd.f32 %v10964_v20, %v3000_v39  ;;  %v15379_v44 = vld [vmem:[#allocation79_spill] sm:$0xff]  ;;  %vm15383_vm5 = vmmov %vm15362_vm0 }
 0x4c9   : > { %v11173_v54 = vpop.f32.mrf.mxu0  ;;  %v3479_v14 = vmul.f32 %v11177_v48, %v11177_v48  ;;  %v3220_v33 = vadd.f32 %v10941_v27, %v3107_v18  ;;  %v11203_v17 = vadd.f32 %v10939_v58, %v3217_v51  ;;  %v3414_v36 = vadd.f32 %v3413_v2, %v3412_v30  ;;  %3610 = vmatpush.msrb.mxu3 %v10811_v41  ;;  %v15374_v18 = vld [vmem:[#allocation95_spill] sm:$0xff]  ;;  %v15375_v2 = vld [vmem:[#allocation61_spill] sm:$0xff]  ;;  %vm15385_vm6 = vmmov %vm15366_vm11 }
 0x4ca   : > { %v11184_v21 = vpop.f32.mrf.mxu2  ;;  %v11191_v35 = vpop.f32.mrf.mxu1  ;;  %v3480_v27 = vmul.f32 %v11188_v60, %v11188_v60  ;;  %v3223_v25 = vadd.f32 %v10956_v22, %v3110_v28  ;;  %v3006_v29 = vadd.f32 %v10996_v23, %v2893_v57  ;;  %v3226_v22 = vadd.f32 %v10972_v63, %v3113_v5  ;;  %v15380_v28 = vld [vmem:[#allocation65_spill] sm:$0xff]  ;;  %vm15389_vm1 = vmmov %vm15362_vm0 }
 0x4cb   : > { %v11216_v58 = vadd.f32 %v10954_v62, %v3220_v33  ;;  %v3416_v0 = vadd.f32 %v3415_v59, %v3414_v36  ;;  %v3417_v62 = vsel %vm15368_vm13, %v11177_v48, 0.0  ;;  %v3518_v4 = vsel %vm15369_vm12, %v3479_v14, 0.0  ;;  %3611 = vmatpush.msrb.mxu3 %v15375_v2  ;;  %v15381_v36 = vld [vmem:[#allocation62_spill] sm:$0xff]  ;;  %vm15392_vm9 = vmmov %vm15362_vm0 }
 0x4cc   : > { %v3481_v31 = vmul.f32 %v11203_v17, %v11203_v17  ;;  %v11236_v20 = vadd.f32 %v10970_v16, %v3223_v25  ;;  %v3116_v23 = vadd.f32 %v10980_v26, %v3003_v53  ;;  %v3009_v57 = vadd.f32 %v11021_v38, %v2896_v40  ;;  %v15372_v26 = vld [vmem:[#allocation64_spill] sm:$0xff]  ;;  %v15373_v38 = vld [vmem:[#allocation51_spill] sm:$0xff]  ;;  %v15384_v25 = vld [vmem:[#allocation25_spill] sm:$0xff] }
 0x4cd   : > { %v3517_v42 = vadd.f32 %v3516_v55, %v3515_v15  ;;  %v3419_v7 = vsel %vm15370_vm14, %v11188_v60, 0.0  ;;  %v3520_v34 = vsel %vm15371_vm7, %v3480_v27, 0.0  ;;  %v3482_v63 = vmul.f32 %v11216_v58, %v11216_v58  ;;  %3612 = vmatpush.msrb.mxu3 %v15381_v36  ;;  %vm15395_vm10 = vmmov %vm15362_vm0 }
 0x4ce   : > { %6624 = vmatmul.msk.f32.gmra.mxu2 %vm15366_vm11, %v15365_v49  ;;  %v3229_v16 = vadd.f32 %v10994_v37, %v3116_v23  ;;  %v11252_v51 = vadd.f32 %v15372_v26, %v3226_v22  ;;  %v3119_v40 = vadd.f32 %v15373_v38, %v3006_v29  ;;  %v3012_v41 = vadd.f32 %v15374_v18, %v2899_v11  ;;  %v15378_v37 = vld [vmem:[#allocation63_spill] sm:$0xff]  ;;  %v15391_v38 = vld [vmem:[#allocation56_spill] sm:$0xff]  ;;  %vm15393_vm11 = vmmov %vm15362_vm0 }
 0x4cf   : > { %v11211_v8 = vpop.f32.mrf.mxu3  ;;  %v3418_v61 = vadd.f32 %v3417_v62, %v3416_v0  ;;  %v3519_v43 = vadd.f32 %v3518_v4, %v3517_v42  ;;  %v3421_v39 = vsel %vm15376_vm8, %v11203_v17, 0.0  ;;  %v3522_v10 = vsel %vm15377_vm3, %v3481_v31, 0.0  ;;  %v15386_v29 = vld [vmem:[#allocation55_spill] sm:$0xff]  ;;  %v15388_v31 = vld [vmem:[#allocation57_spill] sm:$0xff]  ;;  %3613 = vmatpush.msrb.mxu3 %v3395_v6  ;;  %vm15396_vm13 = vmmov %vm15362_vm0 }
 0x4d0   : > { %v3483_v14 = vmul.f32 %v11236_v20, %v11236_v20  ;;  %v3232_v33 = vadd.f32 %v15378_v37, %v3119_v40  ;;  %v11264_v59 = vadd.f32 %v15379_v44, %v3229_v16  ;;  %v3122_v53 = vadd.f32 %v15380_v28, %v3009_v57  ;;  %v15387_v62 = vld [vmem:[#allocation83_spill] sm:$0xff]  ;;  %v15390_v16 = vld [vmem:[#allocation66_spill] sm:$0xff]  ;;  %vm15399_vm12 = vmmov %vm15385_vm6 }
 0x4d1   : > { %v11224_v19 = vpop.f32.mrf.mxu0  ;;  %v3420_v15 = vadd.f32 %v3419_v7, %v3418_v61  ;;  %v3521_v27 = vadd.f32 %v3520_v34, %v3519_v43  ;;  %v3423_v49 = vsel %vm15382_vm4, %v11216_v58, 0.0  ;;  %v3524_v55 = vsel %vm15383_vm5, %v3482_v63, 0.0  ;;  %vm15401_vm14 = vmmov %vm15362_vm0 }
 0x4d2   : > { %v11240_v24 = vpop.f32.mrf.mxu2  ;;  %v11248_v30 = vpop.f32.mrf.mxu1  ;;  %v3484_v5 = vmul.f32 %v11252_v51, %v11252_v51  ;;  %v3235_v0 = vadd.f32 %v15386_v29, %v3122_v53  ;;  %v11279_v4 = vadd.f32 %v15387_v62, %v3232_v33  ;;  %v3125_v22 = vadd.f32 %v15388_v31, %v3012_v41  ;;  %vm15402_vm7 = vmmov %vm15362_vm0 }
 0x4d3   : > { %v3422_v57 = vadd.f32 %v3421_v39, %v3420_v15  ;;  %v3523_v42 = vadd.f32 %v3522_v10, %v3521_v27  ;;  %v3425_v7 = vsel %vm15389_vm1, %v11236_v20, 0.0  ;;  %v3526_v34 = vsel %vm15362_vm0, %v3483_v14, 0.0  ;;  %v15394_v10 = vld [vmem:[#allocation73_spill] sm:$0xff]  ;;  %v15397_v15 = vld [vmem:[#allocation48_spill] sm:$0xff]  ;;  %vm15405_vm8 = vmmov %vm15362_vm0 }
 0x4d4   : > { %v3485_v63 = vmul.f32 %v11264_v59, %v11264_v59  ;;  %v3238_v26 = vadd.f32 %v15390_v16, %v3125_v22  ;;  %v11291_v40 = vadd.f32 %v15391_v38, %v3235_v0  ;;  %v3427_v61 = vsel %vm15392_vm9, %v11252_v51, 0.0  ;;  %v15404_v16 = vld [vmem:[#allocation94_spill] sm:$0xff]  ;;  %vm15406_vm3 = vmmov %vm15362_vm0 }
 0x4d5   : > { %v3424_v41 = vadd.f32 %v3423_v49, %v3422_v57  ;;  %v3525_v2 = vadd.f32 %v3524_v55, %v3523_v42  ;;  %v3528_v43 = vsel %vm15393_vm11, %v3484_v5, 0.0  ;;  %v3486_v39 = vmul.f32 %v11279_v4, %v11279_v4  ;;  %v15400_v5 = vld [vmem:[#allocation77_spill] sm:$0xff]  ;;  %v15403_v57 = vld [vmem:[#allocation96_spill] sm:$0xff]  ;;  %vm15409_vm4 = vmmov %vm15362_vm0 }
 0x4d6   : > { %6625 = vmatmul.msk.f32.gmra.mxu2 %vm15385_vm6, %v15384_v25  ;;  %v11303_v14 = vadd.f32 %v15394_v10, %v3238_v26  ;;  %v3429_v44 = vsel %vm15395_vm10, %v11264_v59, 0.0  ;;  %v3530_v28 = vsel %vm15396_vm13, %v3485_v63, 0.0  ;;  %v3487_v53 = vmul.f32 %v11291_v40, %v11291_v40  ;;  %v15398_v25 = vld [vmem:[#allocation23_spill] sm:$0xff]  ;;  %vm15410_vm5 = vmmov %vm15362_vm0 }
 0x4d7   : > { %v11267_v11 = vpop.f32.mrf.mxu3  ;;  %v3426_v37 = vadd.f32 %v3425_v7, %v3424_v41  ;;  %v3527_v33 = vadd.f32 %v3526_v34, %v3525_v2  ;;  %v2911_v27 = vadd.f32 %v10784_v12, %v15397_v15  ;;  %v2914_v29 = vadd.f32 %v10784_v12, %v15400_v5  ;;  %v15411_v5 = vld [vmem:[#allocation76_spill] sm:$0xff]  ;;  %vm15412_vm6 = vmmov %vm15362_vm0 }
 0x4d8   : > { %v3431_v0 = vsel %vm15401_vm14, %v11279_v4, 0.0  ;;  %v3532_v62 = vsel %vm15402_vm7, %v3486_v39, 0.0  ;;  %v3488_v31 = vmul.f32 %v11303_v14, %v11303_v14  ;;  %v2923_v42 = vadd.f32 %v10784_v12, %v15403_v57  ;;  %vm15415_vm1 = vmmov %vm15362_vm0 }
 0x4d9   : > { %v11282_v23 = vpop.f32.mrf.mxu0  ;;  %v3428_v49 = vadd.f32 %v3427_v61, %v3426_v37  ;;  %v3529_v55 = vadd.f32 %v3528_v43, %v3527_v33  ;;  %v3024_v63 = vadd.f32 %v11075_v3, %v2911_v27  ;;  %v2917_v26 = vadd.f32 %v10784_v12, %v15404_v16  ;;  %v15407_v43 = vld [vmem:[#allocation88_spill] sm:$0xff]  ;;  %vm15418_vm0 = vmmov %vm15399_vm12 }
 0x4da   : > { %v11293_v18 = vpop.f32.mrf.mxu2  ;;  %v11295_v6 = vpop.f32.mrf.mxu1  ;;  %v3433_v38 = vsel %vm15405_vm8, %v11291_v40, 0.0  ;;  %v3534_v41 = vsel %vm15406_vm3, %v3487_v53, 0.0  ;;  %v3027_v2 = vadd.f32 %v11085_v32, %v2914_v29  ;;  %v2926_v39 = vadd.f32 %v10784_v12, %v15407_v43  ;;  %v15417_v43 = vld [vmem:[#allocation26_spill] sm:$0xff]  ;;  %vm15419_vm9 = vmmov %vm15415_vm1 }
 0x4db   : > { %v3430_v7 = vadd.f32 %v3429_v44, %v3428_v49  ;;  %v3531_v34 = vadd.f32 %v3530_v28, %v3529_v55  ;;  %v3489_v3 = vmul.f32 %v11064_v47, %v11064_v47  ;;  %v15408_v44 = vld [vmem:[#allocation49_spill] sm:$0xff]  ;;  %v3435_v53 = vsel %vm15409_vm4, %v11303_v14, 0.0  ;;  %vm15422_vm11 = vmmov %vm15415_vm1 }
 0x4dc   : > { %v2920_v28 = vadd.f32 %v10784_v12, %v15408_v44  ;;  %v3536_v32 = vsel %vm15410_vm5, %v3488_v31, 0.0  ;;  %v3030_v15 = vadd.f32 %v11095_v45, %v2917_v26  ;;  %v3490_v55 = vmul.f32 %v11073_v13, %v11073_v13  ;;  %vm15430_vm10 = vmmov %vm15415_vm1 }
 0x4dd   : > { %v3432_v10 = vadd.f32 %v3431_v0, %v3430_v7  ;;  %v3533_v37 = vadd.f32 %v3532_v62, %v3531_v34  ;;  %v2929_v29 = vadd.f32 %v10784_v12, %v15411_v5  ;;  %v3437_v0 = vsel %vm15412_vm6, %v11064_v47, 0.0  ;;  %v15413_v62 = vld [vmem:[#allocation52_spill] sm:$0xff]  ;;  %v15426_v5 = vld [vmem:[#allocation53_spill] sm:$0xff]  ;;  %vm15433_vm13 = vmmov %vm15415_vm1 }
 0x4de   : > { %6626 = vmatmul.msk.f32.gmra.mxu2 %vm15399_vm12, %v15398_v25  ;;  %v3137_v25 = vadd.f32 %v11079_v52, %v3024_v63  ;;  %v3140_v57 = vadd.f32 %v15413_v62, %v3027_v2  ;;  %v15414_v7 = vld [vmem:[#allocation92_spill] sm:$0xff]  ;;  %v3538_v26 = vsel %vm15415_vm1, %v3489_v3, 0.0  ;;  %v3439_v12 = vsel %vm15419_vm9, %v11073_v13, 0.0  ;;  %v15420_v52 = vld [vmem:[#allocation54_spill] sm:$0xff]  ;;  %vm15435_vm12 = vmmov %vm15415_vm1 }
 0x4df   : > { %v11310_v36 = vpop.f32.mrf.mxu3  ;;  %v3434_v27 = vadd.f32 %v3433_v38, %v3432_v10  ;;  %v3535_v49 = vadd.f32 %v3534_v41, %v3533_v37  ;;  %v3033_v34 = vadd.f32 %v15414_v7, %v2920_v28  ;;  %v15416_v38 = vld [vmem:[#allocation59_spill] sm:$0xff]  ;;  %v3036_v2 = vadd.f32 %v11159_v46, %v2923_v42  ;;  %v7732_v42 = vld [vmem:[%s14438_s9] ss:$0 sm:$0xff]  ;;  %vm15437_vm14 = vmmov %vm15418_vm0 }
 0x4e0   : > { %v3250_v41 = vadd.f32 %v15416_v38, %v3137_v25  ;;  %v3253_v63 = vadd.f32 %v15420_v52, %v3140_v57  ;;  %v15421_v10 = vld [vmem:[#allocation99_spill] sm:$0xff]  ;;  %v3540_v28 = vsel %vm15422_vm11, %v3490_v55, 0.0  ;;  %v15428_v55 = vld [vmem:[#allocation86_spill] sm:$0xff]  ;;  %vm15438_vm7 = vmmov %vm15415_vm1 }
 0x4e1   : > { %v11323_v22 = vpop.f32.mrf.mxu0  ;;  %v3436_v16 = vadd.f32 %v3435_v53, %v3434_v27  ;;  %v3537_v45 = vadd.f32 %v3536_v32, %v3535_v49  ;;  %v3143_v37 = vadd.f32 %v15421_v10, %v3030_v15  ;;  %v15423_v53 = vld [vmem:[#allocation85_spill] sm:$0xff]  ;;  %v15425_v49 = vld [vmem:[#allocation104_spill] sm:$0xff]  ;;  %v15427_v7 = vld [vmem:[#allocation67_spill] sm:$0xff]  ;;  %v3039_v15 = vadd.f32 %v11211_v8, %v2926_v39 }
 0x4e2   : > { %v11334_v61 = vpop.f32.mrf.mxu2  ;;  %v11340_v33 = vpop.f32.mrf.mxu1  ;;  %v3491_v3 = vmul.f32 %v15423_v53, %v15423_v53  ;;  %v15424_v32 = vld [vmem:[#allocation89_spill] sm:$0xff]  ;;  %v11374_v62 = vadd.f32 %v15426_v5, %v3253_v63  ;;  %v3146_v57 = vadd.f32 %v15427_v7, %v3033_v34  ;;  %v3441_v63 = vsel %vm15430_vm10, %v15423_v53, 0.0  ;;  %vm15439_vm8 = vmmov %vm15415_vm1 }
 0x4e3   : > { %v3438_v44 = vadd.f32 %v3437_v0, %v3436_v16  ;;  %v11370_v27 = vadd.f32 %v15424_v32, %v3250_v41  ;;  %v3256_v25 = vadd.f32 %v15425_v49, %v3143_v37  ;;  %v2932_v0 = vadd.f32 %v7732_v42, %v15428_v55  ;;  %v15429_v16 = vld [vmem:[#allocation97_spill] sm:$0xff]  ;;  %v15431_v37 = vld [vmem:[#allocation71_spill] sm:$0xff]  ;;  %v15432_v32 = vld [vmem:[#allocation50_spill] sm:$0xff] }
 0x4e4   : > { %v2935_v41 = vadd.f32 %v7732_v42, %v15429_v16  ;;  %v3259_v34 = vadd.f32 %v15431_v37, %v3146_v57  ;;  %v3149_v39 = vadd.f32 %v11173_v54, %v3036_v2  ;;  %v3542_v5 = vsel %vm15433_vm13, %v3491_v3, 0.0  ;;  %v15434_v54 = vld [vmem:[#allocation100_spill] sm:$0xff]  ;;  %vm15440_vm3 = vmmov %vm15415_vm1 }
 0x4e5   : > { %v3440_v52 = vadd.f32 %v3439_v12, %v3438_v44  ;;  %v11387_v8 = vadd.f32 %v15432_v32, %v3256_v25  ;;  %v3492_v7 = vmul.f32 %v11370_v27, %v11370_v27  ;;  %v3152_v25 = vadd.f32 %v11224_v19, %v3039_v15  ;;  %vm15441_vm4 = vmmov %vm15415_vm1 }
 0x4e6   : > { %6627 = vmatmul.msk.f32.gmra.mxu2 %vm15418_vm0, %v15417_v43  ;;  %v3539_v43 = vadd.f32 %v3538_v26, %v3537_v45  ;;  %v3042_v45 = vadd.f32 %v11267_v11, %v2929_v29  ;;  %v3493_v26 = vmul.f32 %v11374_v62, %v11374_v62  ;;  %v3262_v12 = vadd.f32 %v11191_v35, %v3149_v39  ;;  %v15436_v11 = vld [vmem:[#allocation27_spill] sm:$0xff]  ;;  %vm15442_vm5 = vmmov %vm15415_vm1 }
 0x4e7   : > { %v3047_v31 = vpop.f32.mrf.mxu3  ;;  %v11398_v44 = vadd.f32 %v11184_v21, %v3259_v34  ;;  %v2938_v2 = vadd.f32 %v7732_v42, %v15434_v54  ;;  %v3443_v3 = vsel %vm15435_vm12, %v11370_v27, 0.0  ;;  %v3045_v55 = vadd.f32 %v11310_v36, %v2932_v0  ;;  %vm15443_vm6 = vmmov %vm15415_vm1 }
 0x4e8   : > { %v3541_v49 = vadd.f32 %v3540_v28, %v3539_v43  ;;  %v3442_v28 = vadd.f32 %v3441_v63, %v3440_v52  ;;  %v3494_v35 = vmul.f32 %v11387_v8, %v11387_v8  ;;  %v3265_v21 = vadd.f32 %v11248_v30, %v3152_v25  ;;  %vm15444_vm0 = vmmov %vm15415_vm1 }
 0x4e9   : > { %v3160_v38 = vpop.f32.mrf.mxu0  ;;  %v11411_v19 = vadd.f32 %v11240_v24, %v3262_v12  ;;  %v3544_v15 = vsel %vm15438_vm7, %v3492_v7, 0.0  ;;  %v3445_v16 = vsel %vm15439_vm8, %v11374_v62, 0.0  ;;  %v3155_v43 = vadd.f32 %v11282_v23, %v3042_v45  ;;  %vm15446_vm9 = vmmov %vm15437_vm14 }
 0x4ea   : > { %v3383_v46 = vpop.f32.mrf.mxu2  ;;  %v3273_v10 = vpop.f32.mrf.mxu1  ;;  %v3543_v29 = vadd.f32 %v3542_v5, %v3541_v49  ;;  %v3048_v36 = vadd.f32 %v3047_v31, %v2935_v41  ;;  %v3444_v0 = vadd.f32 %v3443_v3, %v3442_v28  ;;  %v3546_v52 = vsel %vm15440_vm3, %v3493_v26, 0.0  ;;  %vm15448_vm11 = vmmov %vm15444_vm0 }
 0x4eb   : > { %v3495_v63 = vmul.f32 %v11398_v44, %v11398_v44  ;;  %v11421_v37 = vadd.f32 %v11293_v18, %v3265_v21  ;;  %v3447_v24 = vsel %vm15441_vm4, %v11387_v8, 0.0  ;;  %v3268_v34 = vadd.f32 %v11295_v6, %v3155_v43  ;;  %vm15449_vm10 = vmmov %vm15444_vm0 }
 0x4ec   : > { %v3158_v32 = vadd.f32 %v11323_v22, %v3045_v55  ;;  %v3545_v23 = vadd.f32 %v3544_v15, %v3543_v29  ;;  %v3446_v31 = vadd.f32 %v3445_v16, %v3444_v0  ;;  %v3548_v41 = vsel %vm15442_vm5, %v3494_v35, 0.0  ;;  %v15445_v55 = vld [vmem:[#allocation28_spill] sm:$0xff]  ;;  %vm15450_vm13 = vmmov %vm15444_vm0 }
 0x4ed   : > { %v3496_v49 = vmul.f32 %v11411_v19, %v11411_v19  ;;  %v3449_v18 = vsel %vm15443_vm6, %v11398_v44, 0.0  ;;  %v11434_v26 = vadd.f32 %v11334_v61, %v3268_v34  ;;  %v3161_v6 = vadd.f32 %v3160_v38, %v3048_v36  ;;  %v15447_v61 = vld [vmem:[#allocation58_spill] sm:$0xff]  ;;  %vm15451_vm12 = vmmov %vm15444_vm0 }
 0x4ee   : > { %6628 = vmatmul.msk.f32.gmra.mxu2 %vm15437_vm14, %v15436_v11  ;;  %v3271_v45 = vadd.f32 %v11340_v33, %v3158_v32  ;;  %v3547_v22 = vadd.f32 %v3546_v52, %v3545_v23  ;;  %v3448_v12 = vadd.f32 %v3447_v24, %v3446_v31  ;;  %v3550_v25 = vsel %vm15415_vm1, %v3495_v63, 0.0  ;;  %vm15452_vm14 = vmmov %vm15444_vm0 }
 0x4ef   : > { %v3050_v57 = vpop.f32.mrf.mxu3  ;;  %v3451_v54 = vsel %vm15444_vm0, %v11411_v19, 0.0  ;;  %v2941_v33 = vadd.f32 %v7732_v42, %v15447_v61  ;;  %v3552_v29 = vsel %vm15448_vm11, %v3496_v49, 0.0  ;;  %v3453_v21 = vsel %vm15449_vm10, %v11421_v37, 0.0  ;;  %vm15453_vm7 = vmmov %vm15444_vm0 }
 0x4f0   : > { %v3051_v39 = vadd.f32 %v3050_v57, %v2938_v2  ;;  %v3497_v57 = vmul.f32 %v11421_v37, %v11421_v37  ;;  %v3274_v2 = vadd.f32 %v3273_v10, %v3161_v6  ;;  %v11441_v28 = vadd.f32 %v3383_v46, %v3271_v45  ;;  %vm15454_vm8 = vmmov %vm15444_vm0 }
 0x4f1   : > { %v3163_v5 = vpop.f32.mrf.mxu0  ;;  %v3549_v38 = vadd.f32 %v3548_v41, %v3547_v22  ;;  %v3450_v11 = vadd.f32 %v3449_v18, %v3448_v12  ;;  %v3498_v15 = vmul.f32 %v11434_v26, %v11434_v26  ;;  %v3455_v42 = vsel %vm15451_vm12, %v11434_v26, 0.0  ;;  %vm15455_vm3 = vmmov %vm15444_vm0  ;;  %v15456_v22 = vld [vmem:[#allocation29_spill] sm:$0xff] }
 0x4f2   : > { %v3386_v30 = vpop.f32.mrf.mxu2  ;;  %v3276_v7 = vpop.f32.mrf.mxu1  ;;  %v3164_v3 = vadd.f32 %v3163_v5, %v3051_v39  ;;  %v3554_v36 = vsel %vm15450_vm13, %v3497_v57, 0.0  ;;  %v3499_v63 = vmul.f32 %v11441_v28, %v11441_v28  ;;  %vm15457_vm4 = vmmov %vm15446_vm9 }
 0x4f3   : > { %v11451_v46 = vadd.f32 %v3386_v30, %v3274_v2  ;;  %v3551_v16 = vadd.f32 %v3550_v25, %v3549_v38  ;;  %v3452_v43 = vadd.f32 %v3451_v54, %v3450_v11  ;;  %v3556_v39 = vsel %vm15452_vm14, %v3498_v15, 0.0  ;;  %vm15458_vm5 = vmmov %vm15444_vm0 }
 0x4f4   : > { %v3277_v10 = vadd.f32 %v3276_v7, %v3164_v3  ;;  %v3457_v30 = vsel %vm15453_vm7, %v11441_v28, 0.0  ;;  %v3558_v7 = vsel %vm15454_vm8, %v3499_v63, 0.0  ;;  %vm15459_vm6 = vmmov %vm15444_vm0 }
 0x4f5   : > { %v3553_v34 = vadd.f32 %v3552_v29, %v3551_v16  ;;  %v3454_v32 = vadd.f32 %v3453_v21, %v3452_v43  ;;  %v3500_v23 = vmul.f32 %v11451_v46, %v11451_v46  ;;  %v3459_v18 = vsel %vm15455_vm3, %v11451_v46, 0.0  ;;  %vm15460_vm1 = vmmov %vm15444_vm0  ;;  %v15462_v43 = vld [vmem:[#allocation30_spill] sm:$0xff] }
 0x4f6   : > { %6629 = vmatmul.msk.f32.gmra.mxu2 %vm15446_vm9, %v15445_v55  ;;  %vm15461_vm9 = vmmov %vm15444_vm0 }
 0x4f7   : > { %v3053_v35 = vpop.f32.mrf.mxu3  ;;  %v3555_v31 = vadd.f32 %v3554_v36, %v3553_v34  ;;  %v3456_v49 = vadd.f32 %v3455_v42, %v3454_v32  ;;  %v3560_v57 = vsel %vm15458_vm5, %v3500_v23, 0.0  ;;  %vm15463_vm11 = vmmov %vm15457_vm4 }
 0x4f8   : > { %v3054_v52 = vadd.f32 %v3053_v35, %v2941_v33  ;;  %vm15465_vm10 = vmmov %vm15457_vm4 }
 0x4f9   : > { %v3166_v41 = vpop.f32.mrf.mxu0  ;;  %v3557_v12 = vadd.f32 %v3556_v39, %v3555_v31  ;;  %v3458_v25 = vadd.f32 %v3457_v30, %v3456_v49  ;;  %v15464_v30 = vld [vmem:[#allocation31_spill] sm:$0xff]  ;;  %vm15466_vm13 = vmmov %vm15444_vm0 }
 0x4fa   : > { %v3389_v0 = vpop.f32.mrf.mxu2  ;;  %v3279_v5 = vpop.f32.mrf.mxu1  ;;  %v3167_v45 = vadd.f32 %v3166_v41, %v3054_v52  ;;  %vm15468_vm12 = vmmov %vm15457_vm4 }
 0x4fb   : > { %v11458_v24 = vadd.f32 %v3389_v0, %v3277_v10  ;;  %v3559_v3 = vadd.f32 %v3558_v7, %v3557_v12  ;;  %v3460_v55 = vadd.f32 %v3459_v18, %v3458_v25  ;;  %vm15469_vm14 = vmmov %vm15444_vm0  ;;  %v15470_v18 = vld [vmem:[#allocation33_spill] sm:$0xff] }
 0x4fc   : > { %v3280_v54 = vadd.f32 %v3279_v5, %v3167_v45  ;;  %v15467_v5 = vld [vmem:[#allocation32_spill] sm:$0xff]  ;;  %vm15471_vm7 = vmmov %vm15457_vm4  ;;  %v15472_v45 = vld [vmem:[#allocation34_spill] sm:$0xff] }
 0x4fd   : > { %v3501_v6 = vmul.f32 %v11458_v24, %v11458_v24  ;;  %v3461_v2 = vsel %vm15459_vm6, %v11458_v24, 0.0  ;;  %v3561_v11 = vadd.f32 %v3560_v57, %v3559_v3  ;;  %vm15473_vm8 = vmmov %vm15457_vm4  ;;  %v15479_v25 = vld [vmem:[#allocation37_spill] sm:$0xff]  ;;  %v15485_v3 = vld [vmem:[#allocation39_spill] sm:$0xff] }
 0x4fe   : > { %6630 = vmatmul.msk.f32.gmra.mxu2 %vm15457_vm4, %v15456_v22  ;;  %v3462_v29 = vadd.f32 %v3461_v2, %v3460_v55  ;;  %vm15475_vm3 = vmmov %vm15457_vm4  ;;  %v15476_v22 = vld [vmem:[#allocation36_spill] sm:$0xff] }
 0x4ff   : > { %v3562_v33 = vsel %vm15460_vm1, %v3501_v6, 0.0  ;;  %v15474_v6 = vld [vmem:[#allocation35_spill] sm:$0xff]  ;;  %vm15477_vm4 = vmmov %vm15475_vm3 }
 0x500   : > { %v3563_v15 = vadd.f32 %v3562_v33, %v3561_v11  ;;  %vm15480_vm5 = vmmov %vm15475_vm3  ;;  %v15490_v33 = vld [vmem:[#allocation41_spill] sm:$0xff] }
 0x501   : > { %vm15483_vm6 = vmmov %vm15475_vm3 }
 0x502   : > { %v3392_v61 = vpop.f32.mrf.mxu2  ;;  %vm15486_vm1 = vmmov %vm15475_vm3 }
 0x503   : > { %v11476_v38 = vadd.f32 %v3392_v61, %v3280_v54  ;;  %v15482_v54 = vld [vmem:[#allocation38_spill] sm:$0xff]  ;;  %v15488_v61 = vld [vmem:[#allocation40_spill] sm:$0xff] }
 0x505   : > { %v3463_v35 = vsel %vm15444_vm0, %v11476_v38, 0.0  ;;  %v3502_v21 = vmul.f32 %v11476_v38, %v11476_v38  ;;  %vm15489_vm0 = vmmov %vm15486_vm1 }
 0x506   : > { %v3464_v10 = vadd.f32 %v3463_v35, %v3462_v29  ;;  %6631 = vmatmul.msk.f32.gmra.mxu2 %vm15463_vm11, %v15462_v43  ;;  %v15493_v29 = vld [vmem:[#allocation42_spill] sm:$0xff]  ;;  %vm15494_vm11 = vmmov %vm15489_vm0  ;;  %v15502_v43 = vld [vmem:[#allocation45_spill] sm:$0xff] }
 0x507   : > { %v3564_v16 = vsel %vm15461_vm9, %v3502_v21, 0.0  ;;  %vm15491_vm9 = vmmov %vm15489_vm0  ;;  %v15496_v21 = vld [vmem:[#allocation43_spill] sm:$0xff] }
 0x508   : > { %v3465_v36 = vrot.slane %v3464_v10, 4  ;;  %v3565_v0 = vadd.f32 %v3564_v16, %v3563_v15 }
 0x50a   : > { %v3466_v42 = vadd.f32 %v3465_v36, %v3464_v10  ;;  %v3566_v52 = vrot.slane %v3565_v0, 4  ;;  %v11499_v12 = vpop.f32.mrf.mxu2  ;;  %v15499_v10 = vld [vmem:[#allocation44_spill] sm:$0xff] }
 0x50b   : > { %15478 = vst [vmem:[#allocation82_spill] sm:$0xff] %v11499_v12 }
 0x50c   : > { %v3467_v63 = vrot.slane %v3466_v42, 2  ;;  %v3567_v34 = vadd.f32 %v3566_v52, %v3565_v0  ;;  %v15504_v0 = vld [vmem:[#allocation46_spill] sm:$0xff] }
 0x50e   : > { %v3468_v32 = vadd.f32 %v3467_v63, %v3466_v42  ;;  %v3568_v39 = vrot.slane %v3567_v34, 2  ;;  %6632 = vmatmul.msk.f32.gmra.mxu2 %vm15465_vm10, %v15464_v30  ;;  %vm15497_vm10 = vmmov %vm15489_vm0 }
 0x510   : > { %v3469_v23 = vrot.slane %v3468_v32, 1  ;;  %v3569_v41 = vadd.f32 %v3568_v39, %v3567_v34 }
 0x512   : > { %v3470_v31 = vadd.f32 %v3469_v23, %v3468_v32  ;;  %v3570_v49 = vrot.slane %v3569_v41, 1  ;;  %v11503_v57 = vpop.f32.mrf.mxu2  ;;  %v15505_v23 = vld [vmem:[#allocation106_spill] sm:$0xff] }
 0x513   : > { %15481 = vst [vmem:[#allocation74_spill] sm:$0xff] %v11503_v57 }
 0x514   : > { %6547 = vmatmul.msk.f32.vlgmr.msra.gmra.mxu3 %vm15466_vm13, %v3470_v31  ;;  %v3571_v7 = vadd.f32 %v3570_v49, %v3569_v41  ;;  %vm15500_vm13 = vmmov %vm15489_vm0  ;;  %v15506_v31 = vld [vmem:[#allocation90_spill] sm:$0xff]  ;;  %v15507_v49 = vld [vmem:[#allocation87_spill] sm:$0xff] }
 0x515   : > { %v6998_v41 = vpack.i.bf16 %v15506_v31, %v15505_v23 }
 0x516   : > { %6633 = vmatmul.msk.f32.gmra.mxu2 %vm15468_vm12, %v15467_v5  ;;  %vm15503_vm12 = vmmov %vm15489_vm0  ;;  %v15508_v5 = vld [vmem:[#allocation72_spill] sm:$0xff] }
 0x517   : > { %6999 = vrot.lane.b32.xlu1 %v6998_v41, %s7835_s13 }
 0x51a   : > { %v11507_v2 = vpop.f32.mrf.mxu2 }
 0x51b   : > { %15484 = vst [vmem:[#allocation98_spill] sm:$0xff] %v11507_v2 }
 0x51c   : > { %6548 = vmatmul.msk.f32.vlgmr.msrb.gmra.mxu3 %vm15469_vm14, %v3571_v7  ;;  %vm3622_vm14 = vcmask 64512   ;;  %v7003_v7 = vpack.i.bf16 %v15508_v5, %v15507_v49 }
 0x51e   : > { %6634 = vmatmul.msk.f32.gmra.mxu2 %vm15471_vm7, %v15470_v18  ;;  %7004 = vrot.lane.b32.xlu2 %v7003_v7, %s7837_s28 }
 0x522   : > { %v11511_v55 = vpop.f32.mrf.mxu2 }
 0x523   : > { %15487 = vst [vmem:[#allocation91_spill] sm:$0xff] %v11511_v55 }
 0x526   : > { %6635 = vmatmul.msk.f32.gmra.mxu2 %vm15473_vm8, %v15472_v45 }
 0x52a   : > { %v11517_v11 = vpop.f32.mrf.mxu2 }
 0x52b   : > { %15492 = vst [vmem:[#allocation78_spill] sm:$0xff] %v11517_v11 }
 0x52e   : > { %6636 = vmatmul.msk.f32.gmra.mxu2 %vm15475_vm3, %v15474_v6 }
 0x532   : > { %v11521_v35 = vpop.f32.mrf.mxu2 }
 0x533   : > { %15495 = vst [vmem:[#allocation105_spill] sm:$0xff] %v11521_v35 }
 0x536   : > { %6637 = vmatmul.msk.f32.gmra.mxu2 %vm15477_vm4, %v15476_v22 }
 0x53a   : > { %v11525_v15 = vpop.f32.mrf.mxu2 }
 0x53b   : > { %15498 = vst [vmem:[#allocation93_spill] sm:$0xff] %v11525_v15 }
 0x53e   : > { %6638 = vmatmul.msk.f32.gmra.mxu2 %vm15480_vm5, %v15479_v25 }
 0x542   : > { %v11529_v16 = vpop.f32.mrf.mxu2 }
 0x543   : > { %15501 = vst [vmem:[#allocation47_spill] sm:$0xff] %v11529_v16 }
 0x546   : > { %6639 = vmatmul.msk.f32.gmra.mxu2 %vm15483_vm6, %v15482_v54 }
 0x54e   : > { %6640 = vmatmul.msk.f32.gmra.mxu2 %vm15486_vm1, %v15485_v3  ;;  %v4490_v3 = vld [vmem:[%s14441_s12 + $0x118] sm:$0xff] }
 0x54f   : > { %5949 = vmatpush.msra.mxu1 %v4490_v3 }
 0x556   : > { %6641 = vmatmul.msk.f32.gmra.mxu2 %vm15489_vm0, %v15488_v61 }
 0x55e   : > { %6642 = vmatmul.msk.f32.gmra.mxu2 %vm15491_vm9, %v15490_v33  ;;  %v15509_v33 = vld [vmem:[#allocation80_spill] sm:$0xff] }
 0x566   : > { %6643 = vmatmul.msk.f32.gmra.mxu2 %vm15494_vm11, %v15493_v29 }
 0x56e   : > { %6644 = vmatmul.msk.f32.gmra.mxu2 %vm15497_vm10, %v15496_v21 }
 0x576   : > { %6645 = vmatmul.msk.f32.gmra.mxu2 %vm15500_vm13, %v15499_v10 }
 0x57e   : > { %6646 = vmatmul.msk.f32.gmra.mxu2 %vm15503_vm12, %v15502_v43 }
 0x597   : > { %v3592_v36 = vpop.f32.mrf.mxu3 }
 0x598   : > { %v3618_v42 = vmul.f32 %v3592_v36, %v15504_v0 }
 0x59a   : > { %6549 = vmatmul.msk.f32.vlgmr.msrb.gmra.mxu0 %vm3622_vm14, %v3618_v42  ;;  %v3620_v63 = vmul.f32 %v3618_v42, %v3618_v42 }
 0x59f   : > { %v3615_v52 = vpop.f32.mrf.mxu3 }
 0x5a0   : > { %v3619_v34 = vmul.f32 %v3615_v52, %v15504_v0 }
 0x5a2   : > { %v3621_v32 = vsub.f32 %v3619_v34, %v3620_v63 }
 0x5a4   : > { %6550 = vmatmul.msk.f32.vlgmr.msrb.gmra.mxu1 %vm3622_vm14, %v3621_v32 }
 0x617   : > { %v3643_v45 = vpop.f32.mrf.mxu0 }
 0x618   : > { %v11541_v25 = vperm.slane %v3643_v45, 0 }
 0x61a   : > { %v3647_v29 = vsub.f32 %v15509_v33, %v11541_v25  ;;  %v3653_v21 = vsub.f32 %v10875_v56, %v11541_v25  ;;  %v3654_v10 = vsub.f32 %v10890_v50, %v11541_v25  ;;  %v3655_v36 = vsub.f32 %v11177_v48, %v11541_v25 }
 0x61b   : > { %v3656_v0 = vsub.f32 %v11188_v60, %v11541_v25  ;;  %v3659_v42 = vsub.f32 %v11236_v20, %v11541_v25  ;;  %v3660_v52 = vsub.f32 %v11252_v51, %v11541_v25  ;;  %v3661_v56 = vsub.f32 %v11264_v59, %v11541_v25 }
 0x61c   : > { %v3662_v50 = vsub.f32 %v11279_v4, %v11541_v25  ;;  %v3663_v63 = vsub.f32 %v11291_v40, %v11541_v25  ;;  %v3664_v60 = vsub.f32 %v11303_v14, %v11541_v25  ;;  %v3665_v20 = vsub.f32 %v11064_v47, %v11541_v25 }
 0x61d   : > { %v3666_v51 = vsub.f32 %v11073_v13, %v11541_v25  ;;  %v3667_v59 = vsub.f32 %v15423_v53, %v11541_v25  ;;  %v3668_v4 = vsub.f32 %v11370_v27, %v11541_v25  ;;  %v3669_v40 = vsub.f32 %v11374_v62, %v11541_v25 }
 0x61e   : > { %v3670_v14 = vsub.f32 %v11387_v8, %v11541_v25  ;;  %v3671_v47 = vsub.f32 %v11398_v44, %v11541_v25  ;;  %v3672_v13 = vsub.f32 %v11411_v19, %v11541_v25  ;;  %v3673_v32 = vsub.f32 %v11421_v37, %v11541_v25 }
 0x61f   : > { %v3674_v53 = vsub.f32 %v11434_v26, %v11541_v25  ;;  %v3675_v27 = vsub.f32 %v11441_v28, %v11541_v25  ;;  %v3676_v62 = vsub.f32 %v11451_v46, %v11541_v25  ;;  %v3677_v44 = vsub.f32 %v11458_v24, %v11541_v25  ;;  %v4489_v28 = vld [vmem:[%s14441_s12 + $0x110] sm:$0xff] }
 0x620   : > { %v3678_v19 = vsub.f32 %v11476_v38, %v11541_v25  ;;  %5950 = vmatpush.msra.mxu1 %v4489_v28 }
 0x621   : > { %v3699_v39 = vpop.f32.mrf.mxu1 }
 0x622   : > { %v3700_v30 = vadd.f32 1e-06, %v3699_v39 }
 0x624   : > { %7602 = vrsqrt.f32 %v3700_v30  ;;  %vm3708_vm8 = vweird.f32 %v3700_v30 }
 0x62a   : > { %v7603_v18 = vpop.eup %7602 }
 0x62b   : > { %v3703_v6 = vmul.f32 %v7603_v18, %v3700_v30  ;;  %vm3709_vm7 = vweird.f32 %v7603_v18 }
 0x62c   : > { %vm3710_vm3 = vmor %vm3708_vm8, %vm3709_vm7 }
 0x62d   : > { %v3704_v22 = vmul.f32 %v7603_v18, %v3703_v6  ;;  %v11616_v6 = vld [vmem:[%s14439_s10] ss:$0 sm:$0xff] }
 0x62f   : > { %v3705_v54 = vmul.f32 0.5, %v3704_v22 }
 0x631   : > { %v3706_v61 = vsub.f32 1.5, %v3705_v54 }
 0x633   : > { %v3707_v43 = vmul.f32 %v7603_v18, %v3706_v61 }
 0x635   : > { %v3711_v48 = vsel %vm3710_vm3, %v7603_v18, %v3707_v43 }
 0x636   : > { %v11572_v34 = vperm.slane %v3711_v48, 0 }
 0x638   : > { %v3719_v8 = vmul.f32 %v11572_v34, %v3653_v21  ;;  %v3720_v39 = vmul.f32 %v11572_v34, %v3654_v10  ;;  %v3721_v37 = vmul.f32 %v11572_v34, %v3655_v36  ;;  %v3722_v26 = vmul.f32 %v11572_v34, %v3656_v0 }
 0x639   : > { %v3725_v46 = vmul.f32 %v11572_v34, %v3659_v42  ;;  %v3726_v30 = vmul.f32 %v11572_v34, %v3660_v52  ;;  %v3727_v41 = vmul.f32 %v11572_v34, %v3661_v56  ;;  %v3728_v7 = vmul.f32 %v11572_v34, %v3662_v50  ;;  %v15510_v56 = vld [vmem:[#allocation68_spill] sm:$0xff] }
 0x63a   : > { %v3729_v24 = vmul.f32 %v11572_v34, %v3663_v63  ;;  %v3730_v38 = vmul.f32 %v11572_v34, %v3664_v60  ;;  %v3731_v18 = vmul.f32 %v11572_v34, %v3665_v20  ;;  %v3732_v45 = vmul.f32 %v11572_v34, %v3666_v51  ;;  %v15511_v63 = vld [vmem:[#allocation84_spill] sm:$0xff]  ;;  %v15512_v60 = vld [vmem:[#allocation75_spill] sm:$0xff] }
 0x63b   : > { %v3733_v22 = vmul.f32 %v11572_v34, %v3667_v59  ;;  %v3734_v54 = vmul.f32 %v11572_v34, %v3668_v4  ;;  %v3735_v3 = vmul.f32 %v11572_v34, %v3669_v40  ;;  %v3736_v61 = vmul.f32 %v11572_v34, %v3670_v14 }
 0x63c   : > { %v3737_v33 = vmul.f32 %v11572_v34, %v3671_v47  ;;  %v3738_v21 = vmul.f32 %v11572_v34, %v3672_v13  ;;  %v3739_v10 = vmul.f32 %v11572_v34, %v3673_v32  ;;  %v3740_v43 = vmul.f32 %v11572_v34, %v3674_v53 }
 0x63d   : > { %v3741_v36 = vmul.f32 %v11572_v34, %v3675_v27  ;;  %v3742_v0 = vmul.f32 %v11572_v34, %v3676_v62  ;;  %v3743_v42 = vmul.f32 %v11572_v34, %v3677_v44  ;;  %v3744_v52 = vmul.f32 %v11572_v34, %v3678_v19  ;;  %v11658_v19 = vld [vmem:[%s14440_s11] ss:$0 sm:$0xff] }
 0x63e   : > { %v3648_v50 = vsub.f32 %v15510_v56, %v11541_v25  ;;  %v3649_v48 = vsub.f32 %v15511_v63, %v11541_v25  ;;  %v3650_v20 = vsub.f32 %v15512_v60, %v11541_v25  ;;  %v3651_v51 = vsub.f32 %v10853_v1, %v11541_v25 }
 0x63f   : > { %v3652_v59 = vsub.f32 %v10864_v9, %v11541_v25  ;;  %v3713_v4 = vmul.f32 %v11572_v34, %v3647_v29  ;;  %v3754_v40 = vmul.f32 %v11616_v6, %v3719_v8  ;;  %v3755_v14 = vmul.f32 %v11616_v6, %v3720_v39 }
 0x640   : > { %v3714_v47 = vmul.f32 %v11572_v34, %v3648_v50  ;;  %v3715_v13 = vmul.f32 %v11572_v34, %v3649_v48  ;;  %v3756_v32 = vmul.f32 %v11616_v6, %v3721_v37  ;;  %v3757_v53 = vmul.f32 %v11616_v6, %v3722_v26 }
 0x641   : > { %v3760_v27 = vmul.f32 %v11616_v6, %v3725_v46  ;;  %v3761_v1 = vmul.f32 %v11616_v6, %v3726_v30  ;;  %v3762_v9 = vmul.f32 %v11616_v6, %v3727_v41  ;;  %v3763_v29 = vmul.f32 %v11616_v6, %v3728_v7 }
 0x642   : > { %v3764_v62 = vmul.f32 %v11616_v6, %v3729_v24  ;;  %v3765_v8 = vmul.f32 %v11616_v6, %v3730_v38  ;;  %v3766_v39 = vmul.f32 %v11616_v6, %v3731_v18  ;;  %v3767_v44 = vmul.f32 %v11616_v6, %v3732_v45 }
 0x643   : > { %v3768_v37 = vmul.f32 %v11616_v6, %v3733_v22  ;;  %v3769_v26 = vmul.f32 %v11616_v6, %v3734_v54  ;;  %v3770_v28 = vmul.f32 %v11616_v6, %v3735_v3  ;;  %v3771_v46 = vmul.f32 %v11616_v6, %v3736_v61 }
 0x644   : > { %v3772_v30 = vmul.f32 %v11616_v6, %v3737_v33  ;;  %v3773_v41 = vmul.f32 %v11616_v6, %v3738_v21  ;;  %v3774_v7 = vmul.f32 %v11616_v6, %v3739_v10  ;;  %v3775_v24 = vmul.f32 %v11616_v6, %v3740_v43 }
 0x645   : > { %v3776_v38 = vmul.f32 %v11616_v6, %v3741_v36  ;;  %v3777_v18 = vmul.f32 %v11616_v6, %v3742_v0  ;;  %v3778_v45 = vmul.f32 %v11616_v6, %v3743_v42  ;;  %v3779_v22 = vmul.f32 %v11616_v6, %v3744_v52 }
 0x646   : > { %v3716_v54 = vmul.f32 %v11572_v34, %v3650_v20  ;;  %v3717_v3 = vmul.f32 %v11572_v34, %v3651_v51  ;;  %v3718_v61 = vmul.f32 %v11572_v34, %v3652_v59  ;;  %v3748_v33 = vmul.f32 %v11616_v6, %v3713_v4 }
 0x647   : > { %v11677_v21 = vadd.f32 %v11658_v19, %v3754_v40  ;;  %v11680_v10 = vadd.f32 %v11658_v19, %v3755_v14  ;;  %v3749_v43 = vmul.f32 %v11616_v6, %v3714_v47  ;;  %v3750_v36 = vmul.f32 %v11616_v6, %v3715_v13 }
 0x648   : > { %v11685_v0 = vadd.f32 %v11658_v19, %v3756_v32  ;;  %v11688_v42 = vadd.f32 %v11658_v19, %v3757_v53  ;;  %v11691_v52 = vadd.f32 %v11658_v19, %v3760_v27  ;;  %v11694_v56 = vadd.f32 %v11658_v19, %v3761_v1 }
 0x649   : > { %15513 = vst [vmem:[#allocation70_spill] sm:$0xff] %v11677_v21  ;;  %v11697_v50 = vadd.f32 %v11658_v19, %v3762_v9  ;;  %v11700_v63 = vadd.f32 %v11658_v19, %v3763_v29  ;;  %v11703_v48 = vadd.f32 %v11658_v19, %v3764_v62  ;;  %v11706_v60 = vadd.f32 %v11658_v19, %v3765_v8 }
 0x64a   : > { %15514 = vst [vmem:[#allocation14_spill] sm:$0xff] %v11680_v10  ;;  %v11709_v20 = vadd.f32 %v11658_v19, %v3766_v39  ;;  %v11712_v51 = vadd.f32 %v11658_v19, %v3767_v44  ;;  %v11715_v59 = vadd.f32 %v11658_v19, %v3768_v37  ;;  %v11718_v4 = vadd.f32 %v11658_v19, %v3769_v26 }
 0x64b   : > { %15515 = vst [vmem:[#allocation16_spill] sm:$0xff] %v11685_v0  ;;  %v11721_v40 = vadd.f32 %v11658_v19, %v3770_v28  ;;  %v11724_v14 = vadd.f32 %v11658_v19, %v3771_v46  ;;  %v11727_v47 = vadd.f32 %v11658_v19, %v3772_v30  ;;  %v11730_v13 = vadd.f32 %v11658_v19, %v3773_v41 }
 0x64c   : > { %15516 = vst [vmem:[#allocation15_spill] sm:$0xff] %v11688_v42  ;;  %v11733_v32 = vadd.f32 %v11658_v19, %v3774_v7  ;;  %v11736_v53 = vadd.f32 %v11658_v19, %v3775_v24  ;;  %v11739_v27 = vadd.f32 %v11658_v19, %v3776_v38  ;;  %v11742_v1 = vadd.f32 %v11658_v19, %v3777_v18 }
 0x64d   : > { %15517 = vst [vmem:[#allocation17_spill] sm:$0xff] %v11691_v52  ;;  %v11745_v9 = vadd.f32 %v11658_v19, %v3778_v45  ;;  %v11748_v29 = vadd.f32 %v11658_v19, %v3779_v22  ;;  %v3751_v62 = vmul.f32 %v11616_v6, %v3716_v54  ;;  %v3657_v8 = vsub.f32 %v11203_v17, %v11541_v25 }
 0x64e   : > { %15518 = vst [vmem:[#allocation18_spill] sm:$0xff] %v11694_v56  ;;  %v3752_v39 = vmul.f32 %v11616_v6, %v3717_v3  ;;  %v11755_v44 = vadd.f32 %v11658_v19, %v3748_v33  ;;  %v3658_v37 = vsub.f32 %v11216_v58, %v11541_v25  ;;  %v3753_v26 = vmul.f32 %v11616_v6, %v3718_v61  ;;  %v4488_v3 = vld [vmem:[%s14441_s12 + $0x108] sm:$0xff] }
 0x64f   : > { %15519 = vst [vmem:[#allocation19_spill] sm:$0xff] %v11697_v50  ;;  %v11761_v28 = vadd.f32 %v11658_v19, %v3749_v43  ;;  %v3723_v46 = vmul.f32 %v11572_v34, %v3657_v8  ;;  %v11765_v30 = vadd.f32 %v11658_v19, %v3750_v36  ;;  %v11769_v41 = vadd.f32 %v11658_v19, %v3751_v62 }
 0x650   : > { %15520 = vst [vmem:[#allocation21_spill] sm:$0xff] %v11700_v63  ;;  %v3724_v17 = vmul.f32 %v11572_v34, %v3658_v37  ;;  %v11772_v7 = vadd.f32 %v11658_v19, %v3752_v39  ;;  %v6551_v58 = vmul.f32 -1.442695, %v11755_v44  ;;  %v11776_v25 = vadd.f32 %v11658_v19, %v3753_v26  ;;  %5951 = vmatpush.msra.mxu1 %v4488_v3 }
 0x651   : > { %15521 = vst [vmem:[#allocation22_spill] sm:$0xff] %v11703_v48  ;;  %v6552_v24 = vmul.f32 -1.442695, %v11761_v28  ;;  %v3758_v38 = vmul.f32 %v11616_v6, %v3723_v46  ;;  %v6553_v18 = vmul.f32 -1.442695, %v11765_v30 }
 0x652   : > { %15522 = vst [vmem:[#allocation102_spill] sm:$0xff] %v11706_v60  ;;  %v3759_v45 = vmul.f32 %v11616_v6, %v3724_v17  ;;  %v6554_v34 = vmul.f32 -1.442695, %v11769_v41  ;;  %v6555_v22 = vmul.f32 -1.442695, %v11772_v7  ;;  %7604 = vpow2.f32 %v6551_v58  ;;  %v4487_v6 = vld [vmem:[%s14441_s12 + $0x100] sm:$0xff] }
 0x653   : > { %15523 = vst [vmem:[#allocation20_spill] sm:$0xff] %v11709_v20  ;;  %v6556_v54 = vmul.f32 -1.442695, %v11776_v25  ;;  %7606 = vpow2.f32 %v6552_v24  ;;  %v11789_v61 = vadd.f32 %v11658_v19, %v3758_v38  ;;  %v6557_v33 = vmul.f32 -1.442695, %v11677_v21  ;;  %5952 = vmatpush.msra.mxu1 %v4487_v6 }
 0x654   : > { %15524 = vst [vmem:[#allocation60_spill] sm:$0xff] %v11712_v51  ;;  %7608 = vpow2.f32 %v6553_v18  ;;  %v11796_v43 = vadd.f32 %v11658_v19, %v3759_v45  ;;  %v6558_v36 = vmul.f32 -1.442695, %v11680_v10  ;;  %v6559_v62 = vmul.f32 -1.442695, %v11685_v0 }
 0x655   : > { %15525 = vst [vmem:[#allocation81_spill] sm:$0xff] %v11715_v59  ;;  %7610 = vpow2.f32 %v6554_v34  ;;  %v6560_v8 = vmul.f32 -1.442695, %v11688_v42  ;;  %v6561_v37 = vmul.f32 -1.442695, %v11789_v61 }
 0x656   : > { %15526 = vst [vmem:[#allocation69_spill] sm:$0xff] %v11718_v4  ;;  %7612 = vpow2.f32 %v6555_v22  ;;  %v6562_v46 = vmul.f32 -1.442695, %v11796_v43  ;;  %v6563_v17 = vmul.f32 -1.442695, %v11691_v52 }
 0x657   : > { %15527 = vst [vmem:[#allocation24_spill] sm:$0xff] %v11721_v40  ;;  %7614 = vpow2.f32 %v6556_v54  ;;  %v6564_v24 = vmul.f32 -1.442695, %v11694_v56  ;;  %v6565_v18 = vmul.f32 -1.442695, %v11697_v50 }
 0x658   : > { %15528 = vst [vmem:[#allocation64_spill] sm:$0xff] %v11724_v14  ;;  %v7605_v39 = vpop.eup %7604  ;;  %7616 = vpow2.f32 %v6557_v33  ;;  %v6566_v34 = vmul.f32 -1.442695, %v11700_v63  ;;  %v6567_v54 = vmul.f32 -1.442695, %v11703_v48 }
 0x659   : > { %15529 = vst [vmem:[#allocation51_spill] sm:$0xff] %v11727_v47  ;;  %v7607_v26 = vpop.eup %7606  ;;  %7618 = vpow2.f32 %v6558_v36  ;;  %v6568_v33 = vmul.f32 -1.442695, %v11706_v60  ;;  %v6569_v36 = vmul.f32 -1.442695, %v11709_v20 }
 0x65a   : > { %15530 = vst [vmem:[#allocation95_spill] sm:$0xff] %v11730_v13  ;;  %v7609_v19 = vpop.eup %7608  ;;  %7620 = vpow2.f32 %v6559_v62  ;;  %v6571_v16 = vmul.f32 -1.442695, %v11715_v59  ;;  %v6572_v15 = vmul.f32 -1.442695, %v11718_v4 }
 0x65b   : > { %15531 = vst [vmem:[#allocation61_spill] sm:$0xff] %v11733_v32  ;;  %v7611_v58 = vpop.eup %7610  ;;  %7622 = vpow2.f32 %v6560_v8  ;;  %v6570_v8 = vmul.f32 -1.442695, %v11712_v51  ;;  %v6573_v35 = vmul.f32 -1.442695, %v11721_v40 }
 0x65c   : > { %15532 = vst [vmem:[#allocation63_spill] sm:$0xff] %v11736_v53  ;;  %v7613_v38 = vpop.eup %7612  ;;  %7624 = vpow2.f32 %v6561_v37  ;;  %v6574_v11 = vmul.f32 -1.442695, %v11724_v14  ;;  %v6575_v55 = vmul.f32 -1.442695, %v11727_v47 }
 0x65d   : > { %15533 = vst [vmem:[#allocation79_spill] sm:$0xff] %v11739_v27  ;;  %v7615_v45 = vpop.eup %7614  ;;  %7626 = vpow2.f32 %v6562_v46  ;;  %v11838_v31 = vadd.f32 1.0, %v7613_v38  ;;  %v6582_v23 = vmul.f32 -1.442695, %v11748_v29 }
 0x65e   : > { %15534 = vst [vmem:[#allocation65_spill] sm:$0xff] %v11742_v1  ;;  %v7617_v22 = vpop.eup %7616  ;;  %7628 = vpow2.f32 %v6563_v17 }
 0x65f   : > { %15535 = vst [vmem:[#allocation62_spill] sm:$0xff] %v11745_v9  ;;  %v7619_v3 = vpop.eup %7618  ;;  %7630 = vpow2.f32 %v6564_v24  ;;  %v11845_v5 = vadd.f32 1.0, %v7617_v22 }
 0x660   : > { %15536 = vst [vmem:[#allocation25_spill] sm:$0xff] %v11748_v29  ;;  %v7621_v6 = vpop.eup %7620  ;;  %7632 = vpow2.f32 %v6565_v18 }
 0x661   : > { %15537 = vst [vmem:[#allocation55_spill] sm:$0xff] %v11789_v61  ;;  %v7623_v62 = vpop.eup %7622  ;;  %7634 = vpow2.f32 %v6566_v34  ;;  %v11852_v49 = vadd.f32 1.0, %v7621_v6 }
 0x662   : > { %15538 = vst [vmem:[#allocation83_spill] sm:$0xff] %v11796_v43  ;;  %v7625_v37 = vpop.eup %7624  ;;  %7636 = vpow2.f32 %v6567_v54  ;;  %v11818_v54 = vadd.f32 1.0, %v7605_v39  ;;  %v11869_v38 = vadd.f32 1.0, %v7623_v62 }
 0x663   : > { %v7627_v46 = vpop.eup %7626  ;;  %7638 = vpow2.f32 %v6568_v33  ;;  %v11822_v33 = vadd.f32 1.0, %v7607_v26  ;;  %v6579_v26 = vmul.f32 -1.442695, %v11739_v27 }
 0x664   : > { %v7629_v17 = vpop.eup %7628  ;;  %7640 = vpow2.f32 %v6569_v36  ;;  %v6576_v36 = vmul.f32 -1.442695, %v11730_v13  ;;  %15540 = vst [vmem:[#allocation66_spill] sm:$0xff] %v11869_v38  ;;  %v11879_v6 = vadd.f32 1.0, %v7627_v46  ;;  %vm3948_vm5 = vweird.f32 %v11818_v54 }
 0x665   : > { %v7631_v24 = vpop.eup %7630  ;;  %7642 = vpow2.f32 %v6570_v8  ;;  %v11827_v8 = vadd.f32 1.0, %v7609_v19  ;;  %v6580_v19 = vmul.f32 -1.442695, %v11742_v1  ;;  %v11862_v1 = vadd.f32 1.0, %v7619_v3 }
 0x666   : > { %v7633_v18 = vpop.eup %7632  ;;  %7644 = vpow2.f32 %v6571_v16  ;;  %v6577_v16 = vmul.f32 -1.442695, %v11733_v32  ;;  %v11873_v22 = vadd.f32 1.0, %v7629_v17  ;;  %15541 = vst [vmem:[#allocation56_spill] sm:$0xff] %v11879_v6  ;;  %v11885_v29 = vadd.f32 1.0, %v7631_v24 }
 0x667   : > { %v11816_v34 = vpop.eup %7634  ;;  %7646 = vpow2.f32 %v6572_v15  ;;  %v11832_v15 = vadd.f32 1.0, %v7611_v58  ;;  %v11850_v58 = vadd.f32 1.0, %v7615_v45  ;;  %15539 = vst [vmem:[#allocation57_spill] sm:$0xff] %v11862_v1  ;;  %v11864_v45 = vadd.f32 1.0, %v7625_v37 }
 0x668   : > { %v11820_v2 = vpop.eup %7636  ;;  %7648 = vpow2.f32 %v6573_v35  ;;  %v6578_v35 = vmul.f32 -1.442695, %v11736_v53  ;;  %15542 = vst [vmem:[#allocation73_spill] sm:$0xff] %v11885_v29  ;;  %v11892_v3 = vadd.f32 1.0, %v7633_v18  ;;  %v3952_v17 = vand.u32 2147483647, %v11818_v54 }
 0x669   : > { %v11824_v57 = vpop.eup %7638  ;;  %7650 = vpow2.f32 %v6574_v11  ;;  %v11909_v14 = vadd.f32 1.0, %v11816_v34  ;;  %v3969_v24 = vand.u32 2147483648, %v11822_v33  ;;  %vm3963_vm9 = vweird.f32 %v11822_v33 }
 0x66a   : > { %v11829_v12 = vpop.eup %7640  ;;  %7652 = vpow2.f32 %v6575_v55  ;;  %vm3953_vm0 = vcmp.eq.f32.partialorder %v3952_v17, 8.507059e+37  ;;  %v11932_v42 = vadd.f32 1.0, %v11820_v2  ;;  %vm3978_vm12 = vweird.f32 %v11827_v8 }
 0x66b   : > { %v11834_v39 = vpop.eup %7642  ;;  %7654 = vrcp.f32 %v11818_v54  ;;  %15543 = vst [vmem:[#allocation48_spill] sm:$0xff] %v11909_v14  ;;  %v3970_v17 = vor.u32 1.1754944e-38, %v3969_v24  ;;  %v11945_v2 = vadd.f32 1.0, %v11829_v12  ;;  %v11950_v24 = vadd.f32 1.0, %v11824_v57 }
 0x66c   : > { %v11841_v11 = vpop.eup %7644  ;;  %7656 = vrcp.f32 %v11822_v33  ;;  %vm3993_vm7 = vweird.f32 %v11832_v15 }
 0x66d   : > { %v11848_v55 = vpop.eup %7646  ;;  %7658 = vpow2.f32 %v6576_v36  ;;  %15545 = vst [vmem:[#allocation77_spill] sm:$0xff] %v11950_v24  ;;  %v11967_v57 = vadd.f32 1.0, %v11841_v11 }
 0x66e   : > { %v11855_v9 = vpop.eup %7648  ;;  %7660 = vpow2.f32 %v6577_v16 }
 0x66f   : > { %v11860_v53 = vpop.eup %7650  ;;  %7662 = vpow2.f32 %v6578_v35 }
 0x670   : > { %v11867_v36 = vpop.eup %7652  ;;  %7664 = vpow2.f32 %v6579_v26 }
 0x671   : > { %v7655_v13 = vpop.eup %7654  ;;  %7666 = vpow2.f32 %v6580_v19  ;;  %v3954_v19 = vand.u32 2147483648, %v11818_v54 }
 0x672   : > { %v11877_v35 = vpop.eup %7656  ;;  %7668 = vpow2.f32 %v6582_v23  ;;  %v3944_v26 = vmul.f32 %v7655_v13, %v11818_v54  ;;  %vm3949_vm4 = vweird.f32 %v7655_v13 }
 0x673   : > { %v11883_v16 = vpop.eup %7658  ;;  %7670 = vrcp.f32 %v11827_v8  ;;  %v3959_v46 = vmul.f32 %v11877_v35, %v11822_v33  ;;  %vm3964_vm6 = vweird.f32 %v11877_v35  ;;  %vm3950_vm1 = vmor %vm3948_vm5, %vm3949_vm4  ;;  %v3955_v54 = vor.u32 1.1754944e-38, %v3954_v19 }
 0x674   : > { %v11890_v37 = vpop.eup %7660  ;;  %7672 = vrcp.f32 %v11832_v15  ;;  %v3945_v23 = vsub.f32 1.0, %v3944_v26  ;;  %vm3965_vm11 = vmor %vm3963_vm9, %vm3964_vm6  ;;  %vm4008_vm5 = vweird.f32 %v11838_v31 }
 0x675   : > { %v11897_v62 = vpop.eup %7662  ;;  %7674 = vrcp.f32 %v11838_v31  ;;  %v3960_v26 = vsub.f32 1.0, %v3959_v46 }
 0x676   : > { %v11903_v51 = vpop.eup %7664  ;;  %7676 = vrcp.f32 %v11850_v58  ;;  %v3946_v18 = vmul.f32 %v7655_v13, %v3945_v23  ;;  %v3967_v23 = vand.u32 2147483647, %v11822_v33  ;;  %v11988_v33 = vadd.f32 1.0, %v11867_v36 }
 0x677   : > { %v11906_v4 = vpop.eup %7666  ;;  %7678 = vrcp.f32 %v11845_v5  ;;  %v3961_v60 = vmul.f32 %v11877_v35, %v3960_v26 }
 0x678   : > { %v11914_v56 = vpop.eup %7668  ;;  %v3947_v63 = vadd.f32 %v7655_v13, %v3946_v18  ;;  %7680 = vrcp.f32 %v11862_v1  ;;  %vm3968_vm10 = vcmp.eq.f32.partialorder %v3967_v23, 8.507059e+37  ;;  %v15564_v1 = vand.u32 2147483648, %v11838_v31 }
 0x679   : > { %15544 = vst [vmem:[#allocation23_spill] sm:$0xff] %v11914_v56  ;;  %v11919_v46 = vpop.eup %7670  ;;  %7682 = vrcp.f32 %v11852_v49  ;;  %v3962_v26 = vadd.f32 %v11877_v35, %v3961_v60 }
 0x67a   : > { %v11924_v10 = vpop.eup %7672  ;;  %v3951_v18 = vsel %vm3950_vm1, %v7655_v13, %v3947_v63  ;;  %7684 = vrcp.f32 %v11869_v38  ;;  %vm3979_vm13 = vweird.f32 %v11919_v46  ;;  %v12075_v43 = vor.u32 1.1754944e-38, %v15564_v1 }
 0x67b   : > { %v11929_v56 = vpop.eup %7674  ;;  %v3956_v34 = vsel %vm3953_vm0, %v3955_v54, %v3951_v18  ;;  %7686 = vrcp.f32 %v11864_v45  ;;  %v3966_v63 = vsel %vm3965_vm11, %v11877_v35, %v3962_v26  ;;  %v11985_v18 = vadd.f32 1.0, %v11848_v55  ;;  %vm3980_vm1 = vmor %vm3978_vm12, %vm3979_vm13 }
 0x67c   : > { %v11937_v19 = vpop.eup %7676  ;;  %v4423_v60 = vmul.f32 %v3956_v34, %v11755_v44  ;;  %7688 = vrcp.f32 %v11879_v6  ;;  %v3971_v54 = vsel %vm3968_vm10, %v3970_v17, %v3966_v63  ;;  %v11959_v34 = vadd.f32 1.0, %v11834_v39 }
 0x67d   : > { %v11942_v13 = vpop.eup %7678  ;;  %7690 = vrcp.f32 %v11873_v22  ;;  %v11954_v35 = vmul.f32 %v3971_v54, %v11761_v28  ;;  %v11977_v63 = vadd.f32 1.0, %v11855_v9  ;;  %15551 = vst [vmem:[#allocation52_spill] sm:$0xff] %v11985_v18  ;;  %v12035_v55 = vadd.f32 1.0, %v11906_v4 }
 0x67e   : > { %v4524_v23 = vrot.slane %v4423_v60, 7  ;;  %v11956_v44 = vpop.eup %7680  ;;  %15548 = vst [vmem:[#allocation88_spill] sm:$0xff] %v11959_v34  ;;  %7692 = vrcp.f32 %v11885_v29  ;;  %v11999_v60 = vadd.f32 1.0, %v11890_v37  ;;  %v12008_v29 = vadd.f32 1.0, %v11860_v53 }
 0x67f   : > { %15546 = vst [vmem:[#allocation96_spill] sm:$0xff] %v11954_v35  ;;  %v11964_v26 = vpop.eup %7682  ;;  %7694 = vrcp.f32 %v11892_v3  ;;  %v14656_v28 = vrot.slane %v11954_v35, 7  ;;  %v12027_v53 = vadd.f32 1.0, %v11897_v62  ;;  %v3974_v4 = vmul.f32 %v11919_v46, %v11827_v8 }
 0x680   : > { %15547 = vst [vmem:[#allocation94_spill] sm:$0xff] %v11956_v44  ;;  %v11972_v17 = vsel %vm14718_vm2, 0.0, %v4524_v23  ;;  %v11974_v39 = vpop.eup %7684  ;;  %7696 = vrcp.f32 %v11909_v14  ;;  %v12018_v14 = vadd.f32 1.0, %v11883_v16  ;;  %v4344_v62 = vand.u32 2147483648, %v11999_v60 }
 0x681   : > { %15549 = vst [vmem:[#allocation49_spill] sm:$0xff] %v11972_v17  ;;  %v11982_v11 = vpop.eup %7686  ;;  %7698 = vrcp.f32 %v11932_v42  ;;  %v11994_v9 = vsel %vm14718_vm2, %v4524_v23, %v14656_v28  ;;  %v12011_v23 = vadd.f32 1.0, %v11903_v51  ;;  %v3989_v37 = vmul.f32 %v11924_v10, %v11832_v15 }
 0x682   : > { %15550 = vst [vmem:[#allocation76_spill] sm:$0xff] %v11974_v39  ;;  %v11996_v12 = vpop.eup %7688  ;;  %7700 = vrcp.f32 %v11950_v24  ;;  %v7008_v36 = vpack.i.bf16 %v11994_v9, %v11972_v17  ;;  %v15561_v24 = vand.u32 2147483648, %v11827_v8  ;;  %vm3994_vm14 = vweird.f32 %v11924_v10 }
 0x683   : > { %15552 = vst [vmem:[#allocation92_spill] sm:$0xff] %v11994_v9  ;;  %v12005_v54 = vpop.eup %7690  ;;  %7702 = vrcp.f32 %v11945_v2  ;;  %v15562_v16 = vand.u32 2147483648, %v11832_v15  ;;  %v12079_v27 = vmul.f32 %v11942_v13, %v11845_v5  ;;  %vm4009_vm8 = vweird.f32 %v11929_v56  ;;  %vm3995_vm0 = vmor %vm3993_vm7, %vm3994_vm14 }
 0x684   : > { %15553 = vst [vmem:[#allocation59_spill] sm:$0xff] %v11996_v12  ;;  %v12015_v28 = vpop.eup %7692  ;;  %7704 = vrcp.f32 %v11959_v34  ;;  %7009 = vrot.lane.b32.xlu2 %v7008_v36, %s7839_s0  ;;  %v12054_v36 = vor.u32 1.1754944e-38, %v15561_v24  ;;  %v4004_v24 = vmul.f32 %v11929_v56, %v11838_v31  ;;  %v12091_v47 = vmul.f32 %v11964_v26, %v11852_v49  ;;  %vm4010_vm9 = vmor %vm4008_vm5, %vm4009_vm8 }
 0x685   : > { %15554 = vst [vmem:[#allocation26_spill] sm:$0xff] %v12008_v29  ;;  %v12024_v51 = vpop.eup %7694  ;;  %7706 = vrcp.f32 %v11967_v57  ;;  %v15567_v1 = vand.u32 2147483648, %v11852_v49  ;;  %v3990_v12 = vsub.f32 1.0, %v3989_v37  ;;  %vm4039_vm11 = vweird.f32 %v11942_v13 }
 0x686   : > { %15555 = vst [vmem:[#allocation54_spill] sm:$0xff] %v12015_v28  ;;  %v12032_v28 = vpop.eup %7696  ;;  %7708 = vrcp.f32 %v11985_v18  ;;  %v12134_v50 = vmul.f32 %v12024_v51, %v11892_v3  ;;  %vm4024_vm10 = vweird.f32 %v11937_v19  ;;  %vm4069_vm13 = vweird.f32 %v11964_v26 }
 0x687   : > { %15556 = vst [vmem:[#allocation99_spill] sm:$0xff] %v12018_v14  ;;  %v12040_v34 = vpop.eup %7698  ;;  %7710 = vrcp.f32 %v11977_v63  ;;  %v12095_v40 = vor.u32 1.1754944e-38, %v15567_v1  ;;  %v12114_v1 = vmul.f32 %v11982_v11, %v11864_v45  ;;  %vm4038_vm12 = vweird.f32 %v11845_v5 }
 0x688   : > { %15557 = vst [vmem:[#allocation85_spill] sm:$0xff] %v12027_v53  ;;  %7712 = vrcp.f32 %v11988_v33  ;;  %v12144_v21 = vmul.f32 %v12040_v34, %v11932_v42  ;;  %vm4099_vm14 = vweird.f32 %v11982_v11  ;;  %vm4068_vm7 = vweird.f32 %v11852_v49  ;;  %vm12332_vm8 = vmor %vm4038_vm12, %vm4039_vm11 }
 0x689   : > { %15558 = vst [vmem:[#allocation89_spill] sm:$0xff] %v12032_v28  ;;  %v12046_v28 = vpop.eup %7700  ;;  %7714 = vrcp.f32 %v11999_v60  ;;  %vm4158_vm5 = vweird.f32 %v11892_v3  ;;  %vm12353_vm11 = vmor %vm4068_vm7, %vm4069_vm13 }
 0x68a   : > { %15559 = vst [vmem:[#allocation104_spill] sm:$0xff] %v12035_v55  ;;  %v12056_v18 = vpop.eup %7702  ;;  %7716 = vrcp.f32 %v12011_v23 }
 0x68b   : > { %15560 = vst [vmem:[#allocation53_spill] sm:$0xff] %v12046_v28  ;;  %v12065_v28 = vor.u32 1.1754944e-38, %v15562_v16  ;;  %v12067_v44 = vpop.eup %7704  ;;  %7718 = vrcp.f32 %v12008_v29  ;;  %v15565_v16 = vand.u32 2147483648, %v11845_v5  ;;  %v15570_v29 = vand.u32 2147483647, %v11827_v8 }
 0x68c   : > { %15563 = vst [vmem:[#allocation67_spill] sm:$0xff] %v12067_v44  ;;  %v12081_v32 = vpop.eup %7706  ;;  %7720 = vrcp.f32 %v12018_v14 }
 0x68d   : > { %v12087_v44 = vor.u32 1.1754944e-38, %v15565_v16  ;;  %15568 = vst [vmem:[#allocation97_spill] sm:$0xff] %v12095_v40  ;;  %v12097_v59 = vpop.eup %7708  ;;  %vm12102_vm3 = vcmp.eq.f32.partialorder %v15570_v29, 8.507059e+37  ;;  %v15573_v16 = vand.u32 2147483647, %v11832_v15  ;;  %v12122_v29 = vmul.f32 %v12005_v54, %v11873_v22 }
 0x68e   : > { %15569 = vst [vmem:[#allocation71_spill] sm:$0xff] %v12097_v59  ;;  %v15576_v59 = vand.u32 2147483648, %v11864_v45  ;;  %v12124_v14 = vpop.eup %7710  ;;  %7722 = vrcp.f32 %v12027_v53  ;;  %v15582_v53 = vand.u32 2147483648, %v11932_v42  ;;  %v15587_v40 = vand.u32 2147483648, %v11945_v2 }
 0x68f   : > { %15566 = vst [vmem:[#allocation86_spill] sm:$0xff] %v12087_v44  ;;  %vm12108_vm4 = vcmp.eq.f32.partialorder %v15573_v16, 8.507059e+37  ;;  %v15578_v16 = vand.u32 2147483648, %v11873_v22  ;;  %v12140_v0 = vpop.eup %7712  ;;  %7724 = vrcp.f32 %v12035_v55  ;;  %v12171_v55 = vmul.f32 %v12081_v32, %v11967_v57 }
 0x690   : > { %v12118_v20 = vor.u32 1.1754944e-38, %v15576_v59  ;;  %v15580_v59 = vand.u32 2147483648, %v11892_v3  ;;  %v12148_v61 = vor.u32 1.1754944e-38, %v15582_v53  ;;  %v12150_v6 = vpop.eup %7714  ;;  %v12165_v53 = vor.u32 1.1754944e-38, %v15587_v40 }
 0x691   : > { %v12130_v48 = vor.u32 1.1754944e-38, %v15578_v16  ;;  %v3975_v16 = vsub.f32 1.0, %v3974_v4  ;;  %v4005_v4 = vsub.f32 1.0, %v4004_v24  ;;  %v12167_v37 = vpop.eup %7716  ;;  %v12183_v40 = vmul.f32 %v12124_v14, %v11977_v63 }
 0x692   : > { %15577 = vst [vmem:[#allocation50_spill] sm:$0xff] %v12118_v20  ;;  %v12138_v52 = vor.u32 1.1754944e-38, %v15580_v59  ;;  %v3991_v20 = vmul.f32 %v11924_v10, %v3990_v12  ;;  %v12179_v9 = vpop.eup %7718  ;;  %v15592_v24 = vand.u32 2147483648, %v11977_v63  ;;  %v12191_v17 = vmul.f32 %v12140_v0, %v11988_v33 }
 0x693   : > { %15579 = vst [vmem:[#allocation100_spill] sm:$0xff] %v12130_v48  ;;  %v15584_v48 = vand.u32 2147483647, %v11838_v31  ;;  %v3976_v44 = vmul.f32 %v11919_v46, %v3975_v16  ;;  %v12197_v16 = vpop.eup %7720  ;;  %v12201_v12 = vmul.f32 %v12150_v6, %v11999_v60 }
 0x694   : > { %15581 = vst [vmem:[#allocation27_spill] sm:$0xff] %v12138_v52  ;;  %v12161_v52 = vmul.f32 %v12056_v18, %v11945_v2 }
 0x695   : > { %15583 = vst [vmem:[#allocation28_spill] sm:$0xff] %v12148_v61  ;;  %vm12155_vm6 = vcmp.eq.f32.partialorder %v15584_v48, 8.507059e+37  ;;  %v15589_v48 = vand.u32 2147483648, %v11967_v57  ;;  %v3977_v35 = vadd.f32 %v11919_v46, %v3976_v44  ;;  %v4006_v44 = vmul.f32 %v11929_v56, %v4005_v4 }
 0x696   : > { %15588 = vst [vmem:[#allocation58_spill] sm:$0xff] %v12165_v53  ;;  %v12187_v53 = vor.u32 1.1754944e-38, %v15592_v24  ;;  %v3992_v24 = vadd.f32 %v11924_v10, %v3991_v20  ;;  %v4095_v4 = vsub.f32 1.0, %v12114_v1  ;;  %v4185_v1 = vsub.f32 1.0, %v12144_v21 }
 0x697   : > { %v12175_v61 = vor.u32 1.1754944e-38, %v15589_v48  ;;  %15591 = vst [vmem:[#allocation30_spill] sm:$0xff] %v12179_v9  ;;  %v15594_v48 = vand.u32 2147483648, %v11988_v33  ;;  %v12203_v9 = vor.u32 1.1754944e-38, %v4344_v62  ;;  %v3981_v20 = vsel %vm3980_vm1, %v11919_v46, %v3977_v35 }
 0x698   : > { %15593 = vst [vmem:[#allocation31_spill] sm:$0xff] %v12187_v53  ;;  %v12211_v53 = vpop.eup %7722  ;;  %v3996_v62 = vsel %vm3995_vm0, %v11924_v10, %v3992_v24  ;;  %v3986_v15 = vsel %vm12102_vm3, %v12054_v36, %v3981_v20  ;;  %v4007_v46 = vadd.f32 %v11929_v56, %v4006_v44  ;;  %v4125_v35 = vsub.f32 1.0, %v12122_v29 }
 0x699   : > { %15590 = vst [vmem:[#allocation29_spill] sm:$0xff] %v12175_v61  ;;  %v12195_v61 = vor.u32 1.1754944e-38, %v15594_v48  ;;  %v12215_v48 = vmul.f32 %v12167_v37, %v12011_v23  ;;  %v4001_v8 = vsel %vm12108_vm4, %v12065_v28, %v3996_v62  ;;  %v4425_v10 = vmul.f32 %v3986_v15, %v11765_v30 }
 0x69a   : > { %15596 = vst [vmem:[#allocation33_spill] sm:$0xff] %v12197_v16  ;;  %v15599_v16 = vand.u32 2147483648, %v12011_v23  ;;  %v4011_v38 = vsel %vm4010_vm9, %v11929_v56, %v4007_v46  ;;  %v4027_v28 = vand.u32 2147483647, %v11850_v58  ;;  %v4029_v30 = vand.u32 2147483648, %v11850_v58 }
 0x69b   : > { %15595 = vst [vmem:[#allocation32_spill] sm:$0xff] %v12195_v61  ;;  %v4016_v31 = vsel %vm12155_vm6, %v12075_v43, %v4011_v38  ;;  %v4155_v56 = vsub.f32 1.0, %v12134_v50  ;;  %v4215_v29 = vsub.f32 1.0, %v12161_v52  ;;  %vm4023_vm3 = vweird.f32 %v11850_v58 }
 0x69c   : > { %15597 = vst [vmem:[#allocation34_spill] sm:$0xff] %v12203_v9  ;;  %v12219_v61 = vor.u32 1.1754944e-38, %v15599_v16  ;;  %v4019_v9 = vmul.f32 %v11937_v19, %v11850_v58  ;;  %v12232_v16 = vpop.eup %7724  ;;  %v4427_v24 = vmul.f32 %v4016_v31, %v11772_v7  ;;  %vm4098_vm4 = vweird.f32 %v11864_v45  ;;  %vm4025_vm6 = vmor %vm4023_vm3, %vm4024_vm10 }
 0x69d   : > { %15598 = vst [vmem:[#allocation35_spill] sm:$0xff] %v12211_v53  ;;  %v4065_v53 = vsub.f32 1.0, %v12091_v47  ;;  %v4426_v47 = vmul.f32 %v4001_v8, %v11769_v41  ;;  %v4527_v41 = vrot.slane %v4425_v10, 7  ;;  %v4030_v50 = vor.u32 1.1754944e-38, %v4029_v30  ;;  %vm12373_vm13 = vmor %vm4098_vm4, %vm4099_vm14 }
 0x69e   : > { %15600 = vst [vmem:[#allocation36_spill] sm:$0xff] %v12232_v16  ;;  %v4020_v39 = vsub.f32 1.0, %v4019_v9  ;;  %v4530_v7 = vrot.slane %v4427_v24, 7  ;;  %vm4128_vm1 = vweird.f32 %v11873_v22  ;;  %v4245_v44 = vsub.f32 1.0, %v12171_v55 }
 0x69f   : > { %v4528_v36 = vrot.slane %v4426_v47, 7  ;;  %v12271_v59 = vsel %vm14718_vm2, 0.0, %v4527_v41  ;;  %v4275_v58 = vsub.f32 1.0, %v12183_v40  ;;  %vm4028_vm9 = vcmp.eq.f32.partialorder %v4027_v28, 8.507059e+37 }
 0x6a0   : > { %v4021_v9 = vmul.f32 %v11937_v19, %v4020_v39  ;;  %15601 = vst [vmem:[#allocation37_spill] sm:$0xff] %v12271_v59  ;;  %v4761_v21 = vrot.slane %v12271_v59, 2  ;;  %v4305_v15 = vsub.f32 1.0, %v12191_v17  ;;  %v4335_v46 = vsub.f32 1.0, %v12201_v12 }
 0x6a1   : > { %v12268_v43 = vsel %vm14718_vm2, %v4527_v41, %v4528_v36  ;;  %v12302_v40 = vsel %vm14718_vm2, 0.0, %v4530_v7  ;;  %v15604_v47 = vsub.f32 1.0, %v12079_v27  ;;  %v4066_v12 = vmul.f32 %v11964_v26, %v4065_v53 }
 0x6a2   : > { %v4022_v8 = vadd.f32 %v11937_v19, %v4021_v9  ;;  %v14709_v52 = vrot.slane %v12268_v43, 2  ;;  %v4096_v39 = vmul.f32 %v11982_v11, %v4095_v4  ;;  %v12312_v38 = vsel %vm14718_vm2, %v4528_v36, 0.0 }
 0x6a3   : > { %v4036_v17 = vmul.f32 %v11942_v13, %v15604_v47  ;;  %v4687_v28 = vrot.slane %v12268_v43, 1  ;;  %v4689_v30 = vrot.slane %v12312_v38, 1  ;;  %v4691_v53 = vrot.slane %v12302_v40, 1 }
 0x6a4   : > { %v4026_v20 = vsel %vm4025_vm6, %v11937_v19, %v4022_v8  ;;  %v12291_v62 = vsel %vm14708_vm15, %v4761_v21, %v14709_v52  ;;  %vm15603_vm6 = vcmask 261120   ;;  %v4365_v19 = vsub.f32 1.0, %v12215_v48 }
 0x6a5   : > { %15602 = vst [vmem:[#allocation38_spill] sm:$0xff] %v12291_v62  ;;  %v4031_v10 = vsel %vm4028_vm9, %v4030_v50, %v4026_v20  ;;  %6583 = vmatmul.msk.f32.vlgmr.msra.gmra.mxu1 %vm15603_vm6, %v12291_v62  ;;  %v4126_v48 = vmul.f32 %v12005_v54, %v4125_v35  ;;  %v4156_v4 = vmul.f32 %v12024_v51, %v4155_v56  ;;  %vm15607_vm9 = vcmask 1046528  }
 0x6a6   : > { %v4428_v55 = vmul.f32 %v4031_v10, %v11776_v25  ;;  %v4686_v25 = vrot.slane %v12271_v59, 1  ;;  %v4186_v41 = vmul.f32 %v12040_v34, %v4185_v1  ;;  %v4216_v36 = vmul.f32 %v12056_v18, %v4215_v29  ;;  %vm15609_vm3 = vmmov %vm15607_vm9  ;;  %v15700_v29 = vld [vmem:[#allocation50_spill] sm:$0xff] }
 0x6a7   : > { %v12346_v1 = vsel %vm15609_vm3, %v4687_v28, %v4689_v30  ;;  %v4246_v21 = vmul.f32 %v12081_v32, %v4245_v44  ;;  %v4276_v44 = vmul.f32 %v12124_v14, %v4275_v58  ;;  %v4336_v47 = vmul.f32 %v12150_v6, %v4335_v46 }
 0x6a8   : > { %v4531_v27 = vrot.slane %v4428_v55, 7  ;;  %v12343_v56 = vsel %vm15607_vm9, %v4686_v25, %v4687_v28  ;;  %15610 = vst [vmem:[#allocation40_spill] sm:$0xff] %v12346_v1  ;;  %v4306_v55 = vmul.f32 %v12140_v0, %v4305_v15  ;;  %v4366_v25 = vmul.f32 %v12167_v37, %v4365_v19 }
 0x6a9   : > { %15608 = vst [vmem:[#allocation39_spill] sm:$0xff] %v12343_v56  ;;  %v7018_v50 = vpack.i.bf16 %v12346_v1, %v12343_v56  ;;  %v15619_v28 = vmov 0  ;;  %v15622_v30 = vmov 0  ;;  %v15624_v58 = vand.u32 2147483647, %v11873_v22 }
 0x6aa   : > { %v12337_v31 = vsel %vm14718_vm2, %v4530_v7, %v4531_v27  ;;  %v12340_v9 = vsel %vm14718_vm2, %v4531_v27, 0.0  ;;  %v15613_v7 = vand.u32 2147483647, %v11864_v45  ;;  %v15618_v27 = vand.u32 2147483647, %v11845_v5 }
 0x6ab   : > { %v4692_v24 = vrot.slane %v12337_v31, 1  ;;  %v4694_v8 = vrot.slane %v12340_v9, 1  ;;  %v15621_v45 = vand.u32 2147483647, %v11852_v49  ;;  %vm12395_vm4 = vcmp.eq.f32.partialorder %v15624_v58, 8.507059e+37  ;;  %7019 = vrot.lane.b32.xlu0 %v7018_v50, %s7835_s13  ;;  %v15646_v58 = vld [vmem:[#allocation96_spill] sm:$0xff] }
 0x6ac   : > { %vm12365_vm3 = vcmp.eq.f32.partialorder %v15613_v7, 8.507059e+37  ;;  %vm12383_vm7 = vcmp.eq.f32.partialorder %v15618_v27, 8.507059e+37  ;;  %v15625_v15 = vmov 0  ;;  %vm15627_vm9 = vweird.f32 %v12005_v54 }
 0x6ad   : > { %v15620_v28 = vsel %vm12383_vm7, 4294967295, %v15619_v28  ;;  %vm12389_vm14 = vcmp.eq.f32.partialorder %v15621_v45, 8.507059e+37  ;;  %v15626_v15 = vsel %vm12395_vm4, 4294967295, %v15625_v15  ;;  %vm12403_vm12 = vmor %vm4128_vm1, %vm15627_vm9  ;;  %vm15630_vm6 = vcmask 1046528  }
 0x6ae   : > { %v15623_v30 = vsel %vm12389_vm14, 4294967295, %v15622_v30  ;;  %v12408_v49 = vsel %vm15630_vm6, %v4691_v53, %v4692_v24  ;;  %vm15632_vm15 = vmmov %vm15630_vm6  ;;  %v4037_v19 = vadd.f32 %v11942_v13, %v4036_v17  ;;  %v4067_v7 = vadd.f32 %v11964_v26, %v4066_v12  ;;  %v15712_v17 = vld [vmem:[#allocation58_spill] sm:$0xff] }
 0x6af   : > { %15631 = vst [vmem:[#allocation41_spill] sm:$0xff] %v12408_v49  ;;  %v12411_v46 = vsel %vm15632_vm15, %v4692_v24, %v4694_v8  ;;  %v15634_v27 = vand.u32 2147483647, %v11892_v3  ;;  %v15635_v22 = vmov 0  ;;  %v15637_v45 = vand.u32 2147483647, %v11932_v42 }
 0x6b0   : > { %15633 = vst [vmem:[#allocation42_spill] sm:$0xff] %v12411_v46  ;;  %v15638_v53 = vmov 0  ;;  %v15640_v24 = vand.u32 2147483647, %v11945_v2  ;;  %v15641_v8 = vmov 0  ;;  %vm15643_vm6 = vweird.f32 %v12024_v51 }
 0x6b1   : > { %vm12418_vm10 = vcmp.eq.f32.partialorder %v15634_v27, 8.507059e+37  ;;  %vm12424_vm1 = vcmp.eq.f32.partialorder %v15637_v45, 8.507059e+37  ;;  %vm12438_vm9 = vmor %vm4158_vm5, %vm15643_vm6  ;;  %v7023_v12 = vpack.i.bf16 %v12411_v46, %v12408_v49  ;;  %v4097_v50 = vadd.f32 %v11982_v11, %v4096_v39  ;;  %v15706_v49 = vld [vmem:[#allocation100_spill] sm:$0xff] }
 0x6b2   : > { %v15636_v22 = vsel %vm12418_vm10, 4294967295, %v15635_v22  ;;  %v15639_v53 = vsel %vm12424_vm1, 4294967295, %v15638_v53  ;;  %vm12430_vm15 = vcmp.eq.f32.partialorder %v15640_v24, 8.507059e+37  ;;  %v15647_v27 = vrot.slane %v15646_v58, 7  ;;  %v15649_v24 = vld [vmem:[#allocation49_spill] sm:$0xff] }
 0x6b3   : > { %v15642_v8 = vsel %vm12430_vm15, 4294967295, %v15641_v8  ;;  %v4681_v52 = vrot.slane %v15649_v24, 1  ;;  %v15650_v1 = vand.u32 2147483647, %v11967_v57  ;;  %v15651_v3 = vmov 0  ;;  %7024 = vrot.lane.b32.xlu1 %v7023_v12, %s7835_s13 }
 0x6b4   : > { %v12448_v45 = vsel %vm14718_vm2, %v15647_v27, 0.0  ;;  %vm15653_vm5 = vweird.f32 %v12040_v34  ;;  %vm15654_vm6 = vweird.f32 %v11932_v42  ;;  %v4127_v39 = vadd.f32 %v12005_v54, %v4126_v48  ;;  %v15657_v27 = vld [vmem:[#allocation92_spill] sm:$0xff] }
 0x6b5   : > { %15648 = vst [vmem:[#allocation43_spill] sm:$0xff] %v12448_v45  ;;  %vm12453_vm0 = vcmp.eq.f32.partialorder %v15650_v1, 8.507059e+37  ;;  %vm12461_vm15 = vmor %vm15654_vm6, %vm15653_vm5  ;;  %v4157_v58 = vadd.f32 %v12024_v51, %v4156_v4  ;;  %v4682_v46 = vrot.slane %v15657_v27, 1  ;;  %v4684_v56 = vrot.slane %v12448_v45, 1 }
 0x6b6   : > { %v15652_v3 = vsel %vm12453_vm0, 4294967295, %v15651_v3  ;;  %v15658_v1 = vand.u32 2147483647, %v11977_v63  ;;  %v15659_v59 = vmov 0  ;;  %v15661_v42 = vand.u32 2147483647, %v11988_v33 }
 0x6b7   : > { %v15662_v62 = vmov 0  ;;  %v15664_v48 = vand.u32 2147483647, %v11999_v60  ;;  %v15665_v4 = vmov 0  ;;  %vm15667_vm0 = vweird.f32 %v12056_v18 }
 0x6b8   : > { %vm12471_vm2 = vcmp.eq.f32.partialorder %v15658_v1, 8.507059e+37  ;;  %vm12477_vm5 = vcmp.eq.f32.partialorder %v15661_v42, 8.507059e+37  ;;  %vm15668_vm1 = vweird.f32 %v11945_v2  ;;  %v4187_v42 = vadd.f32 %v12040_v34, %v4186_v41  ;;  %v15719_v1 = vld [vmem:[#allocation31_spill] sm:$0xff] }
 0x6b9   : > { %v15660_v59 = vsel %vm12471_vm2, 4294967295, %v15659_v59  ;;  %v15663_v62 = vsel %vm12477_vm5, 4294967295, %v15662_v62  ;;  %vm12483_vm6 = vcmp.eq.f32.partialorder %v15664_v48, 8.507059e+37  ;;  %vm12491_vm10 = vmor %vm15668_vm1, %vm15667_vm0  ;;  %v4217_v45 = vadd.f32 %v12056_v18, %v4216_v36 }
 0x6ba   : > { %v15666_v4 = vsel %vm12483_vm6, 4294967295, %v15665_v4  ;;  %v4247_v27 = vadd.f32 %v12081_v32, %v4246_v21  ;;  %v4277_v48 = vadd.f32 %v12124_v14, %v4276_v44  ;;  %v15671_v24 = vand.u32 2147483647, %v12011_v23 }
 0x6bb   : > { %v15672_v16 = vmov 0  ;;  %vm15674_vm0 = vweird.f32 %v12081_v32  ;;  %vm15675_vm1 = vweird.f32 %v11967_v57  ;;  %v4307_v41 = vadd.f32 %v12140_v0, %v4306_v55  ;;  %v15726_v57 = vld [vmem:[#allocation70_spill] sm:$0xff] }
 0x6bc   : > { %vm12502_vm6 = vcmp.eq.f32.partialorder %v15671_v24, 8.507059e+37  ;;  %vm12510_vm5 = vmor %vm15675_vm1, %vm15674_vm0  ;;  %v4337_v36 = vadd.f32 %v12150_v6, %v4336_v47  ;;  %vm15678_vm2 = vcmask 1046528   ;;  %vm15683_vm14 = vweird.f32 %v11977_v63  ;;  %v15716_v24 = vld [vmem:[#allocation29_spill] sm:$0xff] }
 0x6bd   : > { %v15673_v16 = vsel %vm12502_vm6, 4294967295, %v15672_v16  ;;  %v12517_v21 = vsel %vm15678_vm2, %v4681_v52, %v4682_v46  ;;  %vm15680_vm4 = vmmov %vm15678_vm2  ;;  %vm15682_vm6 = vweird.f32 %v12124_v14  ;;  %v4367_v12 = vadd.f32 %v12167_v37, %v4366_v25  ;;  %v15704_v25 = vld [vmem:[#allocation97_spill] sm:$0xff] }
 0x6be   : > { %15679 = vst [vmem:[#allocation44_spill] sm:$0xff] %v12517_v21  ;;  %v12520_v44 = vsel %vm15680_vm4, %v4682_v46, %v4684_v56  ;;  %vm12526_vm7 = vmor %vm15683_vm14, %vm15682_vm6  ;;  %v4041_v52 = vsel %vm12332_vm8, %v11942_v13, %v4037_v19  ;;  %v4101_v56 = vsel %vm12373_vm13, %v11982_v11, %v4097_v50  ;;  %vm15686_vm2 = vweird.f32 %v12140_v0  ;;  %v15708_v46 = vld [vmem:[#allocation27_spill] sm:$0xff]  ;;  %v15714_v50 = vld [vmem:[#allocation56_spill] sm:$0xff] }
 0x6bf   : > { %15681 = vst [vmem:[#allocation45_spill] sm:$0xff] %v12520_v44  ;;  %v7013_v55 = vpack.i.bf16 %v12520_v44, %v12517_v21  ;;  %vm15687_vm14 = vweird.f32 %v11988_v33  ;;  %v4071_v47 = vsel %vm12353_vm11, %v11964_v26, %v4067_v7  ;;  %v4131_v13 = vsel %vm12403_vm12, %v12005_v54, %v4127_v39  ;;  %v15734_v33 = vld [vmem:[#allocation20_spill] sm:$0xff] }
 0x6c0   : > { %vm12543_vm4 = vmor %vm15687_vm14, %vm15686_vm2  ;;  %v4161_v11 = vsel %vm12438_vm9, %v12024_v51, %v4157_v58  ;;  %v4764_v35 = vrot.slane %v12312_v38, 2  ;;  %vm15690_vm8 = vweird.f32 %v12150_v6  ;;  %vm15691_vm13 = vweird.f32 %v11999_v60  ;;  %v15718_v58 = vld [vmem:[#allocation55_spill] sm:$0xff]  ;;  %v15737_v38 = vld [vmem:[#allocation81_spill] sm:$0xff] }
 0x6c1   : > { %vm12561_vm6 = vmor %vm15691_vm13, %vm15690_vm8  ;;  %7014 = vrot.lane.b32.xlu2 %v7013_v55, %s7835_s13  ;;  %v4191_v26 = vsel %vm12461_vm15, %v12040_v34, %v4187_v42  ;;  %v4221_v54 = vsel %vm12491_vm10, %v12056_v18, %v4217_v45  ;;  %v4251_v51 = vsel %vm12510_vm5, %v12081_v32, %v4247_v27  ;;  %v4281_v60 = vsel %vm12526_vm7, %v12124_v14, %v4277_v48  ;;  %v15715_v45 = vld [vmem:[#allocation59_spill] sm:$0xff]  ;;  %v15721_v42 = vld [vmem:[#allocation32_spill] sm:$0xff] }
 0x6c2   : > { %vm15694_vm11 = vweird.f32 %v12167_v37  ;;  %vm15695_vm12 = vweird.f32 %v12011_v23  ;;  %v4311_v34 = vsel %vm12543_vm4, %v12140_v0, %v4307_v41  ;;  %v4341_v32 = vsel %vm12561_vm6, %v12150_v6, %v4337_v36  ;;  %v15702_v0 = vld [vmem:[#allocation86_spill] sm:$0xff] }
 0x6c3   : > { %vm12582_vm9 = vmor %vm15695_vm12, %vm15694_vm11  ;;  %v15698_v18 = vrot.slane %v12268_v43, 2  ;;  %vm15699_vm10 = vcmask 1045504   ;;  %v4106_v23 = vsel %vm12365_vm3, %v15700_v29, %v4101_v56  ;;  %vm15701_vm7 = vcmask 261120   ;;  %v15723_v48 = vld [vmem:[#allocation34_spill] sm:$0xff] }
 0x6c4   : > { %v4371_v10 = vsel %vm12582_vm9, %v12167_v37, %v4367_v12  ;;  %vm15703_vm15 = vnez %v15620_v28  ;;  %vm15705_vm5 = vnez %v15623_v30  ;;  %vm15707_vm0 = vnez %v15626_v15  ;;  %v15710_v37 = vld [vmem:[#allocation28_spill] sm:$0xff] }
 0x6c5   : > { %v12595_v14 = vsel %vm15699_vm10, %v15698_v18, %v4764_v35  ;;  %v4046_v6 = vsel %vm15703_vm15, %v15702_v0, %v4041_v52  ;;  %v4076_v5 = vsel %vm15705_vm5, %v15704_v25, %v4071_v47  ;;  %v4136_v20 = vsel %vm15707_vm0, %v15706_v49, %v4131_v13  ;;  %v15732_v47 = vld [vmem:[#allocation22_spill] sm:$0xff]  ;;  %v15739_v0 = vld [vmem:[#allocation51_spill] sm:$0xff] }
 0x6c6   : > { %6584 = vmatmul.msk.f32.gmra.mxu1 %vm15701_vm7, %v12595_v14  ;;  %vm15709_vm3 = vnez %v15636_v22  ;;  %vm15711_vm1 = vnez %v15639_v53  ;;  %vm15713_vm2 = vnez %v15642_v8  ;;  %v4109_v30 = vmul.f32 %v15715_v45, %v15714_v50 }
 0x6c7   : > { %v4166_v19 = vsel %vm15709_vm3, %v15708_v46, %v4161_v11  ;;  %v4196_v7 = vsel %vm15711_vm1, %v15710_v37, %v4191_v26  ;;  %v4226_v28 = vsel %vm15713_vm2, %v15712_v17, %v4221_v54  ;;  %vm15717_vm14 = vnez %v15652_v3  ;;  %v15735_v54 = vld [vmem:[#allocation66_spill] sm:$0xff]  ;;  %v15740_v46 = vld [vmem:[#allocation61_spill] sm:$0xff]  ;;  %v15741_v37 = vld [vmem:[#allocation79_spill] sm:$0xff] }
 0x6c8   : > { %v4256_v15 = vsel %vm15717_vm14, %v15716_v24, %v4251_v51  ;;  %v4117_v39 = vand.u32 2147483647, %v15714_v50  ;;  %v4119_v22 = vand.u32 2147483648, %v15714_v50  ;;  %v4433_v27 = vmul.f32 %v4106_v23, %v15718_v58  ;;  %v15736_v51 = vld [vmem:[#allocation76_spill] sm:$0xff]  ;;  %v15742_v17 = vld [vmem:[#allocation83_spill] sm:$0xff] }
 0x6c9   : > { %vm15720_vm4 = vnez %v15660_v59  ;;  %vm15722_vm8 = vnez %v15663_v62  ;;  %vm15724_vm13 = vnez %v15666_v4  ;;  %v4110_v3 = vsub.f32 1.0, %v4109_v30  ;;  %v15727_v62 = vld [vmem:[#allocation16_spill] sm:$0xff]  ;;  %v15728_v4 = vld [vmem:[#allocation17_spill] sm:$0xff] }
 0x6ca   : > { %v4286_v53 = vsel %vm15720_vm4, %v15719_v1, %v4281_v60  ;;  %v4316_v8 = vsel %vm15722_vm8, %v15721_v42, %v4311_v34  ;;  %v4346_v2 = vsel %vm15724_vm13, %v15723_v48, %v4341_v32  ;;  %vm15725_vm6 = vnez %v15673_v16  ;;  %v15731_v16 = vld [vmem:[#allocation19_spill] sm:$0xff]  ;;  %v15738_v32 = vld [vmem:[#allocation24_spill] sm:$0xff]  ;;  %v15747_v48 = vld [vmem:[#allocation94_spill] sm:$0xff] }
 0x6cb   : > { %v4376_v41 = vsel %vm15725_vm6, %v12219_v61, %v4371_v10  ;;  %vm4113_vm11 = vweird.f32 %v15714_v50  ;;  %vm4114_vm12 = vweird.f32 %v15715_v45  ;;  %v4539_v36 = vrot.slane %v4433_v27, 7 }
 0x6cc   : > { %v4111_v59 = vmul.f32 %v15715_v45, %v4110_v3  ;;  %v12647_v12 = vmul.f32 %v4046_v6, %v15726_v57  ;;  %v12650_v55 = vmul.f32 %v4076_v5, %v15727_v62  ;;  %v12653_v52 = vmul.f32 %v4136_v20, %v15728_v4  ;;  %vm4115_vm7 = vmor %vm4113_vm11, %vm4114_vm12 }
 0x6cd   : > { %vm12655_vm9 = vcmp.eq.f32.partialorder %v4117_v39, 8.507059e+37  ;;  %v4120_v61 = vor.u32 1.1754944e-38, %v4119_v22  ;;  %v12660_v63 = vmul.f32 %v4166_v19, %v15731_v16  ;;  %v12663_v13 = vmul.f32 %v4196_v7, %v15732_v47 }
 0x6ce   : > { %v4112_v11 = vadd.f32 %v15715_v45, %v4111_v59  ;;  %vm15733_vm10 = vcmask 1040384   ;;  %v12670_v26 = vmul.f32 %v4226_v28, %v15734_v33  ;;  %v4079_v60 = vmul.f32 %v15736_v51, %v15735_v54 }
 0x6cf   : > { %v12667_v35 = vsel %vm15733_vm10, 0.0, %v4539_v36  ;;  %v12677_v34 = vmul.f32 %v4256_v15, %v15737_v38  ;;  %v12680_v18 = vmul.f32 %v4286_v53, %v15738_v32  ;;  %v4087_v29 = vand.u32 2147483647, %v15735_v54  ;;  %vm15743_vm5 = vmmov %vm15733_vm10 }
 0x6d0   : > { %v4089_v23 = vand.u32 2147483648, %v15735_v54  ;;  %v4116_v10 = vsel %vm4115_vm7, %v15715_v45, %v4112_v11  ;;  %v12686_v6 = vmul.f32 %v4316_v8, %v15739_v0  ;;  %v4080_v25 = vsub.f32 1.0, %v4079_v60  ;;  %v15746_v8 = vld [vmem:[#allocation57_spill] sm:$0xff]  ;;  %vm15748_vm2 = vmmov %vm15743_vm5 }
 0x6d1   : > { %v4536_v5 = vrot.slane %v12650_v55, 7  ;;  %v4121_v49 = vsel %vm12655_vm9, %v4120_v61, %v4116_v10  ;;  %v4706_v20 = vrot.slane %v12667_v35, 1  ;;  %v12693_v19 = vmul.f32 %v4346_v2, %v15740_v46  ;;  %vm15749_vm14 = vmmov %vm15748_vm2  ;;  %v15750_v61 = vld [vmem:[#allocation15_spill] sm:$0xff] }
 0x6d2   : > { %v12696_v7 = vmul.f32 %v4376_v41, %v15741_v37  ;;  %v4434_v28 = vmul.f32 %v4121_v49, %v15742_v17  ;;  %v4081_v50 = vmul.f32 %v15736_v51, %v4080_v25  ;;  %vm4084_vm15 = vweird.f32 %v15736_v51  ;;  %vm15751_vm4 = vmmov %vm15748_vm2 }
 0x6d3   : > { %v12702_v45 = vsel %vm15743_vm5, 0.0, %v4536_v5  ;;  %vm4083_vm0 = vweird.f32 %v15735_v54  ;;  %vm12705_vm3 = vcmp.eq.f32.partialorder %v4087_v29, 8.507059e+37  ;;  %v4090_v24 = vor.u32 1.1754944e-38, %v4089_v23  ;;  %vm15757_vm9 = vmmov %vm15748_vm2 }
 0x6d4   : > { %v4533_v15 = vrot.slane %v12647_v12, 7  ;;  %v4540_v39 = vrot.slane %v4434_v28, 7  ;;  %v4082_v22 = vadd.f32 %v15736_v51, %v4081_v50  ;;  %v14728_v58 = vrot.slane %v12653_v52, 7  ;;  %vm4085_vm1 = vmor %vm4083_vm0, %vm4084_vm15 }
 0x6d5   : > { %v14729_v27 = vrot.slane %v12660_v63, 7  ;;  %v4701_v1 = vrot.slane %v12702_v45, 1  ;;  %v14730_v53 = vrot.slane %v12663_v13, 7  ;;  %v14725_v42 = vrot.slane %v12670_v26, 7  ;;  %vm15758_vm10 = vmmov %vm15748_vm2 }
 0x6d6   : > { %v4049_v2 = vmul.f32 %v15747_v48, %v15746_v8  ;;  %v12719_v3 = vsel %vm15748_vm2, %v4539_v36, %v4540_v39  ;;  %v12722_v41 = vsel %vm15749_vm14, %v4540_v39, 0.0  ;;  %v4086_v59 = vsel %vm4085_vm1, %v15736_v51, %v4082_v22  ;;  %vm15759_vm15 = vmmov %vm15748_vm2 }
 0x6d7   : > { %v14726_v57 = vrot.slane %v12677_v34, 7  ;;  %v4707_v62 = vrot.slane %v12719_v3, 1  ;;  %v4709_v55 = vrot.slane %v12722_v41, 1  ;;  %v4091_v4 = vsel %vm12705_vm3, %v4090_v24, %v4086_v59  ;;  %vm15761_vm5 = vmmov %vm15748_vm2 }
 0x6d8   : > { %v4050_v56 = vsub.f32 1.0, %v4049_v2  ;;  %v4432_v16 = vmul.f32 %v4091_v4, %v15750_v61  ;;  %v4057_v36 = vand.u32 2147483647, %v15746_v8  ;;  %v4059_v47 = vand.u32 2147483648, %v15746_v8  ;;  %vm15763_vm0 = vmmov %vm15748_vm2  ;;  %v15776_v4 = vld [vmem:[#allocation77_spill] sm:$0xff] }
 0x6d9   : > { %v12736_v11 = vsel %vm15751_vm4, 0.0, %v4533_v15  ;;  %vm15753_vm8 = vcmask 1046528   ;;  %vm4054_vm6 = vweird.f32 %v15747_v48  ;;  %v14727_v32 = vrot.slane %v12680_v18, 7  ;;  %vm15765_vm3 = vmmov %vm15763_vm0 }
 0x6da   : > { %15752 = vst [vmem:[#allocation46_spill] sm:$0xff] %v12736_v11  ;;  %v12739_v33 = vsel %vm15753_vm8, %v4706_v20, %v4707_v62  ;;  %vm15755_vm13 = vmmov %vm15753_vm8  ;;  %v4051_v51 = vmul.f32 %v15747_v48, %v4050_v56  ;;  %v4537_v38 = vrot.slane %v4432_v16, 7  ;;  %v14724_v29 = vrot.slane %v12696_v7, 7 }
 0x6db   : > { %15754 = vst [vmem:[#allocation80_spill] sm:$0xff] %v12739_v33  ;;  %v12742_v54 = vsel %vm15755_vm13, %v4707_v62, %v4709_v55  ;;  %vm4053_vm11 = vweird.f32 %v15746_v8  ;;  %vm4058_vm12 = vcmp.eq.f32.partialorder %v4057_v36, 8.507059e+37  ;;  %v4696_v10 = vrot.slane %v12736_v11, 1  ;;  %vm15767_vm1 = vmmov %vm15763_vm0  ;;  %v15773_v8 = vld [vmem:[#allocation14_spill] sm:$0xff] }
 0x6dc   : > { %15756 = vst [vmem:[#allocation68_spill] sm:$0xff] %v12742_v54  ;;  %v7038_v60 = vpack.i.bf16 %v12742_v54, %v12739_v33  ;;  %v4052_v23 = vadd.f32 %v15747_v48, %v4051_v51  ;;  %v12755_v0 = vsel %vm15757_vm9, %v4536_v5, %v4537_v38  ;;  %v12758_v25 = vsel %vm15758_vm10, %v4537_v38, 0.0  ;;  %vm4055_vm7 = vmor %vm4053_vm11, %vm4054_vm6  ;;  %v15782_v38 = vld [vmem:[#allocation89_spill] sm:$0xff] }
 0x6dd   : > { %v4060_v49 = vor.u32 1.1754944e-38, %v4059_v47  ;;  %v12763_v20 = vsel %vm15759_vm15, 0.0, %v14728_v58  ;;  %v4702_v46 = vrot.slane %v12755_v0, 1  ;;  %v4704_v37 = vrot.slane %v12758_v25, 1  ;;  %vm15769_vm2 = vmmov %vm15753_vm8 }
 0x6de   : > { %7039 = vrot.lane.b32.xlu1 %v7038_v60, %s7835_s13  ;;  %15760 = vst [vmem:[#allocation84_spill] sm:$0xff] %v12763_v20  ;;  %v4056_v17 = vsel %vm4055_vm7, %v15747_v48, %v4052_v23  ;;  %v12771_v5 = vsel %vm15761_vm5, 0.0, %v14729_v27  ;;  %v12776_v50 = vsel %vm15763_vm0, 0.0, %v14730_v53  ;;  %v12781_v30 = vsel %vm15765_vm3, 0.0, %v14725_v42  ;;  %vm15771_vm14 = vmmov %vm15769_vm2  ;;  %v15781_v60 = vld [vmem:[#allocation48_spill] sm:$0xff]  ;;  %v15792_v42 = vld [vmem:[#allocation54_spill] sm:$0xff] }
 0x6df   : > { %15762 = vst [vmem:[#allocation75_spill] sm:$0xff] %v12771_v5  ;;  %v4061_v28 = vsel %vm4058_vm12, %v4060_v49, %v4056_v17  ;;  %v12786_v24 = vsel %vm15767_vm1, 0.0, %v14726_v57  ;;  %v12789_v39 = vsel %vm15769_vm2, %v4701_v1, %v4702_v46  ;;  %v12792_v22 = vsel %vm15771_vm14, %v4702_v46, %v4704_v37  ;;  %vm15774_vm4 = vmmov %vm15763_vm0  ;;  %v15777_v1 = vld [vmem:[#allocation53_spill] sm:$0xff]  ;;  %v15795_v27 = vld [vmem:[#allocation26_spill] sm:$0xff] }
 0x6e0   : > { %15764 = vst [vmem:[#allocation96_spill] sm:$0xff] %v12776_v50  ;;  %v4430_v48 = vmul.f32 %v4061_v28, %v15773_v8  ;;  %v4766_v2 = vrot.slane %v12302_v40, 2  ;;  %v7033_v59 = vpack.i.bf16 %v12792_v22, %v12789_v39  ;;  %v12801_v62 = vsel %vm15774_vm4, 0.0, %v14727_v32  ;;  %vm15778_vm8 = vmmov %vm15763_vm0  ;;  %v15796_v53 = vld [vmem:[#allocation30_spill] sm:$0xff] }
 0x6e1   : > { %15766 = vst [vmem:[#allocation50_spill] sm:$0xff] %v12781_v30  ;;  %v4767_v55 = vrot.slane %v12337_v31, 2  ;;  %v4199_v56 = vmul.f32 %v15777_v1, %v15776_v4  ;;  %v12809_v16 = vsel %vm15778_vm8, 0.0, %v14724_v29  ;;  %vm4203_vm13 = vweird.f32 %v15776_v4  ;;  %vm15783_vm12 = vmmov %vm15763_vm0 }
 0x6e2   : > { %15768 = vst [vmem:[#allocation86_spill] sm:$0xff] %v12786_v24  ;;  %v4534_v61 = vrot.slane %v4430_v48, 7  ;;  %v4207_v36 = vand.u32 2147483647, %v15776_v4  ;;  %7034 = vrot.lane.b32.xlu0 %v7033_v59, %s7835_s13  ;;  %vm15780_vm6 = vcmask 1045504   ;;  %vm4204_vm11 = vweird.f32 %v15777_v1  ;;  %vm15784_vm9 = vmmov %vm15763_vm0 }
 0x6e3   : > { %15770 = vst [vmem:[#allocation97_spill] sm:$0xff] %v12789_v39  ;;  %v12815_v47 = vsel %vm15780_vm6, %v4766_v2, %v4767_v55  ;;  %v4200_v51 = vsub.f32 1.0, %v4199_v56  ;;  %v4169_v23 = vmul.f32 %v15782_v38, %v15781_v60  ;;  %vm15785_vm10 = vcmask 261120   ;;  %vm15788_vm5 = vmmov %vm15769_vm2 }
 0x6e4   : > { %15772 = vst [vmem:[#allocation100_spill] sm:$0xff] %v12792_v22  ;;  %v12823_v49 = vsel %vm15783_vm12, %v4533_v15, %v4534_v61  ;;  %v12826_v46 = vsel %vm15784_vm9, %v4534_v61, 0.0  ;;  %6585 = vmatmul.msk.f32.gmra.mxu1 %vm15785_vm10, %v12815_v47  ;;  %v4209_v37 = vand.u32 2147483648, %v15776_v4  ;;  %v4721_v17 = vrot.slane %v12776_v50, 1  ;;  %vm15789_vm0 = vmmov %vm15769_vm2 }
 0x6e5   : > { %15775 = vst [vmem:[#allocation27_spill] sm:$0xff] %v12801_v62  ;;  %v4697_v28 = vrot.slane %v12823_v49, 1  ;;  %v4699_v8 = vrot.slane %v12826_v46, 1  ;;  %v4201_v48 = vmul.f32 %v15777_v1, %v4200_v51  ;;  %v4170_v12 = vsub.f32 1.0, %v4169_v23  ;;  %vm4205_vm3 = vmor %vm4203_vm13, %vm4204_vm11 }
 0x6e6   : > { %15779 = vst [vmem:[#allocation28_spill] sm:$0xff] %v12809_v16  ;;  %vm12835_vm7 = vcmp.eq.f32.partialorder %v4207_v36, 8.507059e+37  ;;  %vm4174_vm15 = vweird.f32 %v15782_v38  ;;  %v4177_v2 = vand.u32 2147483647, %v15781_v60  ;;  %v4179_v59 = vand.u32 2147483648, %v15781_v60  ;;  %vm15800_vm12 = vmmov %vm15784_vm9 }
 0x6e7   : > { %v12843_v56 = vsel %vm15788_vm5, %v4696_v10, %v4697_v28  ;;  %v12846_v61 = vsel %vm15789_vm0, %v4697_v28, %v4699_v8  ;;  %v4202_v29 = vadd.f32 %v15777_v1, %v4201_v48  ;;  %v4171_v51 = vmul.f32 %v15782_v38, %v4170_v12  ;;  %v15791_v48 = vld [vmem:[#allocation73_spill] sm:$0xff]  ;;  %vm15805_vm5 = vmmov %vm15784_vm9 }
 0x6e8   : > { %15790 = vst [vmem:[#allocation58_spill] sm:$0xff] %v12846_v61  ;;  %v7028_v36 = vpack.i.bf16 %v12846_v61, %v12843_v56  ;;  %v4210_v23 = vor.u32 1.1754944e-38, %v4209_v37  ;;  %vm4173_vm1 = vweird.f32 %v15781_v60  ;;  %vm4178_vm2 = vcmp.eq.f32.partialorder %v4177_v2, 8.507059e+37 }
 0x6e9   : > { %v4206_v10 = vsel %vm4205_vm3, %v15777_v1, %v4202_v29  ;;  %v4172_v28 = vadd.f32 %v15782_v38, %v4171_v51  ;;  %v4180_v8 = vor.u32 1.1754944e-38, %v4179_v59  ;;  %v4139_v12 = vmul.f32 %v15792_v42, %v15791_v48  ;;  %vm4175_vm14 = vmor %vm4173_vm1, %vm4174_vm15  ;;  %v15793_v1 = vld [vmem:[#allocation102_spill] sm:$0xff] }
 0x6ea   : > { %7029 = vrot.lane.b32.xlu2 %v7028_v36, %s7835_s13  ;;  %v4211_v57 = vsel %vm12835_vm7, %v4210_v23, %v4206_v10  ;;  %v4716_v4 = vrot.slane %v12771_v5, 1  ;;  %v4147_v60 = vand.u32 2147483647, %v15791_v48  ;;  %v4149_v29 = vand.u32 2147483648, %v15791_v48  ;;  %v15794_v10 = vld [vmem:[#allocation21_spill] sm:$0xff]  ;;  %vm15803_vm15 = vmmov %vm15784_vm9 }
 0x6eb   : > { %v4440_v37 = vmul.f32 %v4211_v57, %v15793_v1  ;;  %v4176_v2 = vsel %vm4175_vm14, %v15782_v38, %v4172_v28  ;;  %v4140_v59 = vsub.f32 1.0, %v4139_v12  ;;  %vm4143_vm4 = vweird.f32 %v15791_v48  ;;  %vm15807_vm3 = vmmov %vm15789_vm0 }
 0x6ec   : > { %v4181_v51 = vsel %vm4178_vm2, %v4180_v8, %v4176_v2  ;;  %vm4144_vm8 = vweird.f32 %v15792_v42  ;;  %v4769_v36 = vrot.slane %v12340_v9, 2  ;;  %v4289_v57 = vmul.f32 %v15796_v53, %v15795_v27  ;;  %vm15809_vm2 = vmmov %vm15789_vm0 }
 0x6ed   : > { %v4549_v23 = vrot.slane %v4440_v37, 7  ;;  %v4438_v32 = vmul.f32 %v4181_v51, %v15794_v10  ;;  %v4141_v58 = vmul.f32 %v15792_v42, %v4140_v59  ;;  %vm12879_vm13 = vcmp.eq.f32.partialorder %v4147_v60, 8.507059e+37  ;;  %vm4145_vm7 = vmor %vm4143_vm4, %vm4144_vm8 }
 0x6ee   : > { %v4150_v28 = vor.u32 1.1754944e-38, %v4149_v29  ;;  %v12884_v8 = vsel %vm15780_vm6, %v4767_v55, %v4769_v36  ;;  %vm4293_vm11 = vweird.f32 %v15795_v27  ;;  %v15799_v9 = vrot.slane %v12663_v13, 7  ;;  %vm15811_vm14 = vmmov %vm15789_vm0 }
 0x6ef   : > { %v12893_v1 = vsel %vm15784_vm9, %v4549_v23, 0.0  ;;  %v4546_v37 = vrot.slane %v4438_v32, 7  ;;  %v4142_v60 = vadd.f32 %v15792_v42, %v4141_v58  ;;  %6586 = vmatmul.msk.f32.gmra.mxu1 %vm15785_vm10, %v12884_v8  ;;  %v4290_v13 = vsub.f32 1.0, %v4289_v57  ;;  %vm15821_vm6 = vmmov %vm15805_vm5 }
 0x6f0   : > { %v12890_v12 = vsel %vm15800_vm12, %v15799_v9, %v4549_v23  ;;  %v4724_v55 = vrot.slane %v12893_v1, 1  ;;  %v4297_v2 = vand.u32 2147483647, %v15795_v27  ;;  %v15802_v59 = vrot.slane %v12660_v63, 7 }
 0x6f1   : > { %15801 = vst [vmem:[#allocation56_spill] sm:$0xff] %v12890_v12  ;;  %v4722_v29 = vrot.slane %v12890_v12, 1  ;;  %v12911_v58 = vsel %vm15805_vm5, %v4546_v37, 0.0  ;;  %v4146_v51 = vsel %vm4145_vm7, %v15792_v42, %v4142_v60  ;;  %v4299_v36 = vand.u32 2147483648, %v15795_v27  ;;  %v15813_v60 = vld [vmem:[#allocation18_spill] sm:$0xff]  ;;  %vm15828_vm7 = vmmov %vm15789_vm0 }
 0x6f2   : > { %v12908_v32 = vsel %vm15803_vm15, %v15802_v59, %v4546_v37  ;;  %v4719_v63 = vrot.slane %v12911_v58, 1  ;;  %v4151_v9 = vsel %vm12879_vm13, %v4150_v28, %v4146_v51  ;;  %v4291_v42 = vmul.f32 %v15796_v53, %v4290_v13  ;;  %v15816_v59 = vld [vmem:[#allocation52_spill] sm:$0xff]  ;;  %vm15830_vm15 = vmmov %vm15789_vm0 }
 0x6f3   : > { %15804 = vst [vmem:[#allocation59_spill] sm:$0xff] %v12908_v32  ;;  %v12916_v23 = vsel %vm15789_vm0, %v4721_v17, %v4722_v29  ;;  %v12919_v48 = vsel %vm15807_vm3, %v4722_v29, %v4724_v55  ;;  %v4717_v10 = vrot.slane %v12908_v32, 1  ;;  %vm4294_vm1 = vweird.f32 %v15796_v53  ;;  %vm15833_vm0 = vmmov %vm15821_vm6 }
 0x6f4   : > { %15806 = vst [vmem:[#allocation29_spill] sm:$0xff] %v12916_v23  ;;  %v7053_v57 = vpack.i.bf16 %v12919_v48, %v12916_v23  ;;  %v4436_v29 = vmul.f32 %v4151_v9, %v15813_v60  ;;  %vm12936_vm4 = vcmp.eq.f32.partialorder %v4297_v2, 8.507059e+37  ;;  %v4292_v28 = vadd.f32 %v15796_v53, %v4291_v42  ;;  %vm4295_vm8 = vmor %vm4293_vm11, %vm4294_vm1  ;;  %v15819_v42 = vld [vmem:[#allocation67_spill] sm:$0xff] }
 0x6f5   : > { %15808 = vst [vmem:[#allocation55_spill] sm:$0xff] %v12919_v48  ;;  %v12930_v17 = vsel %vm15809_vm2, %v4716_v4, %v4717_v10  ;;  %v12933_v37 = vsel %vm15811_vm14, %v4717_v10, %v4719_v63  ;;  %v4300_v13 = vor.u32 1.1754944e-38, %v4299_v36  ;;  %v15817_v4 = vld [vmem:[#allocation71_spill] sm:$0xff]  ;;  %v4736_v2 = vrot.slane %v12801_v62, 1  ;;  %v15818_v36 = vld [vmem:[#allocation88_spill] sm:$0xff]  ;;  %vm15823_vm11 = vmmov %vm15805_vm5 }
 0x6f6   : > { %15810 = vst [vmem:[#allocation31_spill] sm:$0xff] %v12930_v17  ;;  %7054 = vrot.lane.b32.xlu1 %v7053_v57, %s7835_s13  ;;  %v7048_v38 = vpack.i.bf16 %v12933_v37, %v12930_v17  ;;  %v4259_v51 = vmul.f32 %v15817_v4, %v15816_v59  ;;  %v4543_v15 = vrot.slane %v4436_v29, 7  ;;  %v4267_v10 = vand.u32 2147483647, %v15816_v59  ;;  %vm15835_vm3 = vmmov %vm15833_vm0 }
 0x6f7   : > { %15812 = vst [vmem:[#allocation32_spill] sm:$0xff] %v12933_v37  ;;  %v4269_v63 = vand.u32 2147483648, %v15816_v59  ;;  %v4296_v57 = vsel %vm4295_vm8, %v15796_v53, %v4292_v28  ;;  %vm4263_vm13 = vweird.f32 %v15816_v59  ;;  %v4229_v60 = vmul.f32 %v15819_v42, %v15818_v36  ;;  %v15824_v28 = vld [vmem:[#allocation64_spill] sm:$0xff] }
 0x6f8   : > { %7049 = vrot.lane.b32.xlu0 %v7048_v38, %s7835_s13  ;;  %v4260_v9 = vsub.f32 1.0, %v4259_v51  ;;  %v15820_v29 = vrot.slane %v12653_v52, 7  ;;  %v12962_v44 = vsel %vm15823_vm11, %v4543_v15, 0.0  ;;  %v4301_v21 = vsel %vm12936_vm4, %v4300_v13, %v4296_v57  ;;  %vm15838_vm4 = vmmov %vm15828_vm7 }
 0x6f9   : > { %vm4264_vm12 = vweird.f32 %v15817_v4  ;;  %v4714_v38 = vrot.slane %v12962_v44, 1  ;;  %v4446_v51 = vmul.f32 %v4301_v21, %v15824_v28  ;;  %vm12971_vm9 = vcmp.eq.f32.partialorder %v4267_v10, 8.507059e+37  ;;  %vm15840_vm8 = vmmov %vm15838_vm4 }
 0x6fa   : > { %v12959_v27 = vsel %vm15821_vm6, %v15820_v29, %v4543_v15  ;;  %v4261_v23 = vmul.f32 %v15817_v4, %v4260_v9  ;;  %v4270_v29 = vor.u32 1.1754944e-38, %v4269_v63  ;;  %v4230_v15 = vsub.f32 1.0, %v4229_v60  ;;  %vm4265_vm5 = vmor %vm4263_vm13, %vm4264_vm12 }
 0x6fb   : > { %15822 = vst [vmem:[#allocation34_spill] sm:$0xff] %v12959_v27  ;;  %v4712_v53 = vrot.slane %v12959_v27, 1  ;;  %vm4234_vm10 = vweird.f32 %v15819_v42  ;;  %v15827_v55 = vrot.slane %v12763_v20, 1  ;;  %v4558_v62 = vrot.slane %v4446_v51, 7  ;;  %vm15847_vm6 = vmmov %vm15833_vm0 }
 0x6fc   : > { %v4262_v21 = vadd.f32 %v15817_v4, %v4261_v23  ;;  %v4231_v63 = vmul.f32 %v15819_v42, %v4230_v15  ;;  %v4237_v9 = vand.u32 2147483647, %v15818_v36  ;;  %v4239_v60 = vand.u32 2147483648, %v15818_v36  ;;  %vm15849_vm11 = vmmov %vm15833_vm0 }
 0x6fd   : > { %v12979_v13 = vsel %vm15828_vm7, %v15827_v55, %v4712_v53  ;;  %v12982_v57 = vsel %vm15830_vm15, %v4712_v53, %v4714_v38  ;;  %v15832_v28 = vrot.slane %v12680_v18, 7  ;;  %v12998_v38 = vsel %vm15835_vm3, %v4558_v62, 0.0  ;;  %v15837_v55 = vld [vmem:[#allocation69_spill] sm:$0xff]  ;;  %vm15854_vm7 = vmmov %vm15838_vm4 }
 0x6fe   : > { %15829 = vst [vmem:[#allocation70_spill] sm:$0xff] %v12979_v13  ;;  %v7043_v10 = vpack.i.bf16 %v12982_v57, %v12979_v13  ;;  %v4266_v23 = vsel %vm4265_vm5, %v15817_v4, %v4262_v21  ;;  %vm4233_vm1 = vweird.f32 %v15818_v36  ;;  %v4739_v51 = vrot.slane %v12998_v38, 1  ;;  %vm15856_vm15 = vmmov %vm15838_vm4 }
 0x6ff   : > { %15831 = vst [vmem:[#allocation16_spill] sm:$0xff] %v12982_v57  ;;  %v12995_v53 = vsel %vm15833_vm0, %v15832_v28, %v4558_v62  ;;  %v4271_v15 = vsel %vm12971_vm9, %v4270_v29, %v4266_v23  ;;  %v4232_v18 = vadd.f32 %v15819_v42, %v4231_v63  ;;  %vm4235_vm2 = vmor %vm4233_vm1, %vm4234_vm10  ;;  %vm4238_vm14 = vcmp.eq.f32.partialorder %v4237_v9, 8.507059e+37  ;;  %v15843_v9 = vld [vmem:[#allocation36_spill] sm:$0xff] }
 0x700   : > { %15834 = vst [vmem:[#allocation17_spill] sm:$0xff] %v12995_v53  ;;  %7044 = vrot.lane.b32.xlu2 %v7043_v10, %s7835_s13  ;;  %v4737_v59 = vrot.slane %v12995_v53, 1  ;;  %v4444_v28 = vmul.f32 %v4271_v15, %v15837_v55  ;;  %v4240_v62 = vor.u32 1.1754944e-38, %v4239_v60  ;;  %v4771_v4 = vrot.slane %v12736_v11, 2  ;;  %v15842_v15 = vld [vmem:[#allocation104_spill] sm:$0xff]  ;;  %vm15859_vm5 = vmmov %vm15833_vm0 }
 0x701   : > { %15836 = vst [vmem:[#allocation19_spill] sm:$0xff] %v12998_v38  ;;  %v4236_v52 = vsel %vm4235_vm2, %v15819_v42, %v4232_v18  ;;  %v14740_v29 = vrot.slane %v12823_v49, 2  ;;  %v4379_v60 = vmul.f32 %v15843_v9, %v15842_v15  ;;  %v4731_v55 = vrot.slane %v12786_v24, 1  ;;  %v15844_v38 = vld [vmem:[#allocation60_spill] sm:$0xff] }
 0x702   : > { %v13013_v36 = vsel %vm15838_vm4, %v4736_v2, %v4737_v59  ;;  %v13016_v21 = vsel %vm15840_vm8, %v4737_v59, %v4739_v51  ;;  %v4555_v63 = vrot.slane %v4444_v28, 7  ;;  %v4241_v23 = vsel %vm4238_vm14, %v4240_v62, %v4236_v52  ;;  %vm15861_vm14 = vmmov %vm15838_vm4 }
 0x703   : > { %15839 = vst [vmem:[#allocation22_spill] sm:$0xff] %v13013_v36  ;;  %v7068_v10 = vpack.i.bf16 %v13016_v21, %v13013_v36  ;;  %v4442_v2 = vmul.f32 %v4241_v23, %v15844_v38  ;;  %v4726_v53 = vrot.slane %v12781_v30, 1  ;;  %vm15845_vm13 = vcmask 1045504   ;;  %v15853_v23 = vld [vmem:[#allocation35_spill] sm:$0xff] }
 0x704   : > { %15841 = vst [vmem:[#allocation20_spill] sm:$0xff] %v13016_v21  ;;  %v13030_v42 = vsel %vm15845_vm13, %v4771_v4, %v14740_v29  ;;  %v15846_v59 = vrot.slane %v12677_v34, 7  ;;  %v13039_v18 = vsel %vm15849_vm11, %v4555_v63, 0.0  ;;  %vm15851_vm12 = vcmask 261120  }
 0x705   : > { %7069 = vrot.lane.b32.xlu1 %v7068_v10, %s7835_s13  ;;  %15850 = vst [vmem:[#allocation76_spill] sm:$0xff] %v13039_v18  ;;  %6587 = vmatmul.msk.f32.gmra.mxu1 %vm15851_vm12, %v13030_v42  ;;  %v4380_v38 = vsub.f32 1.0, %v4379_v60  ;;  %v4387_v28 = vand.u32 2147483647, %v15842_v15  ;;  %v4734_v4 = vrot.slane %v13039_v18, 1  ;;  %v4552_v52 = vrot.slane %v4442_v2, 7  ;;  %vm15868_vm12 = vmmov %vm15833_vm0 }
 0x706   : > { %v13036_v51 = vsel %vm15847_vm6, %v15846_v59, %v4555_v63  ;;  %v4389_v10 = vand.u32 2147483648, %v15842_v15  ;;  %vm4383_vm9 = vweird.f32 %v15842_v15  ;;  %vm4384_vm10 = vweird.f32 %v15843_v9  ;;  %v15852_v63 = vld [vmem:[#allocation85_spill] sm:$0xff] }
 0x707   : > { %15848 = vst [vmem:[#allocation66_spill] sm:$0xff] %v13036_v51  ;;  %v4732_v62 = vrot.slane %v13036_v51, 1  ;;  %v4381_v34 = vmul.f32 %v15843_v9, %v4380_v38  ;;  %v4349_v59 = vmul.f32 %v15853_v23, %v15852_v63  ;;  %v15858_v21 = vrot.slane %v12670_v26, 7  ;;  %vm4385_vm3 = vmor %vm4383_vm9, %vm4384_vm10 }
 0x708   : > { %v13064_v38 = vsel %vm15833_vm0, %v4552_v52, 0.0  ;;  %vm4388_vm1 = vcmp.eq.f32.partialorder %v4387_v28, 8.507059e+37  ;;  %vm4354_vm2 = vweird.f32 %v15853_v23  ;;  %vm4353_vm8 = vweird.f32 %v15852_v63  ;;  %vm15869_vm9 = vmmov %vm15833_vm0 }
 0x709   : > { %v13053_v60 = vsel %vm15854_vm7, %v4731_v55, %v4732_v62  ;;  %v13056_v29 = vsel %vm15856_vm15, %v4732_v62, %v4734_v4  ;;  %v13061_v2 = vsel %vm15859_vm5, %v15858_v21, %v4552_v52  ;;  %v4729_v48 = vrot.slane %v13064_v38, 1  ;;  %vm4355_vm6 = vmor %vm4353_vm8, %vm4354_vm2 }
 0x70a   : > { %15855 = vst [vmem:[#allocation81_spill] sm:$0xff] %v13053_v60  ;;  %v7063_v15 = vpack.i.bf16 %v13056_v29, %v13053_v60  ;;  %v4727_v36 = vrot.slane %v13061_v2, 1  ;;  %v4382_v55 = vadd.f32 %v15843_v9, %v4381_v34  ;;  %v4390_v62 = vor.u32 1.1754944e-38, %v4389_v10  ;;  %vm15870_vm10 = vmmov %vm15833_vm0 }
 0x70b   : > { %15857 = vst [vmem:[#allocation24_spill] sm:$0xff] %v13056_v29  ;;  %v4350_v4 = vsub.f32 1.0, %v4349_v59  ;;  %v4357_v60 = vand.u32 2147483647, %v15852_v63  ;;  %v4359_v59 = vand.u32 2147483648, %v15852_v63  ;;  %v15864_v29 = vld [vmem:[#allocation65_spill] sm:$0xff]  ;;  %vm15875_vm5 = vmmov %vm15838_vm4 }
 0x70c   : > { %15860 = vst [vmem:[#allocation51_spill] sm:$0xff] %v13061_v2  ;;  %7064 = vrot.lane.b32.xlu0 %v7063_v15, %s7835_s13  ;;  %v13074_v26 = vsel %vm15861_vm14, %v4726_v53, %v4727_v36  ;;  %v13077_v21 = vsel %vm15838_vm4, %v4727_v36, %v4729_v48  ;;  %v4386_v52 = vsel %vm4385_vm3, %v15843_v9, %v4382_v55  ;;  %v4563_v53 = vrot.slane %v12693_v19, 7  ;;  %v15865_v48 = vld [vmem:[#allocation99_spill] sm:$0xff]  ;;  %v15866_v36 = vld [vmem:[#allocation33_spill] sm:$0xff]  ;;  %vm15877_vm0 = vmmov %vm15838_vm4 }
 0x70d   : > { %15862 = vst [vmem:[#allocation61_spill] sm:$0xff] %v13074_v26  ;;  %v7058_v34 = vpack.i.bf16 %v13077_v21, %v13074_v26  ;;  %v4391_v28 = vsel %vm4388_vm1, %v4390_v62, %v4386_v52  ;;  %v4351_v10 = vmul.f32 %v15853_v23, %v4350_v4  ;;  %v4319_v18 = vmul.f32 %v15866_v36, %v15865_v48  ;;  %v15872_v15 = vld [vmem:[#allocation63_spill] sm:$0xff]  ;;  %vm15881_vm14 = vmmov %vm15869_vm9 }
 0x70e   : > { %15863 = vst [vmem:[#allocation79_spill] sm:$0xff] %v13077_v21  ;;  %v4452_v37 = vmul.f32 %v4391_v28, %v15864_v29  ;;  %v4751_v9 = vrot.slane %v12809_v16, 1  ;;  %vm4358_vm13 = vcmp.eq.f32.partialorder %v4357_v60, 8.507059e+37  ;;  %v4360_v4 = vor.u32 1.1754944e-38, %v4359_v59  ;;  %vm15883_vm4 = vmmov %vm15869_vm9  ;;  %v15894_v16 = vld [vmem:[#allocation92_spill] sm:$0xff] }
 0x70f   : > { %7059 = vrot.lane.b32.xlu2 %v7058_v34, %s7835_s13  ;;  %v4352_v55 = vadd.f32 %v15853_v23, %v4351_v10  ;;  %v4320_v19 = vsub.f32 1.0, %v4319_v18  ;;  %vm4324_vm11 = vweird.f32 %v15866_v36  ;;  %v4327_v52 = vand.u32 2147483647, %v15865_v48  ;;  %vm15885_vm8 = vmmov %vm15883_vm4 }
 0x710   : > { %v4567_v62 = vrot.slane %v4452_v37, 7  ;;  %v4329_v34 = vand.u32 2147483648, %v15865_v48  ;;  %v4774_v28 = vrot.slane %v12826_v46, 2  ;;  %v15867_v10 = vrot.slane %v12696_v7, 7 }
 0x711   : > { %v4356_v29 = vsel %vm4355_vm6, %v15853_v23, %v4352_v55  ;;  %v4321_v18 = vmul.f32 %v15866_v36, %v4320_v19  ;;  %v13111_v59 = vsel %vm15870_vm10, 0.0, %v4563_v53  ;;  %vm4323_vm7 = vweird.f32 %v15865_v48  ;;  %v4470_v48 = vld [vmem:[%s14441_s12 + $0x78] sm:$0xff]  ;;  %vm15891_vm6 = vmmov %vm15877_vm0 }
 0x712   : > { %v13104_v63 = vsel %vm15868_vm12, %v15867_v10, %v4567_v62  ;;  %v13107_v37 = vsel %vm15869_vm9, %v4567_v62, 0.0  ;;  %v4361_v60 = vsel %vm4358_vm13, %v4360_v4, %v4356_v29  ;;  %15871 = vst [vmem:[#allocation83_spill] sm:$0xff] %v13111_v59  ;;  %v15873_v10 = vrot.slane %v12823_v49, 2  ;;  %vm4325_vm3 = vmor %vm4323_vm7, %vm4324_vm11  ;;  %5711 = vmatpush.msra.mxu3 %v4470_v48  ;;  %v15888_v48 = vld [vmem:[#allocation23_spill] sm:$0xff] }
 0x713   : > { %v4752_v23 = vrot.slane %v13104_v63, 1  ;;  %v4754_v55 = vrot.slane %v13107_v37, 1  ;;  %v4450_v46 = vmul.f32 %v4361_v60, %v15872_v15  ;;  %v4322_v7 = vadd.f32 %v15866_v36, %v4321_v18  ;;  %vm15889_vm13 = vmmov %vm15877_vm0 }
 0x714   : > { %vm15874_vm15 = vcmask 1045504   ;;  %v4330_v15 = vor.u32 1.1754944e-38, %v4329_v34  ;;  %vm15879_vm1 = vcmask 261120   ;;  %vm4328_vm2 = vcmp.eq.f32.partialorder %v4327_v52, 8.507059e+37  ;;  %v15887_v52 = vld [vmem:[#allocation95_spill] sm:$0xff]  ;;  %vm15897_vm11 = vmmov %vm15883_vm4 }
 0x715   : > { %v13121_v62 = vsel %vm15874_vm15, %v15873_v10, %v4774_v28  ;;  %v13124_v4 = vsel %vm15875_vm5, %v4751_v9, %v4752_v23  ;;  %v13127_v19 = vsel %vm15877_vm0, %v4752_v23, %v4754_v55  ;;  %v4564_v29 = vrot.slane %v4450_v46, 7  ;;  %vm15899_vm12 = vmmov %vm15883_vm4 }
 0x716   : > { %15876 = vst [vmem:[#allocation57_spill] sm:$0xff] %v13124_v4  ;;  %6588 = vmatmul.msk.f32.gmra.mxu1 %vm15879_vm1, %v13121_v62  ;;  %v7083_v28 = vpack.i.bf16 %v13127_v19, %v13124_v4  ;;  %v4746_v9 = vrot.slane %v13111_v59, 1  ;;  %v4326_v60 = vsel %vm4325_vm3, %v15866_v36, %v4322_v7  ;;  %v15880_v18 = vrot.slane %v12686_v6, 7  ;;  %vm15901_vm9 = vmmov %vm15874_vm15 }
 0x717   : > { %15878 = vst [vmem:[#allocation94_spill] sm:$0xff] %v13127_v19  ;;  %v13146_v23 = vsel %vm15883_vm4, %v4563_v53, %v4564_v29  ;;  %v13149_v55 = vsel %vm15885_vm8, %v4564_v29, 0.0  ;;  %v4331_v46 = vsel %vm4328_vm2, %v4330_v15, %v4326_v60  ;;  %v13156_v19 = vadd.f32 1.0, %v15888_v48  ;;  %v4469_v60 = vld [vmem:[%s14441_s12 + $0x70] sm:$0xff]  ;;  %vm15902_vm10 = vmmov %vm15879_vm1 }
 0x718   : > { %v13143_v34 = vsel %vm15881_vm14, 0.0, %v15880_v18  ;;  %15884 = vst [vmem:[#allocation14_spill] sm:$0xff] %v13146_v23  ;;  %7084 = vrot.lane.b32.xlu1 %v7083_v28, %s7835_s13  ;;  %v4747_v10 = vrot.slane %v13146_v23, 1  ;;  %v4749_v36 = vrot.slane %v13149_v55, 1  ;;  %v4448_v7 = vmul.f32 %v4331_v46, %v15887_v52  ;;  %v15893_v52 = vld [vmem:[#allocation49_spill] sm:$0xff]  ;;  %v15895_v23 = vld [vmem:[#allocation43_spill] sm:$0xff]  ;;  %5712 = vmatpush.msra.mxu3 %v4469_v60  ;;  %vm15904_vm7 = vmmov %vm15877_vm0 }
 0x719   : > { %15882 = vst [vmem:[#allocation15_spill] sm:$0xff] %v13143_v34  ;;  %v4776_v18 = vrot.slane %v12702_v45, 2  ;;  %v4777_v53 = vrot.slane %v12755_v0, 2  ;;  %v4741_v28 = vrot.slane %v13143_v34, 1  ;;  %v4756_v48 = vrot.slane %v15893_v52, 2  ;;  %v15903_v60 = vld [vmem:[#allocation38_spill] sm:$0xff]  ;;  %vm15906_vm15 = vmmov %vm15877_vm0 }
 0x71a   : > { %15886 = vst [vmem:[#allocation77_spill] sm:$0xff] %v13149_v55  ;;  %v13161_v4 = vsel %vm15889_vm13, %v4746_v9, %v4747_v10  ;;  %v13164_v29 = vsel %vm15891_vm6, %v4747_v10, %v4749_v36  ;;  %v4561_v15 = vrot.slane %v4448_v7, 7  ;;  %v4757_v55 = vrot.slane %v15894_v16, 2  ;;  %v4468_v10 = vld [vmem:[%s14441_s12 + $0x68] sm:$0xff]  ;;  %vm15908_vm5 = vmmov %vm15901_vm9 }
 0x71b   : > { %15890 = vst [vmem:[#allocation53_spill] sm:$0xff] %v13161_v4  ;;  %v7078_v46 = vpack.i.bf16 %v13164_v29, %v13161_v4  ;;  %v4759_v9 = vrot.slane %v15895_v23, 2  ;;  %v15896_v36 = vrot.slane %v12686_v6, 7  ;;  %v4778_v4 = vsel %vm15901_vm9, %v4776_v18, %v4777_v53  ;;  %5713 = vmatpush.msra.mxu3 %v4468_v10  ;;  %v4467_v18 = vld [vmem:[%s14441_s12 + $0x60] sm:$0xff]  ;;  %vm15909_vm0 = vmmov %vm15908_vm5 }
 0x71c   : > { %15892 = vst [vmem:[#allocation48_spill] sm:$0xff] %v13164_v29  ;;  %v13184_v59 = vsel %vm15899_vm12, %v4561_v15, 0.0  ;;  %7726 = vrcp.f32 %v13156_v19  ;;  %v13194_v6 = vpack.i.bf16 %v12595_v14, %v15903_v60  ;;  %v4758_v16 = vsel %vm15908_vm5, %v4756_v48, %v4757_v55  ;;  %vm15911_vm3 = vmmov %vm15909_vm0  ;;  %v4465_v60 = vld [vmem:[%s14441_s12 + $0x50] sm:$0xff] }
 0x71d   : > { %v13181_v7 = vsel %vm15897_vm11, %v15896_v36, %v4561_v15  ;;  %15900 = vst [vmem:[#allocation73_spill] sm:$0xff] %v13184_v59  ;;  %7079 = vrot.lane.b32.xlu0 %v7078_v46, %s7835_s13  ;;  %v4744_v23 = vrot.slane %v13184_v59, 1  ;;  %v4779_v36 = vrot.slane %v12758_v25, 2  ;;  %v4760_v59 = vsel %vm15909_vm0, %v4757_v55, %v4759_v9  ;;  %v4466_v25 = vld [vmem:[%s14441_s12 + $0x58] sm:$0xff]  ;;  %5714 = vmatpush.msra.mxu3 %v4467_v18  ;;  %vm15912_vm2 = vmmov %vm15909_vm0 }
 0x71e   : > { %15898 = vst [vmem:[#allocation89_spill] sm:$0xff] %v13181_v7  ;;  %v4742_v29 = vrot.slane %v13181_v7, 1  ;;  %6589 = vmatmul.msk.f32.gmra.mxu1 %vm15902_vm10, %v4778_v4  ;;  %v4786_v55 = vrot.slane %v12763_v20, 2  ;;  %v4787_v9 = vrot.slane %v12959_v27, 2  ;;  %v13228_v18 = vpack.i.bf16 %v12884_v8, %v12815_v47  ;;  %vm15913_vm14 = vmmov %vm15909_vm0 }
 0x71f   : > { %v4780_v48 = vsel %vm15911_vm3, %v4777_v53, %v4779_v36  ;;  %5715 = vmatpush.msra.mxu3 %v4466_v25  ;;  %v4464_v53 = vld [vmem:[%s14441_s12 + $0x48] sm:$0xff]  ;;  %v13245_v8 = vpack.i.bf16 %v13121_v62, %v13030_v42  ;;  %v4782_v42 = vrot.slane %v12719_v3, 2  ;;  %v4784_v62 = vrot.slane %v12722_v41, 2  ;;  %vm15914_vm4 = vmmov %vm15909_vm0  ;;  %v4461_v41 = vld [vmem:[%s14441_s12 + $0x30] sm:$0xff] }
 0x720   : > { %v13201_v15 = vsel %vm15904_vm7, %v4741_v28, %v4742_v29  ;;  %v13204_v46 = vsel %vm15906_vm15, %v4742_v29, %v4744_v23  ;;  %7094 = vrot.lane.b32.xlu1 %v13194_v6, %s7837_s28  ;;  %v15910_v28 = vld [vmem:[#allocation62_spill] sm:$0xff]  ;;  %v13217_v29 = vpack.i.bf16 %v4760_v59, %v4758_v16  ;;  %v4789_v23 = vrot.slane %v12962_v44, 2  ;;  %vm15915_vm8 = vmmov %vm15909_vm0 }
 0x721   : > { %15905 = vst [vmem:[#allocation54_spill] sm:$0xff] %v13201_v15  ;;  %v7073_v14 = vpack.i.bf16 %v13204_v46, %v13201_v15  ;;  %v6581_v10 = vmul.f32 -1.442695, %v15910_v28  ;;  %v4791_v16 = vrot.slane %v12771_v5, 2  ;;  %v4792_v44 = vrot.slane %v12908_v32, 2  ;;  %5716 = vmatpush.msra.mxu3 %v4465_v60  ;;  %vm15917_vm13 = vmmov %vm15909_vm0  ;;  %v7000_v15 = vpop.permute.xlu1 %6999 }
 0x722   : > { %15907 = vst [vmem:[#allocation102_spill] sm:$0xff] %v13204_v46  ;;  %v4794_v59 = vrot.slane %v12911_v58, 2  ;;  %v13241_v47 = vpack.i.bf16 %v4780_v48, %v4778_v4  ;;  %v13248_v36 = vsel %vm15912_vm2, %v4786_v55, %v4787_v9  ;;  %v13251_v25 = vsel %vm15913_vm14, %v4787_v9, %v4789_v23  ;;  %v4463_v58 = vld [vmem:[%s14441_s12 + $0x40] sm:$0xff]  ;;  %v4462_v9 = vld [vmem:[%s14441_s12 + $0x38] sm:$0xff]  ;;  %v13274_v23 = vpop.permute.xlu2 %7004  ;;  %vm15919_vm6 = vmmov %vm15909_vm0 }
 0x723   : > { %7074 = vrot.lane.b32.xlu2 %v7073_v14, %s7835_s13  ;;  %v13230_v14 = vpop.eup %7726  ;;  %7728 = vpow2.f32 %v6581_v10  ;;  %v4781_v4 = vrot.slane %v12667_v35, 2  ;;  %5717 = vmatpush.msra.mxu3 %v4464_v53  ;;  %v13278_v60 = vpack.i.bf16 %v13251_v25, %v13248_v36  ;;  %vm15920_vm11 = vmmov %vm15879_vm1  ;;  %v4460_v46 = vld [vmem:[%s14441_s12 + $0x28] sm:$0xff]  ;;  %v4419_v34 = vand.u32 2147483648, %v13156_v19 }
 0x724   : > { %v4409_v10 = vmul.f32 %v13230_v14, %v13156_v19  ;;  %v13267_v55 = vsel %vm15915_vm8, %v4792_v44, %v4794_v59  ;;  %vm15922_vm12 = vmmov %vm15879_vm1  ;;  %vm4414_vm9 = vweird.f32 %v13230_v14  ;;  %vm15924_vm7 = vcmask 523264  }
 0x725   : > { %7089 = vrot.lane.b32.xlu0 %v13217_v29, %s7837_s28  ;;  %5718 = vmatpush.msra.mxu3 %v4463_v58  ;;  %15916 = vst [vmem:[#allocation21_spill] sm:$0xff] %v13278_v60  ;;  %v4783_v59 = vsel %vm15917_vm13, %v4781_v4, %v4782_v42  ;;  %v4785_v58 = vsel %vm15919_vm6, %v4782_v42, %v4784_v62  ;;  %v7006_v42 = vunpack.i.l.bf16 %v13274_v23  ;;  %v4458_v62 = vld [vmem:[%s14441_s12 + $0x18] sm:$0xff]  ;;  %vm15923_vm10 = vmmov %vm15879_vm1  ;;  %vm5515_vm15 = vcmask 785408  }
 0x726   : > { %6590 = vmatmul.msk.f32.gmra.mxu1 %vm15879_vm1, %v4780_v48  ;;  %v13264_v48 = vsel %vm15914_vm4, %v4791_v16, %v4792_v44  ;;  %v4410_v44 = vsub.f32 1.0, %v4409_v10  ;;  %v7001_v10 = vunpack.i.l.bf16 %v7000_v15  ;;  %v13301_v52 = vpack.i.bf16 %v4785_v58, %v4783_v59  ;;  %vm15928_vm2 = vmmov %vm15879_vm1 }
 0x727   : > { %5719 = vmatpush.msra.mxu3 %v4462_v9  ;;  %v13286_v53 = vpack.i.bf16 %v13267_v55, %v13264_v48  ;;  %v4459_v9 = vld [vmem:[%s14441_s12 + $0x20] sm:$0xff]  ;;  %vm4413_vm5 = vweird.f32 %v13156_v19  ;;  %v7002_v51 = vunpack.i.h.bf16 %v7000_v15  ;;  %v7007_v24 = vunpack.i.h.bf16 %v13274_v23  ;;  %v15929_v15 = vld [vmem:[#allocation25_spill] sm:$0xff]  ;;  %vm15930_vm14 = vmmov %vm15924_vm7 }
 0x728   : > { %7109 = vrot.lane.b32.xlu1 %v13241_v47, %s7837_s28  ;;  %v4411_v21 = vmul.f32 %v13230_v14, %v4410_v44  ;;  %vm4415_vm0 = vmor %vm4413_vm5, %vm4414_vm9  ;;  %vm15935_vm9 = vcmask 1045504  }
 0x729   : > { %v7729_v16 = vpop.eup %7728  ;;  %15918 = vst [vmem:[#allocation26_spill] sm:$0xff] %v13286_v53  ;;  %5720 = vmatpush.msra.mxu3 %v4461_v41  ;;  %v15921_v41 = vld [vmem:[#allocation103_spill] sm:$0xff]  ;;  %vm15940_vm5 = vmmov %vm15879_vm1 }
 0x72a   : > { %v13295_v4 = vadd.f32 1.0, %v7729_v16  ;;  %v5451_v16 = vsel %vm15922_vm12, %v15921_v41, %v7001_v10  ;;  %v7010_v44 = vpop.permute.xlu2 %7009  ;;  %v4456_v10 = vld [vmem:[%s14441_s12 + $0x8] sm:$0xff]  ;;  %vm15934_vm12 = vcmask 1040384  }
 0x72b   : > { %7099 = vrot.lane.b32.xlu2 %v13228_v18, %s7837_s28  ;;  %5721 = vmatpush.msra.mxu3 %v4460_v46  ;;  %v4457_v46 = vld [vmem:[%s14441_s12 + $0x10] sm:$0xff]  ;;  %v7011_v7 = vunpack.i.l.bf16 %v7010_v44 }
 0x72c   : > { %7730 = vrcp.f32 %v13295_v4  ;;  %v4404_v23 = vand.u32 2147483648, %v13295_v4  ;;  %vm4398_vm8 = vweird.f32 %v13295_v4 }
 0x72d   : > { %7104 = vrot.lane.b32.xlu0 %v13245_v8, %s7837_s28  ;;  %5722 = vmatpush.msra.mxu3 %v4459_v9  ;;  %v5483_v9 = vsel %vm15924_vm7, %v5451_v16, %v7006_v42  ;;  %v4420_v16 = vor.u32 1.1754944e-38, %v4419_v34 }
 0x72e   : > { %6591 = vmatmul.msk.f32.gmra.mxu1 %vm15920_vm11, %v4783_v59  ;;  %v4412_v59 = vadd.f32 %v13230_v14, %v4411_v21  ;;  %v4417_v21 = vand.u32 2147483647, %v13156_v19  ;;  %v5516_v42 = vsel %vm5515_vm15, %v5483_v9, %v7011_v7  ;;  %v15927_v7 = vld [vmem:[#allocation101_spill] sm:$0xff]  ;;  %v15931_v9 = vld [vmem:[#allocation40_spill] sm:$0xff]  ;;  %vm15932_vm11 = vmmov %vm15879_vm1 }
 0x72f   : > { %5723 = vmatpush.msra.mxu3 %v4458_v62  ;;  %v15925_v62 = vld [vmem:[#allocation37_spill] sm:$0xff]  ;;  %v5452_v34 = vsel %vm15928_vm2, %v15927_v7, %v7002_v51 }
 0x730   : > { %7124 = vrot.lane.b32.xlu1 %v13286_v53, %s7837_s28  ;;  %v7133_v41 = vpack.i.bf16 %v12268_v43, %v15925_v62  ;;  %v4416_v26 = vsel %vm4415_vm0, %v13230_v14, %v4412_v59  ;;  %v15926_v53 = vld [vmem:[#allocation39_spill] sm:$0xff]  ;;  %vm4418_vm3 = vcmp.eq.f32.partialorder %v4417_v21, 8.507059e+37  ;;  %v7012_v59 = vunpack.i.h.bf16 %v7010_v44  ;;  %vm15941_vm0 = vmmov %vm15935_vm9 }
 0x731   : > { %5724 = vmatpush.msra.mxu3 %v4457_v46  ;;  %v4421_v46 = vsel %vm4418_vm3, %v4420_v16, %v4416_v26  ;;  %v5484_v26 = vsel %vm15930_vm14, %v5452_v34, %v7007_v24  ;;  %v7143_v21 = vpack.i.bf16 %v12268_v43, %v15931_v9  ;;  %v4829_v16 = vrot.slane %v13107_v37, 2  ;;  %vm15942_vm3 = vmmov %vm15941_vm0 }
 0x732   : > { %v7731_v19 = vpop.eup %7730  ;;  %v5517_v51 = vsel %vm5515_vm15, %v5484_v26, %v7012_v59  ;;  %vm15946_vm14 = vmmov %vm15940_vm5 }
 0x733   : > { %7114 = vrot.lane.b32.xlu2 %v13301_v52, %s7837_s28  ;;  %5725 = vmatpush.msra.mxu3 %v4456_v10  ;;  %v4394_v14 = vmul.f32 %v7731_v19, %v13295_v4  ;;  %v7153_v10 = vpack.i.bf16 %v12337_v31, %v12302_v40  ;;  %vm4399_vm4 = vweird.f32 %v7731_v19 }
 0x734   : > { %vm4400_vm13 = vmor %vm4398_vm8, %vm4399_vm4 }
 0x735   : > { %7119 = vrot.lane.b32.xlu0 %v13278_v60, %s7837_s28  ;;  %v7138_v60 = vpack.i.bf16 %v15925_v62, %v15926_v53  ;;  %vm15947_vm4 = vmmov %vm15941_vm0 }
 0x736   : > { %6592 = vmatmul.msk.f32.gmra.mxu1 %vm15923_vm10, %v4785_v58  ;;  %v4455_v58 = vld [vmem:[%s14441_s12] sm:$0xff]  ;;  %vm15937_vm10 = vmmov %vm15934_vm12 }
 0x737   : > { %5726 = vmatpush.msra.mxu3 %v4455_v58  ;;  %v4405_v58 = vor.u32 1.1754944e-38, %v4404_v23  ;;  %vm15938_vm7 = vmmov %vm15937_vm10 }
 0x738   : > { %7134 = vrot.lane.b32.xlu1 %v7133_v41, %s7837_s28  ;;  %5727 = vmatmul.f32.vlgmr.msra.gmra.mxu3 %v5516_v42  ;;  %v4454_v41 = vmul.f32 %v4421_v46, %v15929_v15  ;;  %vm15948_vm8 = vmmov %vm15940_vm5 }
 0x73a   : > { %v4570_v24 = vrot.slane %v4454_v41, 7 }
 0x73b   : > { %7139 = vrot.lane.b32.xlu2 %v7138_v60, %s7839_s0  ;;  %v4395_v60 = vsub.f32 1.0, %v4394_v14 }
 0x73c   : > { %v4650_v15 = vsel %vm15934_vm12, %v4570_v24, 0.0  ;;  %vm15952_vm12 = vmmov %vm15940_vm5 }
 0x73d   : > { %7129 = vrot.lane.b32.xlu0 %v13217_v29, %s7835_s13  ;;  %v4396_v29 = vmul.f32 %v7731_v19, %v4395_v60  ;;  %v4873_v41 = vrot.slane %v4650_v15, 2 }
 0x73e   : > { %6593 = vmatmul.msk.f32.gmra.mxu1 %vm15879_vm1, %v13248_v36  ;;  %v4402_v36 = vand.u32 2147483647, %v13295_v4  ;;  %v15933_v4 = vld [vmem:[#allocation42_spill] sm:$0xff]  ;;  %vm15943_vm1 = vcmask 1046528  }
 0x73f   : > { %v4397_v44 = vadd.f32 %v7731_v19, %v4396_v29  ;;  %v7163_v14 = vpack.i.bf16 %v12337_v31, %v15933_v4  ;;  %v4836_v29 = vrot.slane %v4650_v15, 1  ;;  %vm15944_vm2 = vmmov %vm15943_vm1  ;;  %v4797_v15 = vrot.slane %v12890_v12, 2 }
 0x740   : > { %7149 = vrot.lane.b32.xlu1 %v13194_v6, %s7835_s13  ;;  %5730 = vmatmul.f32.gmra.mxu3 %v5517_v51  ;;  %vm4403_vm6 = vcmp.eq.f32.partialorder %v4402_v36, 8.507059e+37  ;;  %v14788_v6 = vrot.slane %v13104_v63, 2 }
 0x741   : > { %v4401_v42 = vsel %vm4400_vm13, %v7731_v19, %v4397_v44  ;;  %vm15949_vm13 = vmmov %vm15941_vm0 }
 0x742   : > { %v4406_v46 = vsel %vm4403_vm6, %v4405_v58, %v4401_v42  ;;  %v13374_v37 = vsel %vm15935_vm9, %v14788_v6, %v4829_v16  ;;  %v7183_v42 = vpack.i.bf16 %v12823_v49, %v12846_v61  ;;  %v13415_v16 = vpop.permute.xlu2 %7014  ;;  %vm15950_vm6 = vmmov %vm15940_vm5 }
 0x743   : > { %7154 = vrot.lane.b32.xlu2 %v7153_v10, %s7837_s28  ;;  %v4453_v34 = vmul.f32 %v4406_v46, %v15910_v28  ;;  %v7193_v46 = vpack.i.bf16 %v12755_v0, %v12702_v45  ;;  %vm15954_vm9 = vmmov %vm15941_vm0 }
 0x745   : > { %7144 = vrot.lane.b32.xlu0 %v7143_v21, %s7839_s0  ;;  %v4569_v19 = vrot.slane %v4453_v34, 7  ;;  %v4796_v34 = vrot.slane %v12776_v50, 2 }
 0x746   : > { %6594 = vmatmul.msk.f32.gmra.mxu1 %vm15932_vm11, %v13251_v25  ;;  %v15936_v25 = vld [vmem:[#allocation41_spill] sm:$0xff]  ;;  %vm15951_vm11 = vmmov %vm15941_vm0 }
 0x747   : > { %v7158_v59 = vpack.i.bf16 %v12302_v40, %v15936_v25  ;;  %v13381_v60 = vsel %vm15937_vm10, 0.0, %v4569_v19  ;;  %v13384_v28 = vsel %vm15938_vm7, %v4569_v19, %v4570_v24  ;;  %v7178_v24 = vpack.i.bf16 %v12736_v11, %v12843_v56  ;;  %vm15955_vm10 = vmmov %vm15940_vm5 }
 0x748   : > { %7164 = vrot.lane.b32.xlu1 %v7163_v14, %s7839_s0  ;;  %15939 = vst [vmem:[#allocation30_spill] sm:$0xff] %v13384_v28  ;;  %v4870_v23 = vrot.slane %v13381_v60, 2  ;;  %v4871_v10 = vrot.slane %v13384_v28, 2  ;;  %v4833_v36 = vrot.slane %v13381_v60, 1  ;;  %v7198_v14 = vpack.i.bf16 %v12702_v45, %v12789_v39  ;;  %vm15960_vm7 = vmmov %vm15941_vm0  ;;  %v15982_v39 = vld [vmem:[#allocation49_spill] sm:$0xff] }
 0x749   : > { %v13429_v19 = vsel %vm15947_vm4, %v4796_v34, %v4797_v15 }
 0x74a   : > { %v13396_v51 = vsel %vm15941_vm0, %v4870_v23, %v4871_v10  ;;  %v13399_v44 = vsel %vm15942_vm3, %v4871_v10, %v4873_v41  ;;  %v7213_v41 = vpack.i.bf16 %v12719_v3, %v12667_v35  ;;  %v13443_v23 = vpop.permute.xlu1 %7024  ;;  %vm15967_vm3 = vmmov %vm15940_vm5 }
 0x74b   : > { %7169 = vrot.lane.b32.xlu2 %v13228_v18, %s7835_s13  ;;  %v4834_v18 = vrot.slane %v13384_v28, 1  ;;  %v16005_v28 = vld [vmem:[#allocation44_spill] sm:$0xff] }
 0x74d   : > { %7159 = vrot.lane.b32.xlu0 %v7158_v59, %s7839_s0  ;;  %v13404_v21 = vsel %vm15943_vm1, %v4833_v36, %v4834_v18  ;;  %v13407_v58 = vsel %vm15944_vm2, %v4834_v18, %v4836_v29  ;;  %v4799_v59 = vrot.slane %v12893_v1, 2  ;;  %v13455_v29 = vpop.permute.xlu0 %7019  ;;  %v4801_v36 = vrot.slane %v12781_v30, 2  ;;  %vm15973_vm1 = vmmov %vm15941_vm0 }
 0x74e   : > { %6595 = vmatmul.msk.f32.gmra.mxu1 %vm15940_vm5, %v13264_v48  ;;  %15945 = vst [vmem:[#allocation18_spill] sm:$0xff] %v13407_v58  ;;  %v7173_v48 = vpack.i.bf16 %v12823_v49, %v12736_v11  ;;  %v4802_v18 = vrot.slane %v13061_v2, 2  ;;  %vm15974_vm2 = vmmov %vm15967_vm3 }
 0x74f   : > { %v13448_v10 = vsel %vm15949_vm13, %v4797_v15, %v4799_v59  ;;  %vm15979_vm4 = vmmov %vm15974_vm2  ;;  %vm15984_vm13 = vcmask 523264  }
 0x750   : > { %7179 = vrot.lane.b32.xlu1 %v7178_v24, %s7839_s0  ;;  %v7218_v24 = vpack.i.bf16 %v12667_v35, %v12739_v33 }
 0x753   : > { %7184 = vrot.lane.b32.xlu2 %v7183_v42, %s7839_s0  ;;  %v13466_v42 = vpop.permute.xlu1 %7039 }
 0x755   : > { %7174 = vrot.lane.b32.xlu0 %v7173_v48, %s7837_s28  ;;  %v13469_v48 = vsel %vm15951_vm11, %v4801_v36, %v4802_v18  ;;  %v13480_v34 = vpop.permute.xlu0 %7034  ;;  %v7258_v36 = vpack.i.bf16 %v12771_v5, %v12930_v17  ;;  %v4480_v17 = vld [vmem:[%s14441_s12 + $0xc8] sm:$0xff]  ;;  %vm15987_vm11 = vmmov %vm15974_vm2 }
 0x756   : > { %6596 = vmatmul.msk.f32.gmra.mxu1 %vm15946_vm14, %v13267_v55  ;;  %v13435_v55 = vpop.permute.xlu2 %7029  ;;  %vm15978_vm14 = vmmov %vm15941_vm0 }
 0x758   : > { %7194 = vrot.lane.b32.xlu1 %v7193_v46, %s7837_s28  ;;  %v7238_v46 = vpack.i.bf16 %v12763_v20, %v12979_v13  ;;  %v4477_v13 = vld [vmem:[%s14441_s12 + $0xb0] sm:$0xff] }
 0x75b   : > { %7199 = vrot.lane.b32.xlu2 %v7198_v14, %s7839_s0  ;;  %v7243_v14 = vpack.i.bf16 %v12959_v27, %v12982_v57 }
 0x75d   : > { %7189 = vrot.lane.b32.xlu0 %v13245_v8, %s7835_s13  ;;  %v7203_v8 = vpack.i.bf16 %v12755_v0, %v12792_v22  ;;  %v4473_v22 = vld [vmem:[%s14441_s12 + $0x90] sm:$0xff] }
 0x75e   : > { %6597 = vmatmul.msk.f32.gmra.mxu1 %vm15948_vm8, %v13429_v19  ;;  %v13457_v1 = vpop.permute.xlu2 %7044  ;;  %vm15983_vm8 = vmmov %vm15974_vm2 }
 0x760   : > { %7209 = vrot.lane.b32.xlu1 %v13241_v47, %s7835_s13  ;;  %v7223_v47 = vpack.i.bf16 %v12719_v3, %v12742_v54  ;;  %v4476_v54 = vld [vmem:[%s14441_s12 + $0xa8] sm:$0xff] }
 0x763   : > { %7214 = vrot.lane.b32.xlu2 %v7213_v41, %s7837_s28  ;;  %v7233_v41 = vpack.i.bf16 %v12959_v27, %v12763_v20 }
 0x765   : > { %7204 = vrot.lane.b32.xlu0 %v7203_v8, %s7839_s0  ;;  %v7253_v8 = vpack.i.bf16 %v12908_v32, %v12771_v5 }
 0x766   : > { %6598 = vmatmul.msk.f32.gmra.mxu1 %vm15950_vm6, %v13448_v10  ;;  %vm15986_vm6 = vmmov %vm15941_vm0 }
 0x768   : > { %7224 = vrot.lane.b32.xlu1 %v7223_v47, %s7839_s0  ;;  %v13498_v47 = vpop.permute.xlu1 %7054 }
 0x769   : > { %v13483_v15 = vpop.permute.xlu2 %7059  ;;  %15956 = vst [vmem:[#allocation71_spill] sm:$0xff] %v13498_v47 }
 0x76a   : > { %15953 = vst [vmem:[#allocation52_spill] sm:$0xff] %v13483_v15  ;;  %v15961_v15 = vld [vmem:[#allocation21_spill] sm:$0xff] }
 0x76b   : > { %7229 = vrot.lane.b32.xlu2 %v13301_v52, %s7835_s13  ;;  %v4804_v52 = vrot.slane %v13064_v38, 2  ;;  %v4486_v38 = vld [vmem:[%s14441_s12 + $0xf8] sm:$0xff] }
 0x76c   : > { %5824 = vmatpush.msra.mxu0 %v4486_v38  ;;  %v13512_v38 = vpop.permute.xlu0 %7049 }
 0x76d   : > { %7219 = vrot.lane.b32.xlu0 %v7218_v24, %s7839_s0  ;;  %v13488_v59 = vsel %vm15954_vm9, %v4802_v18, %v4804_v52  ;;  %v15957_v18 = vld [vmem:[#allocation86_spill] sm:$0xff]  ;;  %v4485_v52 = vld [vmem:[%s14441_s12 + $0xf0] sm:$0xff]  ;;  %vm15994_vm9 = vmmov %vm15974_vm2 }
 0x76e   : > { %6599 = vmatmul.msk.f32.gmra.mxu1 %vm15952_vm12, %v13469_v48  ;;  %v4806_v24 = vrot.slane %v15957_v18, 2  ;;  %5825 = vmatpush.msra.mxu0 %v4485_v52  ;;  %v7273_v52 = vpack.i.bf16 %v12890_v12, %v12776_v50  ;;  %vm15993_vm12 = vmmov %vm15941_vm0 }
 0x770   : > { %7239 = vrot.lane.b32.xlu1 %v7238_v46, %s7839_s0  ;;  %v15958_v46 = vld [vmem:[#allocation66_spill] sm:$0xff] }
 0x773   : > { %7244 = vrot.lane.b32.xlu2 %v7243_v14, %s7839_s0  ;;  %v4807_v14 = vrot.slane %v15958_v46, 2 }
 0x775   : > { %7234 = vrot.lane.b32.xlu0 %v7233_v41, %s7837_s28  ;;  %v4484_v41 = vld [vmem:[%s14441_s12 + $0xe8] sm:$0xff]  ;;  %v13520_v6 = vsel %vm15960_vm7, %v4806_v24, %v4807_v14  ;;  %v15964_v24 = vld [vmem:[#allocation76_spill] sm:$0xff]  ;;  %vm16001_vm7 = vmmov %vm15974_vm2 }
 0x776   : > { %6600 = vmatmul.msk.f32.gmra.mxu1 %vm15955_vm10, %v13488_v59  ;;  %5826 = vmatpush.msra.mxu0 %v4484_v41  ;;  %v15962_v41 = vld [vmem:[#allocation26_spill] sm:$0xff]  ;;  %v4809_v47 = vrot.slane %v15964_v24, 2  ;;  %vm16000_vm10 = vmmov %vm15941_vm0 }
 0x778   : > { %7254 = vrot.lane.b32.xlu1 %v7253_v8, %s7837_s28  ;;  %v4483_v8 = vld [vmem:[%s14441_s12 + $0xe0] sm:$0xff] }
 0x779   : > { %5827 = vmatpush.msra.mxu0 %v4483_v8  ;;  %v15965_v8 = vld [vmem:[#allocation32_spill] sm:$0xff] }
 0x77a   : > { %v7263_v57 = vpack.i.bf16 %v12908_v32, %v15965_v8  ;;  %v15985_v32 = vld [vmem:[#allocation79_spill] sm:$0xff] }
 0x77b   : > { %7259 = vrot.lane.b32.xlu2 %v7258_v36, %s7839_s0  ;;  %v4482_v36 = vld [vmem:[%s14441_s12 + $0xd8] sm:$0xff] }
 0x77c   : > { %5828 = vmatpush.msra.mxu0 %v4482_v36  ;;  %v13551_v36 = vsel %vm15941_vm0, %v4807_v14, %v4809_v47  ;;  %v7288_v47 = vpack.i.bf16 %v13448_v10, %v13429_v19  ;;  %v15970_v14 = vld [vmem:[#allocation17_spill] sm:$0xff]  ;;  %vm16006_vm0 = vmmov %vm15974_vm2 }
 0x77d   : > { %v13517_v26 = vpop.permute.xlu2 %7074  ;;  %7249 = vrot.lane.b32.xlu0 %v15961_v15, %s7835_s13  ;;  %v4481_v15 = vld [vmem:[%s14441_s12 + $0xd0] sm:$0xff]  ;;  %v7353_v11 = vpack.i.bf16 %v13551_v36, %v15970_v14 }
 0x77e   : > { %15959 = vst [vmem:[#allocation88_spill] sm:$0xff] %v13517_v26  ;;  %6601 = vmatmul.msk.f32.gmra.mxu1 %vm15940_vm5, %v13520_v6  ;;  %v13533_v26 = vpop.permute.xlu1 %7069  ;;  %5829 = vmatpush.msra.mxu0 %v4481_v15  ;;  %v15968_v15 = vld [vmem:[#allocation55_spill] sm:$0xff]  ;;  %vm16004_vm5 = vmmov %vm15974_vm2 }
 0x77f   : > { %15963 = vst [vmem:[#allocation67_spill] sm:$0xff] %v13533_v26  ;;  %v13554_v26 = vpop.permute.xlu0 %7064  ;;  %v7283_v8 = vpack.i.bf16 %v12890_v12, %v15968_v15  ;;  %v15972_v15 = vld [vmem:[#allocation29_spill] sm:$0xff] }
 0x780   : > { %7269 = vrot.lane.b32.xlu1 %v15962_v41, %s7835_s13  ;;  %v4479_v41 = vld [vmem:[%s14441_s12 + $0xc0] sm:$0xff]  ;;  %5830 = vmatpush.msra.mxu0 %v4480_v17  ;;  %15966 = vst [vmem:[#allocation64_spill] sm:$0xff] %v13554_v26  ;;  %v15969_v17 = vld [vmem:[#allocation27_spill] sm:$0xff]  ;;  %v4812_v26 = vrot.slane %v15970_v14, 2 }
 0x782   : > { %5831 = vmatpush.msra.mxu0 %v4479_v41 }
 0x783   : > { %7274 = vrot.lane.b32.xlu2 %v7273_v52, %s7837_s28  ;;  %v4478_v52 = vld [vmem:[%s14441_s12 + $0xb8] sm:$0xff] }
 0x784   : > { %5832 = vmatpush.msra.mxu0 %v4478_v52  ;;  %v4475_v52 = vld [vmem:[%s14441_s12 + $0xa0] sm:$0xff] }
 0x785   : > { %v13548_v24 = vpop.permute.xlu2 %7099  ;;  %7264 = vrot.lane.b32.xlu0 %v7263_v57, %s7839_s0  ;;  %v4811_v57 = vrot.slane %v15969_v17, 2 }
 0x786   : > { %6602 = vmatmul.msk.f32.gmra.mxu1 %vm15967_vm3, %v13551_v36  ;;  %5833 = vmatpush.msra.mxu0 %v4477_v13  ;;  %v4474_v13 = vld [vmem:[%s14441_s12 + $0x98] sm:$0xff]  ;;  %vm16007_vm3 = vmmov %vm15984_vm13 }
 0x787   : > { %v13585_v33 = vsel %vm15973_vm1, %v4811_v57, %v4812_v26  ;;  %v7303_v57 = vpack.i.bf16 %v13448_v10, %v13061_v2  ;;  %v4472_v10 = vld [vmem:[%s14441_s12 + $0x88] sm:$0xff]  ;;  %vm16008_vm1 = vmmov %vm16007_vm3 }
 0x788   : > { %7284 = vrot.lane.b32.xlu1 %v7283_v8, %s7839_s0  ;;  %v7278_v8 = vpack.i.bf16 %v12776_v50, %v15972_v15  ;;  %5834 = vmatpush.msra.mxu0 %v4476_v54  ;;  %v15977_v54 = vld [vmem:[#allocation19_spill] sm:$0xff] }
 0x78a   : > { %v13575_v41 = vpop.permute.xlu1 %7084  ;;  %5835 = vmatpush.msra.mxu0 %v4475_v52  ;;  %v7293_v52 = vpack.i.bf16 %v13429_v19, %v12781_v30 }
 0x78b   : > { %7289 = vrot.lane.b32.xlu2 %v7288_v47, %s7835_s13  ;;  %15971 = vst [vmem:[#allocation69_spill] sm:$0xff] %v13575_v41  ;;  %v15975_v47 = vld [vmem:[#allocation61_spill] sm:$0xff] }
 0x78c   : > { %v7298_v41 = vpack.i.bf16 %v12781_v30, %v15975_v47  ;;  %5836 = vmatpush.msra.mxu0 %v4474_v13  ;;  %v7016_v13 = vunpack.i.l.bf16 %v13415_v16  ;;  %v15981_v47 = vld [vmem:[#allocation89_spill] sm:$0xff] }
 0x78d   : > { %v13582_v12 = vpop.permute.xlu2 %7114  ;;  %7279 = vrot.lane.b32.xlu0 %v7278_v8, %s7839_s0  ;;  %v4814_v8 = vrot.slane %v15977_v54, 2  ;;  %v4817_v30 = vrot.slane %v15981_v47, 2 }
 0x78e   : > { %6603 = vmatmul.msk.f32.gmra.mxu1 %vm15974_vm2, %v13585_v33  ;;  %5837 = vmatpush.msra.mxu0 %v4473_v22  ;;  %v7313_v22 = vpack.i.bf16 %v13488_v59, %v13469_v48  ;;  %v5453_v58 = vsel %vm15983_vm8, %v15982_v39, %v7016_v13  ;;  %v7328_v39 = vpack.i.bf16 %v13488_v59, %v15958_v46  ;;  %v13654_v13 = vpop.f32.mrf.mxu1  ;;  %vm16009_vm2 = vmmov %vm15986_vm6 }
 0x78f   : > { %v13595_v15 = vpop.permute.xlu0 %7079  ;;  %15988 = vst [vmem:[#allocation36_spill] sm:$0xff] %v13654_v13  ;;  %vm16015_vm8 = vmmov %vm16006_vm0 }
 0x790   : > { %15976 = vst [vmem:[#allocation104_spill] sm:$0xff] %v13595_v15  ;;  %7299 = vrot.lane.b32.xlu1 %v7298_v41, %s7839_s0  ;;  %v13613_v41 = vsel %vm15978_vm14, %v4812_v26, %v4814_v8  ;;  %5838 = vmatpush.msra.mxu0 %v4472_v10  ;;  %v7318_v8 = vpack.i.bf16 %v13469_v48, %v15957_v18  ;;  %vm16011_vm14 = vmmov %vm16006_vm0 }
 0x792   : > { %v13602_v50 = vpop.permute.xlu1 %7094 }
 0x793   : > { %7304 = vrot.lane.b32.xlu2 %v7303_v57, %s7837_s28  ;;  %v4471_v57 = vld [vmem:[%s14441_s12 + $0x80] sm:$0xff] }
 0x794   : > { %5839 = vmatpush.msra.mxu0 %v4471_v57 }
 0x795   : > { %7294 = vrot.lane.b32.xlu0 %v7293_v52, %s7837_s28  ;;  %v13622_v19 = vpop.permute.xlu2 %7139  ;;  %v15980_v52 = vld [vmem:[#allocation15_spill] sm:$0xff] }
 0x796   : > { %6604 = vmatmul.msk.f32.gmra.mxu1 %vm15979_vm4, %v13613_v41  ;;  %v4816_v15 = vrot.slane %v15980_v52, 2  ;;  %v7142_v7 = vunpack.i.h.bf16 %v13622_v19  ;;  %v7141_v20 = vunpack.i.l.bf16 %v13622_v19  ;;  %v7027_v19 = vunpack.i.h.bf16 %v13443_v23  ;;  %vm16013_vm4 = vmmov %vm16006_vm0 }
 0x797   : > { %v13626_v54 = vpop.permute.xlu0 %7089 }
 0x798   : > { %v7091_v26 = vunpack.i.l.bf16 %v13626_v54  ;;  %7314 = vrot.lane.b32.xlu1 %v7313_v22, %s7835_s13  ;;  %v7308_v22 = vpack.i.bf16 %v13061_v2, %v15985_v32  ;;  %v13645_v5 = vsel %vm15986_vm6, %v4816_v15, %v4817_v30  ;;  %v7026_v2 = vunpack.i.l.bf16 %v13443_v23  ;;  %vm16018_vm6 = vmmov %vm16006_vm0 }
 0x79a   : > { %v5485_v10 = vsel %vm15984_vm13, %v5453_v58, %v7091_v26  ;;  %v13639_v61 = vpop.permute.xlu1 %7109  ;;  %v15990_v26 = vld [vmem:[#allocation73_spill] sm:$0xff]  ;;  %vm16016_vm13 = vmmov %vm16008_vm1 }
 0x79b   : > { %7319 = vrot.lane.b32.xlu2 %v7318_v8, %s7837_s28  ;;  %v5518_v48 = vsel %vm5515_vm15, %v5485_v10, %v7142_v7  ;;  %v15989_v7 = vld [vmem:[#allocation24_spill] sm:$0xff]  ;;  %v4819_v15 = vrot.slane %v15990_v26, 2  ;;  %v15992_v10 = vld [vmem:[#allocation81_spill] sm:$0xff]  ;;  %v15996_v26 = vld [vmem:[#allocation22_spill] sm:$0xff] }
 0x79c   : > { %5733 = vmatmul.f32.gmra.mxu3 %v5518_v48  ;;  %v7333_v57 = vpack.i.bf16 %v15958_v46, %v15989_v7  ;;  %v7323_v48 = vpack.i.bf16 %v15957_v18, %v15992_v10  ;;  %v15997_v7 = vld [vmem:[#allocation83_spill] sm:$0xff]  ;;  %v15998_v10 = vld [vmem:[#allocation14_spill] sm:$0xff] }
 0x79d   : > { %7309 = vrot.lane.b32.xlu0 %v7308_v22, %s7839_s0  ;;  %v13666_v59 = vsel %vm15993_vm12, %v4817_v30, %v4819_v15  ;;  %v7343_v22 = vpack.i.bf16 %v13520_v6, %v15969_v17  ;;  %v4821_v46 = vrot.slane %v15997_v7, 2  ;;  %v4822_v30 = vrot.slane %v15998_v10, 2  ;;  %v13680_v15 = vpop.f32.mrf.mxu1  ;;  %vm16020_vm12 = vmmov %vm16008_vm1 }
 0x79e   : > { %6605 = vmatmul.msk.f32.gmra.mxu1 %vm15987_vm11, %v13645_v5  ;;  %15999 = vst [vmem:[#allocation35_spill] sm:$0xff] %v13680_v15  ;;  %vm16019_vm11 = vmmov %vm16008_vm1 }
 0x79f   : > { %v13652_v58 = vpop.permute.xlu0 %7104  ;;  %v13686_v32 = vsel %vm16000_vm10, %v4821_v46, %v4822_v30  ;;  %v16003_v46 = vld [vmem:[#allocation77_spill] sm:$0xff]  ;;  %vm16023_vm10 = vmmov %vm16006_vm0 }
 0x7a0   : > { %7329 = vrot.lane.b32.xlu1 %v7328_v39, %s7837_s28  ;;  %v4824_v27 = vrot.slane %v16003_v46, 2  ;;  %v7017_v46 = vunpack.i.h.bf16 %v13415_v16 }
 0x7a2   : > { %v13661_v8 = vpop.permute.xlu1 %7124 }
 0x7a3   : > { %7334 = vrot.lane.b32.xlu2 %v7333_v57, %s7839_s0  ;;  %15991 = vst [vmem:[#allocation60_spill] sm:$0xff] %v13661_v8  ;;  %v7348_v57 = vpack.i.bf16 %v15969_v17, %v15996_v26  ;;  %v16002_v26 = vld [vmem:[#allocation20_spill] sm:$0xff] }
 0x7a4   : > { %v7358_v17 = vpack.i.bf16 %v15970_v14, %v16002_v26 }
 0x7a5   : > { %7324 = vrot.lane.b32.xlu0 %v7323_v48, %s7839_s0  ;;  %v7338_v48 = vpack.i.bf16 %v13551_v36, %v13520_v6  ;;  %v7363_v6 = vpack.i.bf16 %v13613_v41, %v13585_v33  ;;  %v13712_v8 = vpop.f32.mrf.mxu1  ;;  %v7102_v36 = vunpack.i.h.bf16 %v13548_v24 }
 0x7a6   : > { %6606 = vmatmul.msk.f32.gmra.mxu1 %vm15994_vm9, %v13666_v59  ;;  %vm16022_vm9 = vmmov %vm16009_vm2 }
 0x7a7   : > { %v13673_v39 = vpop.permute.xlu0 %7119 }
 0x7a8   : > { %15995 = vst [vmem:[#allocation85_spill] sm:$0xff] %v13673_v39  ;;  %7344 = vrot.lane.b32.xlu1 %v7343_v22, %s7837_s28  ;;  %v7101_v22 = vunpack.i.l.bf16 %v13548_v24  ;;  %v16014_v24 = vld [vmem:[#allocation45_spill] sm:$0xff] }
 0x7aa   : > { %v7135_v18 = vpop.permute.xlu1 %7134 }
 0x7ab   : > { %7349 = vrot.lane.b32.xlu2 %v7348_v57, %s7839_s0  ;;  %v7136_v57 = vunpack.i.l.bf16 %v7135_v18  ;;  %v7137_v23 = vunpack.i.h.bf16 %v7135_v18  ;;  %v5458_v18 = vsel %vm16018_vm6, %v12337_v31, %v7027_v19  ;;  %v7096_v31 = vunpack.i.l.bf16 %v13602_v50  ;;  %v7155_v19 = vpop.permute.xlu2 %7154 }
 0x7ad   : > { %7339 = vrot.lane.b32.xlu0 %v7338_v48, %s7835_s13  ;;  %v5457_v48 = vsel %vm16004_vm5, %v12302_v40, %v7026_v2  ;;  %vm16025_vm5 = vmmov %vm16006_vm0 }
 0x7ae   : > { %6607 = vmatmul.msk.f32.gmra.mxu1 %vm16001_vm7, %v13686_v32  ;;  %v13706_v26 = vsel %vm16007_vm3, %v5457_v48, %v7101_v22  ;;  %v16017_v48 = vld [vmem:[#allocation28_spill] sm:$0xff]  ;;  %vm16024_vm7 = vmmov %vm16006_vm0 }
 0x7af   : > { %v7130_v15 = vpop.permute.xlu0 %7129 }
 0x7b0   : > { %v7131_v13 = vunpack.i.l.bf16 %v7130_v15  ;;  %7359 = vrot.lane.b32.xlu1 %v7358_v17, %s7839_s0  ;;  %v7132_v40 = vunpack.i.h.bf16 %v7130_v15 }
 0x7b2   : > { %v5548_v39 = vsel %vm16006_vm0, %v16005_v28, %v7131_v13  ;;  %v7092_v28 = vunpack.i.h.bf16 %v13626_v54  ;;  %v13719_v13 = vsel %vm16009_vm2, %v4822_v30, %v4824_v27  ;;  %v13728_v15 = vpop.permute.xlu1 %7149  ;;  %v5549_v30 = vsel %vm16015_vm8, %v16014_v24, %v7132_v40  ;;  %vm16026_vm0 = vmmov %vm16008_vm1 }
 0x7b3   : > { %7364 = vrot.lane.b32.xlu2 %v7363_v6, %s7835_s13  ;;  %v5580_v17 = vsel %vm16008_vm1, %v5548_v39, %v7136_v57  ;;  %v16010_v39 = vld [vmem:[#allocation54_spill] sm:$0xff]  ;;  %v16012_v57 = vld [vmem:[#allocation92_spill] sm:$0xff]  ;;  %v5581_v40 = vsel %vm16020_vm12, %v5549_v30, %v7137_v23  ;;  %v7388_v23 = vpack.i.bf16 %v13666_v59, %v13645_v5  ;;  %vm16028_vm3 = vmmov %vm16026_vm0 }
 0x7b4   : > { %v5612_v2 = vsel %vm5515_vm15, %v5580_v17, %v7141_v20  ;;  %v7373_v16 = vpack.i.bf16 %v15980_v52, %v16010_v39  ;;  %v7378_v20 = vpack.i.bf16 %v13613_v41, %v15981_v47  ;;  %v5454_v27 = vsel %vm16013_vm4, %v16012_v57, %v7017_v46  ;;  %vm16029_vm1 = vmmov %vm16013_vm4 }
 0x7b5   : > { %7354 = vrot.lane.b32.xlu0 %v7353_v11, %s7837_s28  ;;  %5840 = vmatmul.f32.vlgmr.msra.gmra.mxu0 %v5612_v2  ;;  %v5486_v6 = vsel %vm16016_vm13, %v5454_v27, %v7092_v28  ;;  %v4826_v17 = vrot.slane %v16017_v48, 2  ;;  %v13742_v2 = vsel %vm16019_vm11, %v5458_v18, %v7102_v36  ;;  %v7368_v46 = vpack.i.bf16 %v13585_v33, %v15980_v52  ;;  %v13757_v33 = vpop.f32.mrf.mxu1  ;;  %vm16031_vm2 = vmmov %vm16029_vm1 }
 0x7b6   : > { %6608 = vmatmul.msk.f32.gmra.mxu1 %vm16011_vm14, %v13719_v13  ;;  %v7021_v28 = vunpack.i.l.bf16 %v13455_v29  ;;  %v16021_v36 = vrot.slane %v13104_v63, 2  ;;  %vm16032_vm14 = vmmov %vm16029_vm1 }
 0x7b7   : > { %v7145_v54 = vpop.permute.xlu0 %7144  ;;  %vm16033_vm4 = vmmov %vm16029_vm1 }
 0x7b8   : > { %v7147_v11 = vunpack.i.h.bf16 %v7145_v54  ;;  %v7146_v22 = vunpack.i.l.bf16 %v7145_v54  ;;  %7374 = vrot.lane.b32.xlu1 %v7373_v16, %s7839_s0  ;;  %v7151_v16 = vunpack.i.l.bf16 %v13728_v15  ;;  %v5455_v24 = vsel %vm16024_vm7, %v15925_v62, %v7021_v28  ;;  %vm16034_vm8 = vmmov %vm16029_vm1 }
 0x7b9   : > { %v5487_v18 = vsel %vm16026_vm0, %v5455_v24, %v7096_v31  ;;  %v7022_v62 = vunpack.i.h.bf16 %v13455_v29  ;;  %v7041_v28 = vunpack.i.l.bf16 %v13466_v42  ;;  %v7152_v31 = vunpack.i.h.bf16 %v13728_v15  ;;  %v16030_v15 = vld [vmem:[#allocation48_spill] sm:$0xff]  ;;  %vm16035_vm13 = vmmov %vm16026_vm0 }
 0x7ba   : > { %v5519_v41 = vsel %vm5515_vm15, %v5486_v6, %v7147_v11  ;;  %v5613_v54 = vsel %vm5515_vm15, %v5581_v40, %v7146_v22  ;;  %v7393_v11 = vpack.i.bf16 %v13645_v5, %v15997_v7  ;;  %v5550_v30 = vsel %vm16025_vm5, %v15926_v53, %v7151_v16  ;;  %v16027_v5 = vld [vmem:[#allocation102_spill] sm:$0xff]  ;;  %vm16036_vm6 = vmmov %vm16029_vm1 }
 0x7bb   : > { %7379 = vrot.lane.b32.xlu2 %v7378_v20, %s7837_s28  ;;  %5736 = vmatmul.f32.gmra.mxu3 %v5519_v41  ;;  %v13755_v20 = vsel %vm16022_vm9, %v4826_v17, %v16021_v36  ;;  %v7156_v6 = vunpack.i.l.bf16 %v7155_v19  ;;  %v7165_v17 = vpop.permute.xlu1 %7164  ;;  %v7032_v40 = vunpack.i.h.bf16 %v13435_v55  ;;  %v7042_v16 = vunpack.i.h.bf16 %v13466_v42  ;;  %v7170_v42 = vpop.permute.xlu2 %7169  ;;  %vm16037_vm11 = vmmov %vm16026_vm0 }
 0x7bc   : > { %v7403_v29 = vpack.i.bf16 %v13666_v59, %v15998_v10  ;;  %v5456_v24 = vsel %vm16031_vm2, %v12268_v43, %v7022_v62  ;;  %v7166_v59 = vunpack.i.l.bf16 %v7165_v17  ;;  %vm16038_vm12 = vmmov %vm16026_vm0 }
 0x7bd   : > { %7369 = vrot.lane.b32.xlu0 %v7368_v46, %s7837_s28  ;;  %5843 = vmatmul.f32.gmra.mxu0 %v5613_v54  ;;  %v7383_v46 = vpack.i.bf16 %v15981_v47, %v16027_v5  ;;  %v5582_v53 = vsel %vm16028_vm3, %v5550_v30, %v7156_v6  ;;  %v7107_v54 = vunpack.i.h.bf16 %v13652_v58  ;;  %v13799_v30 = vpop.f32.mrf.mxu1  ;;  %v5551_v6 = vsel %vm16034_vm8, %v15931_v9, %v7152_v31  ;;  %vm16039_vm9 = vmmov %vm16026_vm0 }
 0x7be   : > { %6609 = vmatmul.msk.f32.gmra.mxu1 %vm16023_vm10, %v13755_v20  ;;  %v5464_v43 = vsel %vm16036_vm6, %v12719_v3, %v7042_v16  ;;  %vm16041_vm10 = vmmov %vm16026_vm0  ;;  %v7171_v16 = vunpack.i.l.bf16 %v7170_v42 }
 0x7bf   : > { %v7160_v22 = vpop.permute.xlu0 %7159  ;;  %vm16042_vm7 = vmmov %vm16029_vm1 }
 0x7c0   : > { %v7162_v57 = vunpack.i.h.bf16 %v7160_v22  ;;  %v7161_v27 = vunpack.i.l.bf16 %v7160_v22  ;;  %7389 = vrot.lane.b32.xlu1 %v7388_v23, %s7835_s13  ;;  %v7117_v23 = vunpack.i.h.bf16 %v13582_v12  ;;  %v7097_v22 = vunpack.i.h.bf16 %v13602_v50  ;;  %vm16043_vm5 = vmmov %vm16029_vm1 }
 0x7c1   : > { %v5460_v50 = vsel %vm16032_vm14, %v12823_v49, %v7032_v40  ;;  %v7036_v40 = vunpack.i.l.bf16 %v13480_v34  ;;  %vm16045_vm0 = vmmov %vm16029_vm1 }
 0x7c2   : > { %v5520_v41 = vsel %vm5515_vm15, %v5487_v18, %v7162_v57  ;;  %v5614_v36 = vsel %vm5515_vm15, %v5582_v53, %v7161_v27  ;;  %v7167_v57 = vunpack.i.h.bf16 %v7165_v17  ;;  %v7408_v27 = vpack.i.bf16 %v15998_v10, %v16030_v15  ;;  %vm16048_vm2 = vmmov %vm16045_vm0 }
 0x7c3   : > { %7394 = vrot.lane.b32.xlu2 %v7393_v11, %s7837_s28  ;;  %5739 = vmatmul.f32.gmra.mxu3 %v5520_v41  ;;  %v7116_v11 = vunpack.i.l.bf16 %v13582_v12  ;;  %v5463_v12 = vsel %vm16033_vm4, %v12667_v35, %v7041_v28  ;;  %v13805_v18 = vsel %vm16035_vm13, %v5460_v50, %v7107_v54  ;;  %v7157_v41 = vunpack.i.h.bf16 %v7155_v19  ;;  %v7180_v62 = vpop.permute.xlu1 %7179  ;;  %v16040_v28 = vld [vmem:[#allocation53_spill] sm:$0xff]  ;;  %v7185_v50 = vpop.permute.xlu2 %7184  ;;  %vm16049_vm14 = vmmov %vm16045_vm0 }
 0x7c4   : > { %v5488_v49 = vsel %vm16037_vm11, %v5456_v24, %v7097_v22  ;;  %v13814_v35 = vsel %vm16039_vm9, %v5464_v43, %v7117_v23  ;;  %v7398_v3 = vpack.i.bf16 %v15997_v7, %v16040_v28  ;;  %v7111_v53 = vunpack.i.l.bf16 %v13639_v61  ;;  %vm16050_vm4 = vmmov %vm16045_vm0 }
 0x7c5   : > { %7384 = vrot.lane.b32.xlu0 %v7383_v46, %s7839_s0  ;;  %5846 = vmatmul.f32.gmra.mxu0 %v5614_v36  ;;  %v13811_v46 = vsel %vm16038_vm12, %v5463_v12, %v7116_v11  ;;  %v5521_v9 = vsel %vm5515_vm15, %v5488_v49, %v7167_v57  ;;  %v5583_v19 = vsel %vm16041_vm10, %v5551_v6, %v7157_v41  ;;  %v7182_v23 = vunpack.i.h.bf16 %v7180_v62  ;;  %vm16053_vm6 = vmmov %vm16045_vm0 }
 0x7c6   : > { %6610 = vmatmul.msk.f32.gmra.mxu1 %vm16029_vm1, %v13374_v37  ;;  %v5615_v54 = vsel %vm5515_vm15, %v5583_v19, %v7166_v59  ;;  %v7418_v36 = vpack.i.bf16 %v13686_v32, %v16017_v48  ;;  %v5461_v11 = vsel %vm16043_vm5, %v12702_v45, %v7036_v40  ;;  %v7181_v22 = vunpack.i.l.bf16 %v7180_v62  ;;  %vm16046_vm1 = vmmov %vm16028_vm3  ;;  %v13840_v59 = vpop.f32.mrf.mxu1 }
 0x7c7   : > { %v7175_v17 = vpop.permute.xlu0 %7174  ;;  %v13837_v24 = vsel %vm16028_vm3, %v5461_v11, %v7111_v53  ;;  %v5522_v45 = vsel %vm5515_vm15, %v13706_v26, %v7182_v23  ;;  %v7037_v6 = vunpack.i.h.bf16 %v13480_v34  ;;  %v7413_v43 = vpack.i.bf16 %v13719_v13, %v13686_v32  ;;  %vm16051_vm8 = vmmov %vm16046_vm1 }
 0x7c8   : > { %7404 = vrot.lane.b32.xlu1 %v7403_v29, %s7837_s28  ;;  %v7176_v31 = vunpack.i.l.bf16 %v7175_v17  ;;  %v16044_v29 = vld [vmem:[#allocation57_spill] sm:$0xff]  ;;  %v7172_v41 = vunpack.i.h.bf16 %v7170_v42  ;;  %v7187_v62 = vunpack.i.h.bf16 %v7185_v50  ;;  %vm16052_vm13 = vmmov %vm16046_vm1 }
 0x7c9   : > { %v7423_v57 = vpack.i.bf16 %v16017_v48, %v16044_v29  ;;  %v5462_v32 = vsel %vm16049_vm14, %v12755_v0, %v7037_v6  ;;  %vm16055_vm11 = vmmov %vm16045_vm0 }
 0x7ca   : > { %v5553_v34 = vsel %vm16050_vm4, %v15933_v4, %v7172_v41  ;;  %v5523_v0 = vsel %vm5515_vm15, %v13742_v2, %v7187_v62  ;;  %v7428_v4 = vpack.i.bf16 %v13719_v13, %v13104_v63  ;;  %vm16058_vm12 = vmmov %vm16045_vm0 }
 0x7cb   : > { %7409 = vrot.lane.b32.xlu2 %v7408_v27, %s7839_s0  ;;  %5742 = vmatmul.f32.gmra.mxu3 %v5521_v9  ;;  %v5552_v27 = vsel %vm16045_vm0, %v15936_v25, %v7171_v16  ;;  %v7112_v25 = vunpack.i.h.bf16 %v13639_v61  ;;  %v7177_v9 = vunpack.i.h.bf16 %v7175_v17  ;;  %v7438_v61 = vpack.i.bf16 %v13374_v37, %v13755_v20  ;;  %v13867_v17 = vpop.permute.xlu1 %7194  ;;  %vm16060_vm9 = vmmov %vm16046_vm1 }
 0x7cc   : > { %v5584_v12 = vsel %vm16046_vm1, %v5552_v27, %v7176_v31  ;;  %v7186_v16 = vunpack.i.l.bf16 %v7185_v50  ;;  %v7200_v31 = vpop.permute.xlu2 %7199  ;;  %v7196_v23 = vunpack.i.l.bf16 %v13867_v17  ;;  %v7448_v27 = vpack.i.bf16 %v13381_v60, %v13404_v21  ;;  %v16054_v50 = vld [vmem:[#allocation87_spill] sm:$0xff]  ;;  %vm16061_vm10 = vmmov %vm16046_vm1 }
 0x7cd   : > { %7399 = vrot.lane.b32.xlu0 %v7398_v3, %s7839_s0  ;;  %5849 = vmatmul.f32.gmra.mxu0 %v5615_v54  ;;  %v5616_v49 = vsel %vm5515_vm15, %v5584_v12, %v7181_v22  ;;  %v16047_v3 = vld [vmem:[#allocation94_spill] sm:$0xff]  ;;  %v13865_v42 = vsel %vm16051_vm8, %v5462_v32, %v7112_v25  ;;  %v5585_v53 = vsel %vm16052_vm13, %v5553_v34, %v7177_v9  ;;  %v7031_v54 = vunpack.i.l.bf16 %v13435_v55  ;;  %vm16067_vm5 = vmmov %vm16045_vm0 }
 0x7ce   : > { %6611 = vmatmul.msk.f32.gmra.mxu1 %vm16042_vm7, %v13396_v51  ;;  %v7433_v26 = vpack.i.bf16 %v13104_v63, %v16047_v3  ;;  %v5617_v11 = vsel %vm5515_vm15, %v5585_v53, %v7186_v16  ;;  %v7106_v22 = vunpack.i.l.bf16 %v13652_v58  ;;  %v7047_v55 = vunpack.i.h.bf16 %v13457_v1  ;;  %v16057_v25 = vld [vmem:[#allocation46_spill] sm:$0xff]  ;;  %v16064_v53 = vld [vmem:[#allocation84_spill] sm:$0xff]  ;;  %vm16065_vm7 = vmmov %vm16045_vm0 }
 0x7cf   : > { %v13850_v40 = vpop.permute.xlu0 %7189  ;;  %v7202_v13 = vunpack.i.h.bf16 %v7200_v31  ;;  %v7052_v12 = vunpack.i.h.bf16 %v13512_v38  ;;  %v7051_v58 = vunpack.i.l.bf16 %v13512_v38  ;;  %v7443_v38 = vpack.i.bf16 %v13755_v20, %v13381_v60  ;;  %v16069_v20 = vld [vmem:[#allocation59_spill] sm:$0xff]  ;;  %vm16070_vm3 = vmmov %vm16045_vm0 }
 0x7d0   : > { %7419 = vrot.lane.b32.xlu1 %v7418_v36, %s7837_s28  ;;  %v7191_v19 = vunpack.i.l.bf16 %v13850_v40  ;;  %v13877_v36 = vpop.f32.mrf.mxu1  ;;  %vm16072_vm14 = vmmov %vm16046_vm1 }
 0x7d1   : > { %vm16073_vm4 = vmmov %vm16046_vm1 }
 0x7d2   : > { %v5554_v2 = vsel %vm16053_vm6, %v12843_v56, %v7191_v19  ;;  %v5459_v56 = vsel %vm16058_vm12, %v16057_v25, %v7031_v54  ;;  %vm16075_vm8 = vmmov %vm16045_vm0 }
 0x7d3   : > { %7424 = vrot.lane.b32.xlu2 %v7423_v57, %s7839_s0  ;;  %5745 = vmatmul.f32.gmra.mxu3 %v5522_v45  ;;  %v7046_v57 = vunpack.i.l.bf16 %v13457_v1  ;;  %v16056_v45 = vld [vmem:[#allocation60_spill] sm:$0xff]  ;;  %v16059_v1 = vld [vmem:[#allocation85_spill] sm:$0xff]  ;;  %v5586_v62 = vsel %vm16060_vm9, %v5554_v2, %v7196_v23  ;;  %v5491_v32 = vsel %vm16061_vm10, %v5459_v56, %v7106_v22  ;;  %v16068_v23 = vld [vmem:[#allocation75_spill] sm:$0xff] }
 0x7d4   : > { %v7127_v6 = vunpack.i.h.bf16 %v16056_v45  ;;  %v7126_v41 = vunpack.i.l.bf16 %v16056_v45  ;;  %v7121_v9 = vunpack.i.l.bf16 %v16059_v1  ;;  %v5524_v19 = vsel %vm5515_vm15, %v5491_v32, %v7202_v13  ;;  %v16074_v13 = vld [vmem:[#allocation72_spill] sm:$0xff]  ;;  %vm16077_vm13 = vmmov %vm16045_vm0  ;;  %v16078_v56 = vld [vmem:[#allocation103_spill] sm:$0xff] }
 0x7d5   : > { %7414 = vrot.lane.b32.xlu0 %v7413_v43, %s7835_s13  ;;  %5852 = vmatmul.f32.gmra.mxu0 %v5616_v49  ;;  %v7122_v49 = vunpack.i.h.bf16 %v16059_v1  ;;  %v5465_v16 = vsel %vm16065_vm7, %v16064_v53, %v7046_v57  ;;  %v5467_v60 = vsel %vm16045_vm0, %v16068_v23, %v7051_v58  ;;  %v16076_v58 = vld [vmem:[#allocation58_spill] sm:$0xff]  ;;  %vm16079_vm6 = vmmov %vm16046_vm1 }
 0x7d6   : > { %6612 = vmatmul.msk.f32.gmra.mxu1 %vm16048_vm2, %v13399_v44  ;;  %vm16071_vm2 = vmmov %vm16046_vm1  ;;  %v13926_v2 = vsel %vm16072_vm14, %v5467_v60, %v7126_v41  ;;  %v16084_v53 = vld [vmem:[#allocation106_spill] sm:$0xff] }
 0x7d7   : > { %v7205_v43 = vpop.permute.xlu0 %7204  ;;  %vm16085_vm12 = vmmov %vm16046_vm1 }
 0x7d8   : > { %7434 = vrot.lane.b32.xlu1 %v7433_v26, %s7839_s0  ;;  %v7201_v26 = vunpack.i.l.bf16 %v7200_v31  ;;  %v7192_v31 = vunpack.i.h.bf16 %v13850_v40  ;;  %v7207_v57 = vunpack.i.h.bf16 %v7205_v43  ;;  %vm16087_vm9 = vmmov %vm16045_vm0 }
 0x7d9   : > { %vm16088_vm10 = vmmov %vm16046_vm1 }
 0x7da   : > { %v5555_v45 = vsel %vm16077_vm13, %v16076_v58, %v7192_v31  ;;  %v5525_v25 = vsel %vm5515_vm15, %v13805_v18, %v7207_v57  ;;  %v16081_v18 = vld [vmem:[#allocation97_spill] sm:$0xff]  ;;  %v16089_v58 = vld [vmem:[#allocation90_spill] sm:$0xff]  ;;  %vm16091_vm7 = vmmov %vm16045_vm0 }
 0x7db   : > { %7439 = vrot.lane.b32.xlu2 %v7438_v61, %s7835_s13  ;;  %5748 = vmatmul.f32.gmra.mxu3 %v5523_v0  ;;  %v16062_v61 = vld [vmem:[#allocation30_spill] sm:$0xff]  ;;  %vm16098_vm14 = vmmov %vm16045_vm0 }
 0x7dc   : > { %v16063_v34 = vpack.i.bf16 %v13374_v37, %v16062_v61  ;;  %v16066_v0 = vld [vmem:[#allocation34_spill] sm:$0xff]  ;;  %v5468_v37 = vsel %vm16070_vm3, %v16069_v20, %v7052_v12  ;;  %v7206_v12 = vunpack.i.l.bf16 %v7205_v43  ;;  %v7215_v43 = vpop.permute.xlu2 %7214  ;;  %vm16094_vm3 = vmmov %vm16046_vm1 }
 0x7dd   : > { %7429 = vrot.lane.b32.xlu0 %v7428_v4, %s7837_s28  ;;  %5855 = vmatmul.f32.gmra.mxu0 %v5617_v11  ;;  %v5466_v54 = vsel %vm16067_vm5, %v16066_v0, %v7047_v55  ;;  %v5618_v4 = vsel %vm5515_vm15, %v5586_v62, %v7201_v26  ;;  %v13920_v11 = vsel %vm16046_vm1, %v5465_v16, %v7121_v9  ;;  %v13932_v55 = vpop.f32.mrf.mxu1  ;;  %v7216_v26 = vunpack.i.l.bf16 %v7215_v43  ;;  %vm16092_vm5 = vmmov %vm16046_vm1 }
 0x7de   : > { %6613 = vmatmul.msk.f32.gmra.mxu1 %vm16055_vm11, %v16054_v50  ;;  %v13923_v22 = vsel %vm16071_vm2, %v5466_v54, %v7122_v49  ;;  %v13929_v40 = vsel %vm16073_vm4, %v5468_v37, %v7127_v6  ;;  %v7210_v50 = vpop.permute.xlu1 %7209  ;;  %v16080_v49 = vld [vmem:[#allocation18_spill] sm:$0xff]  ;;  %vm16082_vm11 = vmmov %vm16045_vm0  ;;  %v7458_v16 = vpack.i.bf16 %v16084_v53, %v16062_v61  ;;  %v7217_v20 = vunpack.i.h.bf16 %v7215_v43 }
 0x7df   : > { %v7220_v6 = vpop.permute.xlu0 %7219  ;;  %v7211_v1 = vunpack.i.l.bf16 %v7210_v50  ;;  %v7212_v54 = vunpack.i.h.bf16 %v7210_v50  ;;  %vm16096_vm1 = vmmov %vm16045_vm0 }
 0x7e0   : > { %7449 = vrot.lane.b32.xlu1 %v7448_v27, %s7839_s0  ;;  %v7197_v27 = vunpack.i.h.bf16 %v13867_v17  ;;  %v7221_v9 = vunpack.i.l.bf16 %v7220_v6  ;;  %vm16099_vm4 = vmmov %vm16071_vm2 }
 0x7e1   : > { %v5556_v62 = vsel %vm16082_vm11, %v16081_v18, %v7211_v1  ;;  %vm16102_vm13 = vmmov %vm16071_vm2 }
 0x7e2   : > { %v5587_v41 = vsel %vm16079_vm6, %v5555_v45, %v7197_v27  ;;  %v5588_v0 = vsel %vm16085_vm12, %v5556_v62, %v7216_v26  ;;  %v16093_v62 = vld [vmem:[#allocation68_spill] sm:$0xff]  ;;  %vm16104_vm6 = vmmov %vm16045_vm0 }
 0x7e3   : > { %7454 = vrot.lane.b32.xlu2 %v16063_v34, %s7837_s28  ;;  %5751 = vmatmul.f32.gmra.mxu3 %v5524_v19  ;;  %v5619_v17 = vsel %vm5515_vm15, %v5587_v41, %v7206_v12  ;;  %v16083_v34 = vld [vmem:[#allocation101_spill] sm:$0xff]  ;;  %vm16106_vm11 = vmmov %vm16071_vm2 }
 0x7e4   : > { %vm16109_vm12 = vmmov %vm16045_vm0 }
 0x7e5   : > { %7444 = vrot.lane.b32.xlu0 %v7443_v38, %s7837_s28  ;;  %5858 = vmatmul.f32.gmra.mxu0 %v5618_v4  ;;  %v7230_v4 = vpop.permute.xlu2 %7229 }
 0x7e6   : > { %6614 = vmatmul.msk.f32.gmra.mxu1 %vm16075_vm8, %v16074_v13  ;;  %v7225_v32 = vpop.permute.xlu1 %7224  ;;  %v7231_v13 = vunpack.i.l.bf16 %v7230_v4  ;;  %vm16101_vm8 = vmmov %vm16045_vm0 }
 0x7e7   : > { %v7235_v19 = vpop.permute.xlu0 %7234  ;;  %v7227_v31 = vunpack.i.h.bf16 %v7225_v32  ;;  %v7226_v23 = vunpack.i.l.bf16 %v7225_v32 }
 0x7e8   : > { %5223 = vrot.lane.b32.xlu1 %v13396_v51, %s7835_s13  ;;  %v7222_v51 = vunpack.i.h.bf16 %v7220_v6  ;;  %v7236_v50 = vunpack.i.l.bf16 %v7235_v19 }
 0x7e9   : > { %v5527_v37 = vsel %vm5515_vm15, %v13865_v42, %v7227_v31 }
 0x7ea   : > { %v5526_v38 = vsel %vm5515_vm15, %v13837_v24, %v7222_v51  ;;  %v16086_v24 = vld [vmem:[#allocation100_spill] sm:$0xff]  ;;  %v7237_v51 = vunpack.i.h.bf16 %v7235_v19 }
 0x7eb   : > { %5319 = vrot.lane.b32.xlu2 %v16078_v56, %s7837_s28  ;;  %5754 = vmatmul.f32.gmra.mxu3 %v5525_v25  ;;  %v5557_v60 = vsel %vm16087_vm9, %v16086_v24, %v7212_v54  ;;  %v16090_v25 = vld [vmem:[#allocation80_spill] sm:$0xff]  ;;  %vm16110_vm9 = vmmov %vm16071_vm2 }
 0x7ec   : > { %v5589_v61 = vsel %vm16088_vm10, %v5557_v60, %v7217_v20  ;;  %v5558_v56 = vsel %vm16091_vm7, %v16090_v25, %v7231_v13  ;;  %vm16112_vm10 = vmmov %vm16045_vm0 }
 0x7ed   : > { %5413 = vrot.lane.b32.xlu0 %v16080_v49, %s7839_s0  ;;  %5861 = vmatmul.f32.gmra.mxu0 %v5619_v17  ;;  %v5621_v27 = vsel %vm5515_vm15, %v5589_v61, %v7226_v23  ;;  %v7245_v41 = vpop.permute.xlu2 %7244  ;;  %v5590_v42 = vsel %vm16092_vm5, %v5558_v56, %v7236_v50  ;;  %v7232_v17 = vunpack.i.h.bf16 %v7230_v4  ;;  %vm16115_vm7 = vmmov %vm16071_vm2 }
 0x7ee   : > { %v7240_v57 = vpop.permute.xlu1 %7239  ;;  %vm16119_vm5 = vmmov %vm16045_vm0 }
 0x7ef   : > { %v7250_v12 = vpop.permute.xlu0 %7249  ;;  %v7242_v45 = vunpack.i.h.bf16 %v7240_v57  ;;  %v7241_v6 = vunpack.i.l.bf16 %v7240_v57  ;;  %v5559_v26 = vsel %vm16045_vm0, %v16093_v62, %v7232_v17  ;;  %vm16120_vm0 = vmmov %vm16071_vm2 }
 0x7f0   : > { %5225 = vrot.lane.b32.xlu1 %v13399_v44, %s7835_s13  ;;  %v5620_v44 = vsel %vm5515_vm15, %v5588_v0, %v7221_v9  ;;  %v7247_v9 = vunpack.i.h.bf16 %v7245_v41  ;;  %v7251_v53 = vunpack.i.l.bf16 %v7250_v12 }
 0x7f1   : > { %v5528_v1 = vsel %vm5515_vm15, %v13811_v46, %v7242_v45  ;;  %v5622_v43 = vsel %vm5515_vm15, %v5590_v42, %v7241_v6 }
 0x7f3   : > { %5321 = vrot.lane.b32.xlu2 %v16083_v34, %s7837_s28  ;;  %5757 = vmatmul.f32.gmra.mxu3 %v5526_v38  ;;  %v5591_v38 = vsel %vm16094_vm3, %v5559_v26, %v7237_v51  ;;  %v7246_v34 = vunpack.i.l.bf16 %v7245_v41  ;;  %vm16122_vm3 = vmmov %vm16096_vm1  ;;  %s16230_s28 = sld [smem:[#allocation112_spill]] }
 0x7f5   : > { %7459 = vrot.lane.b32.xlu0 %v7458_v16, %s7839_s0  ;;  %5864 = vmatmul.f32.gmra.mxu0 %v5620_v44  ;;  %v5529_v16 = vsel %vm5515_vm15, %v13814_v35, %v7247_v9  ;;  %v7260_v46 = vpop.permute.xlu2 %7259  ;;  %v5623_v0 = vsel %vm5515_vm15, %v5591_v38, %v7246_v34  ;;  %v16095_v44 = vld [vmem:[#allocation70_spill] sm:$0xff]  ;;  %v7252_v35 = vunpack.i.h.bf16 %v7250_v12 }
 0x7f6   : > { %v7255_v32 = vpop.permute.xlu1 %7254  ;;  %v7262_v19 = vunpack.i.h.bf16 %v7260_v46  ;;  %v5560_v31 = vsel %vm16096_vm1, %v16095_v44, %v7251_v53  ;;  %v7261_v24 = vunpack.i.l.bf16 %v7260_v46 }
 0x7f7   : > { %v7265_v18 = vpop.permute.xlu0 %7264  ;;  %v7256_v54 = vunpack.i.l.bf16 %v7255_v32  ;;  %v7257_v61 = vunpack.i.h.bf16 %v7255_v32 }
 0x7f8   : > { %v5530_v60 = vsel %vm5515_vm15, %v13920_v11, %v7262_v19  ;;  %v7267_v57 = vunpack.i.h.bf16 %v7265_v18  ;;  %v7266_v13 = vunpack.i.l.bf16 %v7265_v18  ;;  %v5728_v18 = vpop.f32.mrf.mxu3 }
 0x7f9   : > { %v5592_v23 = vsel %vm16071_vm2, %v5560_v31, %v7256_v54  ;;  %v16105_v54 = vld [vmem:[#allocation71_spill] sm:$0xff]  ;;  %vm16123_vm2 = vmmov %vm16120_vm0  ;;  %s6379_s15 = scalar_lea.hbm %s16230_s28, %s6654_s19  ;;  %s7785_s21 = scalar_lea.hbm %s16230_s28, 512 }
 0x7fa   : > { %v5531_v45 = vsel %vm5515_vm15, %v13923_v22, %v7267_v57  ;;  %v16108_v57 = vld [vmem:[#allocation96_spill] sm:$0xff]  ;;  %s6382_s18 = sshll.u32 %s6379_s15, 4  ;;  %s6383_s18 = int_to_ptr.hbm [resolvable:$true] %s6382_s18 }
 0x7fb   : > { %5760 = vmatmul.f32.gmra.mxu3 %v5527_v37  ;;  %v5624_v37 = vsel %vm5515_vm15, %v5592_v23, %v7261_v24  ;;  %s7779_s27 = sshra.s32 %s6383_s18, 4  ;;  %s7780_s27 = int_to_ptr.hbm [resolvable:$true] %s7779_s27 }
 0x7fc   : > { %s7781_s20 = scalar_lea.hbm %s7780_s27, 256  ;;  %p7786_p1 = scmp.lt.s32.totalorder %s7780_s27, %s16230_s28 }
 0x7fd   : > { %5417 = vrot.lane.b32.xlu0 %v16089_v58, %s7839_s0  ;;  %5867 = vmatmul.f32.gmra.mxu0 %v5621_v27  ;;  %v16097_v27 = vld [vmem:[#allocation16_spill] sm:$0xff]  ;;  %v7275_v58 = vpop.permute.xlu2 %7274  ;;  %s16107_s0 = sld [smem:[#allocation110_spill]]  ;;  %p7782_p9 = scmp.ne.s32.totalorder %s7780_s27, %s7781_s20 }
 0x7fe   : > { %v7270_v20 = vpop.permute.xlu1 %7269  ;;  %v5561_v50 = vsel %vm16098_vm14, %v16097_v27, %v7252_v35  ;;  %vm16128_vm14 = vmmov %vm16096_vm1  ;;  %p7787_p3 = scmp.lt.s32.totalorder %s7785_s21, %s7781_s20 }
 0x7ff   : > { %v7280_v4 = vpop.permute.xlu0 %7279  ;;  %v5593_v11 = vsel %vm16099_vm4, %v5561_v50, %v7257_v61  ;;  %v7271_v25 = vunpack.i.l.bf16 %v7270_v20  ;;  %v7272_v62 = vunpack.i.h.bf16 %v7270_v20  ;;  %v16111_v50 = vld [vmem:[#allocation29_spill] sm:$0xff]  ;;  %vm16130_vm4 = vmmov %vm16096_vm1  ;;  %p7783_p13 = pnand %p7782_p9, %p7977_p11 }
 0x800   : > { %v5625_v12 = vsel %vm5515_vm15, %v5593_v11, %v7266_v13  ;;  %v7282_v41 = vunpack.i.h.bf16 %v7280_v4  ;;  %v7281_v42 = vunpack.i.l.bf16 %v7280_v4  ;;  %v5731_v35 = vpop.f32.mrf.mxu3  ;;  %p7788_p4 = por %p7787_p3, %p7786_p1 }
 0x801   : > { %p7784_p0 = pneg %p7783_p13 }
 0x802   : > { %v5532_v51 = vsel %vm5515_vm15, %v13926_v2, %v7282_v41  ;;  %v7056_v2 = vunpack.i.l.bf16 %v16105_v54 }
 0x803   : > { %5763 = vmatmul.f32.gmra.mxu3 %v5528_v1  ;;  %v16100_v1 = vld [vmem:[#allocation31_spill] sm:$0xff]  ;;  %v14012_v24 = vld [vmem:[%s16107_s0] ss:$0 sm:$0xff]  ;;  %p7789_p7 = pnand %p7788_p4, %p7784_p0 }
 0x804   : > { %v5562_v17 = vsel %vm16101_vm8, %v16100_v1, %v7271_v25  ;;  %vm16131_vm8 = vmmov %vm16120_vm0 }
 0x805   : > { %5870 = vmatmul.f32.gmra.mxu0 %v5622_v43  ;;  %v7276_v43 = vunpack.i.l.bf16 %v7275_v58  ;;  %v7290_v9 = vpop.permute.xlu2 %7289 }
 0x806   : > { %v7285_v56 = vpop.permute.xlu1 %7284  ;;  %v7291_v4 = vunpack.i.l.bf16 %v7290_v9 }
 0x807   : > { %v7295_v6 = vpop.permute.xlu0 %7294  ;;  %v5594_v22 = vsel %vm16102_vm13, %v5562_v17, %v7276_v43  ;;  %v7287_v38 = vunpack.i.h.bf16 %v7285_v56  ;;  %v7286_v53 = vunpack.i.l.bf16 %v7285_v56  ;;  %v16116_v17 = vld [vmem:[#allocation82_spill] sm:$0xff]  ;;  %vm16132_vm13 = vmmov %vm16096_vm1 }
 0x808   : > { %v5626_v26 = vsel %vm5515_vm15, %v5594_v22, %v7281_v42  ;;  %v7297_v44 = vunpack.i.h.bf16 %v7295_v6  ;;  %v7296_v20 = vunpack.i.l.bf16 %v7295_v6  ;;  %v5729_v6 = vadd.f32 %v14012_v24, %v5728_v18  ;;  %v16117_v22 = vld [vmem:[#allocation36_spill] sm:$0xff] }
 0x809   : > { %v5533_v19 = vsel %vm5515_vm15, %v13929_v40, %v7287_v38  ;;  %v5469_v40 = vsel %vm16109_vm12, %v16108_v57, %v7056_v2  ;;  %v7057_v42 = vunpack.i.h.bf16 %v16105_v54  ;;  %v7292_v18 = vunpack.i.h.bf16 %v7290_v9  ;;  %vm16137_vm12 = vmmov %vm16120_vm0 }
 0x80a   : > { %v5501_v13 = vsel %vm16110_vm9, %v5469_v40, %v7297_v44  ;;  %v5732_v2 = vadd.f32 %v14012_v24, %v5731_v35  ;;  %vm16139_vm9 = vmmov %vm16096_vm1 }
 0x80b   : > { %5766 = vmatmul.f32.gmra.mxu3 %v5529_v16  ;;  %v16103_v16 = vld [vmem:[#allocation32_spill] sm:$0xff] }
 0x80c   : > { %v5563_v46 = vsel %vm16104_vm6, %v16103_v16, %v7272_v62  ;;  %vm16133_vm6 = vmmov %vm16120_vm0 }
 0x80d   : > { %5873 = vmatmul.f32.gmra.mxu0 %v5623_v0  ;;  %v7277_v0 = vunpack.i.h.bf16 %v7275_v58  ;;  %v5564_v58 = vsel %vm16112_vm10, %v16111_v50, %v7291_v4  ;;  %vm16140_vm10 = vmmov %vm16120_vm0 }
 0x80e   : > { %v7300_v34 = vpop.permute.xlu1 %7299  ;;  %v5596_v25 = vsel %vm16115_vm7, %v5564_v58, %v7296_v20  ;;  %vm16142_vm7 = vmmov %vm16096_vm1 }
 0x80f   : > { %v14000_v32 = vpop.permute.xlu0 %7309  ;;  %v5595_v31 = vsel %vm16106_vm11, %v5563_v46, %v7277_v0  ;;  %v7301_v27 = vunpack.i.l.bf16 %v7300_v34  ;;  %v16118_v0 = vld [vmem:[#allocation56_spill] sm:$0xff]  ;;  %vm16136_vm11 = vmmov %vm16096_vm1 }
 0x810   : > { %v5627_v23 = vsel %vm5515_vm15, %v5595_v31, %v7286_v53  ;;  %v7311_v46 = vunpack.i.l.bf16 %v14000_v32  ;;  %v5470_v54 = vsel %vm16119_vm5, %v16118_v0, %v7057_v42  ;;  %vm16145_vm5 = vmmov %vm16096_vm1 }
 0x811   : > { %v5628_v1 = vsel %vm5515_vm15, %v5596_v25, %v7301_v27  ;;  %v16125_v27 = vld [vmem:[#allocation74_spill] sm:$0xff] }
 0x813   : > { %5769 = vmatmul.f32.gmra.mxu3 %v5530_v60  ;;  %v7305_v60 = vpop.permute.xlu2 %7304 }
 0x815   : > { %5876 = vmatmul.f32.gmra.mxu0 %v5624_v37  ;;  %v7302_v37 = vunpack.i.h.bf16 %v7300_v34  ;;  %v7306_v34 = vunpack.i.l.bf16 %v7305_v60 }
 0x816   : > { %v14027_v11 = vpop.permute.xlu1 %7314 }
 0x817   : > { %v14016_v61 = vpop.permute.xlu0 %7324  ;;  %v5534_v56 = vsel %vm5515_vm15, %v5501_v13, %v7302_v37  ;;  %v16124_v37 = vld [vmem:[#allocation52_spill] sm:$0xff]  ;;  %v7316_v40 = vunpack.i.l.bf16 %v14027_v11 }
 0x818   : > { %v7061_v57 = vunpack.i.l.bf16 %v16124_v37  ;;  %v7326_v42 = vunpack.i.l.bf16 %v14016_v61 }
 0x81b   : > { %5772 = vmatmul.f32.gmra.mxu3 %v5531_v45  ;;  %v14024_v45 = vld [vmem:[%s16113_s23] ss:$0 sm:$0xff]  ;;  %v7320_v53 = vpop.permute.xlu2 %7319  ;;  %s6380_s23 = sshll.u32 %s14049_s17, 4  ;;  %s6381_s23 = int_to_ptr.vmem [resolvable:$true] %s6380_s23 }
 0x81c   : > { %v6176_v43 = vadd.f32 %v14024_v45, %v16116_v17  ;;  %v6179_v50 = vadd.f32 %v14024_v45, %v16125_v27  ;;  %v7322_v58 = vunpack.i.h.bf16 %v7320_v53 }
 0x81d   : > { %5879 = vmatmul.f32.gmra.mxu0 %v5625_v12 }
 0x81e   : > { %v7330_v20 = vpop.permute.xlu1 %7329 }
 0x81f   : > { %v5734_v38 = vpop.f32.mrf.mxu3 }
 0x823   : > { %5775 = vmatmul.f32.gmra.mxu3 %v5532_v51  ;;  %v7307_v51 = vunpack.i.h.bf16 %v7305_v60 }
 0x825   : > { %5882 = vmatmul.f32.gmra.mxu0 %v5626_v26  ;;  %v7312_v26 = vunpack.i.h.bf16 %v14000_v32  ;;  %v5502_v31 = vsel %vm16120_vm0, %v5470_v54, %v7307_v51  ;;  %v14070_v54 = vpop.f32.mrf.mxu2  ;;  %vm16147_vm0 = vmmov %vm16096_vm1 }
 0x827   : > { %v5535_v4 = vsel %vm5515_vm15, %v5502_v31, %v7312_v26 }
 0x82b   : > { %5778 = vmatmul.f32.gmra.mxu3 %v5533_v19  ;;  %v14041_v19 = vpop.permute.xlu0 %7339 }
 0x82d   : > { %5885 = vmatmul.f32.gmra.mxu0 %v5627_v23  ;;  %v16121_v23 = vld [vmem:[#allocation55_spill] sm:$0xff] }
 0x82e   : > { %v5565_v60 = vsel %vm16122_vm3, %v16121_v23, %v7292_v18  ;;  %v5735_v18 = vadd.f32 %v14012_v24, %v5734_v38  ;;  %v7317_v38 = vunpack.i.h.bf16 %v14027_v11  ;;  %v7331_v23 = vunpack.i.l.bf16 %v7330_v20  ;;  %vm16148_vm3 = vmmov %vm16123_vm2 }
 0x82f   : > { %v5597_v35 = vsel %vm16123_vm2, %v5565_v60, %v7306_v34  ;;  %v7345_v60 = vpop.permute.xlu1 %7344 }
 0x830   : > { %v5629_v13 = vsel %vm5515_vm15, %v5597_v35, %v7311_v46  ;;  %v14082_v35 = vpop.f32.mrf.mxu1 }
 0x832   : > { %v5841_v12 = vpop.f32.mrf.mxu0 }
 0x833   : > { %v5842_v41 = vadd.f32 %v5841_v12, %v5729_v6  ;;  %5781 = vmatmul.f32.gmra.mxu3 %v5534_v56  ;;  %v16126_v6 = vld [vmem:[#allocation35_spill] sm:$0xff]  ;;  %v7327_v12 = vunpack.i.h.bf16 %v14016_v61  ;;  %v7332_v61 = vunpack.i.h.bf16 %v7330_v20 }
 0x835   : > { %v5955_v62 = vadd.f32 %v16117_v22, %v5842_v41  ;;  %5888 = vmatmul.f32.gmra.mxu0 %v5628_v1  ;;  %v16127_v1 = vld [vmem:[#allocation50_spill] sm:$0xff]  ;;  %v7321_v22 = vunpack.i.l.bf16 %v7320_v53 }
 0x836   : > { %v5471_v17 = vsel %vm16128_vm14, %v16127_v1, %v7061_v57  ;;  %v16135_v57 = vld [vmem:[#allocation51_spill] sm:$0xff]  ;;  %vm16153_vm14 = vmmov %vm16147_vm0 }
 0x837   : > { %v6271_v16 = vadd.f32 %v6176_v43, %v5955_v62  ;;  %v16129_v43 = vld [vmem:[#allocation61_spill] sm:$0xff]  ;;  %v7335_v62 = vpop.permute.xlu2 %7334  ;;  %v5503_v34 = vsel %vm16131_vm8, %v5471_v17, %v7322_v58  ;;  %vm16156_vm8 = vmmov %vm16147_vm0 }
 0x838   : > { %v5566_v51 = vsel %vm16130_vm4, %v16129_v43, %v7316_v40  ;;  %v5536_v0 = vsel %vm5515_vm15, %v5503_v34, %v7327_v12  ;;  %v7337_v27 = vunpack.i.h.bf16 %v7335_v62  ;;  %v14099_v34 = vpop.f32.mrf.mxu2 }
 0x839   : > { %v6303_v44 = vmul.f32 0.70710677, %v6271_v16  ;;  %v7062_v16 = vunpack.i.h.bf16 %v16124_v37  ;;  %v5598_v53 = vsel %vm16133_vm6, %v5566_v51, %v7321_v22  ;;  %v7347_v51 = vunpack.i.h.bf16 %v7345_v60  ;;  %vm16159_vm6 = vmmov %vm16147_vm0 }
 0x83a   : > { %v5844_v9 = vpop.f32.mrf.mxu0  ;;  %v5630_v31 = vsel %vm5515_vm15, %v5598_v53, %v7326_v42  ;;  %v7341_v42 = vunpack.i.l.bf16 %v14041_v19  ;;  %v16146_v53 = vld [vmem:[#allocation81_spill] sm:$0xff] }
 0x83b   : > { %6335 = vst.msk [vmem:[%s14049_s17] sm:$0xff] %vm16096_vm1, %v6303_v44  ;;  %v5845_v32 = vadd.f32 %v5844_v9, %v5732_v2  ;;  %5784 = vmatmul.f32.gmra.mxu3 %v5535_v4  ;;  %v14072_v2 = vpop.permute.xlu0 %7354  ;;  %v16134_v9 = vld [vmem:[#allocation98_spill] sm:$0xff]  ;;  %v5472_v40 = vsel %vm16136_vm11, %v16135_v57, %v7062_v16  ;;  %v7346_v16 = vunpack.i.l.bf16 %v7345_v60  ;;  %vm16149_vm1 = vmmov %vm16123_vm2 }
 0x83c   : > { %v6182_v4 = vadd.f32 %v14024_v45, %v16134_v9  ;;  %v5504_v11 = vsel %vm16137_vm12, %v5472_v40, %v7332_v61  ;;  %v16144_v61 = vld [vmem:[#allocation86_spill] sm:$0xff]  ;;  %vm16150_vm2 = vmmov %vm16147_vm0 }
 0x83d   : > { %v5958_v25 = vadd.f32 %v16126_v6, %v5845_v32  ;;  %5891 = vmatmul.f32.gmra.mxu0 %v5629_v13  ;;  %v5537_v17 = vsel %vm5515_vm15, %v5504_v11, %v7337_v27  ;;  %vm16154_vm4 = vmmov %vm16149_vm1 }
 0x83e   : > { %v5737_v56 = vpop.f32.mrf.mxu3  ;;  %vm16162_vm11 = vmmov %vm16147_vm0 }
 0x83f   : > { %v6272_v41 = vadd.f32 %v6179_v50, %v5958_v25  ;;  %v16138_v50 = vld [vmem:[#allocation79_spill] sm:$0xff]  ;;  %v5738_v20 = vadd.f32 %v14012_v24, %v5737_v56  ;;  %v16141_v25 = vld [vmem:[#allocation64_spill] sm:$0xff]  ;;  %v7350_v43 = vpop.permute.xlu2 %7349  ;;  %vm16163_vm12 = vmmov %vm16149_vm1 }
 0x840   : > { %v5567_v58 = vsel %vm16139_vm9, %v16138_v50, %v7317_v38  ;;  %v7066_v12 = vunpack.i.l.bf16 %v16141_v25  ;;  %v16143_v56 = vld [vmem:[#allocation91_spill] sm:$0xff]  ;;  %v5568_v38 = vsel %vm16147_vm0, %v16146_v53, %v7341_v42  ;;  %v7352_v60 = vunpack.i.h.bf16 %v7350_v43  ;;  %vm16165_vm9 = vmmov %vm16147_vm0 }
 0x841   : > { %v6304_v26 = vmul.f32 0.70710677, %v6272_v41  ;;  %v7336_v41 = vunpack.i.l.bf16 %v7335_v62  ;;  %v7067_v40 = vunpack.i.h.bf16 %v16141_v25  ;;  %v7357_v50 = vunpack.i.h.bf16 %v14072_v2 }
 0x842   : > { %v5847_v46 = vpop.f32.mrf.mxu0  ;;  %v7356_v25 = vunpack.i.l.bf16 %v14072_v2 }
 0x843   : > { %6336 = vst.msk [vmem:[%s14049_s17 + $0x8] sm:$0xff] %vm16132_vm13, %v6304_v26  ;;  %v5848_v44 = vadd.f32 %v5847_v46, %v5735_v18  ;;  %5787 = vmatmul.f32.gmra.mxu3 %v5536_v0  ;;  %v6185_v26 = vadd.f32 %v14024_v45, %v16143_v56  ;;  %v14101_v62 = vpop.permute.xlu0 %7369  ;;  %vm16157_vm13 = vmmov %vm16149_vm1 }
 0x845   : > { %v5961_v32 = vadd.f32 %v13712_v8, %v5848_v44  ;;  %5894 = vmatmul.f32.gmra.mxu0 %v5630_v31  ;;  %v5599_v8 = vsel %vm16140_vm10, %v5567_v58, %v7331_v23  ;;  %v5473_v44 = vsel %vm16145_vm5, %v16144_v61, %v7066_v12  ;;  %v7360_v31 = vpop.permute.xlu1 %7359  ;;  %v14109_v23 = vpop.f32.mrf.mxu1  ;;  %vm16166_vm10 = vmmov %vm16149_vm1 }
 0x846   : > { %v5740_v37 = vpop.f32.mrf.mxu3  ;;  %v5631_v18 = vsel %vm5515_vm15, %v5599_v8, %v7336_v41  ;;  %v7362_v42 = vunpack.i.h.bf16 %v7360_v31  ;;  %v7361_v56 = vunpack.i.l.bf16 %v7360_v31  ;;  %vm16169_vm5 = vmmov %vm16147_vm0 }
 0x847   : > { %v6273_v13 = vadd.f32 %v6182_v4, %v5961_v32  ;;  %v5505_v4 = vsel %vm16148_vm3, %v5473_v44, %v7347_v51  ;;  %v5741_v32 = vadd.f32 %v14012_v24, %v5740_v37  ;;  %v16151_v37 = vld [vmem:[#allocation78_spill] sm:$0xff]  ;;  %v14122_v12 = vpop.permute.xlu2 %7364  ;;  %v14128_v51 = vpop.f32.mrf.mxu2  ;;  %v16158_v44 = vld [vmem:[#allocation67_spill] sm:$0xff]  ;;  %vm16172_vm3 = vmmov %vm16150_vm2 }
 0x848   : > { %v5538_v27 = vsel %vm5515_vm15, %v5505_v4, %v7352_v60  ;;  %v6188_v8 = vadd.f32 %v14024_v45, %v16151_v37  ;;  %v7071_v53 = vunpack.i.l.bf16 %v16158_v44  ;;  %v7372_v60 = vunpack.i.h.bf16 %v14101_v62 }
 0x849   : > { %v6305_v6 = vmul.f32 0.70710677, %v6273_v13  ;;  %v7351_v13 = vunpack.i.l.bf16 %v7350_v43 }
 0x84a   : > { %v5850_v1 = vpop.f32.mrf.mxu0 }
 0x84b   : > { %6337 = vst.msk [vmem:[%s14049_s17 + $0x10] sm:$0xff] %vm16142_vm7, %v6305_v6  ;;  %v5851_v22 = vadd.f32 %v5850_v1, %v5738_v20  ;;  %5790 = vmatmul.f32.gmra.mxu3 %v5537_v17  ;;  %v7342_v20 = vunpack.i.h.bf16 %v14041_v19  ;;  %v16152_v17 = vld [vmem:[#allocation66_spill] sm:$0xff]  ;;  %v14130_v19 = vpop.permute.xlu0 %7384  ;;  %vm16167_vm7 = vmmov %vm16147_vm0 }
 0x84c   : > { %v5474_v43 = vsel %vm16153_vm14, %v16152_v17, %v7067_v40  ;;  %v7371_v40 = vunpack.i.l.bf16 %v14101_v62  ;;  %vm16170_vm0 = vmmov %vm16149_vm1 }
 0x84d   : > { %v5964_v46 = vadd.f32 %v13757_v33, %v5851_v22  ;;  %5897 = vmatmul.f32.gmra.mxu0 %v5631_v18  ;;  %v5600_v33 = vsel %vm16149_vm1, %v5568_v38, %v7346_v16  ;;  %v5506_v18 = vsel %vm16154_vm4, %v5474_v43, %v7357_v50  ;;  %v7375_v16 = vpop.permute.xlu1 %7374  ;;  %v14138_v38 = vpop.f32.mrf.mxu1  ;;  %v16161_v50 = vld [vmem:[#allocation27_spill] sm:$0xff]  ;;  %vm16173_vm1 = vmmov %vm16150_vm2 }
 0x84e   : > { %v5743_v0 = vpop.f32.mrf.mxu3  ;;  %v5632_v6 = vsel %vm5515_vm15, %v5600_v33, %v7351_v13  ;;  %v5539_v4 = vsel %vm5515_vm15, %v5506_v18, %v7362_v42  ;;  %vm16177_vm14 = vmmov %vm16173_vm1 }
 0x84f   : > { %v6274_v9 = vadd.f32 %v6185_v26, %v5964_v46  ;;  %v16155_v26 = vld [vmem:[#allocation24_spill] sm:$0xff]  ;;  %v14155_v42 = vpop.f32.mrf.mxu2  ;;  %vm16178_vm4 = vmmov %vm16173_vm1 }
 0x850   : > { %v5569_v2 = vsel %vm16156_vm8, %v16155_v26, %v7342_v20  ;;  %v7380_v20 = vpop.permute.xlu2 %7379  ;;  %vm16179_vm8 = vmmov %vm16170_vm0 }
 0x851   : > { %v6306_v57 = vmul.f32 0.70710677, %v6274_v9  ;;  %v5601_v61 = vsel %vm16157_vm13, %v5569_v2, %v7356_v25  ;;  %v16164_v25 = vld [vmem:[#allocation22_spill] sm:$0xff]  ;;  %v7072_v2 = vunpack.i.h.bf16 %v16158_v44  ;;  %v7386_v44 = vunpack.i.l.bf16 %v14130_v19  ;;  %vm16180_vm13 = vmmov %vm16173_vm1 }
 0x852   : > { %v5853_v11 = vpop.f32.mrf.mxu0 }
 0x853   : > { %6338 = vst.msk [vmem:[%s14049_s17 + $0x18] sm:$0xff] %vm16150_vm2, %v6306_v57  ;;  %v5854_v58 = vadd.f32 %v5853_v11, %v5741_v32  ;;  %5793 = vmatmul.f32.gmra.mxu3 %v5538_v27  ;;  %v7366_v32 = vunpack.i.l.bf16 %v14122_v12  ;;  %v16160_v57 = vld [vmem:[#allocation105_spill] sm:$0xff]  ;;  %v7377_v11 = vunpack.i.h.bf16 %v7375_v16  ;;  %v14157_v62 = vpop.permute.xlu0 %7399  ;;  %vm16174_vm2 = vmmov %vm16170_vm0 }
 0x854   : > { %v6191_v33 = vadd.f32 %v14024_v45, %v16160_v57 }
 0x855   : > { %v5967_v41 = vadd.f32 %v13799_v30, %v5854_v58  ;;  %5900 = vmatmul.f32.gmra.mxu0 %v5632_v6  ;;  %v5744_v30 = vadd.f32 %v14012_v24, %v5743_v0  ;;  %v5633_v0 = vsel %vm5515_vm15, %v5601_v61, %v7361_v56  ;;  %v5475_v58 = vsel %vm16162_vm11, %v16161_v50, %v7071_v53  ;;  %v14162_v56 = vpop.permute.xlu1 %7389  ;;  %vm16182_vm11 = vmmov %vm16173_vm1 }
 0x856   : > { %v5746_v1 = vpop.f32.mrf.mxu3  ;;  %v5507_v37 = vsel %vm16163_vm12, %v5475_v58, %v7372_v60  ;;  %v7382_v61 = vunpack.i.h.bf16 %v7380_v20  ;;  %vm16183_vm12 = vmmov %vm16170_vm0 }
 0x857   : > { %v6275_v22 = vadd.f32 %v6188_v8, %v5967_v41  ;;  %v7376_v8 = vunpack.i.l.bf16 %v7375_v16  ;;  %v5570_v41 = vsel %vm16165_vm9, %v16164_v25, %v7366_v32  ;;  %v5540_v18 = vsel %vm5515_vm15, %v5507_v37, %v7377_v11  ;;  %v14167_v16 = vpop.f32.mrf.mxu1  ;;  %v16171_v11 = vld [vmem:[#allocation20_spill] sm:$0xff]  ;;  %v14183_v58 = vpop.f32.mrf.mxu2  ;;  %v16176_v25 = vld [vmem:[#allocation47_spill] sm:$0xff]  ;;  %vm16184_vm9 = vmmov %vm16173_vm1 }
 0x858   : > { %v5602_v43 = vsel %vm16166_vm10, %v5570_v41, %v7371_v40  ;;  %v7395_v57 = vpop.permute.xlu2 %7394  ;;  %v7391_v37 = vunpack.i.l.bf16 %v14162_v56  ;;  %v6197_v41 = vadd.f32 %v14024_v45, %v16176_v25  ;;  %vm16185_vm10 = vmmov %vm16170_vm0 }
 0x859   : > { %v6307_v46 = vmul.f32 0.70710677, %v6275_v22 }
 0x85a   : > { %v5856_v9 = vpop.f32.mrf.mxu0 }
 0x85b   : > { %6339 = vst.msk [vmem:[%s14049_s17 + $0x20] sm:$0xff] %vm16159_vm6, %v6307_v46  ;;  %v5857_v31 = vadd.f32 %v5856_v9, %v5744_v30  ;;  %5796 = vmatmul.f32.gmra.mxu3 %v5539_v4  ;;  %v5634_v30 = vsel %vm5515_vm15, %v5602_v43, %v7376_v8  ;;  %v16168_v46 = vld [vmem:[#allocation93_spill] sm:$0xff]  ;;  %v7367_v9 = vunpack.i.h.bf16 %v14122_v12  ;;  %v7387_v4 = vunpack.i.h.bf16 %v14130_v19  ;;  %vm16181_vm6 = vmmov %vm16170_vm0 }
 0x85d   : > { %v5970_v13 = vadd.f32 %v13840_v59, %v5857_v31  ;;  %5903 = vmatmul.f32.gmra.mxu0 %v5633_v0  ;;  %v5747_v59 = vadd.f32 %v14012_v24, %v5746_v1  ;;  %v6194_v1 = vadd.f32 %v14024_v45, %v16168_v46  ;;  %v7381_v31 = vunpack.i.l.bf16 %v7380_v20  ;;  %v14185_v20 = vpop.permute.xlu0 %7414 }
 0x85e   : > { %v5749_v27 = vpop.f32.mrf.mxu3  ;;  %v5476_v0 = vsel %vm16169_vm5, %v15970_v14, %v7072_v2  ;;  %v5571_v50 = vsel %vm16172_vm3, %v16171_v11, %v7367_v9  ;;  %vm16188_vm5 = vmmov %vm16173_vm1 }
 0x85f   : > { %v6276_v6 = vadd.f32 %v6191_v33, %v5970_v13  ;;  %v5750_v33 = vadd.f32 %v14012_v24, %v5749_v27  ;;  %v5603_v14 = vsel %vm16174_vm2, %v5571_v50, %v7381_v31  ;;  %v16175_v27 = vld [vmem:[#allocation88_spill] sm:$0xff]  ;;  %vm16190_vm3 = vmmov %vm16174_vm2 }
 0x860   : > { %v5635_v8 = vsel %vm5515_vm15, %v5603_v14, %v7386_v44  ;;  %v7410_v44 = vpop.permute.xlu2 %7409 }
 0x861   : > { %v6308_v17 = vmul.f32 0.70710677, %v6276_v6  ;;  %v7076_v6 = vunpack.i.l.bf16 %v16175_v27 }
 0x862   : > { %v5859_v22 = vpop.f32.mrf.mxu0 }
 0x863   : > { %6340 = vst.msk [vmem:[%s14049_s17 + $0x28] sm:$0xff] %vm16167_vm7, %v6308_v17  ;;  %v5860_v26 = vadd.f32 %v5859_v22, %v5747_v59  ;;  %5799 = vmatmul.f32.gmra.mxu3 %v5540_v18  ;;  %v7397_v59 = vunpack.i.h.bf16 %v7395_v57  ;;  %v7405_v17 = vpop.permute.xlu1 %7404  ;;  %v14196_v22 = vpop.f32.mrf.mxu1  ;;  %v7402_v18 = vunpack.i.h.bf16 %v14157_v62  ;;  %v5477_v46 = vsel %vm16177_vm14, %v15980_v52, %v7076_v6  ;;  %vm16187_vm7 = vmmov %vm16173_vm1 }
 0x865   : > { %v5973_v53 = vadd.f32 %v13877_v36, %v5860_v26  ;;  %5906 = vmatmul.f32.gmra.mxu0 %v5634_v30  ;;  %v5508_v36 = vsel %vm16170_vm0, %v5476_v0, %v7382_v61  ;;  %v7401_v30 = vunpack.i.l.bf16 %v14157_v62  ;;  %v7396_v61 = vunpack.i.l.bf16 %v7395_v57  ;;  %vm16189_vm0 = vmmov %vm16173_vm1 }
 0x866   : > { %v5752_v60 = vpop.f32.mrf.mxu3  ;;  %v5541_v12 = vsel %vm5515_vm15, %v5508_v36, %v7387_v4  ;;  %v5509_v9 = vsel %vm16179_vm8, %v5477_v46, %v7397_v59  ;;  %v7077_v4 = vunpack.i.h.bf16 %v16175_v27  ;;  %v7407_v0 = vunpack.i.h.bf16 %v7405_v17  ;;  %v14217_v36 = vpop.permute.xlu0 %7429  ;;  %vm16193_vm14 = vmmov %vm16189_vm0 }
 0x867   : > { %v6277_v32 = vadd.f32 %v6194_v1, %v5973_v53  ;;  %v5572_v1 = vsel %vm16178_vm4, %v16010_v39, %v7391_v37  ;;  %v5753_v53 = vadd.f32 %v14012_v24, %v5752_v60  ;;  %v7392_v39 = vunpack.i.h.bf16 %v14162_v56  ;;  %vm16195_vm8 = vmmov %vm16189_vm0 }
 0x868   : > { %v5604_v52 = vsel %vm16181_vm6, %v5572_v1, %v7396_v61  ;;  %v6200_v57 = vadd.f32 %v14024_v45, %v14070_v54  ;;  %v5478_v11 = vsel %vm16182_vm11, %v15981_v47, %v7077_v4  ;;  %v7412_v54 = vunpack.i.h.bf16 %v7410_v44  ;;  %vm16198_vm6 = vmmov %vm16189_vm0 }
 0x869   : > { %v6309_v40 = vmul.f32 0.70710677, %v6277_v32  ;;  %v5542_v32 = vsel %vm5515_vm15, %v5509_v9, %v7402_v18  ;;  %v5636_v60 = vsel %vm5515_vm15, %v5604_v52, %v7401_v30  ;;  %v5573_v27 = vsel %vm16184_vm9, %v16027_v5, %v7392_v39  ;;  %vm16199_vm11 = vmmov %vm16189_vm0 }
 0x86a   : > { %v5862_v13 = vpop.f32.mrf.mxu0  ;;  %v7416_v47 = vunpack.i.l.bf16 %v14185_v20  ;;  %vm16201_vm9 = vmmov %vm16189_vm0 }
 0x86b   : > { %6341 = vst.msk [vmem:[%s14049_s17 + $0x30] sm:$0xff] %vm16173_vm1, %v6309_v40  ;;  %v5863_v19 = vadd.f32 %v5862_v13, %v5750_v33  ;;  %5802 = vmatmul.f32.gmra.mxu3 %v5541_v12  ;;  %v14215_v33 = vpop.f32.mrf.mxu2  ;;  %v7406_v40 = vunpack.i.l.bf16 %v7405_v17  ;;  %v7420_v50 = vpop.permute.xlu1 %7419  ;;  %vm16191_vm1 = vmmov %vm16174_vm2 }
 0x86c   : > { %v14223_v14 = vpop.f32.mrf.mxu1  ;;  %v7421_v30 = vunpack.i.l.bf16 %v7420_v50  ;;  %vm16192_vm2 = vmmov %vm16189_vm0 }
 0x86d   : > { %v5976_v43 = vadd.f32 %v13932_v55, %v5863_v19  ;;  %5909 = vmatmul.f32.gmra.mxu0 %v5635_v8  ;;  %v5510_v19 = vsel %vm16183_vm12, %v5478_v11, %v7407_v0  ;;  %v16186_v8 = vld [vmem:[#allocation104_spill] sm:$0xff]  ;;  %v7431_v11 = vunpack.i.l.bf16 %v14217_v36  ;;  %vm16194_vm4 = vmmov %vm16191_vm1 }
 0x86e   : > { %v5755_v26 = vpop.f32.mrf.mxu3  ;;  %v7081_v25 = vunpack.i.l.bf16 %v16186_v8  ;;  %v5543_v17 = vsel %vm5515_vm15, %v5510_v19, %v7412_v54  ;;  %v7445_v9 = vpop.permute.xlu0 %7444  ;;  %vm16200_vm12 = vmmov %vm16191_vm1 }
 0x86f   : > { %v6278_v2 = vadd.f32 %v6197_v41, %v5976_v43  ;;  %v5756_v6 = vadd.f32 %v14012_v24, %v5755_v26  ;;  %v7411_v41 = vunpack.i.l.bf16 %v7410_v44  ;;  %v7422_v43 = vunpack.i.h.bf16 %v7420_v50 }
 0x870   : > { %v6203_v26 = vadd.f32 %v14024_v45, %v14099_v34  ;;  %v5479_v61 = vsel %vm16188_vm5, %v15997_v7, %v7081_v25  ;;  %vm16204_vm5 = vmmov %vm16189_vm0 }
 0x871   : > { %v6310_v55 = vmul.f32 0.70710677, %v6278_v2  ;;  %v7425_v2 = vpop.permute.xlu2 %7424 }
 0x872   : > { %v5865_v31 = vpop.f32.mrf.mxu0  ;;  %v7427_v34 = vunpack.i.h.bf16 %v7425_v2  ;;  %v7426_v52 = vunpack.i.l.bf16 %v7425_v2  ;;  %v6209_v2 = vadd.f32 %v14024_v45, %v14155_v42 }
 0x873   : > { %6342 = vst.msk [vmem:[%s14049_s17 + $0x38] sm:$0xff] %vm16180_vm13, %v6310_v55  ;;  %v5866_v62 = vadd.f32 %v5865_v31, %v5753_v53  ;;  %5805 = vmatmul.f32.gmra.mxu3 %v5542_v32  ;;  %v5574_v53 = vsel %vm16189_vm0, %v16040_v28, %v7416_v47  ;;  %v14242_v55 = vpop.f32.mrf.mxu2  ;;  %v5511_v31 = vsel %vm16190_vm3, %v5479_v61, %v7422_v43  ;;  %v7435_v32 = vpop.permute.xlu1 %7434  ;;  %vm16196_vm13 = vmmov %vm16191_vm1  ;;  %v7447_v43 = vunpack.i.h.bf16 %v7445_v9 }
 0x874   : > { %v5606_v0 = vsel %vm16191_vm1, %v5574_v53, %v7421_v30  ;;  %v14248_v7 = vpop.f32.mrf.mxu1  ;;  %v5544_v39 = vsel %vm5515_vm15, %v5511_v31, %v7427_v34  ;;  %v7446_v30 = vunpack.i.l.bf16 %v7445_v9  ;;  %vm16206_vm3 = vmmov %vm16192_vm2 }
 0x875   : > { %v5979_v13 = vadd.f32 %v14082_v35, %v5866_v62  ;;  %5912 = vmatmul.f32.gmra.mxu0 %v5636_v60  ;;  %v5605_v35 = vsel %vm16185_vm10, %v5573_v27, %v7406_v40  ;;  %v7082_v62 = vunpack.i.h.bf16 %v16186_v8  ;;  %v7432_v60 = vunpack.i.h.bf16 %v14217_v36  ;;  %vm16202_vm10 = vmmov %vm16191_vm1 }
 0x876   : > { %v5758_v12 = vpop.f32.mrf.mxu3  ;;  %v5637_v5 = vsel %vm5515_vm15, %v5605_v35, %v7411_v41  ;;  %v7417_v40 = vunpack.i.h.bf16 %v14185_v20  ;;  %v5414_v36 = vpop.permute.xlu0 %5413  ;;  %v16197_v41 = vld [vmem:[#allocation69_spill] sm:$0xff] }
 0x877   : > { %v6279_v56 = vadd.f32 %v6200_v57, %v5979_v13  ;;  %v5759_v44 = vadd.f32 %v14012_v24, %v5758_v12  ;;  %v5638_v13 = vsel %vm5515_vm15, %v5606_v0, %v7426_v52  ;;  %v6206_v12 = vadd.f32 %v14024_v45, %v14128_v51 }
 0x878   : > { %v5480_v54 = vsel %vm16193_vm14, %v15998_v10, %v7082_v62  ;;  %v5575_v35 = vsel %vm16195_vm8, %v16030_v15, %v7417_v40  ;;  %v7086_v47 = vunpack.i.l.bf16 %v16197_v41 }
 0x879   : > { %v6311_v37 = vmul.f32 0.70710677, %v6279_v56  ;;  %v7437_v56 = vunpack.i.h.bf16 %v7435_v32  ;;  %v7440_v20 = vpop.permute.xlu2 %7439  ;;  %v5607_v25 = vsel %vm16196_vm13, %v5575_v35, %v7431_v11 }
 0x87a   : > { %v5868_v59 = vpop.f32.mrf.mxu0  ;;  %v5481_v53 = vsel %vm16199_vm11, %v16017_v48, %v7086_v47 }
 0x87b   : > { %6343 = vst.msk [vmem:[%s14049_s17 + $0x40] sm:$0xff] %vm16187_vm7, %v6311_v37  ;;  %v5869_v18 = vadd.f32 %v5868_v59, %v5756_v6  ;;  %5808 = vmatmul.f32.gmra.mxu3 %v5543_v17  ;;  %v5512_v6 = vsel %vm16194_vm4, %v5480_v54, %v7432_v60  ;;  %v7436_v37 = vunpack.i.l.bf16 %v7435_v32  ;;  %v14265_v51 = vpop.f32.mrf.mxu2  ;;  %v7450_v17 = vpop.permute.xlu1 %7449  ;;  %v5513_v31 = vsel %vm16200_vm12, %v5481_v53, %v7447_v43  ;;  %vm16203_vm7 = vmmov %vm16189_vm0 }
 0x87c   : > { %v5545_v59 = vsel %vm5515_vm15, %v5512_v6, %v7437_v56  ;;  %v14273_v15 = vpop.f32.mrf.mxu1  ;;  %v7451_v34 = vunpack.i.l.bf16 %v7450_v17  ;;  %vm16205_vm0 = vmmov %vm16191_vm1 }
 0x87d   : > { %v5982_v46 = vadd.f32 %v14109_v23, %v5869_v18  ;;  %5915 = vmatmul.f32.gmra.mxu0 %v5637_v5  ;;  %v7441_v5 = vunpack.i.l.bf16 %v7440_v20  ;;  %vm16207_vm1 = vmmov %vm16192_vm2 }
 0x87e   : > { %v5761_v1 = vpop.f32.mrf.mxu3  ;;  %v7460_v52 = vpop.permute.xlu0 %7459  ;;  %vm16209_vm14 = vmmov %vm16207_vm1 }
 0x87f   : > { %v6280_v4 = vadd.f32 %v6203_v26, %v5982_v46  ;;  %v5639_v26 = vsel %vm5515_vm15, %v5607_v25, %v7436_v37  ;;  %v5576_v32 = vsel %vm16201_vm9, %v16044_v29, %v7441_v5  ;;  %v7462_v43 = vunpack.i.h.bf16 %v7460_v52  ;;  %vm16210_vm4 = vmmov %vm16205_vm0 }
 0x880   : > { %v5608_v9 = vsel %vm16202_vm10, %v5576_v32, %v7446_v30  ;;  %vm16211_vm8 = vmmov %vm16207_vm1 }
 0x881   : > { %v6312_v23 = vmul.f32 0.70710677, %v6280_v4  ;;  %v5640_v29 = vsel %vm5515_vm15, %v5608_v9, %v7451_v34  ;;  %vm16212_vm13 = vmmov %vm16207_vm1 }
 0x882   : > { %v5871_v28 = vpop.f32.mrf.mxu0  ;;  %vm16214_vm11 = vmmov %vm16207_vm1 }
 0x883   : > { %6344 = vst.msk [vmem:[%s14049_s17 + $0x48] sm:$0xff] %vm16192_vm2, %v6312_v23  ;;  %v5872_v57 = vadd.f32 %v5871_v28, %v5759_v44  ;;  %5811 = vmatmul.f32.gmra.mxu3 %v5544_v39  ;;  %v14287_v62 = vpop.f32.mrf.mxu2  ;;  %v7087_v28 = vunpack.i.h.bf16 %v16197_v41  ;;  %v6212_v39 = vadd.f32 %v14024_v45, %v14183_v58  ;;  %v5224_v35 = vpop.permute.xlu1 %5223  ;;  %vm16208_vm2 = vmmov %vm16205_vm0 }
 0x884   : > { %v14296_v40 = vpop.f32.mrf.mxu1  ;;  %vm16215_vm12 = vmmov %vm16207_vm1 }
 0x885   : > { %v5985_v50 = vadd.f32 %v14138_v38, %v5872_v57  ;;  %5918 = vmatmul.f32.gmra.mxu0 %v5638_v13  ;;  %v5762_v38 = vadd.f32 %v14012_v24, %v5761_v1  ;;  %v7452_v1 = vunpack.i.h.bf16 %v7450_v17  ;;  %v7442_v13 = vunpack.i.h.bf16 %v7440_v20  ;;  %vm16217_vm9 = vmmov %vm16207_vm1 }
 0x886   : > { %v5764_v19 = vpop.f32.mrf.mxu3  ;;  %v5578_v17 = vsel %vm16209_vm14, %v13404_v21, %v5224_v35  ;;  %vm16218_vm10 = vmmov %vm16207_vm1 }
 0x887   : > { %v6281_v27 = vadd.f32 %v6206_v12, %v5985_v50  ;;  %v5765_v44 = vadd.f32 %v14012_v24, %v5764_v19  ;;  %v5546_v0 = vsel %vm5515_vm15, %v5513_v31, %v7452_v1  ;;  %v7461_v12 = vunpack.i.l.bf16 %v7460_v52  ;;  %v5418_v31 = vpop.permute.xlu0 %5417 }
 0x888   : > { %v5482_v19 = vsel %vm16204_vm5, %v13104_v63, %v7087_v28  ;;  %v5577_v37 = vsel %vm16206_vm3, %v16047_v3, %v7442_v13  ;;  %vm16220_vm5 = vmmov %vm16207_vm1 }
 0x889   : > { %v6313_v8 = vmul.f32 0.70710677, %v6281_v27 }
 0x88a   : > { %v5874_v10 = vpop.f32.mrf.mxu0 }
 0x88b   : > { %6345 = vst.msk [vmem:[%s14049_s17 + $0x50] sm:$0xff] %vm16198_vm6, %v6313_v8  ;;  %v5875_v18 = vadd.f32 %v5874_v10, %v5762_v38  ;;  %5814 = vmatmul.f32.gmra.mxu3 %v5545_v59  ;;  %v6215_v8 = vadd.f32 %v14024_v45, %v14215_v33  ;;  %v6226_v25 = vpop.f32.mrf.mxu2  ;;  %v5226_v30 = vpop.permute.xlu1 %5225  ;;  %vm16213_vm6 = vmmov %vm16205_vm0 }
 0x88c   : > { %v6005_v59 = vpop.f32.mrf.mxu1  ;;  %v5579_v53 = vsel %vm16212_vm13, %v16080_v49, %v5226_v30 }
 0x88d   : > { %v5988_v46 = vadd.f32 %v14167_v16, %v5875_v18  ;;  %5921 = vmatmul.f32.gmra.mxu0 %v5639_v26  ;;  %v7455_v16 = vpop.permute.xlu2 %7454 }
 0x88e   : > { %v5767_v61 = vpop.f32.mrf.mxu3  ;;  %v7457_v60 = vunpack.i.h.bf16 %v7455_v16  ;;  %v7456_v50 = vunpack.i.l.bf16 %v7455_v16  ;;  %v6221_v16 = vadd.f32 %v14024_v45, %v14265_v51 }
 0x88f   : > { %v6282_v4 = vadd.f32 %v6209_v2, %v5988_v46  ;;  %v5768_v54 = vadd.f32 %v14012_v24, %v5767_v61  ;;  %v6218_v2 = vadd.f32 %v14024_v45, %v14242_v55 }
 0x890   : > { %v5514_v58 = vsel %vm16205_vm0, %v5482_v19, %v7457_v60  ;;  %v5609_v38 = vsel %vm16208_vm2, %v5577_v37, %v7456_v50  ;;  %vm16221_vm0 = vmmov %vm16207_vm1 }
 0x891   : > { %v6314_v42 = vmul.f32 0.70710677, %v6282_v4  ;;  %v5641_v63 = vsel %vm5515_vm15, %v5609_v38, %v5414_v36  ;;  %vm16222_vm3 = vmmov %vm16221_vm0 }
 0x892   : > { %v5877_v23 = vpop.f32.mrf.mxu0  ;;  %vm16224_vm2 = vmmov %vm16221_vm0 }
 0x893   : > { %6346 = vst.msk [vmem:[%s14049_s17 + $0x58] sm:$0xff] %vm16203_vm7, %v6314_v42  ;;  %v5878_v48 = vadd.f32 %v5877_v23, %v5765_v44  ;;  %5817 = vmatmul.f32.gmra.mxu3 %v5546_v0  ;;  %v6229_v1 = vpop.f32.mrf.mxu2  ;;  %vm16219_vm7 = vmmov %vm16207_vm1 }
 0x894   : > { %v6008_v44 = vpop.f32.mrf.mxu1  ;;  %vm16225_vm14 = vmmov %vm16221_vm0 }
 0x895   : > { %v5991_v57 = vadd.f32 %v14196_v22, %v5878_v48  ;;  %5924 = vmatmul.f32.gmra.mxu0 %v5640_v29  ;;  %v5547_v22 = vsel %vm5515_vm15, %v5514_v58, %v7461_v12  ;;  %v5320_v47 = vpop.permute.xlu2 %5319  ;;  %vm16228_vm13 = vmmov %vm16221_vm0 }
 0x896   : > { %v5770_v11 = vpop.f32.mrf.mxu3  ;;  %v5610_v36 = vsel %vm16210_vm4, %v5578_v17, %v5320_v47  ;;  %vm16226_vm4 = vmmov %vm16221_vm0 }
 0x897   : > { %v6283_v56 = vadd.f32 %v6212_v39, %v5991_v57  ;;  %v5771_v18 = vadd.f32 %v14012_v24, %v5770_v11  ;;  %v6224_v57 = vadd.f32 %v14024_v45, %v14287_v62 }
 0x899   : > { %v6315_v27 = vmul.f32 0.70710677, %v6283_v56 }
 0x89a   : > { %v5880_v6 = vpop.f32.mrf.mxu0 }
 0x89b   : > { %6347 = vst.msk [vmem:[%s14049_s17 + $0x60] sm:$0xff] %vm16207_vm1, %v6315_v27  ;;  %v5881_v20 = vadd.f32 %v5880_v6, %v5768_v54  ;;  %5820 = vmatmul.f32.gmra.mxu3 %v5547_v22  ;;  %v6232_v52 = vpop.f32.mrf.mxu2  ;;  %v6227_v54 = vadd.f32 %v14024_v45, %v6226_v25 }
 0x89c   : > { %v6011_v60 = vpop.f32.mrf.mxu1  ;;  %v6233_v17 = vadd.f32 %v14024_v45, %v6232_v52 }
 0x89d   : > { %v5994_v41 = vadd.f32 %v14223_v14, %v5881_v20  ;;  %5927 = vmatmul.f32.gmra.mxu0 %v5641_v63  ;;  %v5642_v14 = vsel %vm5515_vm15, %v5610_v36, %v7462_v43  ;;  %v5322_v4 = vpop.permute.xlu2 %5321  ;;  %v6230_v20 = vadd.f32 %v14024_v45, %v6229_v1 }
 0x89e   : > { %v5773_v10 = vpop.f32.mrf.mxu3  ;;  %v5611_v55 = vsel %vm16213_vm6, %v5579_v53, %v5322_v4  ;;  %vm16229_vm6 = vmmov %vm16221_vm0 }
 0x89f   : > { %v6284_v3 = vadd.f32 %v6215_v8, %v5994_v41  ;;  %v5774_v34 = vadd.f32 %v14012_v24, %v5773_v10  ;;  %v5643_v9 = vsel %vm5515_vm15, %v5611_v55, %v5418_v31  ;;  %vm16216_vm15 = vmmov %vm16207_vm1 }
 0x8a0   : > { %vm16223_vm1 = vmmov %vm16221_vm0 }
 0x8a1   : > { %v6316_v5 = vmul.f32 0.70710677, %v6284_v3 }
 0x8a2   : > { %v5883_v26 = vpop.f32.mrf.mxu0 }
 0x8a3   : > { %6348 = vst.msk [vmem:[%s14049_s17 + $0x68] sm:$0xff] %vm16211_vm8, %v6316_v5  ;;  %v5884_v33 = vadd.f32 %v5883_v26, %v5771_v18  ;;  %v6235_v56 = vpop.f32.mrf.mxu2  ;;  %vm16227_vm8 = vmmov %vm16221_vm0 }
 0x8a4   : > { %v6014_v58 = vpop.f32.mrf.mxu1 }
 0x8a5   : > { %v5997_v46 = vadd.f32 %v14248_v7, %v5884_v33  ;;  %5930 = vmatmul.f32.gmra.mxu0 %v5642_v14 }
 0x8a6   : > { %v5776_v21 = vpop.f32.mrf.mxu3 }
 0x8a7   : > { %v6285_v61 = vadd.f32 %v6218_v2, %v5997_v46  ;;  %v5777_v48 = vadd.f32 %v14012_v24, %v5776_v21  ;;  %v6236_v46 = vadd.f32 %v14024_v45, %v6235_v56 }
 0x8a9   : > { %v6317_v32 = vmul.f32 0.70710677, %v6285_v61 }
 0x8aa   : > { %v5886_v42 = vpop.f32.mrf.mxu0 }
 0x8ab   : > { %6349 = vst.msk [vmem:[%s14049_s17 + $0x70] sm:$0xff] %vm16214_vm11, %v6317_v32  ;;  %v5887_v7 = vadd.f32 %v5886_v42, %v5774_v34  ;;  %v6238_v38 = vpop.f32.mrf.mxu2  ;;  %vm16231_vm11 = vmmov %vm16221_vm0 }
 0x8ac   : > { %v6017_v25 = vpop.f32.mrf.mxu1  ;;  %v6239_v42 = vadd.f32 %v14024_v45, %v6238_v38 }
 0x8ad   : > { %v6000_v49 = vadd.f32 %v14273_v15, %v5887_v7  ;;  %5933 = vmatmul.f32.gmra.mxu0 %v5643_v9 }
 0x8ae   : > { %v5779_v23 = vpop.f32.mrf.mxu3 }
 0x8af   : > { %v6286_v0 = vadd.f32 %v6221_v16, %v6000_v49  ;;  %v5780_v12 = vadd.f32 %v14012_v24, %v5779_v23 }
 0x8b1   : > { %v6318_v28 = vmul.f32 0.70710677, %v6286_v0 }
 0x8b2   : > { %v5889_v29 = vpop.f32.mrf.mxu0 }
 0x8b3   : > { %6350 = vst.msk [vmem:[%s14049_s17 + $0x78] sm:$0xff] %vm16215_vm12, %v6318_v28  ;;  %v5890_v39 = vadd.f32 %v5889_v29, %v5777_v48  ;;  %v6241_v5 = vpop.f32.mrf.mxu2  ;;  %vm16233_vm12 = vmmov %vm16221_vm0 }
 0x8b4   : > { %v6020_v14 = vpop.f32.mrf.mxu1  ;;  %v6242_v48 = vadd.f32 %v14024_v45, %v6241_v5 }
 0x8b5   : > { %v6003_v51 = vadd.f32 %v14296_v40, %v5890_v39 }
 0x8b6   : > { %v5782_v13 = vpop.f32.mrf.mxu3 }
 0x8b7   : > { %v6287_v15 = vadd.f32 %v6224_v57, %v6003_v51  ;;  %v5783_v40 = vadd.f32 %v14012_v24, %v5782_v13 }
 0x8b9   : > { %v6319_v11 = vmul.f32 0.70710677, %v6287_v15 }
 0x8ba   : > { %v5892_v50 = vpop.f32.mrf.mxu0 }
 0x8bb   : > { %6351 = vst.msk [vmem:[%s14049_s17 + $0x80] sm:$0xff] %vm16216_vm15, %v6319_v11  ;;  %v5893_v19 = vadd.f32 %v5892_v50, %v5780_v12  ;;  %v6244_v53 = vpop.f32.mrf.mxu2 }
 0x8bc   : > { %v6245_v12 = vadd.f32 %v14024_v45, %v6244_v53 }
 0x8bd   : > { %v6006_v27 = vadd.f32 %v6005_v59, %v5893_v19 }
 0x8be   : > { %v5785_v6 = vpop.f32.mrf.mxu3 }
 0x8bf   : > { %v6288_v62 = vadd.f32 %v6227_v54, %v6006_v27  ;;  %v5786_v47 = vadd.f32 %v14012_v24, %v5785_v6 }
 0x8c1   : > { %v6320_v22 = vmul.f32 0.70710677, %v6288_v62 }
 0x8c2   : > { %v5895_v37 = vpop.f32.mrf.mxu0 }
 0x8c3   : > { %6352 = vst.msk [vmem:[%s14049_s17 + $0x88] sm:$0xff] %vm16217_vm9, %v6320_v22  ;;  %v5896_v35 = vadd.f32 %v5895_v37, %v5783_v40  ;;  %v6247_v0 = vpop.f32.mrf.mxu2 }
 0x8c4   : > { %v6248_v40 = vadd.f32 %v14024_v45, %v6247_v0 }
 0x8c5   : > { %v6009_v63 = vadd.f32 %v6008_v44, %v5896_v35  ;;  %v6023_v44 = vpop.f32.mrf.mxu1 }
 0x8c6   : > { %v5788_v8 = vpop.f32.mrf.mxu3 }
 0x8c7   : > { %v6289_v41 = vadd.f32 %v6230_v20, %v6009_v63  ;;  %v5789_v36 = vadd.f32 %v14012_v24, %v5788_v8 }
 0x8c9   : > { %v6321_v10 = vmul.f32 0.70710677, %v6289_v41 }
 0x8ca   : > { %v5898_v3 = vpop.f32.mrf.mxu0 }
 0x8cb   : > { %6353 = vst.msk [vmem:[%s14049_s17 + $0x90] sm:$0xff] %vm16218_vm10, %v6321_v10  ;;  %v5899_v59 = vadd.f32 %v5898_v3, %v5786_v47  ;;  %v6250_v11 = vpop.f32.mrf.mxu2 }
 0x8cc   : > { %v6251_v47 = vadd.f32 %v14024_v45, %v6250_v11 }
 0x8cd   : > { %v6012_v43 = vadd.f32 %v6011_v60, %v5899_v59  ;;  %v6026_v29 = vpop.f32.mrf.mxu1 }
 0x8ce   : > { %v5791_v18 = vpop.f32.mrf.mxu3 }
 0x8cf   : > { %v6290_v26 = vadd.f32 %v6233_v17, %v6012_v43  ;;  %v5792_v4 = vadd.f32 %v14012_v24, %v5791_v18  ;;  %v7733_v43 = vld [vmem:[%s16107_s0] ss:$0 sm:$0xff] }
 0x8d1   : > { %v6322_v33 = vmul.f32 0.70710677, %v6290_v26 }
 0x8d2   : > { %v5901_v2 = vpop.f32.mrf.mxu0 }
 0x8d3   : > { %6354 = vst.msk [vmem:[%s14049_s17 + $0x98] sm:$0xff] %vm16219_vm7, %v6322_v33  ;;  %v5902_v30 = vadd.f32 %v5901_v2, %v5789_v36  ;;  %v6253_v35 = vpop.f32.mrf.mxu2 }
 0x8d4   : > { %v6254_v33 = vadd.f32 %v14024_v45, %v6253_v35 }
 0x8d5   : > { %v6015_v21 = vadd.f32 %v6014_v58, %v5902_v30  ;;  %v6029_v54 = vpop.f32.mrf.mxu1 }
 0x8d6   : > { %v5794_v1 = vpop.f32.mrf.mxu3 }
 0x8d7   : > { %v6291_v61 = vadd.f32 %v6236_v46, %v6015_v21  ;;  %v5795_v16 = vadd.f32 %v14012_v24, %v5794_v1 }
 0x8d9   : > { %v6323_v31 = vmul.f32 0.70710677, %v6291_v61 }
 0x8da   : > { %v5904_v34 = vpop.f32.mrf.mxu0 }
 0x8db   : > { %6355 = vst.msk [vmem:[%s14049_s17 + $0xa0] sm:$0xff] %vm16220_vm5, %v6323_v31  ;;  %v5905_v32 = vadd.f32 %v5904_v34, %v5792_v4  ;;  %v6256_v17 = vpop.f32.mrf.mxu2  ;;  %v7734_v4 = vld [vmem:[%s16114_s30] ss:$0 sm:$0xff] }
 0x8dc   : > { %v6257_v31 = vadd.f32 %v7734_v4, %v6256_v17 }
 0x8dd   : > { %v6018_v55 = vadd.f32 %v6017_v25, %v5905_v32  ;;  %v6032_v8 = vpop.f32.mrf.mxu1 }
 0x8de   : > { %v5797_v7 = vpop.f32.mrf.mxu3 }
 0x8df   : > { %v6292_v9 = vadd.f32 %v6239_v42, %v6018_v55  ;;  %v5798_v57 = vadd.f32 %v14012_v24, %v5797_v7 }
 0x8e1   : > { %v6324_v49 = vmul.f32 0.70710677, %v6292_v9 }
 0x8e2   : > { %v5907_v23 = vpop.f32.mrf.mxu0 }
 0x8e3   : > { %6356 = vst.msk [vmem:[%s14049_s17 + $0xa8] sm:$0xff] %vm16221_vm0, %v6324_v49  ;;  %v5908_v52 = vadd.f32 %v5907_v23, %v5795_v16  ;;  %v6259_v61 = vpop.f32.mrf.mxu2 }
 0x8e4   : > { %v6260_v16 = vadd.f32 %v7734_v4, %v6259_v61 }
 0x8e5   : > { %v6021_v28 = vadd.f32 %v6020_v14, %v5908_v52  ;;  %v6035_v36 = vpop.f32.mrf.mxu1 }
 0x8e6   : > { %v5800_v39 = vpop.f32.mrf.mxu3 }
 0x8e7   : > { %v6293_v60 = vadd.f32 %v6242_v48, %v6021_v28  ;;  %v5801_v27 = vadd.f32 %v14012_v24, %v5800_v39 }
 0x8e9   : > { %v6325_v51 = vmul.f32 0.70710677, %v6293_v60 }
 0x8ea   : > { %v5910_v13 = vpop.f32.mrf.mxu0 }
 0x8eb   : > { %6357 = vst.msk [vmem:[%s14049_s17 + $0xb0] sm:$0xff] %vm16222_vm3, %v6325_v51  ;;  %v5911_v15 = vadd.f32 %v5910_v13, %v5798_v57  ;;  %v6262_v49 = vpop.f32.mrf.mxu2 }
 0x8ec   : > { %v6263_v57 = vadd.f32 %v7734_v4, %v6262_v49 }
 0x8ed   : > { %v6024_v50 = vadd.f32 %v6023_v44, %v5911_v15  ;;  %v6038_v32 = vpop.f32.mrf.mxu1 }
 0x8ee   : > { %v5803_v56 = vpop.f32.mrf.mxu3 }
 0x8ef   : > { %v6294_v19 = vadd.f32 %v6245_v12, %v6024_v50  ;;  %v5804_v38 = vadd.f32 %v14012_v24, %v5803_v56 }
 0x8f1   : > { %v6326_v58 = vmul.f32 0.70710677, %v6294_v19 }
 0x8f2   : > { %v5913_v6 = vpop.f32.mrf.mxu0 }
 0x8f3   : > { %6358 = vst.msk [vmem:[%s14049_s17 + $0xb8] sm:$0xff] %vm16223_vm1, %v6326_v58  ;;  %v5914_v62 = vadd.f32 %v5913_v6, %v5801_v27  ;;  %v6265_v13 = vpop.f32.mrf.mxu2 }
 0x8f5   : > { %v6027_v22 = vadd.f32 %v6026_v29, %v5914_v62  ;;  %v6041_v52 = vpop.f32.mrf.mxu1 }
 0x8f6   : > { %v5806_v37 = vpop.f32.mrf.mxu3 }
 0x8f7   : > { %v6295_v20 = vadd.f32 %v6248_v40, %v6027_v22  ;;  %v5807_v18 = vadd.f32 %v7733_v43, %v5806_v37 }
 0x8f9   : > { %v6327_v63 = vmul.f32 0.70710677, %v6295_v20 }
 0x8fa   : > { %v5916_v41 = vpop.f32.mrf.mxu0 }
 0x8fb   : > { %6359 = vst.msk [vmem:[%s14049_s17 + $0xc0] sm:$0xff] %vm16224_vm2, %v6327_v63  ;;  %v5917_v25 = vadd.f32 %v5916_v41, %v5804_v38  ;;  %v6268_v62 = vpop.f32.mrf.mxu2 }
 0x8fc   : > { %v6269_v38 = vadd.f32 %v7734_v4, %v6268_v62 }
 0x8fd   : > { %v6030_v10 = vadd.f32 %v6029_v54, %v5917_v25  ;;  %v6044_v12 = vpop.f32.mrf.mxu1  ;;  %v6266_v54 = vadd.f32 %v7734_v4, %v6265_v13 }
 0x8fe   : > { %v5809_v3 = vpop.f32.mrf.mxu3 }
 0x8ff   : > { %v6296_v59 = vadd.f32 %v6251_v47, %v6030_v10  ;;  %v5810_v46 = vadd.f32 %v7733_v43, %v5809_v3 }
 0x901   : > { %v6328_v5 = vmul.f32 0.70710677, %v6296_v59 }
 0x902   : > { %v5919_v24 = vpop.f32.mrf.mxu0 }
 0x903   : > { %6360 = vst.msk [vmem:[%s14049_s17 + $0xc8] sm:$0xff] %vm16225_vm14, %v6328_v5  ;;  %v5920_v26 = vadd.f32 %v5919_v24, %v5807_v18 }
 0x905   : > { %v6033_v14 = vadd.f32 %v6032_v8, %v5920_v26  ;;  %v6047_v35 = vpop.f32.mrf.mxu1 }
 0x906   : > { %v5812_v30 = vpop.f32.mrf.mxu3 }
 0x907   : > { %v6297_v2 = vadd.f32 %v6254_v33, %v6033_v14  ;;  %v5813_v44 = vadd.f32 %v7733_v43, %v5812_v30 }
 0x909   : > { %v6329_v21 = vmul.f32 0.70710677, %v6297_v2 }
 0x90a   : > { %v5922_v1 = vpop.f32.mrf.mxu0 }
 0x90b   : > { %6361 = vst.msk [vmem:[%s14049_s17 + $0xd0] sm:$0xff] %vm16226_vm4, %v6329_v21  ;;  %v5923_v53 = vadd.f32 %v5922_v1, %v5810_v46 }
 0x90d   : > { %v6036_v34 = vadd.f32 %v6035_v36, %v5923_v53 }
 0x90e   : > { %v5815_v55 = vpop.f32.mrf.mxu3 }
 0x90f   : > { %v6298_v45 = vadd.f32 %v6257_v31, %v6036_v34  ;;  %v5816_v48 = vadd.f32 %v7733_v43, %v5815_v55 }
 0x911   : > { %v6330_v42 = vmul.f32 0.70710677, %v6298_v45 }
 0x912   : > { %v5925_v7 = vpop.f32.mrf.mxu0 }
 0x913   : > { %6362 = vst.msk [vmem:[%s14049_s17 + $0xd8] sm:$0xff] %vm16227_vm8, %v6330_v42  ;;  %v5926_v9 = vadd.f32 %v5925_v7, %v5813_v44 }
 0x915   : > { %v6039_v23 = vadd.f32 %v6038_v32, %v5926_v9 }
 0x916   : > { %v5818_v60 = vpop.f32.mrf.mxu3 }
 0x917   : > { %v6299_v0 = vadd.f32 %v6260_v16, %v6039_v23  ;;  %v5819_v11 = vadd.f32 %v7733_v43, %v5818_v60 }
 0x919   : > { %v6331_v28 = vmul.f32 0.70710677, %v6299_v0 }
 0x91a   : > { %v5928_v29 = vpop.f32.mrf.mxu0 }
 0x91b   : > { %6363 = vst.msk [vmem:[%s14049_s17 + $0xe0] sm:$0xff] %vm16228_vm13, %v6331_v28  ;;  %v5929_v39 = vadd.f32 %v5928_v29, %v5816_v48 }
 0x91d   : > { %v6042_v51 = vadd.f32 %v6041_v52, %v5929_v39 }
 0x91e   : > { %v5821_v58 = vpop.f32.mrf.mxu3 }
 0x91f   : > { %v6300_v15 = vadd.f32 %v6263_v57, %v6042_v51  ;;  %v5822_v40 = vadd.f32 %v7733_v43, %v5821_v58 }
 0x921   : > { %v6332_v50 = vmul.f32 0.70710677, %v6300_v15 }
 0x922   : > { %v5931_v56 = vpop.f32.mrf.mxu0 }
 0x923   : > { %6364 = vst.msk [vmem:[%s14049_s17 + $0xe8] sm:$0xff] %vm16229_vm6, %v6332_v50  ;;  %v5932_v19 = vadd.f32 %v5931_v56, %v5819_v11 }
 0x925   : > { %v6045_v27 = vadd.f32 %v6044_v12, %v5932_v19 }
 0x927   : > { %v6301_v6 = vadd.f32 %v6266_v54, %v6045_v27 }
 0x929   : > { %v6333_v22 = vmul.f32 0.70710677, %v6301_v6 }
 0x92a   : > { %v5934_v37 = vpop.f32.mrf.mxu0 }
 0x92b   : > { %6365 = vst.msk [vmem:[%s14049_s17 + $0xf0] sm:$0xff] %vm16231_vm11, %v6333_v22  ;;  %v5935_v20 = vadd.f32 %v5934_v37, %v5822_v40 }
 0x92d   : > { %v6048_v63 = vadd.f32 %v6047_v35, %v5935_v20 }
 0x92f   : > { %v6302_v8 = vadd.f32 %v6269_v38, %v6048_v63 }
 0x931   : > { %v6334_v41 = vmul.f32 0.70710677, %v6302_v8 }
 0x933   : > { %6366 = vst.msk [vmem:[%s14049_s17 + $0xf8] sm:$0xff] %vm16233_vm12, %v6334_v41 }
 0x934   : > { %7792 = shalt.err (!%p7789_p7)
}
 0x935   : > { %s7840_s26 = smov 128   ;;  %s7841_s17 = smov 8  }
 0x936   : > { %6705 = dma.vmem_to_hbm [thread:$0]  (%p7977_p11), %s6381_s23, 4096, %s6383_s18, %s6368_s25, %s7840_s26, %s7840_s26, %s7841_s17  }
 0x937 PF: > { %s16234_s0 = sld [smem:[#allocation8_spill]]  ;;  %p16236_p5 = scmp.ge.s32.totalorder %s7831_s24, 2 }
 0x939   : > { %p6712_p8 = pnand %p16236_p5, %p7981_p12 }
 0x93b   : > { %p6713_p10 = pneg %p6712_p8 }
 0x93d   : > { %s6397_s2 = sand.u32 1, %s16234_s0  }
 0x93e   : > { %s6398_s29 = scalar_lea.sflag [#allocation4], %s6397_s2 }
 0x93f   : > { %7814 = dma.done.wait (%p6713_p10), %s6398_s29, 4096  }
 0x940   : > { %7816 = vsyncadd (%p6713_p10), %s6398_s29, 4294963200  ;;  %s16237_s24 = sld [smem:[#allocation10_spill]]  ;;  %s16240_s21 = smov %s7823_s22 }
 0x941   : > { %s16238_s27 = sld [smem:[#allocation9_spill]] }
 0x942   : > { %s16239_s23 = sld [smem:[#allocation11_spill]] }
 0x946   : > { %p29_p2 = scmp.ge.s32.totalorder %s16237_s24, 4  }
 0x947   : > { %s16241_s22 = smov %s16238_s27 }
 0x948   :  { %31 = sbr.rel (!%p29_p2) target bundleno = 12 (0xc), region = 132 }
 0x94d   :  { %6404 = vsyncpa [#allocation3], 1 }
 0x94e   :  { %6406 = vsyncpa [#allocation3 + $0x1], 1 }
 0x94f   :  { %6407 = vsyncpa [#allocation4], 1 }
 0x950   :  { %6409 = vsyncpa [#allocation4 + $0x1], 1 }

</bundles_post_ra>
